<compile_context>
chip_gen: v6e
topology: v6e:2x2x1
jax: 0.10.0
libtpu: 0.0.40
codegen_flags: <defaults>
</compile_context>

<pallas_src>
import functools

import jax
import jax.numpy as jnp
from jax.experimental import pallas as pl
from jax.experimental.pallas import tpu as pltpu


CFG = dict(in_ch=3, dim=16, n_blocks=2, upscaling_factor=2, kernel_size=5,
           split_ratio=0.25, use_ea=True, norm_groups=4)


# -----------------------------------------------------------------------------
# In-kernel math helpers (f32 VPU/EUP)
# -----------------------------------------------------------------------------
def _mish(x):
    # mish(x) = x * tanh(softplus(x)) = x * t(t+2) / (t(t+2)+2), t = e^x
    t = jnp.exp(jnp.minimum(x, 20.0))          # for x > 20, mish(x) == x anyway
    num = t * (t + 2.0)
    return x * num * pl.reciprocal(num + 2.0, approx=True)


def _sigmoid(x):
    x = jnp.clip(x, -30.0, 30.0)
    return pl.reciprocal(1.0 + jnp.exp(-x), approx=True)


# -----------------------------------------------------------------------------
# Host-side weight prep: (K,K,Cin,Cout) HWIO -> (Cout, K*K*Cin), tap-major /
# channel-minor columns (matches the transposed im2col row order), bf16 for MXU.
# -----------------------------------------------------------------------------
def _flatten_wT(w_hwio):
    kh, kw, cin, cout = w_hwio.shape
    return jnp.transpose(w_hwio.reshape(kh * kw * cin, cout))


def _prep_weights(params, cfg):
    dim, in_ch = cfg["dim"], cfg["in_ch"]
    bf16 = jnp.bfloat16
    blocks = params["blocks"]

    def stack_w(key):
        return jnp.stack([_flatten_wT(b[key]) for b in blocks])

    def stack_b(key):
        return jnp.stack([b[key].reshape(-1, 1) for b in blocks])

    # pad feat_in input channels (3 -> dim) so its im2col rows are tile aligned
    fin_w = jnp.pad(params["feat_in_w"], ((0, 0), (0, 0), (0, dim - in_ch), (0, 0)))
    return dict(
        wfi=_flatten_wT(fin_w).astype(bf16),
        bfi=params["feat_in_b"].reshape(-1, 1),
        w1=stack_w("dccm1_w").astype(bf16), b1=stack_b("dccm1_b"),
        w2=stack_w("dccm2_w").astype(bf16), b2=stack_b("dccm2_b"),
        wlk=stack_w("lk_w"), blk=stack_b("lk_b"),            # f32: VPU FMA path
        wea=stack_w("ea_w").astype(bf16), bea=stack_b("ea_b"),
        wrf=stack_w("refine_w").astype(bf16), brf=stack_b("refine_b"),
        gam=stack_b("norm_gamma"), bet=stack_b("norm_beta"),
        wfo=_flatten_wT(params["feat_out_w"]).astype(bf16),
        bfo=params["feat_out_b"].reshape(-1, 1),
    )


# -----------------------------------------------------------------------------
# Fused network kernel: feat_in -> n_blocks x PLKBlock -> feat_out (+repeat add)
# -----------------------------------------------------------------------------
def _fused_forward(x_cm, w, cfg, H, W):
    """x_cm: (N, dim, H*W) f32, channel-padded input, feature-major (lane-dense)."""
    N, C, HW = x_cm.shape
    assert HW == H * W
    nb = cfg["n_blocks"]
    G = cfg["norm_groups"]
    cg = C // G
    Klk = cfg["kernel_size"]
    plk = Klk // 2
    pdim = int(C * cfg["split_ratio"])
    use_ea = cfg["use_ea"]
    in_ch = cfg["in_ch"]
    s2 = cfg["upscaling_factor"] ** 2
    out_c = in_ch * s2
    inv_n = 1.0 / float(HW * cg)
    eps = 1e-5

    # Flat H-padded halo buffer geometry: padded-image row r / col c lives at
    # buffer index lead + r*W + c; the interior (rows p..p+H-1) is written at
    # [interior, interior+HW) which is 128-lane aligned; tap (ky,kx) reads
    # [base + ky*W + kx, ... + HW) and a per-kx column mask kills row wraparound.
    def geom(p):
        lead = (-(p * W)) % 128
        if lead < p:
            lead += 128
        return lead - p, lead + p * W, lead + 2 * p * W + p + HW  # base, interior, len

    base1, int1, L1 = geom(1)
    baselk, intlk, Llk = geom(plk)

    def kernel(x_ref, wfi_ref, bfi_ref,
               w1_ref, b1_ref, w2_ref, b2_ref,
               wlk_ref, blkb_ref, wea_ref, bea_ref,
               wrf_ref, brf_ref, gam_ref, bet_ref,
               wfo_ref, bfo_ref,
               o_ref,
               act, buf1, buf2, buflk, hbuf, patches):
        j = pl.program_id(1)

        # per-kx column validity masks (tiny, recomputed per step)
        col = jax.lax.broadcasted_iota(jnp.int32, (1, HW), 1) % W

        def col_mask(kx, p):
            if kx == p:
                return None
            return jnp.where((col >= p - kx) & (col < W + p - kx), 1.0, 0.0)

        masks3 = [col_mask(kx, 1) for kx in range(3)]
        masks_lk = [col_mask(kx, plk) for kx in range(Klk)]

        def conv_mm(buf, wT, bias, masks, K, Cin, base):
            # transposed im2col: (K*K*Cin, HW) bf16, full-lane row stores, then
            # ONE bf16 MXU matmul with f32 accumulation.
            for ky in range(K):
                for kx in range(K):
                    t = ky * K + kx
                    src = buf[:, base + ky * W + kx: base + ky * W + kx + HW]
                    if masks[kx] is not None:
                        src = src * masks[kx]
                    patches[t * Cin:(t + 1) * Cin, :] = src.astype(patches.dtype)
            out = jnp.dot(wT, patches[0:K * K * Cin, :],
                          preferred_element_type=jnp.float32)
            return out + bias

        # ---- first block step of each image: zero halos ONCE, feat_in conv ----
        @pl.when(j == 0)
        def _():
            buf1[...] = jnp.zeros(buf1.shape, buf1.dtype)
            buf2[...] = jnp.zeros(buf2.shape, buf2.dtype)
            buflk[...] = jnp.zeros(buflk.shape, buflk.dtype)
            buf1[:, int1:int1 + HW] = x_ref[0]
            act[...] = conv_mm(buf1, wfi_ref[...], bfi_ref[...], masks3, 3, C, base1)

        # ---- PLKBlock j (activation stays resident in VMEM across blocks) ----
        xs = act[...]                                      # (C, HW) block input / skip

        # DCCM: conv3x3 -> Mish -> conv3x3
        buf1[:, int1:int1 + HW] = xs
        a = _mish(conv_mm(buf1, w1_ref[0], b1_ref[0], masks3, 3, C, base1))
        buf2[:, int1:int1 + HW] = a
        hbuf[...] = conv_mm(buf2, w2_ref[0], b2_ref[0], masks3, 3, 2 * C, base1)

        # Partial large-kernel conv on the first pdim channels, in place.
        # pdim is tiny -> K*K broadcast-weight VPU FMAs, no im2col / MXU.
        buflk[:, intlk:intlk + HW] = hbuf[0:pdim, :]
        wlkT = wlk_ref[0]                                  # (pdim, K*K*pdim) f32
        acc = jnp.zeros((pdim, HW), jnp.float32)
        for ky in range(Klk):
            for kx in range(Klk):
                t = ky * Klk + kx
                src = buflk[:, baselk + ky * W + kx: baselk + ky * W + kx + HW]
                if masks_lk[kx] is not None:
                    src = src * masks_lk[kx]
                for ci in range(pdim):
                    acc = acc + (wlkT[:, t * pdim + ci: t * pdim + ci + 1]
                                 * src[ci:ci + 1, :])
        hbuf[0:pdim, :] = acc + blkb_ref[0]                # in-place channel update

        h = hbuf[...]
        if use_ea:                                         # EA: h * sigmoid(conv3x3(h))
            buf1[:, int1:int1 + HW] = h
            gate = conv_mm(buf1, wea_ref[0], bea_ref[0], masks3, 3, C, base1)
            h = h * _sigmoid(gate)

        # refine (1x1 conv)
        r = jnp.dot(wrf_ref[0], h.astype(jnp.bfloat16),
                    preferred_element_type=jnp.float32) + brf_ref[0]

        # GroupNorm (biased variance, eps=1e-5) + residual, per group
        gam = gam_ref[0]
        bet = bet_ref[0]
        for gi in range(G):
            sl = slice(gi * cg, (gi + 1) * cg)
            rg = r[sl, :]
            mu = jnp.sum(rg, axis=(0, 1), keepdims=True) * inv_n
            d = rg - mu
            var = jnp.sum(d * d, axis=(0, 1), keepdims=True) * inv_n
            yg = d * jax.lax.rsqrt(var + eps) * gam[sl, :] + bet[sl, :]
            act[sl, :] = yg + xs[sl, :]

        # ---- last block step: feat_out conv + fused repeat_interleave residual ----
        @pl.when(j == nb - 1)
        def _():
            buf1[:, int1:int1 + HW] = act[...]
            out = conv_mm(buf1, wfo_ref[...], bfo_ref[...], masks3, 3, C, base1)
            xv = x_ref[0]
            rep = jnp.concatenate(
                [jnp.broadcast_to(xv[c:c + 1, :], (s2, HW)) for c in range(in_ch)],
                axis=0)                                    # repeat_interleave(x, s^2)
            o_ref[0] = (out + rep).astype(o_ref.dtype)

    def const2d(arr):
        return pl.BlockSpec(arr.shape, lambda n, j: (0, 0))

    def per_block(arr):
        return pl.BlockSpec((1,) + arr.shape[1:], lambda n, j: (j, 0, 0))

    in_specs = [
        pl.BlockSpec((1, C, HW), lambda n, j: (n, 0, 0)),  # x: fetched once per image
        const2d(w["wfi"]), const2d(w["bfi"]),
        per_block(w["w1"]), per_block(w["b1"]),
        per_block(w["w2"]), per_block(w["b2"]),
        per_block(w["wlk"]), per_block(w["blk"]),
        per_block(w["wea"]), per_block(w["bea"]),
        per_block(w["wrf"]), per_block(w["brf"]),
        per_block(w["gam"]), per_block(w["bet"]),
        const2d(w["wfo"]), const2d(w["bfo"]),
    ]

    return pl.pallas_call(
        kernel,
        out_shape=jax.ShapeDtypeStruct((N, out_c, HW), jnp.float32),
        grid=(N, nb),
        in_specs=in_specs,
        out_specs=pl.BlockSpec((1, out_c, HW), lambda n, j: (n, 0, 0)),
        scratch_shapes=[
            pltpu.VMEM((C, HW), jnp.float32),              # resident activation
            pltpu.VMEM((C, L1), jnp.float32),              # 3x3 halo buffer (C rows)
            pltpu.VMEM((2 * C, L1), jnp.float32),          # 3x3 halo buffer (2C rows)
            pltpu.VMEM((pdim, Llk), jnp.float32),          # KxK halo buffer (pdim rows)
            pltpu.VMEM((C, HW), jnp.float32),              # DCCM/PLK output (in-place)
            pltpu.VMEM((9 * 2 * C, HW), jnp.bfloat16),     # transposed im2col patches
        ],
        compiler_params=pltpu.CompilerParams(
            dimension_semantics=("parallel", "arbitrary"),
            # TODO(synk): tune per generation (~100 MiB v5e/v6e, <=56 MiB v7x) and
            # add row-halo spatial tiling for realistic SR input sizes.
            vmem_limit_bytes=48 * 1024 * 1024),
    )(x_cm, w["wfi"], w["bfi"], w["w1"], w["b1"], w["w2"], w["b2"],
      w["wlk"], w["blk"], w["wea"], w["bea"], w["wrf"], w["brf"],
      w["gam"], w["bet"], w["wfo"], w["bfo"])


# -----------------------------------------------------------------------------
# Public forward (eval mode): dropout=0, partial LK conv == in-place split conv
# -----------------------------------------------------------------------------
def realplksr_forward(params, x_nchw, cfg):
    s = cfg["upscaling_factor"]
    in_ch, dim = cfg["in_ch"], cfg["dim"]
    N, _, H, W = x_nchw.shape

    # NCHW flattened == feature-major (N, C, H*W): H*W is the lane axis.
    x = x_nchw.reshape(N, in_ch, H * W).astype(jnp.float32)
    x = jnp.pad(x, ((0, 0), (0, dim - in_ch), (0, 0)))     # channel-pad to dim

    w = _prep_weights(params, cfg)
    y = _fused_forward(x, w, cfg, H, W)                     # (N, out_c, H*W)

    # TODO(synk): DySample (the default to_img upsampler) is not defined in the
    # provided source; using the dysample=False nn.PixelShuffle path.
    y = y.reshape(N, in_ch, s, s, H, W)
    y = jnp.transpose(y, (0, 1, 4, 2, 5, 3))
    return y.reshape(N, in_ch, H * s, W * s)


# -----------------------------------------------------------------------------
# Parameter init (HWIO conv weights, matching torch trunc_normal_(std=0.02))
# -----------------------------------------------------------------------------
def trunc_normal(key, shape, std=0.02):
    return (std * jax.random.truncated_normal(key, -2.0, 2.0, shape)).astype(jnp.float32)


def init_params(key, cfg):
    in_ch, dim = cfg["in_ch"], cfg["dim"]
    s, K = cfg["upscaling_factor"], cfg["kernel_size"]
    pdim = int(dim * cfg["split_ratio"])
    out_c = in_ch * s * s
    keys = jax.random.split(key, 4 + cfg["n_blocks"])

    def bias(k, n):
        return (0.01 * jax.random.normal(k, (n,))).astype(jnp.float32)

    p = {
        "feat_in_w": trunc_normal(keys[0], (3, 3, in_ch, dim)),
        "feat_in_b": bias(keys[1], dim),
        "feat_out_w": trunc_normal(keys[2], (3, 3, dim, out_c)),
        "feat_out_b": bias(keys[3], out_c),
        "blocks": [],
    }
    for i in range(cfg["n_blocks"]):
        bk = jax.random.split(keys[4 + i], 10)
        p["blocks"].append(dict(
            dccm1_w=trunc_normal(bk[0], (3, 3, dim, 2 * dim)),
            dccm1_b=bias(bk[1], 2 * dim),
            dccm2_w=trunc_normal(bk[2], (3, 3, 2 * dim, dim)),
            dccm2_b=bias(bk[3], dim),
            lk_w=trunc_normal(bk[4], (K, K, pdim, pdim)),
            lk_b=bias(bk[5], pdim),
            ea_w=trunc_normal(bk[6], (3, 3, dim, dim)),
            ea_b=bias(bk[7], dim),
            refine_w=trunc_normal(bk[8], (1, 1, dim, dim)),
            refine_b=bias(bk[9], dim),
            norm_gamma=jnp.ones((dim,), jnp.float32),
            norm_beta=jnp.zeros((dim,), jnp.float32),
        ))
    return p


if __name__ == "__main__":
    key = jax.random.PRNGKey(0)
    pkey, xkey = jax.random.split(key)
    params = init_params(pkey, CFG)

    N, H, W = 2, 16, 16
    x = jax.random.normal(xkey, (N, CFG["in_ch"], H, W), jnp.float32)

    fwd = jax.jit(functools.partial(realplksr_forward, cfg=CFG))
    out = jax.block_until_ready(fwd(params, x))

    s = CFG["upscaling_factor"]
    assert out.shape == (N, CFG["in_ch"], H * s, W * s), out.shape
    assert bool(jnp.all(jnp.isfinite(out)))
    print("KERNEL_OK")
</pallas_src>

<mosaic_0001>
module attributes {stable_mosaic.version = 11 : i64} {
  func.func @kernel(%arg0: i32, %arg1: i32, %arg2: memref<1x16x256xf32, #tpu.memory_space<vmem>>, %arg3: memref<16x144xbf16, #tpu.memory_space<vmem>>, %arg4: memref<16x1xf32, #tpu.memory_space<vmem>>, %arg5: memref<1x32x144xbf16, #tpu.memory_space<vmem>>, %arg6: memref<1x32x1xf32, #tpu.memory_space<vmem>>, %arg7: memref<1x16x288xbf16, #tpu.memory_space<vmem>>, %arg8: memref<1x16x1xf32, #tpu.memory_space<vmem>>, %arg9: memref<1x4x100xf32, #tpu.memory_space<vmem>>, %arg10: memref<1x4x1xf32, #tpu.memory_space<vmem>>, %arg11: memref<1x16x144xbf16, #tpu.memory_space<vmem>>, %arg12: memref<1x16x1xf32, #tpu.memory_space<vmem>>, %arg13: memref<1x16x16xbf16, #tpu.memory_space<vmem>>, %arg14: memref<1x16x1xf32, #tpu.memory_space<vmem>>, %arg15: memref<1x16x1xf32, #tpu.memory_space<vmem>>, %arg16: memref<1x16x1xf32, #tpu.memory_space<vmem>>, %arg17: memref<12x144xbf16, #tpu.memory_space<vmem>>, %arg18: memref<12x1xf32, #tpu.memory_space<vmem>>, %arg19: memref<1x12x256xf32, #tpu.memory_space<vmem>>, %arg20: memref<16x256xf32, #tpu.memory_space<vmem>>, %arg21: memref<16x401xf32, #tpu.memory_space<vmem>>, %arg22: memref<32x401xf32, #tpu.memory_space<vmem>>, %arg23: memref<4x418xf32, #tpu.memory_space<vmem>>, %arg24: memref<16x256xf32, #tpu.memory_space<vmem>>, %arg25: memref<288x256xbf16, #tpu.memory_space<vmem>>) attributes {dimension_semantics = [#tpu.dimension_semantics<parallel>, #tpu.dimension_semantics<arbitrary>], iteration_bounds = array<i64: 2, 2>, scalar_prefetch = 0 : i64, scratch_operands = 6 : i64, tpu.core_type = #tpu.core_type<tc>, window_params = [{transform_indices = @transform_0, window_bounds = array<i64: 1, 16, 256>}, {pipeline_mode = #tpu.pipeline_mode<synchronous>, transform_indices = @transform_1, window_bounds = array<i64: 16, 144>}, {pipeline_mode = #tpu.pipeline_mode<synchronous>, transform_indices = @transform_2, window_bounds = array<i64: 16, 1>}, {transform_indices = @transform_3, window_bounds = array<i64: 1, 32, 144>}, {transform_indices = @transform_4, window_bounds = array<i64: 1, 32, 1>}, {transform_indices = @transform_5, window_bounds = array<i64: 1, 16, 288>}, {transform_indices = @transform_6, window_bounds = array<i64: 1, 16, 1>}, {transform_indices = @transform_7, window_bounds = array<i64: 1, 4, 100>}, {transform_indices = @transform_8, window_bounds = array<i64: 1, 4, 1>}, {transform_indices = @transform_9, window_bounds = array<i64: 1, 16, 144>}, {transform_indices = @transform_10, window_bounds = array<i64: 1, 16, 1>}, {transform_indices = @transform_11, window_bounds = array<i64: 1, 16, 16>}, {transform_indices = @transform_12, window_bounds = array<i64: 1, 16, 1>}, {transform_indices = @transform_13, window_bounds = array<i64: 1, 16, 1>}, {transform_indices = @transform_14, window_bounds = array<i64: 1, 16, 1>}, {pipeline_mode = #tpu.pipeline_mode<synchronous>, transform_indices = @transform_15, window_bounds = array<i64: 12, 144>}, {pipeline_mode = #tpu.pipeline_mode<synchronous>, transform_indices = @transform_16, window_bounds = array<i64: 12, 1>}, {transform_indices = @transform_17, window_bounds = array<i64: 1, 12, 256>}]} {
    %0 = tpu.iota {dimensions = array<i32: 1>} : vector<1x256xi32>
    %c16_i32 = arith.constant 16 : i32
    %c0_i32 = arith.constant 0 : i32
    %1 = arith.cmpi eq, %c16_i32, %c0_i32 : i32
    %c1_i32 = arith.constant 1 : i32
    %2 = arith.select %1, %c1_i32, %c16_i32 : i32
    %3 = vector.broadcast %2 : i32 to vector<1x256xi32>
    %4 = arith.remsi %0, %3 : vector<1x256xi32>
    %c0_i32_0 = arith.constant 0 : i32
    %5 = vector.broadcast %c0_i32_0 : i32 to vector<1x256xi32>
    %6 = arith.cmpi ne, %4, %5 : vector<1x256xi32>
    %c0_i32_1 = arith.constant 0 : i32
    %7 = vector.broadcast %c0_i32_1 : i32 to vector<1x256xi32>
    %8 = arith.cmpi slt, %4, %7 : vector<1x256xi32>
    %c0_i32_2 = arith.constant 0 : i32
    %9 = arith.cmpi slt, %2, %c0_i32_2 : i32
    %10 = vector.broadcast %9 : i1 to vector<1x256xi1>
    %11 = vector.broadcast %10 : vector<1x256xi1> to vector<1x256xi1>
    %12 = arith.xori %8, %11 : vector<1x256xi1>
    %13 = arith.andi %12, %6 : vector<1x256xi1>
    %14 = vector.broadcast %2 : i32 to vector<1x256xi32>
    %15 = arith.addi %4, %14 : vector<1x256xi32>
    %16 = arith.select %13, %15, %4 : vector<1x256xi1>, vector<1x256xi32>
    %c1_i32_3 = arith.constant 1 : i32
    %17 = vector.broadcast %c1_i32_3 : i32 to vector<1x256xi32>
    %18 = arith.cmpi sge, %16, %17 : vector<1x256xi32>
    %c17_i32 = arith.constant 17 : i32
    %19 = vector.broadcast %c17_i32 : i32 to vector<1x256xi32>
    %20 = arith.cmpi slt, %16, %19 : vector<1x256xi32>
    %21 = arith.andi %18, %20 : vector<1x256xi1>
    %cst = arith.constant 1.000000e+00 : f32
    %cst_4 = arith.constant 0.000000e+00 : f32
    %22 = vector.broadcast %cst : f32 to vector<1x256xf32>
    %23 = vector.broadcast %cst_4 : f32 to vector<1x256xf32>
    %24 = arith.select %21, %22, %23 : vector<1x256xi1>, vector<1x256xf32>
    %c-1_i32 = arith.constant -1 : i32
    %25 = vector.broadcast %c-1_i32 : i32 to vector<1x256xi32>
    %26 = arith.cmpi sge, %16, %25 : vector<1x256xi32>
    %c15_i32 = arith.constant 15 : i32
    %27 = vector.broadcast %c15_i32 : i32 to vector<1x256xi32>
    %28 = arith.cmpi slt, %16, %27 : vector<1x256xi32>
    %29 = arith.andi %26, %28 : vector<1x256xi1>
    %cst_5 = arith.constant 1.000000e+00 : f32
    %cst_6 = arith.constant 0.000000e+00 : f32
    %30 = vector.broadcast %cst_5 : f32 to vector<1x256xf32>
    %31 = vector.broadcast %cst_6 : f32 to vector<1x256xf32>
    %32 = arith.select %29, %30, %31 : vector<1x256xi1>, vector<1x256xf32>
    %c2_i32 = arith.constant 2 : i32
    %33 = vector.broadcast %c2_i32 : i32 to vector<1x256xi32>
    %34 = arith.cmpi sge, %16, %33 : vector<1x256xi32>
    %c18_i32 = arith.constant 18 : i32
    %35 = vector.broadcast %c18_i32 : i32 to vector<1x256xi32>
    %36 = arith.cmpi slt, %16, %35 : vector<1x256xi32>
    %37 = arith.andi %34, %36 : vector<1x256xi1>
    %cst_7 = arith.constant 1.000000e+00 : f32
    %cst_8 = arith.constant 0.000000e+00 : f32
    %38 = vector.broadcast %cst_7 : f32 to vector<1x256xf32>
    %39 = vector.broadcast %cst_8 : f32 to vector<1x256xf32>
    %40 = arith.select %37, %38, %39 : vector<1x256xi1>, vector<1x256xf32>
    %c1_i32_9 = arith.constant 1 : i32
    %41 = vector.broadcast %c1_i32_9 : i32 to vector<1x256xi32>
    %42 = arith.cmpi sge, %16, %41 : vector<1x256xi32>
    %c17_i32_10 = arith.constant 17 : i32
    %43 = vector.broadcast %c17_i32_10 : i32 to vector<1x256xi32>
    %44 = arith.cmpi slt, %16, %43 : vector<1x256xi32>
    %45 = arith.andi %42, %44 : vector<1x256xi1>
    %cst_11 = arith.constant 1.000000e+00 : f32
    %cst_12 = arith.constant 0.000000e+00 : f32
    %46 = vector.broadcast %cst_11 : f32 to vector<1x256xf32>
    %47 = vector.broadcast %cst_12 : f32 to vector<1x256xf32>
    %48 = arith.select %45, %46, %47 : vector<1x256xi1>, vector<1x256xf32>
    %c-1_i32_13 = arith.constant -1 : i32
    %49 = vector.broadcast %c-1_i32_13 : i32 to vector<1x256xi32>
    %50 = arith.cmpi sge, %16, %49 : vector<1x256xi32>
    %c15_i32_14 = arith.constant 15 : i32
    %51 = vector.broadcast %c15_i32_14 : i32 to vector<1x256xi32>
    %52 = arith.cmpi slt, %16, %51 : vector<1x256xi32>
    %53 = arith.andi %50, %52 : vector<1x256xi1>
    %cst_15 = arith.constant 1.000000e+00 : f32
    %cst_16 = arith.constant 0.000000e+00 : f32
    %54 = vector.broadcast %cst_15 : f32 to vector<1x256xf32>
    %55 = vector.broadcast %cst_16 : f32 to vector<1x256xf32>
    %56 = arith.select %53, %54, %55 : vector<1x256xi1>, vector<1x256xf32>
    %c-2_i32 = arith.constant -2 : i32
    %57 = vector.broadcast %c-2_i32 : i32 to vector<1x256xi32>
    %58 = arith.cmpi sge, %16, %57 : vector<1x256xi32>
    %c14_i32 = arith.constant 14 : i32
    %59 = vector.broadcast %c14_i32 : i32 to vector<1x256xi32>
    %60 = arith.cmpi slt, %16, %59 : vector<1x256xi32>
    %61 = arith.andi %58, %60 : vector<1x256xi1>
    %cst_17 = arith.constant 1.000000e+00 : f32
    %cst_18 = arith.constant 0.000000e+00 : f32
    %62 = vector.broadcast %cst_17 : f32 to vector<1x256xf32>
    %63 = vector.broadcast %cst_18 : f32 to vector<1x256xf32>
    %64 = arith.select %61, %62, %63 : vector<1x256xi1>, vector<1x256xf32>
    %c0_i32_19 = arith.constant 0 : i32
    %65 = arith.cmpi eq, %arg1, %c0_i32_19 : i32
    %66 = arith.extui %65 : i1 to i32
    %c0_i32_20 = arith.constant 0 : i32
    %67 = arith.cmpi ne, %66, %c0_i32_20 : i32
    scf.if %67 {
      %cst_244 = arith.constant 0.000000e+00 : f32
      %1055 = vector.broadcast %cst_244 : f32 to vector<16x401xf32>
      %c0_245 = arith.constant 0 : index
      %c0_246 = arith.constant 0 : index
      %1056 = vector.load %arg21[%c0_245, %c0_246] : memref<16x401xf32, #tpu.memory_space<vmem>>, vector<16x401xf32>
      tpu.vector_store %arg21[%c0_245, %c0_246], %1055 {strides = array<i32>} : memref<16x401xf32, #tpu.memory_space<vmem>>, vector<16x401xf32>,
      %cst_247 = arith.constant 0.000000e+00 : f32
      %1057 = vector.broadcast %cst_247 : f32 to vector<32x401xf32>
      %c0_248 = arith.constant 0 : index
      %c0_249 = arith.constant 0 : index
      %1058 = vector.load %arg22[%c0_248, %c0_249] : memref<32x401xf32, #tpu.memory_space<vmem>>, vector<32x401xf32>
      tpu.vector_store %arg22[%c0_248, %c0_249], %1057 {strides = array<i32>} : memref<32x401xf32, #tpu.memory_space<vmem>>, vector<32x401xf32>,
      %cst_250 = arith.constant 0.000000e+00 : f32
      %1059 = vector.broadcast %cst_250 : f32 to vector<4x418xf32>
      %c0_251 = arith.constant 0 : index
      %c0_252 = arith.constant 0 : index
      %1060 = vector.load %arg23[%c0_251, %c0_252] : memref<4x418xf32, #tpu.memory_space<vmem>>, vector<4x418xf32>
      tpu.vector_store %arg23[%c0_251, %c0_252], %1059 {strides = array<i32>} : memref<4x418xf32, #tpu.memory_space<vmem>>, vector<4x418xf32>,
      %c0_253 = arith.constant 0 : index
      %c0_254 = arith.constant 0 : index
      %c0_255 = arith.constant 0 : index
      %1061 = vector.load %arg2[%c0_253, %c0_254, %c0_255] : memref<1x16x256xf32, #tpu.memory_space<vmem>>, vector<1x16x256xf32>
      %1062 = vector.shape_cast %1061 : vector<1x16x256xf32> to vector<16x256xf32>
      %c0_256 = arith.constant 0 : index
      %c128_257 = arith.constant 128 : index
      %1063 = vector.load %arg21[%c0_256, %c128_257] : memref<16x401xf32, #tpu.memory_space<vmem>>, vector<16x256xf32>
      tpu.vector_store %arg21[%c0_256, %c128_257], %1062 {strides = array<i32>} : memref<16x401xf32, #tpu.memory_space<vmem>>, vector<16x256xf32>,
      %c0_258 = arith.constant 0 : index
      %c0_259 = arith.constant 0 : index
      %1064 = vector.load %arg3[%c0_258, %c0_259] : memref<16x144xbf16, #tpu.memory_space<vmem>>, vector<16x144xbf16>
      %c0_260 = arith.constant 0 : index
      %c0_261 = arith.constant 0 : index
      %1065 = vector.load %arg4[%c0_260, %c0_261] : memref<16x1xf32, #tpu.memory_space<vmem>>, vector<16x1xf32>
      %c0_262 = arith.constant 0 : index
      %c111_263 = arith.constant 111 : index
      %1066 = vector.load %arg21[%c0_262, %c111_263] : memref<16x401xf32, #tpu.memory_space<vmem>>, vector<16x256xf32>
      %1067 = vector.broadcast %24 : vector<1x256xf32> to vector<16x256xf32>
      %1068 = arith.mulf %1066, %1067 : vector<16x256xf32>
      %1069 = arith.truncf %1068 : vector<16x256xf32> to vector<16x256xbf16>
      %c0_264 = arith.constant 0 : index
      %c0_265 = arith.constant 0 : index
      %1070 = vector.load %arg25[%c0_264, %c0_265] : memref<288x256xbf16, #tpu.memory_space<vmem>>, vector<16x256xbf16>
      tpu.vector_store %arg25[%c0_264, %c0_265], %1069 {strides = array<i32>} : memref<288x256xbf16, #tpu.memory_space<vmem>>, vector<16x256xbf16>,
      %c0_266 = arith.constant 0 : index
      %c112_267 = arith.constant 112 : index
      %1071 = vector.load %arg21[%c0_266, %c112_267] : memref<16x401xf32, #tpu.memory_space<vmem>>, vector<16x256xf32>
      %1072 = arith.truncf %1071 : vector<16x256xf32> to vector<16x256xbf16>
      %c16_268 = arith.constant 16 : index
      %c0_269 = arith.constant 0 : index
      %1073 = vector.load %arg25[%c16_268, %c0_269] : memref<288x256xbf16, #tpu.memory_space<vmem>>, vector<16x256xbf16>
      tpu.vector_store %arg25[%c16_268, %c0_269], %1072 {strides = array<i32>} : memref<288x256xbf16, #tpu.memory_space<vmem>>, vector<16x256xbf16>,
      %c0_270 = arith.constant 0 : index
      %c113_271 = arith.constant 113 : index
      %1074 = vector.load %arg21[%c0_270, %c113_271] : memref<16x401xf32, #tpu.memory_space<vmem>>, vector<16x256xf32>
      %1075 = vector.broadcast %32 : vector<1x256xf32> to vector<16x256xf32>
      %1076 = arith.mulf %1074, %1075 : vector<16x256xf32>
      %1077 = arith.truncf %1076 : vector<16x256xf32> to vector<16x256xbf16>
      %c32_272 = arith.constant 32 : index
      %c0_273 = arith.constant 0 : index
      %1078 = vector.load %arg25[%c32_272, %c0_273] : memref<288x256xbf16, #tpu.memory_space<vmem>>, vector<16x256xbf16>
      tpu.vector_store %arg25[%c32_272, %c0_273], %1077 {strides = array<i32>} : memref<288x256xbf16, #tpu.memory_space<vmem>>, vector<16x256xbf16>,
      %c0_274 = arith.constant 0 : index
      %c127_275 = arith.constant 127 : index
      %1079 = vector.load %arg21[%c0_274, %c127_275] : memref<16x401xf32, #tpu.memory_space<vmem>>, vector<16x256xf32>
      %1080 = vector.broadcast %24 : vector<1x256xf32> to vector<16x256xf32>
      %1081 = arith.mulf %1079, %1080 : vector<16x256xf32>
      %1082 = arith.truncf %1081 : vector<16x256xf32> to vector<16x256xbf16>
      %c48_276 = arith.constant 48 : index
      %c0_277 = arith.constant 0 : index
      %1083 = vector.load %arg25[%c48_276, %c0_277] : memref<288x256xbf16, #tpu.memory_space<vmem>>, vector<16x256xbf16>
      tpu.vector_store %arg25[%c48_276, %c0_277], %1082 {strides = array<i32>} : memref<288x256xbf16, #tpu.memory_space<vmem>>, vector<16x256xbf16>,
      %c0_278 = arith.constant 0 : index
      %c128_279 = arith.constant 128 : index
      %1084 = vector.load %arg21[%c0_278, %c128_279] : memref<16x401xf32, #tpu.memory_space<vmem>>, vector<16x256xf32>
      %1085 = arith.truncf %1084 : vector<16x256xf32> to vector<16x256xbf16>
      %c64_280 = arith.constant 64 : index
      %c0_281 = arith.constant 0 : index
      %1086 = vector.load %arg25[%c64_280, %c0_281] : memref<288x256xbf16, #tpu.memory_space<vmem>>, vector<16x256xbf16>
      tpu.vector_store %arg25[%c64_280, %c0_281], %1085 {strides = array<i32>} : memref<288x256xbf16, #tpu.memory_space<vmem>>, vector<16x256xbf16>,
      %c0_282 = arith.constant 0 : index
      %c129_283 = arith.constant 129 : index
      %1087 = vector.load %arg21[%c0_282, %c129_283] : memref<16x401xf32, #tpu.memory_space<vmem>>, vector<16x256xf32>
      %1088 = vector.broadcast %32 : vector<1x256xf32> to vector<16x256xf32>
      %1089 = arith.mulf %1087, %1088 : vector<16x256xf32>
      %1090 = arith.truncf %1089 : vector<16x256xf32> to vector<16x256xbf16>
      %c80_284 = arith.constant 80 : index
      %c0_285 = arith.constant 0 : index
      %1091 = vector.load %arg25[%c80_284, %c0_285] : memref<288x256xbf16, #tpu.memory_space<vmem>>, vector<16x256xbf16>
      tpu.vector_store %arg25[%c80_284, %c0_285], %1090 {strides = array<i32>} : memref<288x256xbf16, #tpu.memory_space<vmem>>, vector<16x256xbf16>,
      %c0_286 = arith.constant 0 : index
      %c143_287 = arith.constant 143 : index
      %1092 = vector.load %arg21[%c0_286, %c143_287] : memref<16x401xf32, #tpu.memory_space<vmem>>, vector<16x256xf32>
      %1093 = vector.broadcast %24 : vector<1x256xf32> to vector<16x256xf32>
      %1094 = arith.mulf %1092, %1093 : vector<16x256xf32>
      %1095 = arith.truncf %1094 : vector<16x256xf32> to vector<16x256xbf16>
      %c96_288 = arith.constant 96 : index
      %c0_289 = arith.constant 0 : index
      %1096 = vector.load %arg25[%c96_288, %c0_289] : memref<288x256xbf16, #tpu.memory_space<vmem>>, vector<16x256xbf16>
      tpu.vector_store %arg25[%c96_288, %c0_289], %1095 {strides = array<i32>} : memref<288x256xbf16, #tpu.memory_space<vmem>>, vector<16x256xbf16>,
      %c0_290 = arith.constant 0 : index
      %c144_291 = arith.constant 144 : index
      %1097 = vector.load %arg21[%c0_290, %c144_291] : memref<16x401xf32, #tpu.memory_space<vmem>>, vector<16x256xf32>
      %1098 = arith.truncf %1097 : vector<16x256xf32> to vector<16x256xbf16>
      %c112_292 = arith.constant 112 : index
      %c0_293 = arith.constant 0 : index
      %1099 = vector.load %arg25[%c112_292, %c0_293] : memref<288x256xbf16, #tpu.memory_space<vmem>>, vector<16x256xbf16>
      tpu.vector_store %arg25[%c112_292, %c0_293], %1098 {strides = array<i32>} : memref<288x256xbf16, #tpu.memory_space<vmem>>, vector<16x256xbf16>,
      %c0_294 = arith.constant 0 : index
      %c145_295 = arith.constant 145 : index
      %1100 = vector.load %arg21[%c0_294, %c145_295] : memref<16x401xf32, #tpu.memory_space<vmem>>, vector<16x256xf32>
      %1101 = vector.broadcast %32 : vector<1x256xf32> to vector<16x256xf32>
      %1102 = arith.mulf %1100, %1101 : vector<16x256xf32>
      %1103 = arith.truncf %1102 : vector<16x256xf32> to vector<16x256xbf16>
      %c128_296 = arith.constant 128 : index
      %c0_297 = arith.constant 0 : index
      %1104 = vector.load %arg25[%c128_296, %c0_297] : memref<288x256xbf16, #tpu.memory_space<vmem>>, vector<16x256xbf16>
      tpu.vector_store %arg25[%c128_296, %c0_297], %1103 {strides = array<i32>} : memref<288x256xbf16, #tpu.memory_space<vmem>>, vector<16x256xbf16>,
      %c0_298 = arith.constant 0 : index
      %c0_299 = arith.constant 0 : index
      %1105 = vector.load %arg25[%c0_298, %c0_299] : memref<288x256xbf16, #tpu.memory_space<vmem>>, vector<144x256xbf16>
      %cst_300 = arith.constant dense<0.000000e+00> : vector<16x256xf32>
      %1106 = tpu.matmul %1064, %1105, %cst_300 {dimension_numbers = #tpu.dot_dimension_numbers<[1], [0], [0], [1], [0, 0, 1, 1], [], []>} : vector<16x144xbf16>, vector<144x256xbf16>, vector<16x256xf32> -> vector<16x256xf32>
      %1107 = vector.broadcast %1065 : vector<16x1xf32> to vector<16x256xf32>
      %1108 = arith.addf %1106, %1107 : vector<16x256xf32>
      %c0_301 = arith.constant 0 : index
      %c0_302 = arith.constant 0 : index
      %1109 = vector.load %arg20[%c0_301, %c0_302] : memref<16x256xf32, #tpu.memory_space<vmem>>, vector<16x256xf32>
      tpu.vector_store %arg20[%c0_301, %c0_302], %1108 {strides = array<i32>} : memref<16x256xf32, #tpu.memory_space<vmem>>, vector<16x256xf32>,
    } else {
    }
    %c0 = arith.constant 0 : index
    %c0_21 = arith.constant 0 : index
    %68 = vector.load %arg20[%c0, %c0_21] : memref<16x256xf32, #tpu.memory_space<vmem>>, vector<16x256xf32>
    %c0_22 = arith.constant 0 : index
    %c128 = arith.constant 128 : index
    %69 = vector.load %arg21[%c0_22, %c128] : memref<16x401xf32, #tpu.memory_space<vmem>>, vector<16x256xf32>
    tpu.vector_store %arg21[%c0_22, %c128], %68 {strides = array<i32>} : memref<16x401xf32, #tpu.memory_space<vmem>>, vector<16x256xf32>,
    %c0_23 = arith.constant 0 : index
    %c0_24 = arith.constant 0 : index
    %c0_25 = arith.constant 0 : index
    %70 = vector.load %arg5[%c0_23, %c0_24, %c0_25] : memref<1x32x144xbf16, #tpu.memory_space<vmem>>, vector<1x32x144xbf16>
    %71 = vector.shape_cast %70 : vector<1x32x144xbf16> to vector<32x144xbf16>
    %c0_26 = arith.constant 0 : index
    %c0_27 = arith.constant 0 : index
    %c0_28 = arith.constant 0 : index
    %72 = vector.load %arg6[%c0_26, %c0_27, %c0_28] : memref<1x32x1xf32, #tpu.memory_space<vmem>>, vector<1x32x1xf32>
    %73 = vector.shape_cast %72 : vector<1x32x1xf32> to vector<32x1xf32>
    %c0_29 = arith.constant 0 : index
    %c111 = arith.constant 111 : index
    %74 = vector.load %arg21[%c0_29, %c111] : memref<16x401xf32, #tpu.memory_space<vmem>>, vector<16x256xf32>
    %75 = vector.broadcast %24 : vector<1x256xf32> to vector<16x256xf32>
    %76 = arith.mulf %74, %75 : vector<16x256xf32>
    %77 = arith.truncf %76 : vector<16x256xf32> to vector<16x256xbf16>
    %c0_30 = arith.constant 0 : index
    %c0_31 = arith.constant 0 : index
    %78 = vector.load %arg25[%c0_30, %c0_31] : memref<288x256xbf16, #tpu.memory_space<vmem>>, vector<16x256xbf16>
    tpu.vector_store %arg25[%c0_30, %c0_31], %77 {strides = array<i32>} : memref<288x256xbf16, #tpu.memory_space<vmem>>, vector<16x256xbf16>,
    %c0_32 = arith.constant 0 : index
    %c112 = arith.constant 112 : index
    %79 = vector.load %arg21[%c0_32, %c112] : memref<16x401xf32, #tpu.memory_space<vmem>>, vector<16x256xf32>
    %80 = arith.truncf %79 : vector<16x256xf32> to vector<16x256xbf16>
    %c16 = arith.constant 16 : index
    %c0_33 = arith.constant 0 : index
    %81 = vector.load %arg25[%c16, %c0_33] : memref<288x256xbf16, #tpu.memory_space<vmem>>, vector<16x256xbf16>
    tpu.vector_store %arg25[%c16, %c0_33], %80 {strides = array<i32>} : memref<288x256xbf16, #tpu.memory_space<vmem>>, vector<16x256xbf16>,
    %c0_34 = arith.constant 0 : index
    %c113 = arith.constant 113 : index
    %82 = vector.load %arg21[%c0_34, %c113] : memref<16x401xf32, #tpu.memory_space<vmem>>, vector<16x256xf32>
    %83 = vector.broadcast %32 : vector<1x256xf32> to vector<16x256xf32>
    %84 = arith.mulf %82, %83 : vector<16x256xf32>
    %85 = arith.truncf %84 : vector<16x256xf32> to vector<16x256xbf16>
    %c32 = arith.constant 32 : index
    %c0_35 = arith.constant 0 : index
    %86 = vector.load %arg25[%c32, %c0_35] : memref<288x256xbf16, #tpu.memory_space<vmem>>, vector<16x256xbf16>
    tpu.vector_store %arg25[%c32, %c0_35], %85 {strides = array<i32>} : memref<288x256xbf16, #tpu.memory_space<vmem>>, vector<16x256xbf16>,
    %c0_36 = arith.constant 0 : index
    %c127 = arith.constant 127 : index
    %87 = vector.load %arg21[%c0_36, %c127] : memref<16x401xf32, #tpu.memory_space<vmem>>, vector<16x256xf32>
    %88 = vector.broadcast %24 : vector<1x256xf32> to vector<16x256xf32>
    %89 = arith.mulf %87, %88 : vector<16x256xf32>
    %90 = arith.truncf %89 : vector<16x256xf32> to vector<16x256xbf16>
    %c48 = arith.constant 48 : index
    %c0_37 = arith.constant 0 : index
    %91 = vector.load %arg25[%c48, %c0_37] : memref<288x256xbf16, #tpu.memory_space<vmem>>, vector<16x256xbf16>
    tpu.vector_store %arg25[%c48, %c0_37], %90 {strides = array<i32>} : memref<288x256xbf16, #tpu.memory_space<vmem>>, vector<16x256xbf16>,
    %c0_38 = arith.constant 0 : index
    %c128_39 = arith.constant 128 : index
    %92 = vector.load %arg21[%c0_38, %c128_39] : memref<16x401xf32, #tpu.memory_space<vmem>>, vector<16x256xf32>
    %93 = arith.truncf %92 : vector<16x256xf32> to vector<16x256xbf16>
    %c64 = arith.constant 64 : index
    %c0_40 = arith.constant 0 : index
    %94 = vector.load %arg25[%c64, %c0_40] : memref<288x256xbf16, #tpu.memory_space<vmem>>, vector<16x256xbf16>
    tpu.vector_store %arg25[%c64, %c0_40], %93 {strides = array<i32>} : memref<288x256xbf16, #tpu.memory_space<vmem>>, vector<16x256xbf16>,
    %c0_41 = arith.constant 0 : index
    %c129 = arith.constant 129 : index
    %95 = vector.load %arg21[%c0_41, %c129] : memref<16x401xf32, #tpu.memory_space<vmem>>, vector<16x256xf32>
    %96 = vector.broadcast %32 : vector<1x256xf32> to vector<16x256xf32>
    %97 = arith.mulf %95, %96 : vector<16x256xf32>
    %98 = arith.truncf %97 : vector<16x256xf32> to vector<16x256xbf16>
    %c80 = arith.constant 80 : index
    %c0_42 = arith.constant 0 : index
    %99 = vector.load %arg25[%c80, %c0_42] : memref<288x256xbf16, #tpu.memory_space<vmem>>, vector<16x256xbf16>
    tpu.vector_store %arg25[%c80, %c0_42], %98 {strides = array<i32>} : memref<288x256xbf16, #tpu.memory_space<vmem>>, vector<16x256xbf16>,
    %c0_43 = arith.constant 0 : index
    %c143 = arith.constant 143 : index
    %100 = vector.load %arg21[%c0_43, %c143] : memref<16x401xf32, #tpu.memory_space<vmem>>, vector<16x256xf32>
    %101 = vector.broadcast %24 : vector<1x256xf32> to vector<16x256xf32>
    %102 = arith.mulf %100, %101 : vector<16x256xf32>
    %103 = arith.truncf %102 : vector<16x256xf32> to vector<16x256xbf16>
    %c96 = arith.constant 96 : index
    %c0_44 = arith.constant 0 : index
    %104 = vector.load %arg25[%c96, %c0_44] : memref<288x256xbf16, #tpu.memory_space<vmem>>, vector<16x256xbf16>
    tpu.vector_store %arg25[%c96, %c0_44], %103 {strides = array<i32>} : memref<288x256xbf16, #tpu.memory_space<vmem>>, vector<16x256xbf16>,
    %c0_45 = arith.constant 0 : index
    %c144 = arith.constant 144 : index
    %105 = vector.load %arg21[%c0_45, %c144] : memref<16x401xf32, #tpu.memory_space<vmem>>, vector<16x256xf32>
    %106 = arith.truncf %105 : vector<16x256xf32> to vector<16x256xbf16>
    %c112_46 = arith.constant 112 : index
    %c0_47 = arith.constant 0 : index
    %107 = vector.load %arg25[%c112_46, %c0_47] : memref<288x256xbf16, #tpu.memory_space<vmem>>, vector<16x256xbf16>
    tpu.vector_store %arg25[%c112_46, %c0_47], %106 {strides = array<i32>} : memref<288x256xbf16, #tpu.memory_space<vmem>>, vector<16x256xbf16>,
    %c0_48 = arith.constant 0 : index
    %c145 = arith.constant 145 : index
    %108 = vector.load %arg21[%c0_48, %c145] : memref<16x401xf32, #tpu.memory_space<vmem>>, vector<16x256xf32>
    %109 = vector.broadcast %32 : vector<1x256xf32> to vector<16x256xf32>
    %110 = arith.mulf %108, %109 : vector<16x256xf32>
    %111 = arith.truncf %110 : vector<16x256xf32> to vector<16x256xbf16>
    %c128_49 = arith.constant 128 : index
    %c0_50 = arith.constant 0 : index
    %112 = vector.load %arg25[%c128_49, %c0_50] : memref<288x256xbf16, #tpu.memory_space<vmem>>, vector<16x256xbf16>
    tpu.vector_store %arg25[%c128_49, %c0_50], %111 {strides = array<i32>} : memref<288x256xbf16, #tpu.memory_space<vmem>>, vector<16x256xbf16>,
    %c0_51 = arith.constant 0 : index
    %c0_52 = arith.constant 0 : index
    %113 = vector.load %arg25[%c0_51, %c0_52] : memref<288x256xbf16, #tpu.memory_space<vmem>>, vector<144x256xbf16>
    %cst_53 = arith.constant dense<0.000000e+00> : vector<32x256xf32>
    %114 = tpu.matmul %71, %113, %cst_53 {dimension_numbers = #tpu.dot_dimension_numbers<[1], [0], [0], [1], [0, 0, 1, 1], [], []>} : vector<32x144xbf16>, vector<144x256xbf16>, vector<32x256xf32> -> vector<32x256xf32>
    %115 = vector.broadcast %73 : vector<32x1xf32> to vector<32x256xf32>
    %116 = arith.addf %114, %115 : vector<32x256xf32>
    %cst_54 = arith.constant 2.000000e+01 : f32
    %117 = vector.broadcast %cst_54 : f32 to vector<32x256xf32>
    %118 = arith.minimumf %116, %117 : vector<32x256xf32>
    %119 = math.exp %118 : vector<32x256xf32>
    %cst_55 = arith.constant 2.000000e+00 : f32
    %120 = vector.broadcast %cst_55 : f32 to vector<32x256xf32>
    %121 = arith.addf %119, %120 : vector<32x256xf32>
    %122 = arith.mulf %119, %121 : vector<32x256xf32>
    %123 = arith.mulf %116, %122 : vector<32x256xf32>
    %cst_56 = arith.constant 2.000000e+00 : f32
    %124 = vector.broadcast %cst_56 : f32 to vector<32x256xf32>
    %125 = arith.addf %122, %124 : vector<32x256xf32>
    %126 = tpu.reciprocal %125 {approx = true} : vector<32x256xf32> -> vector<32x256xf32>
    %127 = arith.mulf %123, %126 : vector<32x256xf32>
    %c0_57 = arith.constant 0 : index
    %c128_58 = arith.constant 128 : index
    %128 = vector.load %arg22[%c0_57, %c128_58] : memref<32x401xf32, #tpu.memory_space<vmem>>, vector<32x256xf32>
    tpu.vector_store %arg22[%c0_57, %c128_58], %127 {strides = array<i32>} : memref<32x401xf32, #tpu.memory_space<vmem>>, vector<32x256xf32>,
    %c0_59 = arith.constant 0 : index
    %c0_60 = arith.constant 0 : index
    %c0_61 = arith.constant 0 : index
    %129 = vector.load %arg7[%c0_59, %c0_60, %c0_61] : memref<1x16x288xbf16, #tpu.memory_space<vmem>>, vector<1x16x288xbf16>
    %130 = vector.shape_cast %129 : vector<1x16x288xbf16> to vector<16x288xbf16>
    %c0_62 = arith.constant 0 : index
    %c0_63 = arith.constant 0 : index
    %c0_64 = arith.constant 0 : index
    %131 = vector.load %arg8[%c0_62, %c0_63, %c0_64] : memref<1x16x1xf32, #tpu.memory_space<vmem>>, vector<1x16x1xf32>
    %132 = vector.shape_cast %131 : vector<1x16x1xf32> to vector<16x1xf32>
    %c0_65 = arith.constant 0 : index
    %c111_66 = arith.constant 111 : index
    %133 = vector.load %arg22[%c0_65, %c111_66] : memref<32x401xf32, #tpu.memory_space<vmem>>, vector<32x256xf32>
    %134 = vector.broadcast %24 : vector<1x256xf32> to vector<32x256xf32>
    %135 = arith.mulf %133, %134 : vector<32x256xf32>
    %136 = arith.truncf %135 : vector<32x256xf32> to vector<32x256xbf16>
    %c0_67 = arith.constant 0 : index
    %c0_68 = arith.constant 0 : index
    %137 = vector.load %arg25[%c0_67, %c0_68] : memref<288x256xbf16, #tpu.memory_space<vmem>>, vector<32x256xbf16>
    tpu.vector_store %arg25[%c0_67, %c0_68], %136 {strides = array<i32>} : memref<288x256xbf16, #tpu.memory_space<vmem>>, vector<32x256xbf16>,
    %c0_69 = arith.constant 0 : index
    %c112_70 = arith.constant 112 : index
    %138 = vector.load %arg22[%c0_69, %c112_70] : memref<32x401xf32, #tpu.memory_space<vmem>>, vector<32x256xf32>
    %139 = arith.truncf %138 : vector<32x256xf32> to vector<32x256xbf16>
    %c32_71 = arith.constant 32 : index
    %c0_72 = arith.constant 0 : index
    %140 = vector.load %arg25[%c32_71, %c0_72] : memref<288x256xbf16, #tpu.memory_space<vmem>>, vector<32x256xbf16>
    tpu.vector_store %arg25[%c32_71, %c0_72], %139 {strides = array<i32>} : memref<288x256xbf16, #tpu.memory_space<vmem>>, vector<32x256xbf16>,
    %c0_73 = arith.constant 0 : index
    %c113_74 = arith.constant 113 : index
    %141 = vector.load %arg22[%c0_73, %c113_74] : memref<32x401xf32, #tpu.memory_space<vmem>>, vector<32x256xf32>
    %142 = vector.broadcast %32 : vector<1x256xf32> to vector<32x256xf32>
    %143 = arith.mulf %141, %142 : vector<32x256xf32>
    %144 = arith.truncf %143 : vector<32x256xf32> to vector<32x256xbf16>
    %c64_75 = arith.constant 64 : index
    %c0_76 = arith.constant 0 : index
    %145 = vector.load %arg25[%c64_75, %c0_76] : memref<288x256xbf16, #tpu.memory_space<vmem>>, vector<32x256xbf16>
    tpu.vector_store %arg25[%c64_75, %c0_76], %144 {strides = array<i32>} : memref<288x256xbf16, #tpu.memory_space<vmem>>, vector<32x256xbf16>,
    %c0_77 = arith.constant 0 : index
    %c127_78 = arith.constant 127 : index
    %146 = vector.load %arg22[%c0_77, %c127_78] : memref<32x401xf32, #tpu.memory_space<vmem>>, vector<32x256xf32>
    %147 = vector.broadcast %24 : vector<1x256xf32> to vector<32x256xf32>
    %148 = arith.mulf %146, %147 : vector<32x256xf32>
    %149 = arith.truncf %148 : vector<32x256xf32> to vector<32x256xbf16>
    %c96_79 = arith.constant 96 : index
    %c0_80 = arith.constant 0 : index
    %150 = vector.load %arg25[%c96_79, %c0_80] : memref<288x256xbf16, #tpu.memory_space<vmem>>, vector<32x256xbf16>
    tpu.vector_store %arg25[%c96_79, %c0_80], %149 {strides = array<i32>} : memref<288x256xbf16, #tpu.memory_space<vmem>>, vector<32x256xbf16>,
    %c0_81 = arith.constant 0 : index
    %c128_82 = arith.constant 128 : index
    %151 = vector.load %arg22[%c0_81, %c128_82] : memref<32x401xf32, #tpu.memory_space<vmem>>, vector<32x256xf32>
    %152 = arith.truncf %151 : vector<32x256xf32> to vector<32x256xbf16>
    %c128_83 = arith.constant 128 : index
    %c0_84 = arith.constant 0 : index
    %153 = vector.load %arg25[%c128_83, %c0_84] : memref<288x256xbf16, #tpu.memory_space<vmem>>, vector<32x256xbf16>
    tpu.vector_store %arg25[%c128_83, %c0_84], %152 {strides = array<i32>} : memref<288x256xbf16, #tpu.memory_space<vmem>>, vector<32x256xbf16>,
    %c0_85 = arith.constant 0 : index
    %c129_86 = arith.constant 129 : index
    %154 = vector.load %arg22[%c0_85, %c129_86] : memref<32x401xf32, #tpu.memory_space<vmem>>, vector<32x256xf32>
    %155 = vector.broadcast %32 : vector<1x256xf32> to vector<32x256xf32>
    %156 = arith.mulf %154, %155 : vector<32x256xf32>
    %157 = arith.truncf %156 : vector<32x256xf32> to vector<32x256xbf16>
    %c160 = arith.constant 160 : index
    %c0_87 = arith.constant 0 : index
    %158 = vector.load %arg25[%c160, %c0_87] : memref<288x256xbf16, #tpu.memory_space<vmem>>, vector<32x256xbf16>
    tpu.vector_store %arg25[%c160, %c0_87], %157 {strides = array<i32>} : memref<288x256xbf16, #tpu.memory_space<vmem>>, vector<32x256xbf16>,
    %c0_88 = arith.constant 0 : index
    %c143_89 = arith.constant 143 : index
    %159 = vector.load %arg22[%c0_88, %c143_89] : memref<32x401xf32, #tpu.memory_space<vmem>>, vector<32x256xf32>
    %160 = vector.broadcast %24 : vector<1x256xf32> to vector<32x256xf32>
    %161 = arith.mulf %159, %160 : vector<32x256xf32>
    %162 = arith.truncf %161 : vector<32x256xf32> to vector<32x256xbf16>
    %c192 = arith.constant 192 : index
    %c0_90 = arith.constant 0 : index
    %163 = vector.load %arg25[%c192, %c0_90] : memref<288x256xbf16, #tpu.memory_space<vmem>>, vector<32x256xbf16>
    tpu.vector_store %arg25[%c192, %c0_90], %162 {strides = array<i32>} : memref<288x256xbf16, #tpu.memory_space<vmem>>, vector<32x256xbf16>,
    %c0_91 = arith.constant 0 : index
    %c144_92 = arith.constant 144 : index
    %164 = vector.load %arg22[%c0_91, %c144_92] : memref<32x401xf32, #tpu.memory_space<vmem>>, vector<32x256xf32>
    %165 = arith.truncf %164 : vector<32x256xf32> to vector<32x256xbf16>
    %c224 = arith.constant 224 : index
    %c0_93 = arith.constant 0 : index
    %166 = vector.load %arg25[%c224, %c0_93] : memref<288x256xbf16, #tpu.memory_space<vmem>>, vector<32x256xbf16>
    tpu.vector_store %arg25[%c224, %c0_93], %165 {strides = array<i32>} : memref<288x256xbf16, #tpu.memory_space<vmem>>, vector<32x256xbf16>,
    %c0_94 = arith.constant 0 : index
    %c145_95 = arith.constant 145 : index
    %167 = vector.load %arg22[%c0_94, %c145_95] : memref<32x401xf32, #tpu.memory_space<vmem>>, vector<32x256xf32>
    %168 = vector.broadcast %32 : vector<1x256xf32> to vector<32x256xf32>
    %169 = arith.mulf %167, %168 : vector<32x256xf32>
    %170 = arith.truncf %169 : vector<32x256xf32> to vector<32x256xbf16>
    %c256 = arith.constant 256 : index
    %c0_96 = arith.constant 0 : index
    %171 = vector.load %arg25[%c256, %c0_96] : memref<288x256xbf16, #tpu.memory_space<vmem>>, vector<32x256xbf16>
    tpu.vector_store %arg25[%c256, %c0_96], %170 {strides = array<i32>} : memref<288x256xbf16, #tpu.memory_space<vmem>>, vector<32x256xbf16>,
    %c0_97 = arith.constant 0 : index
    %c0_98 = arith.constant 0 : index
    %172 = vector.load %arg25[%c0_97, %c0_98] : memref<288x256xbf16, #tpu.memory_space<vmem>>, vector<288x256xbf16>
    %cst_99 = arith.constant dense<0.000000e+00> : vector<16x256xf32>
    %173 = tpu.matmul %130, %172, %cst_99 {dimension_numbers = #tpu.dot_dimension_numbers<[1], [0], [0], [1], [0, 0, 1, 1], [], []>} : vector<16x288xbf16>, vector<288x256xbf16>, vector<16x256xf32> -> vector<16x256xf32>
    %174 = vector.broadcast %132 : vector<16x1xf32> to vector<16x256xf32>
    %175 = arith.addf %173, %174 : vector<16x256xf32>
    %c0_100 = arith.constant 0 : index
    %c0_101 = arith.constant 0 : index
    %176 = vector.load %arg24[%c0_100, %c0_101] : memref<16x256xf32, #tpu.memory_space<vmem>>, vector<16x256xf32>
    tpu.vector_store %arg24[%c0_100, %c0_101], %175 {strides = array<i32>} : memref<16x256xf32, #tpu.memory_space<vmem>>, vector<16x256xf32>,
    %c0_102 = arith.constant 0 : index
    %c0_103 = arith.constant 0 : index
    %177 = vector.load %arg24[%c0_102, %c0_103] : memref<16x256xf32, #tpu.memory_space<vmem>>, vector<4x256xf32>
    %c0_104 = arith.constant 0 : index
    %c128_105 = arith.constant 128 : index
    %178 = vector.load %arg23[%c0_104, %c128_105] : memref<4x418xf32, #tpu.memory_space<vmem>>, vector<4x256xf32>
    tpu.vector_store %arg23[%c0_104, %c128_105], %177 {strides = array<i32>} : memref<4x418xf32, #tpu.memory_space<vmem>>, vector<4x256xf32>,
    %c0_106 = arith.constant 0 : index
    %c0_107 = arith.constant 0 : index
    %c0_108 = arith.constant 0 : index
    %179 = vector.load %arg9[%c0_106, %c0_107, %c0_108] : memref<1x4x100xf32, #tpu.memory_space<vmem>>, vector<1x4x100xf32>
    %180 = vector.shape_cast %179 : vector<1x4x100xf32> to vector<4x100xf32>
    %cst_109 = arith.constant 0.000000e+00 : f32
    %181 = vector.broadcast %cst_109 : f32 to vector<4x256xf32>
    %c0_110 = arith.constant 0 : index
    %c94 = arith.constant 94 : index
    %182 = vector.load %arg23[%c0_110, %c94] : memref<4x418xf32, #tpu.memory_space<vmem>>, vector<4x256xf32>
    %183 = vector.broadcast %40 : vector<1x256xf32> to vector<4x256xf32>
    %184 = arith.mulf %182, %183 : vector<4x256xf32>
    %185 = vector.extract_strided_slice %180 {offsets = [0, 0], sizes = [4, 1], strides = [1, 1]} : vector<4x100xf32> to vector<4x1xf32>
    %186 = vector.extract_strided_slice %184 {offsets = [0, 0], sizes = [1, 256], strides = [1, 1]} : vector<4x256xf32> to vector<1x256xf32>
    %187 = vector.broadcast %185 : vector<4x1xf32> to vector<4x256xf32>
    %188 = vector.broadcast %186 : vector<1x256xf32> to vector<4x256xf32>
    %189 = arith.mulf %187, %188 : vector<4x256xf32>
    %190 = arith.addf %181, %189 : vector<4x256xf32>
    %191 = vector.extract_strided_slice %180 {offsets = [0, 1], sizes = [4, 1], strides = [1, 1]} : vector<4x100xf32> to vector<4x1xf32>
    %192 = vector.extract_strided_slice %184 {offsets = [1, 0], sizes = [1, 256], strides = [1, 1]} : vector<4x256xf32> to vector<1x256xf32>
    %193 = vector.broadcast %191 : vector<4x1xf32> to vector<4x256xf32>
    %194 = vector.broadcast %192 : vector<1x256xf32> to vector<4x256xf32>
    %195 = arith.mulf %193, %194 : vector<4x256xf32>
    %196 = arith.addf %190, %195 : vector<4x256xf32>
    %197 = vector.extract_strided_slice %180 {offsets = [0, 2], sizes = [4, 1], strides = [1, 1]} : vector<4x100xf32> to vector<4x1xf32>
    %198 = vector.extract_strided_slice %184 {offsets = [2, 0], sizes = [1, 256], strides = [1, 1]} : vector<4x256xf32> to vector<1x256xf32>
    %199 = vector.broadcast %197 : vector<4x1xf32> to vector<4x256xf32>
    %200 = vector.broadcast %198 : vector<1x256xf32> to vector<4x256xf32>
    %201 = arith.mulf %199, %200 : vector<4x256xf32>
    %202 = arith.addf %196, %201 : vector<4x256xf32>
    %203 = vector.extract_strided_slice %180 {offsets = [0, 3], sizes = [4, 1], strides = [1, 1]} : vector<4x100xf32> to vector<4x1xf32>
    %204 = vector.extract_strided_slice %184 {offsets = [3, 0], sizes = [1, 256], strides = [1, 1]} : vector<4x256xf32> to vector<1x256xf32>
    %205 = vector.broadcast %203 : vector<4x1xf32> to vector<4x256xf32>
    %206 = vector.broadcast %204 : vector<1x256xf32> to vector<4x256xf32>
    %207 = arith.mulf %205, %206 : vector<4x256xf32>
    %208 = arith.addf %202, %207 : vector<4x256xf32>
    %c0_111 = arith.constant 0 : index
    %c95 = arith.constant 95 : index
    %209 = vector.load %arg23[%c0_111, %c95] : memref<4x418xf32, #tpu.memory_space<vmem>>, vector<4x256xf32>
    %210 = vector.broadcast %48 : vector<1x256xf32> to vector<4x256xf32>
    %211 = arith.mulf %209, %210 : vector<4x256xf32>
    %212 = vector.extract_strided_slice %180 {offsets = [0, 4], sizes = [4, 1], strides = [1, 1]} : vector<4x100xf32> to vector<4x1xf32>
    %213 = vector.extract_strided_slice %211 {offsets = [0, 0], sizes = [1, 256], strides = [1, 1]} : vector<4x256xf32> to vector<1x256xf32>
    %214 = vector.broadcast %212 : vector<4x1xf32> to vector<4x256xf32>
    %215 = vector.broadcast %213 : vector<1x256xf32> to vector<4x256xf32>
    %216 = arith.mulf %214, %215 : vector<4x256xf32>
    %217 = arith.addf %208, %216 : vector<4x256xf32>
    %218 = vector.extract_strided_slice %180 {offsets = [0, 5], sizes = [4, 1], strides = [1, 1]} : vector<4x100xf32> to vector<4x1xf32>
    %219 = vector.extract_strided_slice %211 {offsets = [1, 0], sizes = [1, 256], strides = [1, 1]} : vector<4x256xf32> to vector<1x256xf32>
    %220 = vector.broadcast %218 : vector<4x1xf32> to vector<4x256xf32>
    %221 = vector.broadcast %219 : vector<1x256xf32> to vector<4x256xf32>
    %222 = arith.mulf %220, %221 : vector<4x256xf32>
    %223 = arith.addf %217, %222 : vector<4x256xf32>
    %224 = vector.extract_strided_slice %180 {offsets = [0, 6], sizes = [4, 1], strides = [1, 1]} : vector<4x100xf32> to vector<4x1xf32>
    %225 = vector.extract_strided_slice %211 {offsets = [2, 0], sizes = [1, 256], strides = [1, 1]} : vector<4x256xf32> to vector<1x256xf32>
    %226 = vector.broadcast %224 : vector<4x1xf32> to vector<4x256xf32>
    %227 = vector.broadcast %225 : vector<1x256xf32> to vector<4x256xf32>
    %228 = arith.mulf %226, %227 : vector<4x256xf32>
    %229 = arith.addf %223, %228 : vector<4x256xf32>
    %230 = vector.extract_strided_slice %180 {offsets = [0, 7], sizes = [4, 1], strides = [1, 1]} : vector<4x100xf32> to vector<4x1xf32>
    %231 = vector.extract_strided_slice %211 {offsets = [3, 0], sizes = [1, 256], strides = [1, 1]} : vector<4x256xf32> to vector<1x256xf32>
    %232 = vector.broadcast %230 : vector<4x1xf32> to vector<4x256xf32>
    %233 = vector.broadcast %231 : vector<1x256xf32> to vector<4x256xf32>
    %234 = arith.mulf %232, %233 : vector<4x256xf32>
    %235 = arith.addf %229, %234 : vector<4x256xf32>
    %c0_112 = arith.constant 0 : index
    %c96_113 = arith.constant 96 : index
    %236 = vector.load %arg23[%c0_112, %c96_113] : memref<4x418xf32, #tpu.memory_space<vmem>>, vector<4x256xf32>
    %237 = vector.extract_strided_slice %180 {offsets = [0, 8], sizes = [4, 1], strides = [1, 1]} : vector<4x100xf32> to vector<4x1xf32>
    %238 = vector.extract_strided_slice %236 {offsets = [0, 0], sizes = [1, 256], strides = [1, 1]} : vector<4x256xf32> to vector<1x256xf32>
    %239 = vector.broadcast %237 : vector<4x1xf32> to vector<4x256xf32>
    %240 = vector.broadcast %238 : vector<1x256xf32> to vector<4x256xf32>
    %241 = arith.mulf %239, %240 : vector<4x256xf32>
    %242 = arith.addf %235, %241 : vector<4x256xf32>
    %243 = vector.extract_strided_slice %180 {offsets = [0, 9], sizes = [4, 1], strides = [1, 1]} : vector<4x100xf32> to vector<4x1xf32>
    %244 = vector.extract_strided_slice %236 {offsets = [1, 0], sizes = [1, 256], strides = [1, 1]} : vector<4x256xf32> to vector<1x256xf32>
    %245 = vector.broadcast %243 : vector<4x1xf32> to vector<4x256xf32>
    %246 = vector.broadcast %244 : vector<1x256xf32> to vector<4x256xf32>
    %247 = arith.mulf %245, %246 : vector<4x256xf32>
    %248 = arith.addf %242, %247 : vector<4x256xf32>
    %249 = vector.extract_strided_slice %180 {offsets = [0, 10], sizes = [4, 1], strides = [1, 1]} : vector<4x100xf32> to vector<4x1xf32>
    %250 = vector.extract_strided_slice %236 {offsets = [2, 0], sizes = [1, 256], strides = [1, 1]} : vector<4x256xf32> to vector<1x256xf32>
    %251 = vector.broadcast %249 : vector<4x1xf32> to vector<4x256xf32>
    %252 = vector.broadcast %250 : vector<1x256xf32> to vector<4x256xf32>
    %253 = arith.mulf %251, %252 : vector<4x256xf32>
    %254 = arith.addf %248, %253 : vector<4x256xf32>
    %255 = vector.extract_strided_slice %180 {offsets = [0, 11], sizes = [4, 1], strides = [1, 1]} : vector<4x100xf32> to vector<4x1xf32>
    %256 = vector.extract_strided_slice %236 {offsets = [3, 0], sizes = [1, 256], strides = [1, 1]} : vector<4x256xf32> to vector<1x256xf32>
    %257 = vector.broadcast %255 : vector<4x1xf32> to vector<4x256xf32>
    %258 = vector.broadcast %256 : vector<1x256xf32> to vector<4x256xf32>
    %259 = arith.mulf %257, %258 : vector<4x256xf32>
    %260 = arith.addf %254, %259 : vector<4x256xf32>
    %c0_114 = arith.constant 0 : index
    %c97 = arith.constant 97 : index
    %261 = vector.load %arg23[%c0_114, %c97] : memref<4x418xf32, #tpu.memory_space<vmem>>, vector<4x256xf32>
    %262 = vector.broadcast %56 : vector<1x256xf32> to vector<4x256xf32>
    %263 = arith.mulf %261, %262 : vector<4x256xf32>
    %264 = vector.extract_strided_slice %180 {offsets = [0, 12], sizes = [4, 1], strides = [1, 1]} : vector<4x100xf32> to vector<4x1xf32>
    %265 = vector.extract_strided_slice %263 {offsets = [0, 0], sizes = [1, 256], strides = [1, 1]} : vector<4x256xf32> to vector<1x256xf32>
    %266 = vector.broadcast %264 : vector<4x1xf32> to vector<4x256xf32>
    %267 = vector.broadcast %265 : vector<1x256xf32> to vector<4x256xf32>
    %268 = arith.mulf %266, %267 : vector<4x256xf32>
    %269 = arith.addf %260, %268 : vector<4x256xf32>
    %270 = vector.extract_strided_slice %180 {offsets = [0, 13], sizes = [4, 1], strides = [1, 1]} : vector<4x100xf32> to vector<4x1xf32>
    %271 = vector.extract_strided_slice %263 {offsets = [1, 0], sizes = [1, 256], strides = [1, 1]} : vector<4x256xf32> to vector<1x256xf32>
    %272 = vector.broadcast %270 : vector<4x1xf32> to vector<4x256xf32>
    %273 = vector.broadcast %271 : vector<1x256xf32> to vector<4x256xf32>
    %274 = arith.mulf %272, %273 : vector<4x256xf32>
    %275 = arith.addf %269, %274 : vector<4x256xf32>
    %276 = vector.extract_strided_slice %180 {offsets = [0, 14], sizes = [4, 1], strides = [1, 1]} : vector<4x100xf32> to vector<4x1xf32>
    %277 = vector.extract_strided_slice %263 {offsets = [2, 0], sizes = [1, 256], strides = [1, 1]} : vector<4x256xf32> to vector<1x256xf32>
    %278 = vector.broadcast %276 : vector<4x1xf32> to vector<4x256xf32>
    %279 = vector.broadcast %277 : vector<1x256xf32> to vector<4x256xf32>
    %280 = arith.mulf %278, %279 : vector<4x256xf32>
    %281 = arith.addf %275, %280 : vector<4x256xf32>
    %282 = vector.extract_strided_slice %180 {offsets = [0, 15], sizes = [4, 1], strides = [1, 1]} : vector<4x100xf32> to vector<4x1xf32>
    %283 = vector.extract_strided_slice %263 {offsets = [3, 0], sizes = [1, 256], strides = [1, 1]} : vector<4x256xf32> to vector<1x256xf32>
    %284 = vector.broadcast %282 : vector<4x1xf32> to vector<4x256xf32>
    %285 = vector.broadcast %283 : vector<1x256xf32> to vector<4x256xf32>
    %286 = arith.mulf %284, %285 : vector<4x256xf32>
    %287 = arith.addf %281, %286 : vector<4x256xf32>
    %c0_115 = arith.constant 0 : index
    %c98 = arith.constant 98 : index
    %288 = vector.load %arg23[%c0_115, %c98] : memref<4x418xf32, #tpu.memory_space<vmem>>, vector<4x256xf32>
    %289 = vector.broadcast %64 : vector<1x256xf32> to vector<4x256xf32>
    %290 = arith.mulf %288, %289 : vector<4x256xf32>
    %291 = vector.extract_strided_slice %180 {offsets = [0, 16], sizes = [4, 1], strides = [1, 1]} : vector<4x100xf32> to vector<4x1xf32>
    %292 = vector.extract_strided_slice %290 {offsets = [0, 0], sizes = [1, 256], strides = [1, 1]} : vector<4x256xf32> to vector<1x256xf32>
    %293 = vector.broadcast %291 : vector<4x1xf32> to vector<4x256xf32>
    %294 = vector.broadcast %292 : vector<1x256xf32> to vector<4x256xf32>
    %295 = arith.mulf %293, %294 : vector<4x256xf32>
    %296 = arith.addf %287, %295 : vector<4x256xf32>
    %297 = vector.extract_strided_slice %180 {offsets = [0, 17], sizes = [4, 1], strides = [1, 1]} : vector<4x100xf32> to vector<4x1xf32>
    %298 = vector.extract_strided_slice %290 {offsets = [1, 0], sizes = [1, 256], strides = [1, 1]} : vector<4x256xf32> to vector<1x256xf32>
    %299 = vector.broadcast %297 : vector<4x1xf32> to vector<4x256xf32>
    %300 = vector.broadcast %298 : vector<1x256xf32> to vector<4x256xf32>
    %301 = arith.mulf %299, %300 : vector<4x256xf32>
    %302 = arith.addf %296, %301 : vector<4x256xf32>
    %303 = vector.extract_strided_slice %180 {offsets = [0, 18], sizes = [4, 1], strides = [1, 1]} : vector<4x100xf32> to vector<4x1xf32>
    %304 = vector.extract_strided_slice %290 {offsets = [2, 0], sizes = [1, 256], strides = [1, 1]} : vector<4x256xf32> to vector<1x256xf32>
    %305 = vector.broadcast %303 : vector<4x1xf32> to vector<4x256xf32>
    %306 = vector.broadcast %304 : vector<1x256xf32> to vector<4x256xf32>
    %307 = arith.mulf %305, %306 : vector<4x256xf32>
    %308 = arith.addf %302, %307 : vector<4x256xf32>
    %309 = vector.extract_strided_slice %180 {offsets = [0, 19], sizes = [4, 1], strides = [1, 1]} : vector<4x100xf32> to vector<4x1xf32>
    %310 = vector.extract_strided_slice %290 {offsets = [3, 0], sizes = [1, 256], strides = [1, 1]} : vector<4x256xf32> to vector<1x256xf32>
    %311 = vector.broadcast %309 : vector<4x1xf32> to vector<4x256xf32>
    %312 = vector.broadcast %310 : vector<1x256xf32> to vector<4x256xf32>
    %313 = arith.mulf %311, %312 : vector<4x256xf32>
    %314 = arith.addf %308, %313 : vector<4x256xf32>
    %c0_116 = arith.constant 0 : index
    %c110 = arith.constant 110 : index
    %315 = vector.load %arg23[%c0_116, %c110] : memref<4x418xf32, #tpu.memory_space<vmem>>, vector<4x256xf32>
    %316 = vector.broadcast %40 : vector<1x256xf32> to vector<4x256xf32>
    %317 = arith.mulf %315, %316 : vector<4x256xf32>
    %318 = vector.extract_strided_slice %180 {offsets = [0, 20], sizes = [4, 1], strides = [1, 1]} : vector<4x100xf32> to vector<4x1xf32>
    %319 = vector.extract_strided_slice %317 {offsets = [0, 0], sizes = [1, 256], strides = [1, 1]} : vector<4x256xf32> to vector<1x256xf32>
    %320 = vector.broadcast %318 : vector<4x1xf32> to vector<4x256xf32>
    %321 = vector.broadcast %319 : vector<1x256xf32> to vector<4x256xf32>
    %322 = arith.mulf %320, %321 : vector<4x256xf32>
    %323 = arith.addf %314, %322 : vector<4x256xf32>
    %324 = vector.extract_strided_slice %180 {offsets = [0, 21], sizes = [4, 1], strides = [1, 1]} : vector<4x100xf32> to vector<4x1xf32>
    %325 = vector.extract_strided_slice %317 {offsets = [1, 0], sizes = [1, 256], strides = [1, 1]} : vector<4x256xf32> to vector<1x256xf32>
    %326 = vector.broadcast %324 : vector<4x1xf32> to vector<4x256xf32>
    %327 = vector.broadcast %325 : vector<1x256xf32> to vector<4x256xf32>
    %328 = arith.mulf %326, %327 : vector<4x256xf32>
    %329 = arith.addf %323, %328 : vector<4x256xf32>
    %330 = vector.extract_strided_slice %180 {offsets = [0, 22], sizes = [4, 1], strides = [1, 1]} : vector<4x100xf32> to vector<4x1xf32>
    %331 = vector.extract_strided_slice %317 {offsets = [2, 0], sizes = [1, 256], strides = [1, 1]} : vector<4x256xf32> to vector<1x256xf32>
    %332 = vector.broadcast %330 : vector<4x1xf32> to vector<4x256xf32>
    %333 = vector.broadcast %331 : vector<1x256xf32> to vector<4x256xf32>
    %334 = arith.mulf %332, %333 : vector<4x256xf32>
    %335 = arith.addf %329, %334 : vector<4x256xf32>
    %336 = vector.extract_strided_slice %180 {offsets = [0, 23], sizes = [4, 1], strides = [1, 1]} : vector<4x100xf32> to vector<4x1xf32>
    %337 = vector.extract_strided_slice %317 {offsets = [3, 0], sizes = [1, 256], strides = [1, 1]} : vector<4x256xf32> to vector<1x256xf32>
    %338 = vector.broadcast %336 : vector<4x1xf32> to vector<4x256xf32>
    %339 = vector.broadcast %337 : vector<1x256xf32> to vector<4x256xf32>
    %340 = arith.mulf %338, %339 : vector<4x256xf32>
    %341 = arith.addf %335, %340 : vector<4x256xf32>
    %c0_117 = arith.constant 0 : index
    %c111_118 = arith.constant 111 : index
    %342 = vector.load %arg23[%c0_117, %c111_118] : memref<4x418xf32, #tpu.memory_space<vmem>>, vector<4x256xf32>
    %343 = vector.broadcast %48 : vector<1x256xf32> to vector<4x256xf32>
    %344 = arith.mulf %342, %343 : vector<4x256xf32>
    %345 = vector.extract_strided_slice %180 {offsets = [0, 24], sizes = [4, 1], strides = [1, 1]} : vector<4x100xf32> to vector<4x1xf32>
    %346 = vector.extract_strided_slice %344 {offsets = [0, 0], sizes = [1, 256], strides = [1, 1]} : vector<4x256xf32> to vector<1x256xf32>
    %347 = vector.broadcast %345 : vector<4x1xf32> to vector<4x256xf32>
    %348 = vector.broadcast %346 : vector<1x256xf32> to vector<4x256xf32>
    %349 = arith.mulf %347, %348 : vector<4x256xf32>
    %350 = arith.addf %341, %349 : vector<4x256xf32>
    %351 = vector.extract_strided_slice %180 {offsets = [0, 25], sizes = [4, 1], strides = [1, 1]} : vector<4x100xf32> to vector<4x1xf32>
    %352 = vector.extract_strided_slice %344 {offsets = [1, 0], sizes = [1, 256], strides = [1, 1]} : vector<4x256xf32> to vector<1x256xf32>
    %353 = vector.broadcast %351 : vector<4x1xf32> to vector<4x256xf32>
    %354 = vector.broadcast %352 : vector<1x256xf32> to vector<4x256xf32>
    %355 = arith.mulf %353, %354 : vector<4x256xf32>
    %356 = arith.addf %350, %355 : vector<4x256xf32>
    %357 = vector.extract_strided_slice %180 {offsets = [0, 26], sizes = [4, 1], strides = [1, 1]} : vector<4x100xf32> to vector<4x1xf32>
    %358 = vector.extract_strided_slice %344 {offsets = [2, 0], sizes = [1, 256], strides = [1, 1]} : vector<4x256xf32> to vector<1x256xf32>
    %359 = vector.broadcast %357 : vector<4x1xf32> to vector<4x256xf32>
    %360 = vector.broadcast %358 : vector<1x256xf32> to vector<4x256xf32>
    %361 = arith.mulf %359, %360 : vector<4x256xf32>
    %362 = arith.addf %356, %361 : vector<4x256xf32>
    %363 = vector.extract_strided_slice %180 {offsets = [0, 27], sizes = [4, 1], strides = [1, 1]} : vector<4x100xf32> to vector<4x1xf32>
    %364 = vector.extract_strided_slice %344 {offsets = [3, 0], sizes = [1, 256], strides = [1, 1]} : vector<4x256xf32> to vector<1x256xf32>
    %365 = vector.broadcast %363 : vector<4x1xf32> to vector<4x256xf32>
    %366 = vector.broadcast %364 : vector<1x256xf32> to vector<4x256xf32>
    %367 = arith.mulf %365, %366 : vector<4x256xf32>
    %368 = arith.addf %362, %367 : vector<4x256xf32>
    %c0_119 = arith.constant 0 : index
    %c112_120 = arith.constant 112 : index
    %369 = vector.load %arg23[%c0_119, %c112_120] : memref<4x418xf32, #tpu.memory_space<vmem>>, vector<4x256xf32>
    %370 = vector.extract_strided_slice %180 {offsets = [0, 28], sizes = [4, 1], strides = [1, 1]} : vector<4x100xf32> to vector<4x1xf32>
    %371 = vector.extract_strided_slice %369 {offsets = [0, 0], sizes = [1, 256], strides = [1, 1]} : vector<4x256xf32> to vector<1x256xf32>
    %372 = vector.broadcast %370 : vector<4x1xf32> to vector<4x256xf32>
    %373 = vector.broadcast %371 : vector<1x256xf32> to vector<4x256xf32>
    %374 = arith.mulf %372, %373 : vector<4x256xf32>
    %375 = arith.addf %368, %374 : vector<4x256xf32>
    %376 = vector.extract_strided_slice %180 {offsets = [0, 29], sizes = [4, 1], strides = [1, 1]} : vector<4x100xf32> to vector<4x1xf32>
    %377 = vector.extract_strided_slice %369 {offsets = [1, 0], sizes = [1, 256], strides = [1, 1]} : vector<4x256xf32> to vector<1x256xf32>
    %378 = vector.broadcast %376 : vector<4x1xf32> to vector<4x256xf32>
    %379 = vector.broadcast %377 : vector<1x256xf32> to vector<4x256xf32>
    %380 = arith.mulf %378, %379 : vector<4x256xf32>
    %381 = arith.addf %375, %380 : vector<4x256xf32>
    %382 = vector.extract_strided_slice %180 {offsets = [0, 30], sizes = [4, 1], strides = [1, 1]} : vector<4x100xf32> to vector<4x1xf32>
    %383 = vector.extract_strided_slice %369 {offsets = [2, 0], sizes = [1, 256], strides = [1, 1]} : vector<4x256xf32> to vector<1x256xf32>
    %384 = vector.broadcast %382 : vector<4x1xf32> to vector<4x256xf32>
    %385 = vector.broadcast %383 : vector<1x256xf32> to vector<4x256xf32>
    %386 = arith.mulf %384, %385 : vector<4x256xf32>
    %387 = arith.addf %381, %386 : vector<4x256xf32>
    %388 = vector.extract_strided_slice %180 {offsets = [0, 31], sizes = [4, 1], strides = [1, 1]} : vector<4x100xf32> to vector<4x1xf32>
    %389 = vector.extract_strided_slice %369 {offsets = [3, 0], sizes = [1, 256], strides = [1, 1]} : vector<4x256xf32> to vector<1x256xf32>
    %390 = vector.broadcast %388 : vector<4x1xf32> to vector<4x256xf32>
    %391 = vector.broadcast %389 : vector<1x256xf32> to vector<4x256xf32>
    %392 = arith.mulf %390, %391 : vector<4x256xf32>
    %393 = arith.addf %387, %392 : vector<4x256xf32>
    %c0_121 = arith.constant 0 : index
    %c113_122 = arith.constant 113 : index
    %394 = vector.load %arg23[%c0_121, %c113_122] : memref<4x418xf32, #tpu.memory_space<vmem>>, vector<4x256xf32>
    %395 = vector.broadcast %56 : vector<1x256xf32> to vector<4x256xf32>
    %396 = arith.mulf %394, %395 : vector<4x256xf32>
    %397 = vector.extract_strided_slice %180 {offsets = [0, 32], sizes = [4, 1], strides = [1, 1]} : vector<4x100xf32> to vector<4x1xf32>
    %398 = vector.extract_strided_slice %396 {offsets = [0, 0], sizes = [1, 256], strides = [1, 1]} : vector<4x256xf32> to vector<1x256xf32>
    %399 = vector.broadcast %397 : vector<4x1xf32> to vector<4x256xf32>
    %400 = vector.broadcast %398 : vector<1x256xf32> to vector<4x256xf32>
    %401 = arith.mulf %399, %400 : vector<4x256xf32>
    %402 = arith.addf %393, %401 : vector<4x256xf32>
    %403 = vector.extract_strided_slice %180 {offsets = [0, 33], sizes = [4, 1], strides = [1, 1]} : vector<4x100xf32> to vector<4x1xf32>
    %404 = vector.extract_strided_slice %396 {offsets = [1, 0], sizes = [1, 256], strides = [1, 1]} : vector<4x256xf32> to vector<1x256xf32>
    %405 = vector.broadcast %403 : vector<4x1xf32> to vector<4x256xf32>
    %406 = vector.broadcast %404 : vector<1x256xf32> to vector<4x256xf32>
    %407 = arith.mulf %405, %406 : vector<4x256xf32>
    %408 = arith.addf %402, %407 : vector<4x256xf32>
    %409 = vector.extract_strided_slice %180 {offsets = [0, 34], sizes = [4, 1], strides = [1, 1]} : vector<4x100xf32> to vector<4x1xf32>
    %410 = vector.extract_strided_slice %396 {offsets = [2, 0], sizes = [1, 256], strides = [1, 1]} : vector<4x256xf32> to vector<1x256xf32>
    %411 = vector.broadcast %409 : vector<4x1xf32> to vector<4x256xf32>
    %412 = vector.broadcast %410 : vector<1x256xf32> to vector<4x256xf32>
    %413 = arith.mulf %411, %412 : vector<4x256xf32>
    %414 = arith.addf %408, %413 : vector<4x256xf32>
    %415 = vector.extract_strided_slice %180 {offsets = [0, 35], sizes = [4, 1], strides = [1, 1]} : vector<4x100xf32> to vector<4x1xf32>
    %416 = vector.extract_strided_slice %396 {offsets = [3, 0], sizes = [1, 256], strides = [1, 1]} : vector<4x256xf32> to vector<1x256xf32>
    %417 = vector.broadcast %415 : vector<4x1xf32> to vector<4x256xf32>
    %418 = vector.broadcast %416 : vector<1x256xf32> to vector<4x256xf32>
    %419 = arith.mulf %417, %418 : vector<4x256xf32>
    %420 = arith.addf %414, %419 : vector<4x256xf32>
    %c0_123 = arith.constant 0 : index
    %c114 = arith.constant 114 : index
    %421 = vector.load %arg23[%c0_123, %c114] : memref<4x418xf32, #tpu.memory_space<vmem>>, vector<4x256xf32>
    %422 = vector.broadcast %64 : vector<1x256xf32> to vector<4x256xf32>
    %423 = arith.mulf %421, %422 : vector<4x256xf32>
    %424 = vector.extract_strided_slice %180 {offsets = [0, 36], sizes = [4, 1], strides = [1, 1]} : vector<4x100xf32> to vector<4x1xf32>
    %425 = vector.extract_strided_slice %423 {offsets = [0, 0], sizes = [1, 256], strides = [1, 1]} : vector<4x256xf32> to vector<1x256xf32>
    %426 = vector.broadcast %424 : vector<4x1xf32> to vector<4x256xf32>
    %427 = vector.broadcast %425 : vector<1x256xf32> to vector<4x256xf32>
    %428 = arith.mulf %426, %427 : vector<4x256xf32>
    %429 = arith.addf %420, %428 : vector<4x256xf32>
    %430 = vector.extract_strided_slice %180 {offsets = [0, 37], sizes = [4, 1], strides = [1, 1]} : vector<4x100xf32> to vector<4x1xf32>
    %431 = vector.extract_strided_slice %423 {offsets = [1, 0], sizes = [1, 256], strides = [1, 1]} : vector<4x256xf32> to vector<1x256xf32>
    %432 = vector.broadcast %430 : vector<4x1xf32> to vector<4x256xf32>
    %433 = vector.broadcast %431 : vector<1x256xf32> to vector<4x256xf32>
    %434 = arith.mulf %432, %433 : vector<4x256xf32>
    %435 = arith.addf %429, %434 : vector<4x256xf32>
    %436 = vector.extract_strided_slice %180 {offsets = [0, 38], sizes = [4, 1], strides = [1, 1]} : vector<4x100xf32> to vector<4x1xf32>
    %437 = vector.extract_strided_slice %423 {offsets = [2, 0], sizes = [1, 256], strides = [1, 1]} : vector<4x256xf32> to vector<1x256xf32>
    %438 = vector.broadcast %436 : vector<4x1xf32> to vector<4x256xf32>
    %439 = vector.broadcast %437 : vector<1x256xf32> to vector<4x256xf32>
    %440 = arith.mulf %438, %439 : vector<4x256xf32>
    %441 = arith.addf %435, %440 : vector<4x256xf32>
    %442 = vector.extract_strided_slice %180 {offsets = [0, 39], sizes = [4, 1], strides = [1, 1]} : vector<4x100xf32> to vector<4x1xf32>
    %443 = vector.extract_strided_slice %423 {offsets = [3, 0], sizes = [1, 256], strides = [1, 1]} : vector<4x256xf32> to vector<1x256xf32>
    %444 = vector.broadcast %442 : vector<4x1xf32> to vector<4x256xf32>
    %445 = vector.broadcast %443 : vector<1x256xf32> to vector<4x256xf32>
    %446 = arith.mulf %444, %445 : vector<4x256xf32>
    %447 = arith.addf %441, %446 : vector<4x256xf32>
    %c0_124 = arith.constant 0 : index
    %c126 = arith.constant 126 : index
    %448 = vector.load %arg23[%c0_124, %c126] : memref<4x418xf32, #tpu.memory_space<vmem>>, vector<4x256xf32>
    %449 = vector.broadcast %40 : vector<1x256xf32> to vector<4x256xf32>
    %450 = arith.mulf %448, %449 : vector<4x256xf32>
    %451 = vector.extract_strided_slice %180 {offsets = [0, 40], sizes = [4, 1], strides = [1, 1]} : vector<4x100xf32> to vector<4x1xf32>
    %452 = vector.extract_strided_slice %450 {offsets = [0, 0], sizes = [1, 256], strides = [1, 1]} : vector<4x256xf32> to vector<1x256xf32>
    %453 = vector.broadcast %451 : vector<4x1xf32> to vector<4x256xf32>
    %454 = vector.broadcast %452 : vector<1x256xf32> to vector<4x256xf32>
    %455 = arith.mulf %453, %454 : vector<4x256xf32>
    %456 = arith.addf %447, %455 : vector<4x256xf32>
    %457 = vector.extract_strided_slice %180 {offsets = [0, 41], sizes = [4, 1], strides = [1, 1]} : vector<4x100xf32> to vector<4x1xf32>
    %458 = vector.extract_strided_slice %450 {offsets = [1, 0], sizes = [1, 256], strides = [1, 1]} : vector<4x256xf32> to vector<1x256xf32>
    %459 = vector.broadcast %457 : vector<4x1xf32> to vector<4x256xf32>
    %460 = vector.broadcast %458 : vector<1x256xf32> to vector<4x256xf32>
    %461 = arith.mulf %459, %460 : vector<4x256xf32>
    %462 = arith.addf %456, %461 : vector<4x256xf32>
    %463 = vector.extract_strided_slice %180 {offsets = [0, 42], sizes = [4, 1], strides = [1, 1]} : vector<4x100xf32> to vector<4x1xf32>
    %464 = vector.extract_strided_slice %450 {offsets = [2, 0], sizes = [1, 256], strides = [1, 1]} : vector<4x256xf32> to vector<1x256xf32>
    %465 = vector.broadcast %463 : vector<4x1xf32> to vector<4x256xf32>
    %466 = vector.broadcast %464 : vector<1x256xf32> to vector<4x256xf32>
    %467 = arith.mulf %465, %466 : vector<4x256xf32>
    %468 = arith.addf %462, %467 : vector<4x256xf32>
    %469 = vector.extract_strided_slice %180 {offsets = [0, 43], sizes = [4, 1], strides = [1, 1]} : vector<4x100xf32> to vector<4x1xf32>
    %470 = vector.extract_strided_slice %450 {offsets = [3, 0], sizes = [1, 256], strides = [1, 1]} : vector<4x256xf32> to vector<1x256xf32>
    %471 = vector.broadcast %469 : vector<4x1xf32> to vector<4x256xf32>
    %472 = vector.broadcast %470 : vector<1x256xf32> to vector<4x256xf32>
    %473 = arith.mulf %471, %472 : vector<4x256xf32>
    %474 = arith.addf %468, %473 : vector<4x256xf32>
    %c0_125 = arith.constant 0 : index
    %c127_126 = arith.constant 127 : index
    %475 = vector.load %arg23[%c0_125, %c127_126] : memref<4x418xf32, #tpu.memory_space<vmem>>, vector<4x256xf32>
    %476 = vector.broadcast %48 : vector<1x256xf32> to vector<4x256xf32>
    %477 = arith.mulf %475, %476 : vector<4x256xf32>
    %478 = vector.extract_strided_slice %180 {offsets = [0, 44], sizes = [4, 1], strides = [1, 1]} : vector<4x100xf32> to vector<4x1xf32>
    %479 = vector.extract_strided_slice %477 {offsets = [0, 0], sizes = [1, 256], strides = [1, 1]} : vector<4x256xf32> to vector<1x256xf32>
    %480 = vector.broadcast %478 : vector<4x1xf32> to vector<4x256xf32>
    %481 = vector.broadcast %479 : vector<1x256xf32> to vector<4x256xf32>
    %482 = arith.mulf %480, %481 : vector<4x256xf32>
    %483 = arith.addf %474, %482 : vector<4x256xf32>
    %484 = vector.extract_strided_slice %180 {offsets = [0, 45], sizes = [4, 1], strides = [1, 1]} : vector<4x100xf32> to vector<4x1xf32>
    %485 = vector.extract_strided_slice %477 {offsets = [1, 0], sizes = [1, 256], strides = [1, 1]} : vector<4x256xf32> to vector<1x256xf32>
    %486 = vector.broadcast %484 : vector<4x1xf32> to vector<4x256xf32>
    %487 = vector.broadcast %485 : vector<1x256xf32> to vector<4x256xf32>
    %488 = arith.mulf %486, %487 : vector<4x256xf32>
    %489 = arith.addf %483, %488 : vector<4x256xf32>
    %490 = vector.extract_strided_slice %180 {offsets = [0, 46], sizes = [4, 1], strides = [1, 1]} : vector<4x100xf32> to vector<4x1xf32>
    %491 = vector.extract_strided_slice %477 {offsets = [2, 0], sizes = [1, 256], strides = [1, 1]} : vector<4x256xf32> to vector<1x256xf32>
    %492 = vector.broadcast %490 : vector<4x1xf32> to vector<4x256xf32>
    %493 = vector.broadcast %491 : vector<1x256xf32> to vector<4x256xf32>
    %494 = arith.mulf %492, %493 : vector<4x256xf32>
    %495 = arith.addf %489, %494 : vector<4x256xf32>
    %496 = vector.extract_strided_slice %180 {offsets = [0, 47], sizes = [4, 1], strides = [1, 1]} : vector<4x100xf32> to vector<4x1xf32>
    %497 = vector.extract_strided_slice %477 {offsets = [3, 0], sizes = [1, 256], strides = [1, 1]} : vector<4x256xf32> to vector<1x256xf32>
    %498 = vector.broadcast %496 : vector<4x1xf32> to vector<4x256xf32>
    %499 = vector.broadcast %497 : vector<1x256xf32> to vector<4x256xf32>
    %500 = arith.mulf %498, %499 : vector<4x256xf32>
    %501 = arith.addf %495, %500 : vector<4x256xf32>
    %c0_127 = arith.constant 0 : index
    %c128_128 = arith.constant 128 : index
    %502 = vector.load %arg23[%c0_127, %c128_128] : memref<4x418xf32, #tpu.memory_space<vmem>>, vector<4x256xf32>
    %503 = vector.extract_strided_slice %180 {offsets = [0, 48], sizes = [4, 1], strides = [1, 1]} : vector<4x100xf32> to vector<4x1xf32>
    %504 = vector.extract_strided_slice %502 {offsets = [0, 0], sizes = [1, 256], strides = [1, 1]} : vector<4x256xf32> to vector<1x256xf32>
    %505 = vector.broadcast %503 : vector<4x1xf32> to vector<4x256xf32>
    %506 = vector.broadcast %504 : vector<1x256xf32> to vector<4x256xf32>
    %507 = arith.mulf %505, %506 : vector<4x256xf32>
    %508 = arith.addf %501, %507 : vector<4x256xf32>
    %509 = vector.extract_strided_slice %180 {offsets = [0, 49], sizes = [4, 1], strides = [1, 1]} : vector<4x100xf32> to vector<4x1xf32>
    %510 = vector.extract_strided_slice %502 {offsets = [1, 0], sizes = [1, 256], strides = [1, 1]} : vector<4x256xf32> to vector<1x256xf32>
    %511 = vector.broadcast %509 : vector<4x1xf32> to vector<4x256xf32>
    %512 = vector.broadcast %510 : vector<1x256xf32> to vector<4x256xf32>
    %513 = arith.mulf %511, %512 : vector<4x256xf32>
    %514 = arith.addf %508, %513 : vector<4x256xf32>
    %515 = vector.extract_strided_slice %180 {offsets = [0, 50], sizes = [4, 1], strides = [1, 1]} : vector<4x100xf32> to vector<4x1xf32>
    %516 = vector.extract_strided_slice %502 {offsets = [2, 0], sizes = [1, 256], strides = [1, 1]} : vector<4x256xf32> to vector<1x256xf32>
    %517 = vector.broadcast %515 : vector<4x1xf32> to vector<4x256xf32>
    %518 = vector.broadcast %516 : vector<1x256xf32> to vector<4x256xf32>
    %519 = arith.mulf %517, %518 : vector<4x256xf32>
    %520 = arith.addf %514, %519 : vector<4x256xf32>
    %521 = vector.extract_strided_slice %180 {offsets = [0, 51], sizes = [4, 1], strides = [1, 1]} : vector<4x100xf32> to vector<4x1xf32>
    %522 = vector.extract_strided_slice %502 {offsets = [3, 0], sizes = [1, 256], strides = [1, 1]} : vector<4x256xf32> to vector<1x256xf32>
    %523 = vector.broadcast %521 : vector<4x1xf32> to vector<4x256xf32>
    %524 = vector.broadcast %522 : vector<1x256xf32> to vector<4x256xf32>
    %525 = arith.mulf %523, %524 : vector<4x256xf32>
    %526 = arith.addf %520, %525 : vector<4x256xf32>
    %c0_129 = arith.constant 0 : index
    %c129_130 = arith.constant 129 : index
    %527 = vector.load %arg23[%c0_129, %c129_130] : memref<4x418xf32, #tpu.memory_space<vmem>>, vector<4x256xf32>
    %528 = vector.broadcast %56 : vector<1x256xf32> to vector<4x256xf32>
    %529 = arith.mulf %527, %528 : vector<4x256xf32>
    %530 = vector.extract_strided_slice %180 {offsets = [0, 52], sizes = [4, 1], strides = [1, 1]} : vector<4x100xf32> to vector<4x1xf32>
    %531 = vector.extract_strided_slice %529 {offsets = [0, 0], sizes = [1, 256], strides = [1, 1]} : vector<4x256xf32> to vector<1x256xf32>
    %532 = vector.broadcast %530 : vector<4x1xf32> to vector<4x256xf32>
    %533 = vector.broadcast %531 : vector<1x256xf32> to vector<4x256xf32>
    %534 = arith.mulf %532, %533 : vector<4x256xf32>
    %535 = arith.addf %526, %534 : vector<4x256xf32>
    %536 = vector.extract_strided_slice %180 {offsets = [0, 53], sizes = [4, 1], strides = [1, 1]} : vector<4x100xf32> to vector<4x1xf32>
    %537 = vector.extract_strided_slice %529 {offsets = [1, 0], sizes = [1, 256], strides = [1, 1]} : vector<4x256xf32> to vector<1x256xf32>
    %538 = vector.broadcast %536 : vector<4x1xf32> to vector<4x256xf32>
    %539 = vector.broadcast %537 : vector<1x256xf32> to vector<4x256xf32>
    %540 = arith.mulf %538, %539 : vector<4x256xf32>
    %541 = arith.addf %535, %540 : vector<4x256xf32>
    %542 = vector.extract_strided_slice %180 {offsets = [0, 54], sizes = [4, 1], strides = [1, 1]} : vector<4x100xf32> to vector<4x1xf32>
    %543 = vector.extract_strided_slice %529 {offsets = [2, 0], sizes = [1, 256], strides = [1, 1]} : vector<4x256xf32> to vector<1x256xf32>
    %544 = vector.broadcast %542 : vector<4x1xf32> to vector<4x256xf32>
    %545 = vector.broadcast %543 : vector<1x256xf32> to vector<4x256xf32>
    %546 = arith.mulf %544, %545 : vector<4x256xf32>
    %547 = arith.addf %541, %546 : vector<4x256xf32>
    %548 = vector.extract_strided_slice %180 {offsets = [0, 55], sizes = [4, 1], strides = [1, 1]} : vector<4x100xf32> to vector<4x1xf32>
    %549 = vector.extract_strided_slice %529 {offsets = [3, 0], sizes = [1, 256], strides = [1, 1]} : vector<4x256xf32> to vector<1x256xf32>
    %550 = vector.broadcast %548 : vector<4x1xf32> to vector<4x256xf32>
    %551 = vector.broadcast %549 : vector<1x256xf32> to vector<4x256xf32>
    %552 = arith.mulf %550, %551 : vector<4x256xf32>
    %553 = arith.addf %547, %552 : vector<4x256xf32>
    %c0_131 = arith.constant 0 : index
    %c130 = arith.constant 130 : index
    %554 = vector.load %arg23[%c0_131, %c130] : memref<4x418xf32, #tpu.memory_space<vmem>>, vector<4x256xf32>
    %555 = vector.broadcast %64 : vector<1x256xf32> to vector<4x256xf32>
    %556 = arith.mulf %554, %555 : vector<4x256xf32>
    %557 = vector.extract_strided_slice %180 {offsets = [0, 56], sizes = [4, 1], strides = [1, 1]} : vector<4x100xf32> to vector<4x1xf32>
    %558 = vector.extract_strided_slice %556 {offsets = [0, 0], sizes = [1, 256], strides = [1, 1]} : vector<4x256xf32> to vector<1x256xf32>
    %559 = vector.broadcast %557 : vector<4x1xf32> to vector<4x256xf32>
    %560 = vector.broadcast %558 : vector<1x256xf32> to vector<4x256xf32>
    %561 = arith.mulf %559, %560 : vector<4x256xf32>
    %562 = arith.addf %553, %561 : vector<4x256xf32>
    %563 = vector.extract_strided_slice %180 {offsets = [0, 57], sizes = [4, 1], strides = [1, 1]} : vector<4x100xf32> to vector<4x1xf32>
    %564 = vector.extract_strided_slice %556 {offsets = [1, 0], sizes = [1, 256], strides = [1, 1]} : vector<4x256xf32> to vector<1x256xf32>
    %565 = vector.broadcast %563 : vector<4x1xf32> to vector<4x256xf32>
    %566 = vector.broadcast %564 : vector<1x256xf32> to vector<4x256xf32>
    %567 = arith.mulf %565, %566 : vector<4x256xf32>
    %568 = arith.addf %562, %567 : vector<4x256xf32>
    %569 = vector.extract_strided_slice %180 {offsets = [0, 58], sizes = [4, 1], strides = [1, 1]} : vector<4x100xf32> to vector<4x1xf32>
    %570 = vector.extract_strided_slice %556 {offsets = [2, 0], sizes = [1, 256], strides = [1, 1]} : vector<4x256xf32> to vector<1x256xf32>
    %571 = vector.broadcast %569 : vector<4x1xf32> to vector<4x256xf32>
    %572 = vector.broadcast %570 : vector<1x256xf32> to vector<4x256xf32>
    %573 = arith.mulf %571, %572 : vector<4x256xf32>
    %574 = arith.addf %568, %573 : vector<4x256xf32>
    %575 = vector.extract_strided_slice %180 {offsets = [0, 59], sizes = [4, 1], strides = [1, 1]} : vector<4x100xf32> to vector<4x1xf32>
    %576 = vector.extract_strided_slice %556 {offsets = [3, 0], sizes = [1, 256], strides = [1, 1]} : vector<4x256xf32> to vector<1x256xf32>
    %577 = vector.broadcast %575 : vector<4x1xf32> to vector<4x256xf32>
    %578 = vector.broadcast %576 : vector<1x256xf32> to vector<4x256xf32>
    %579 = arith.mulf %577, %578 : vector<4x256xf32>
    %580 = arith.addf %574, %579 : vector<4x256xf32>
    %c0_132 = arith.constant 0 : index
    %c142 = arith.constant 142 : index
    %581 = vector.load %arg23[%c0_132, %c142] : memref<4x418xf32, #tpu.memory_space<vmem>>, vector<4x256xf32>
    %582 = vector.broadcast %40 : vector<1x256xf32> to vector<4x256xf32>
    %583 = arith.mulf %581, %582 : vector<4x256xf32>
    %584 = vector.extract_strided_slice %180 {offsets = [0, 60], sizes = [4, 1], strides = [1, 1]} : vector<4x100xf32> to vector<4x1xf32>
    %585 = vector.extract_strided_slice %583 {offsets = [0, 0], sizes = [1, 256], strides = [1, 1]} : vector<4x256xf32> to vector<1x256xf32>
    %586 = vector.broadcast %584 : vector<4x1xf32> to vector<4x256xf32>
    %587 = vector.broadcast %585 : vector<1x256xf32> to vector<4x256xf32>
    %588 = arith.mulf %586, %587 : vector<4x256xf32>
    %589 = arith.addf %580, %588 : vector<4x256xf32>
    %590 = vector.extract_strided_slice %180 {offsets = [0, 61], sizes = [4, 1], strides = [1, 1]} : vector<4x100xf32> to vector<4x1xf32>
    %591 = vector.extract_strided_slice %583 {offsets = [1, 0], sizes = [1, 256], strides = [1, 1]} : vector<4x256xf32> to vector<1x256xf32>
    %592 = vector.broadcast %590 : vector<4x1xf32> to vector<4x256xf32>
    %593 = vector.broadcast %591 : vector<1x256xf32> to vector<4x256xf32>
    %594 = arith.mulf %592, %593 : vector<4x256xf32>
    %595 = arith.addf %589, %594 : vector<4x256xf32>
    %596 = vector.extract_strided_slice %180 {offsets = [0, 62], sizes = [4, 1], strides = [1, 1]} : vector<4x100xf32> to vector<4x1xf32>
    %597 = vector.extract_strided_slice %583 {offsets = [2, 0], sizes = [1, 256], strides = [1, 1]} : vector<4x256xf32> to vector<1x256xf32>
    %598 = vector.broadcast %596 : vector<4x1xf32> to vector<4x256xf32>
    %599 = vector.broadcast %597 : vector<1x256xf32> to vector<4x256xf32>
    %600 = arith.mulf %598, %599 : vector<4x256xf32>
    %601 = arith.addf %595, %600 : vector<4x256xf32>
    %602 = vector.extract_strided_slice %180 {offsets = [0, 63], sizes = [4, 1], strides = [1, 1]} : vector<4x100xf32> to vector<4x1xf32>
    %603 = vector.extract_strided_slice %583 {offsets = [3, 0], sizes = [1, 256], strides = [1, 1]} : vector<4x256xf32> to vector<1x256xf32>
    %604 = vector.broadcast %602 : vector<4x1xf32> to vector<4x256xf32>
    %605 = vector.broadcast %603 : vector<1x256xf32> to vector<4x256xf32>
    %606 = arith.mulf %604, %605 : vector<4x256xf32>
    %607 = arith.addf %601, %606 : vector<4x256xf32>
    %c0_133 = arith.constant 0 : index
    %c143_134 = arith.constant 143 : index
    %608 = vector.load %arg23[%c0_133, %c143_134] : memref<4x418xf32, #tpu.memory_space<vmem>>, vector<4x256xf32>
    %609 = vector.broadcast %48 : vector<1x256xf32> to vector<4x256xf32>
    %610 = arith.mulf %608, %609 : vector<4x256xf32>
    %611 = vector.extract_strided_slice %180 {offsets = [0, 64], sizes = [4, 1], strides = [1, 1]} : vector<4x100xf32> to vector<4x1xf32>
    %612 = vector.extract_strided_slice %610 {offsets = [0, 0], sizes = [1, 256], strides = [1, 1]} : vector<4x256xf32> to vector<1x256xf32>
    %613 = vector.broadcast %611 : vector<4x1xf32> to vector<4x256xf32>
    %614 = vector.broadcast %612 : vector<1x256xf32> to vector<4x256xf32>
    %615 = arith.mulf %613, %614 : vector<4x256xf32>
    %616 = arith.addf %607, %615 : vector<4x256xf32>
    %617 = vector.extract_strided_slice %180 {offsets = [0, 65], sizes = [4, 1], strides = [1, 1]} : vector<4x100xf32> to vector<4x1xf32>
    %618 = vector.extract_strided_slice %610 {offsets = [1, 0], sizes = [1, 256], strides = [1, 1]} : vector<4x256xf32> to vector<1x256xf32>
    %619 = vector.broadcast %617 : vector<4x1xf32> to vector<4x256xf32>
    %620 = vector.broadcast %618 : vector<1x256xf32> to vector<4x256xf32>
    %621 = arith.mulf %619, %620 : vector<4x256xf32>
    %622 = arith.addf %616, %621 : vector<4x256xf32>
    %623 = vector.extract_strided_slice %180 {offsets = [0, 66], sizes = [4, 1], strides = [1, 1]} : vector<4x100xf32> to vector<4x1xf32>
    %624 = vector.extract_strided_slice %610 {offsets = [2, 0], sizes = [1, 256], strides = [1, 1]} : vector<4x256xf32> to vector<1x256xf32>
    %625 = vector.broadcast %623 : vector<4x1xf32> to vector<4x256xf32>
    %626 = vector.broadcast %624 : vector<1x256xf32> to vector<4x256xf32>
    %627 = arith.mulf %625, %626 : vector<4x256xf32>
    %628 = arith.addf %622, %627 : vector<4x256xf32>
    %629 = vector.extract_strided_slice %180 {offsets = [0, 67], sizes = [4, 1], strides = [1, 1]} : vector<4x100xf32> to vector<4x1xf32>
    %630 = vector.extract_strided_slice %610 {offsets = [3, 0], sizes = [1, 256], strides = [1, 1]} : vector<4x256xf32> to vector<1x256xf32>
    %631 = vector.broadcast %629 : vector<4x1xf32> to vector<4x256xf32>
    %632 = vector.broadcast %630 : vector<1x256xf32> to vector<4x256xf32>
    %633 = arith.mulf %631, %632 : vector<4x256xf32>
    %634 = arith.addf %628, %633 : vector<4x256xf32>
    %c0_135 = arith.constant 0 : index
    %c144_136 = arith.constant 144 : index
    %635 = vector.load %arg23[%c0_135, %c144_136] : memref<4x418xf32, #tpu.memory_space<vmem>>, vector<4x256xf32>
    %636 = vector.extract_strided_slice %180 {offsets = [0, 68], sizes = [4, 1], strides = [1, 1]} : vector<4x100xf32> to vector<4x1xf32>
    %637 = vector.extract_strided_slice %635 {offsets = [0, 0], sizes = [1, 256], strides = [1, 1]} : vector<4x256xf32> to vector<1x256xf32>
    %638 = vector.broadcast %636 : vector<4x1xf32> to vector<4x256xf32>
    %639 = vector.broadcast %637 : vector<1x256xf32> to vector<4x256xf32>
    %640 = arith.mulf %638, %639 : vector<4x256xf32>
    %641 = arith.addf %634, %640 : vector<4x256xf32>
    %642 = vector.extract_strided_slice %180 {offsets = [0, 69], sizes = [4, 1], strides = [1, 1]} : vector<4x100xf32> to vector<4x1xf32>
    %643 = vector.extract_strided_slice %635 {offsets = [1, 0], sizes = [1, 256], strides = [1, 1]} : vector<4x256xf32> to vector<1x256xf32>
    %644 = vector.broadcast %642 : vector<4x1xf32> to vector<4x256xf32>
    %645 = vector.broadcast %643 : vector<1x256xf32> to vector<4x256xf32>
    %646 = arith.mulf %644, %645 : vector<4x256xf32>
    %647 = arith.addf %641, %646 : vector<4x256xf32>
    %648 = vector.extract_strided_slice %180 {offsets = [0, 70], sizes = [4, 1], strides = [1, 1]} : vector<4x100xf32> to vector<4x1xf32>
    %649 = vector.extract_strided_slice %635 {offsets = [2, 0], sizes = [1, 256], strides = [1, 1]} : vector<4x256xf32> to vector<1x256xf32>
    %650 = vector.broadcast %648 : vector<4x1xf32> to vector<4x256xf32>
    %651 = vector.broadcast %649 : vector<1x256xf32> to vector<4x256xf32>
    %652 = arith.mulf %650, %651 : vector<4x256xf32>
    %653 = arith.addf %647, %652 : vector<4x256xf32>
    %654 = vector.extract_strided_slice %180 {offsets = [0, 71], sizes = [4, 1], strides = [1, 1]} : vector<4x100xf32> to vector<4x1xf32>
    %655 = vector.extract_strided_slice %635 {offsets = [3, 0], sizes = [1, 256], strides = [1, 1]} : vector<4x256xf32> to vector<1x256xf32>
    %656 = vector.broadcast %654 : vector<4x1xf32> to vector<4x256xf32>
    %657 = vector.broadcast %655 : vector<1x256xf32> to vector<4x256xf32>
    %658 = arith.mulf %656, %657 : vector<4x256xf32>
    %659 = arith.addf %653, %658 : vector<4x256xf32>
    %c0_137 = arith.constant 0 : index
    %c145_138 = arith.constant 145 : index
    %660 = vector.load %arg23[%c0_137, %c145_138] : memref<4x418xf32, #tpu.memory_space<vmem>>, vector<4x256xf32>
    %661 = vector.broadcast %56 : vector<1x256xf32> to vector<4x256xf32>
    %662 = arith.mulf %660, %661 : vector<4x256xf32>
    %663 = vector.extract_strided_slice %180 {offsets = [0, 72], sizes = [4, 1], strides = [1, 1]} : vector<4x100xf32> to vector<4x1xf32>
    %664 = vector.extract_strided_slice %662 {offsets = [0, 0], sizes = [1, 256], strides = [1, 1]} : vector<4x256xf32> to vector<1x256xf32>
    %665 = vector.broadcast %663 : vector<4x1xf32> to vector<4x256xf32>
    %666 = vector.broadcast %664 : vector<1x256xf32> to vector<4x256xf32>
    %667 = arith.mulf %665, %666 : vector<4x256xf32>
    %668 = arith.addf %659, %667 : vector<4x256xf32>
    %669 = vector.extract_strided_slice %180 {offsets = [0, 73], sizes = [4, 1], strides = [1, 1]} : vector<4x100xf32> to vector<4x1xf32>
    %670 = vector.extract_strided_slice %662 {offsets = [1, 0], sizes = [1, 256], strides = [1, 1]} : vector<4x256xf32> to vector<1x256xf32>
    %671 = vector.broadcast %669 : vector<4x1xf32> to vector<4x256xf32>
    %672 = vector.broadcast %670 : vector<1x256xf32> to vector<4x256xf32>
    %673 = arith.mulf %671, %672 : vector<4x256xf32>
    %674 = arith.addf %668, %673 : vector<4x256xf32>
    %675 = vector.extract_strided_slice %180 {offsets = [0, 74], sizes = [4, 1], strides = [1, 1]} : vector<4x100xf32> to vector<4x1xf32>
    %676 = vector.extract_strided_slice %662 {offsets = [2, 0], sizes = [1, 256], strides = [1, 1]} : vector<4x256xf32> to vector<1x256xf32>
    %677 = vector.broadcast %675 : vector<4x1xf32> to vector<4x256xf32>
    %678 = vector.broadcast %676 : vector<1x256xf32> to vector<4x256xf32>
    %679 = arith.mulf %677, %678 : vector<4x256xf32>
    %680 = arith.addf %674, %679 : vector<4x256xf32>
    %681 = vector.extract_strided_slice %180 {offsets = [0, 75], sizes = [4, 1], strides = [1, 1]} : vector<4x100xf32> to vector<4x1xf32>
    %682 = vector.extract_strided_slice %662 {offsets = [3, 0], sizes = [1, 256], strides = [1, 1]} : vector<4x256xf32> to vector<1x256xf32>
    %683 = vector.broadcast %681 : vector<4x1xf32> to vector<4x256xf32>
    %684 = vector.broadcast %682 : vector<1x256xf32> to vector<4x256xf32>
    %685 = arith.mulf %683, %684 : vector<4x256xf32>
    %686 = arith.addf %680, %685 : vector<4x256xf32>
    %c0_139 = arith.constant 0 : index
    %c146 = arith.constant 146 : index
    %687 = vector.load %arg23[%c0_139, %c146] : memref<4x418xf32, #tpu.memory_space<vmem>>, vector<4x256xf32>
    %688 = vector.broadcast %64 : vector<1x256xf32> to vector<4x256xf32>
    %689 = arith.mulf %687, %688 : vector<4x256xf32>
    %690 = vector.extract_strided_slice %180 {offsets = [0, 76], sizes = [4, 1], strides = [1, 1]} : vector<4x100xf32> to vector<4x1xf32>
    %691 = vector.extract_strided_slice %689 {offsets = [0, 0], sizes = [1, 256], strides = [1, 1]} : vector<4x256xf32> to vector<1x256xf32>
    %692 = vector.broadcast %690 : vector<4x1xf32> to vector<4x256xf32>
    %693 = vector.broadcast %691 : vector<1x256xf32> to vector<4x256xf32>
    %694 = arith.mulf %692, %693 : vector<4x256xf32>
    %695 = arith.addf %686, %694 : vector<4x256xf32>
    %696 = vector.extract_strided_slice %180 {offsets = [0, 77], sizes = [4, 1], strides = [1, 1]} : vector<4x100xf32> to vector<4x1xf32>
    %697 = vector.extract_strided_slice %689 {offsets = [1, 0], sizes = [1, 256], strides = [1, 1]} : vector<4x256xf32> to vector<1x256xf32>
    %698 = vector.broadcast %696 : vector<4x1xf32> to vector<4x256xf32>
    %699 = vector.broadcast %697 : vector<1x256xf32> to vector<4x256xf32>
    %700 = arith.mulf %698, %699 : vector<4x256xf32>
    %701 = arith.addf %695, %700 : vector<4x256xf32>
    %702 = vector.extract_strided_slice %180 {offsets = [0, 78], sizes = [4, 1], strides = [1, 1]} : vector<4x100xf32> to vector<4x1xf32>
    %703 = vector.extract_strided_slice %689 {offsets = [2, 0], sizes = [1, 256], strides = [1, 1]} : vector<4x256xf32> to vector<1x256xf32>
    %704 = vector.broadcast %702 : vector<4x1xf32> to vector<4x256xf32>
    %705 = vector.broadcast %703 : vector<1x256xf32> to vector<4x256xf32>
    %706 = arith.mulf %704, %705 : vector<4x256xf32>
    %707 = arith.addf %701, %706 : vector<4x256xf32>
    %708 = vector.extract_strided_slice %180 {offsets = [0, 79], sizes = [4, 1], strides = [1, 1]} : vector<4x100xf32> to vector<4x1xf32>
    %709 = vector.extract_strided_slice %689 {offsets = [3, 0], sizes = [1, 256], strides = [1, 1]} : vector<4x256xf32> to vector<1x256xf32>
    %710 = vector.broadcast %708 : vector<4x1xf32> to vector<4x256xf32>
    %711 = vector.broadcast %709 : vector<1x256xf32> to vector<4x256xf32>
    %712 = arith.mulf %710, %711 : vector<4x256xf32>
    %713 = arith.addf %707, %712 : vector<4x256xf32>
    %c0_140 = arith.constant 0 : index
    %c158 = arith.constant 158 : index
    %714 = vector.load %arg23[%c0_140, %c158] : memref<4x418xf32, #tpu.memory_space<vmem>>, vector<4x256xf32>
    %715 = vector.broadcast %40 : vector<1x256xf32> to vector<4x256xf32>
    %716 = arith.mulf %714, %715 : vector<4x256xf32>
    %717 = vector.extract_strided_slice %180 {offsets = [0, 80], sizes = [4, 1], strides = [1, 1]} : vector<4x100xf32> to vector<4x1xf32>
    %718 = vector.extract_strided_slice %716 {offsets = [0, 0], sizes = [1, 256], strides = [1, 1]} : vector<4x256xf32> to vector<1x256xf32>
    %719 = vector.broadcast %717 : vector<4x1xf32> to vector<4x256xf32>
    %720 = vector.broadcast %718 : vector<1x256xf32> to vector<4x256xf32>
    %721 = arith.mulf %719, %720 : vector<4x256xf32>
    %722 = arith.addf %713, %721 : vector<4x256xf32>
    %723 = vector.extract_strided_slice %180 {offsets = [0, 81], sizes = [4, 1], strides = [1, 1]} : vector<4x100xf32> to vector<4x1xf32>
    %724 = vector.extract_strided_slice %716 {offsets = [1, 0], sizes = [1, 256], strides = [1, 1]} : vector<4x256xf32> to vector<1x256xf32>
    %725 = vector.broadcast %723 : vector<4x1xf32> to vector<4x256xf32>
    %726 = vector.broadcast %724 : vector<1x256xf32> to vector<4x256xf32>
    %727 = arith.mulf %725, %726 : vector<4x256xf32>
    %728 = arith.addf %722, %727 : vector<4x256xf32>
    %729 = vector.extract_strided_slice %180 {offsets = [0, 82], sizes = [4, 1], strides = [1, 1]} : vector<4x100xf32> to vector<4x1xf32>
    %730 = vector.extract_strided_slice %716 {offsets = [2, 0], sizes = [1, 256], strides = [1, 1]} : vector<4x256xf32> to vector<1x256xf32>
    %731 = vector.broadcast %729 : vector<4x1xf32> to vector<4x256xf32>
    %732 = vector.broadcast %730 : vector<1x256xf32> to vector<4x256xf32>
    %733 = arith.mulf %731, %732 : vector<4x256xf32>
    %734 = arith.addf %728, %733 : vector<4x256xf32>
    %735 = vector.extract_strided_slice %180 {offsets = [0, 83], sizes = [4, 1], strides = [1, 1]} : vector<4x100xf32> to vector<4x1xf32>
    %736 = vector.extract_strided_slice %716 {offsets = [3, 0], sizes = [1, 256], strides = [1, 1]} : vector<4x256xf32> to vector<1x256xf32>
    %737 = vector.broadcast %735 : vector<4x1xf32> to vector<4x256xf32>
    %738 = vector.broadcast %736 : vector<1x256xf32> to vector<4x256xf32>
    %739 = arith.mulf %737, %738 : vector<4x256xf32>
    %740 = arith.addf %734, %739 : vector<4x256xf32>
    %c0_141 = arith.constant 0 : index
    %c159 = arith.constant 159 : index
    %741 = vector.load %arg23[%c0_141, %c159] : memref<4x418xf32, #tpu.memory_space<vmem>>, vector<4x256xf32>
    %742 = vector.broadcast %48 : vector<1x256xf32> to vector<4x256xf32>
    %743 = arith.mulf %741, %742 : vector<4x256xf32>
    %744 = vector.extract_strided_slice %180 {offsets = [0, 84], sizes = [4, 1], strides = [1, 1]} : vector<4x100xf32> to vector<4x1xf32>
    %745 = vector.extract_strided_slice %743 {offsets = [0, 0], sizes = [1, 256], strides = [1, 1]} : vector<4x256xf32> to vector<1x256xf32>
    %746 = vector.broadcast %744 : vector<4x1xf32> to vector<4x256xf32>
    %747 = vector.broadcast %745 : vector<1x256xf32> to vector<4x256xf32>
    %748 = arith.mulf %746, %747 : vector<4x256xf32>
    %749 = arith.addf %740, %748 : vector<4x256xf32>
    %750 = vector.extract_strided_slice %180 {offsets = [0, 85], sizes = [4, 1], strides = [1, 1]} : vector<4x100xf32> to vector<4x1xf32>
    %751 = vector.extract_strided_slice %743 {offsets = [1, 0], sizes = [1, 256], strides = [1, 1]} : vector<4x256xf32> to vector<1x256xf32>
    %752 = vector.broadcast %750 : vector<4x1xf32> to vector<4x256xf32>
    %753 = vector.broadcast %751 : vector<1x256xf32> to vector<4x256xf32>
    %754 = arith.mulf %752, %753 : vector<4x256xf32>
    %755 = arith.addf %749, %754 : vector<4x256xf32>
    %756 = vector.extract_strided_slice %180 {offsets = [0, 86], sizes = [4, 1], strides = [1, 1]} : vector<4x100xf32> to vector<4x1xf32>
    %757 = vector.extract_strided_slice %743 {offsets = [2, 0], sizes = [1, 256], strides = [1, 1]} : vector<4x256xf32> to vector<1x256xf32>
    %758 = vector.broadcast %756 : vector<4x1xf32> to vector<4x256xf32>
    %759 = vector.broadcast %757 : vector<1x256xf32> to vector<4x256xf32>
    %760 = arith.mulf %758, %759 : vector<4x256xf32>
    %761 = arith.addf %755, %760 : vector<4x256xf32>
    %762 = vector.extract_strided_slice %180 {offsets = [0, 87], sizes = [4, 1], strides = [1, 1]} : vector<4x100xf32> to vector<4x1xf32>
    %763 = vector.extract_strided_slice %743 {offsets = [3, 0], sizes = [1, 256], strides = [1, 1]} : vector<4x256xf32> to vector<1x256xf32>
    %764 = vector.broadcast %762 : vector<4x1xf32> to vector<4x256xf32>
    %765 = vector.broadcast %763 : vector<1x256xf32> to vector<4x256xf32>
    %766 = arith.mulf %764, %765 : vector<4x256xf32>
    %767 = arith.addf %761, %766 : vector<4x256xf32>
    %c0_142 = arith.constant 0 : index
    %c160_143 = arith.constant 160 : index
    %768 = vector.load %arg23[%c0_142, %c160_143] : memref<4x418xf32, #tpu.memory_space<vmem>>, vector<4x256xf32>
    %769 = vector.extract_strided_slice %180 {offsets = [0, 88], sizes = [4, 1], strides = [1, 1]} : vector<4x100xf32> to vector<4x1xf32>
    %770 = vector.extract_strided_slice %768 {offsets = [0, 0], sizes = [1, 256], strides = [1, 1]} : vector<4x256xf32> to vector<1x256xf32>
    %771 = vector.broadcast %769 : vector<4x1xf32> to vector<4x256xf32>
    %772 = vector.broadcast %770 : vector<1x256xf32> to vector<4x256xf32>
    %773 = arith.mulf %771, %772 : vector<4x256xf32>
    %774 = arith.addf %767, %773 : vector<4x256xf32>
    %775 = vector.extract_strided_slice %180 {offsets = [0, 89], sizes = [4, 1], strides = [1, 1]} : vector<4x100xf32> to vector<4x1xf32>
    %776 = vector.extract_strided_slice %768 {offsets = [1, 0], sizes = [1, 256], strides = [1, 1]} : vector<4x256xf32> to vector<1x256xf32>
    %777 = vector.broadcast %775 : vector<4x1xf32> to vector<4x256xf32>
    %778 = vector.broadcast %776 : vector<1x256xf32> to vector<4x256xf32>
    %779 = arith.mulf %777, %778 : vector<4x256xf32>
    %780 = arith.addf %774, %779 : vector<4x256xf32>
    %781 = vector.extract_strided_slice %180 {offsets = [0, 90], sizes = [4, 1], strides = [1, 1]} : vector<4x100xf32> to vector<4x1xf32>
    %782 = vector.extract_strided_slice %768 {offsets = [2, 0], sizes = [1, 256], strides = [1, 1]} : vector<4x256xf32> to vector<1x256xf32>
    %783 = vector.broadcast %781 : vector<4x1xf32> to vector<4x256xf32>
    %784 = vector.broadcast %782 : vector<1x256xf32> to vector<4x256xf32>
    %785 = arith.mulf %783, %784 : vector<4x256xf32>
    %786 = arith.addf %780, %785 : vector<4x256xf32>
    %787 = vector.extract_strided_slice %180 {offsets = [0, 91], sizes = [4, 1], strides = [1, 1]} : vector<4x100xf32> to vector<4x1xf32>
    %788 = vector.extract_strided_slice %768 {offsets = [3, 0], sizes = [1, 256], strides = [1, 1]} : vector<4x256xf32> to vector<1x256xf32>
    %789 = vector.broadcast %787 : vector<4x1xf32> to vector<4x256xf32>
    %790 = vector.broadcast %788 : vector<1x256xf32> to vector<4x256xf32>
    %791 = arith.mulf %789, %790 : vector<4x256xf32>
    %792 = arith.addf %786, %791 : vector<4x256xf32>
    %c0_144 = arith.constant 0 : index
    %c161 = arith.constant 161 : index
    %793 = vector.load %arg23[%c0_144, %c161] : memref<4x418xf32, #tpu.memory_space<vmem>>, vector<4x256xf32>
    %794 = vector.broadcast %56 : vector<1x256xf32> to vector<4x256xf32>
    %795 = arith.mulf %793, %794 : vector<4x256xf32>
    %796 = vector.extract_strided_slice %180 {offsets = [0, 92], sizes = [4, 1], strides = [1, 1]} : vector<4x100xf32> to vector<4x1xf32>
    %797 = vector.extract_strided_slice %795 {offsets = [0, 0], sizes = [1, 256], strides = [1, 1]} : vector<4x256xf32> to vector<1x256xf32>
    %798 = vector.broadcast %796 : vector<4x1xf32> to vector<4x256xf32>
    %799 = vector.broadcast %797 : vector<1x256xf32> to vector<4x256xf32>
    %800 = arith.mulf %798, %799 : vector<4x256xf32>
    %801 = arith.addf %792, %800 : vector<4x256xf32>
    %802 = vector.extract_strided_slice %180 {offsets = [0, 93], sizes = [4, 1], strides = [1, 1]} : vector<4x100xf32> to vector<4x1xf32>
    %803 = vector.extract_strided_slice %795 {offsets = [1, 0], sizes = [1, 256], strides = [1, 1]} : vector<4x256xf32> to vector<1x256xf32>
    %804 = vector.broadcast %802 : vector<4x1xf32> to vector<4x256xf32>
    %805 = vector.broadcast %803 : vector<1x256xf32> to vector<4x256xf32>
    %806 = arith.mulf %804, %805 : vector<4x256xf32>
    %807 = arith.addf %801, %806 : vector<4x256xf32>
    %808 = vector.extract_strided_slice %180 {offsets = [0, 94], sizes = [4, 1], strides = [1, 1]} : vector<4x100xf32> to vector<4x1xf32>
    %809 = vector.extract_strided_slice %795 {offsets = [2, 0], sizes = [1, 256], strides = [1, 1]} : vector<4x256xf32> to vector<1x256xf32>
    %810 = vector.broadcast %808 : vector<4x1xf32> to vector<4x256xf32>
    %811 = vector.broadcast %809 : vector<1x256xf32> to vector<4x256xf32>
    %812 = arith.mulf %810, %811 : vector<4x256xf32>
    %813 = arith.addf %807, %812 : vector<4x256xf32>
    %814 = vector.extract_strided_slice %180 {offsets = [0, 95], sizes = [4, 1], strides = [1, 1]} : vector<4x100xf32> to vector<4x1xf32>
    %815 = vector.extract_strided_slice %795 {offsets = [3, 0], sizes = [1, 256], strides = [1, 1]} : vector<4x256xf32> to vector<1x256xf32>
    %816 = vector.broadcast %814 : vector<4x1xf32> to vector<4x256xf32>
    %817 = vector.broadcast %815 : vector<1x256xf32> to vector<4x256xf32>
    %818 = arith.mulf %816, %817 : vector<4x256xf32>
    %819 = arith.addf %813, %818 : vector<4x256xf32>
    %c0_145 = arith.constant 0 : index
    %c162 = arith.constant 162 : index
    %820 = vector.load %arg23[%c0_145, %c162] : memref<4x418xf32, #tpu.memory_space<vmem>>, vector<4x256xf32>
    %821 = vector.broadcast %64 : vector<1x256xf32> to vector<4x256xf32>
    %822 = arith.mulf %820, %821 : vector<4x256xf32>
    %823 = vector.extract_strided_slice %180 {offsets = [0, 96], sizes = [4, 1], strides = [1, 1]} : vector<4x100xf32> to vector<4x1xf32>
    %824 = vector.extract_strided_slice %822 {offsets = [0, 0], sizes = [1, 256], strides = [1, 1]} : vector<4x256xf32> to vector<1x256xf32>
    %825 = vector.broadcast %823 : vector<4x1xf32> to vector<4x256xf32>
    %826 = vector.broadcast %824 : vector<1x256xf32> to vector<4x256xf32>
    %827 = arith.mulf %825, %826 : vector<4x256xf32>
    %828 = arith.addf %819, %827 : vector<4x256xf32>
    %829 = vector.extract_strided_slice %180 {offsets = [0, 97], sizes = [4, 1], strides = [1, 1]} : vector<4x100xf32> to vector<4x1xf32>
    %830 = vector.extract_strided_slice %822 {offsets = [1, 0], sizes = [1, 256], strides = [1, 1]} : vector<4x256xf32> to vector<1x256xf32>
    %831 = vector.broadcast %829 : vector<4x1xf32> to vector<4x256xf32>
    %832 = vector.broadcast %830 : vector<1x256xf32> to vector<4x256xf32>
    %833 = arith.mulf %831, %832 : vector<4x256xf32>
    %834 = arith.addf %828, %833 : vector<4x256xf32>
    %835 = vector.extract_strided_slice %180 {offsets = [0, 98], sizes = [4, 1], strides = [1, 1]} : vector<4x100xf32> to vector<4x1xf32>
    %836 = vector.extract_strided_slice %822 {offsets = [2, 0], sizes = [1, 256], strides = [1, 1]} : vector<4x256xf32> to vector<1x256xf32>
    %837 = vector.broadcast %835 : vector<4x1xf32> to vector<4x256xf32>
    %838 = vector.broadcast %836 : vector<1x256xf32> to vector<4x256xf32>
    %839 = arith.mulf %837, %838 : vector<4x256xf32>
    %840 = arith.addf %834, %839 : vector<4x256xf32>
    %841 = vector.extract_strided_slice %180 {offsets = [0, 99], sizes = [4, 1], strides = [1, 1]} : vector<4x100xf32> to vector<4x1xf32>
    %842 = vector.extract_strided_slice %822 {offsets = [3, 0], sizes = [1, 256], strides = [1, 1]} : vector<4x256xf32> to vector<1x256xf32>
    %843 = vector.broadcast %841 : vector<4x1xf32> to vector<4x256xf32>
    %844 = vector.broadcast %842 : vector<1x256xf32> to vector<4x256xf32>
    %845 = arith.mulf %843, %844 : vector<4x256xf32>
    %846 = arith.addf %840, %845 : vector<4x256xf32>
    %c0_146 = arith.constant 0 : index
    %c0_147 = arith.constant 0 : index
    %c0_148 = arith.constant 0 : index
    %847 = vector.load %arg10[%c0_146, %c0_147, %c0_148] : memref<1x4x1xf32, #tpu.memory_space<vmem>>, vector<1x4x1xf32>
    %848 = vector.shape_cast %847 : vector<1x4x1xf32> to vector<4x1xf32>
    %849 = vector.broadcast %848 : vector<4x1xf32> to vector<4x256xf32>
    %850 = arith.addf %846, %849 : vector<4x256xf32>
    %c0_149 = arith.constant 0 : index
    %c0_150 = arith.constant 0 : index
    %851 = vector.load %arg24[%c0_149, %c0_150] : memref<16x256xf32, #tpu.memory_space<vmem>>, vector<4x256xf32>
    tpu.vector_store %arg24[%c0_149, %c0_150], %850 {strides = array<i32>} : memref<16x256xf32, #tpu.memory_space<vmem>>, vector<4x256xf32>,
    %c0_151 = arith.constant 0 : index
    %c0_152 = arith.constant 0 : index
    %852 = vector.load %arg24[%c0_151, %c0_152] : memref<16x256xf32, #tpu.memory_space<vmem>>, vector<16x256xf32>
    %c0_153 = arith.constant 0 : index
    %c128_154 = arith.constant 128 : index
    %853 = vector.load %arg21[%c0_153, %c128_154] : memref<16x401xf32, #tpu.memory_space<vmem>>, vector<16x256xf32>
    tpu.vector_store %arg21[%c0_153, %c128_154], %852 {strides = array<i32>} : memref<16x401xf32, #tpu.memory_space<vmem>>, vector<16x256xf32>,
    %c0_155 = arith.constant 0 : index
    %c0_156 = arith.constant 0 : index
    %c0_157 = arith.constant 0 : index
    %854 = vector.load %arg11[%c0_155, %c0_156, %c0_157] : memref<1x16x144xbf16, #tpu.memory_space<vmem>>, vector<1x16x144xbf16>
    %855 = vector.shape_cast %854 : vector<1x16x144xbf16> to vector<16x144xbf16>
    %c0_158 = arith.constant 0 : index
    %c0_159 = arith.constant 0 : index
    %c0_160 = arith.constant 0 : index
    %856 = vector.load %arg12[%c0_158, %c0_159, %c0_160] : memref<1x16x1xf32, #tpu.memory_space<vmem>>, vector<1x16x1xf32>
    %857 = vector.shape_cast %856 : vector<1x16x1xf32> to vector<16x1xf32>
    %c0_161 = arith.constant 0 : index
    %c111_162 = arith.constant 111 : index
    %858 = vector.load %arg21[%c0_161, %c111_162] : memref<16x401xf32, #tpu.memory_space<vmem>>, vector<16x256xf32>
    %859 = vector.broadcast %24 : vector<1x256xf32> to vector<16x256xf32>
    %860 = arith.mulf %858, %859 : vector<16x256xf32>
    %861 = arith.truncf %860 : vector<16x256xf32> to vector<16x256xbf16>
    %c0_163 = arith.constant 0 : index
    %c0_164 = arith.constant 0 : index
    %862 = vector.load %arg25[%c0_163, %c0_164] : memref<288x256xbf16, #tpu.memory_space<vmem>>, vector<16x256xbf16>
    tpu.vector_store %arg25[%c0_163, %c0_164], %861 {strides = array<i32>} : memref<288x256xbf16, #tpu.memory_space<vmem>>, vector<16x256xbf16>,
    %c0_165 = arith.constant 0 : index
    %c112_166 = arith.constant 112 : index
    %863 = vector.load %arg21[%c0_165, %c112_166] : memref<16x401xf32, #tpu.memory_space<vmem>>, vector<16x256xf32>
    %864 = arith.truncf %863 : vector<16x256xf32> to vector<16x256xbf16>
    %c16_167 = arith.constant 16 : index
    %c0_168 = arith.constant 0 : index
    %865 = vector.load %arg25[%c16_167, %c0_168] : memref<288x256xbf16, #tpu.memory_space<vmem>>, vector<16x256xbf16>
    tpu.vector_store %arg25[%c16_167, %c0_168], %864 {strides = array<i32>} : memref<288x256xbf16, #tpu.memory_space<vmem>>, vector<16x256xbf16>,
    %c0_169 = arith.constant 0 : index
    %c113_170 = arith.constant 113 : index
    %866 = vector.load %arg21[%c0_169, %c113_170] : memref<16x401xf32, #tpu.memory_space<vmem>>, vector<16x256xf32>
    %867 = vector.broadcast %32 : vector<1x256xf32> to vector<16x256xf32>
    %868 = arith.mulf %866, %867 : vector<16x256xf32>
    %869 = arith.truncf %868 : vector<16x256xf32> to vector<16x256xbf16>
    %c32_171 = arith.constant 32 : index
    %c0_172 = arith.constant 0 : index
    %870 = vector.load %arg25[%c32_171, %c0_172] : memref<288x256xbf16, #tpu.memory_space<vmem>>, vector<16x256xbf16>
    tpu.vector_store %arg25[%c32_171, %c0_172], %869 {strides = array<i32>} : memref<288x256xbf16, #tpu.memory_space<vmem>>, vector<16x256xbf16>,
    %c0_173 = arith.constant 0 : index
    %c127_174 = arith.constant 127 : index
    %871 = vector.load %arg21[%c0_173, %c127_174] : memref<16x401xf32, #tpu.memory_space<vmem>>, vector<16x256xf32>
    %872 = vector.broadcast %24 : vector<1x256xf32> to vector<16x256xf32>
    %873 = arith.mulf %871, %872 : vector<16x256xf32>
    %874 = arith.truncf %873 : vector<16x256xf32> to vector<16x256xbf16>
    %c48_175 = arith.constant 48 : index
    %c0_176 = arith.constant 0 : index
    %875 = vector.load %arg25[%c48_175, %c0_176] : memref<288x256xbf16, #tpu.memory_space<vmem>>, vector<16x256xbf16>
    tpu.vector_store %arg25[%c48_175, %c0_176], %874 {strides = array<i32>} : memref<288x256xbf16, #tpu.memory_space<vmem>>, vector<16x256xbf16>,
    %c0_177 = arith.constant 0 : index
    %c128_178 = arith.constant 128 : index
    %876 = vector.load %arg21[%c0_177, %c128_178] : memref<16x401xf32, #tpu.memory_space<vmem>>, vector<16x256xf32>
    %877 = arith.truncf %876 : vector<16x256xf32> to vector<16x256xbf16>
    %c64_179 = arith.constant 64 : index
    %c0_180 = arith.constant 0 : index
    %878 = vector.load %arg25[%c64_179, %c0_180] : memref<288x256xbf16, #tpu.memory_space<vmem>>, vector<16x256xbf16>
    tpu.vector_store %arg25[%c64_179, %c0_180], %877 {strides = array<i32>} : memref<288x256xbf16, #tpu.memory_space<vmem>>, vector<16x256xbf16>,
    %c0_181 = arith.constant 0 : index
    %c129_182 = arith.constant 129 : index
    %879 = vector.load %arg21[%c0_181, %c129_182] : memref<16x401xf32, #tpu.memory_space<vmem>>, vector<16x256xf32>
    %880 = vector.broadcast %32 : vector<1x256xf32> to vector<16x256xf32>
    %881 = arith.mulf %879, %880 : vector<16x256xf32>
    %882 = arith.truncf %881 : vector<16x256xf32> to vector<16x256xbf16>
    %c80_183 = arith.constant 80 : index
    %c0_184 = arith.constant 0 : index
    %883 = vector.load %arg25[%c80_183, %c0_184] : memref<288x256xbf16, #tpu.memory_space<vmem>>, vector<16x256xbf16>
    tpu.vector_store %arg25[%c80_183, %c0_184], %882 {strides = array<i32>} : memref<288x256xbf16, #tpu.memory_space<vmem>>, vector<16x256xbf16>,
    %c0_185 = arith.constant 0 : index
    %c143_186 = arith.constant 143 : index
    %884 = vector.load %arg21[%c0_185, %c143_186] : memref<16x401xf32, #tpu.memory_space<vmem>>, vector<16x256xf32>
    %885 = vector.broadcast %24 : vector<1x256xf32> to vector<16x256xf32>
    %886 = arith.mulf %884, %885 : vector<16x256xf32>
    %887 = arith.truncf %886 : vector<16x256xf32> to vector<16x256xbf16>
    %c96_187 = arith.constant 96 : index
    %c0_188 = arith.constant 0 : index
    %888 = vector.load %arg25[%c96_187, %c0_188] : memref<288x256xbf16, #tpu.memory_space<vmem>>, vector<16x256xbf16>
    tpu.vector_store %arg25[%c96_187, %c0_188], %887 {strides = array<i32>} : memref<288x256xbf16, #tpu.memory_space<vmem>>, vector<16x256xbf16>,
    %c0_189 = arith.constant 0 : index
    %c144_190 = arith.constant 144 : index
    %889 = vector.load %arg21[%c0_189, %c144_190] : memref<16x401xf32, #tpu.memory_space<vmem>>, vector<16x256xf32>
    %890 = arith.truncf %889 : vector<16x256xf32> to vector<16x256xbf16>
    %c112_191 = arith.constant 112 : index
    %c0_192 = arith.constant 0 : index
    %891 = vector.load %arg25[%c112_191, %c0_192] : memref<288x256xbf16, #tpu.memory_space<vmem>>, vector<16x256xbf16>
    tpu.vector_store %arg25[%c112_191, %c0_192], %890 {strides = array<i32>} : memref<288x256xbf16, #tpu.memory_space<vmem>>, vector<16x256xbf16>,
    %c0_193 = arith.constant 0 : index
    %c145_194 = arith.constant 145 : index
    %892 = vector.load %arg21[%c0_193, %c145_194] : memref<16x401xf32, #tpu.memory_space<vmem>>, vector<16x256xf32>
    %893 = vector.broadcast %32 : vector<1x256xf32> to vector<16x256xf32>
    %894 = arith.mulf %892, %893 : vector<16x256xf32>
    %895 = arith.truncf %894 : vector<16x256xf32> to vector<16x256xbf16>
    %c128_195 = arith.constant 128 : index
    %c0_196 = arith.constant 0 : index
    %896 = vector.load %arg25[%c128_195, %c0_196] : memref<288x256xbf16, #tpu.memory_space<vmem>>, vector<16x256xbf16>
    tpu.vector_store %arg25[%c128_195, %c0_196], %895 {strides = array<i32>} : memref<288x256xbf16, #tpu.memory_space<vmem>>, vector<16x256xbf16>,
    %c0_197 = arith.constant 0 : index
    %c0_198 = arith.constant 0 : index
    %897 = vector.load %arg25[%c0_197, %c0_198] : memref<288x256xbf16, #tpu.memory_space<vmem>>, vector<144x256xbf16>
    %cst_199 = arith.constant dense<0.000000e+00> : vector<16x256xf32>
    %898 = tpu.matmul %855, %897, %cst_199 {dimension_numbers = #tpu.dot_dimension_numbers<[1], [0], [0], [1], [0, 0, 1, 1], [], []>} : vector<16x144xbf16>, vector<144x256xbf16>, vector<16x256xf32> -> vector<16x256xf32>
    %899 = vector.broadcast %857 : vector<16x1xf32> to vector<16x256xf32>
    %900 = arith.addf %898, %899 : vector<16x256xf32>
    %cst_200 = arith.constant -3.000000e+01 : f32
    %cst_201 = arith.constant 3.000000e+01 : f32
    %901 = vector.broadcast %cst_200 : f32 to vector<16x256xf32>
    %902 = arith.maximumf %901, %900 : vector<16x256xf32>
    %903 = vector.broadcast %cst_201 : f32 to vector<16x256xf32>
    %904 = arith.minimumf %903, %902 : vector<16x256xf32>
    %cst_202 = arith.constant 0.000000e+00 : f32
    %905 = vector.broadcast %cst_202 : f32 to vector<16x256xf32>
    %906 = arith.subf %905, %904 : vector<16x256xf32>
    %907 = math.exp %906 : vector<16x256xf32>
    %cst_203 = arith.constant 1.000000e+00 : f32
    %908 = vector.broadcast %cst_203 : f32 to vector<16x256xf32>
    %909 = arith.addf %908, %907 : vector<16x256xf32>
    %910 = tpu.reciprocal %909 {approx = true} : vector<16x256xf32> -> vector<16x256xf32>
    %911 = arith.mulf %852, %910 : vector<16x256xf32>
    %c0_204 = arith.constant 0 : index
    %c0_205 = arith.constant 0 : index
    %c0_206 = arith.constant 0 : index
    %912 = vector.load %arg13[%c0_204, %c0_205, %c0_206] : memref<1x16x16xbf16, #tpu.memory_space<vmem>>, vector<1x16x16xbf16>
    %913 = vector.shape_cast %912 : vector<1x16x16xbf16> to vector<16x16xbf16>
    %914 = arith.truncf %911 : vector<16x256xf32> to vector<16x256xbf16>
    %cst_207 = arith.constant dense<0.000000e+00> : vector<16x256xf32>
    %915 = tpu.matmul %913, %914, %cst_207 {dimension_numbers = #tpu.dot_dimension_numbers<[1], [0], [0], [1], [0, 0, 1, 1], [], []>} : vector<16x16xbf16>, vector<16x256xbf16>, vector<16x256xf32> -> vector<16x256xf32>
    %c0_208 = arith.constant 0 : index
    %c0_209 = arith.constant 0 : index
    %c0_210 = arith.constant 0 : index
    %916 = vector.load %arg14[%c0_208, %c0_209, %c0_210] : memref<1x16x1xf32, #tpu.memory_space<vmem>>, vector<1x16x1xf32>
    %917 = vector.shape_cast %916 : vector<1x16x1xf32> to vector<16x1xf32>
    %918 = vector.broadcast %917 : vector<16x1xf32> to vector<16x256xf32>
    %919 = arith.addf %915, %918 : vector<16x256xf32>
    %c0_211 = arith.constant 0 : index
    %c0_212 = arith.constant 0 : index
    %c0_213 = arith.constant 0 : index
    %920 = vector.load %arg15[%c0_211, %c0_212, %c0_213] : memref<1x16x1xf32, #tpu.memory_space<vmem>>, vector<1x16x1xf32>
    %921 = vector.shape_cast %920 : vector<1x16x1xf32> to vector<16x1xf32>
    %c0_214 = arith.constant 0 : index
    %c0_215 = arith.constant 0 : index
    %c0_216 = arith.constant 0 : index
    %922 = vector.load %arg16[%c0_214, %c0_215, %c0_216] : memref<1x16x1xf32, #tpu.memory_space<vmem>>, vector<1x16x1xf32>
    %923 = vector.shape_cast %922 : vector<1x16x1xf32> to vector<16x1xf32>
    %924 = vector.extract_strided_slice %919 {offsets = [0, 0], sizes = [4, 256], strides = [1, 1]} : vector<16x256xf32> to vector<4x256xf32>
    %925 = vector.shape_cast %924 : vector<4x256xf32> to vector<1x4x256xf32>
    %cst_217 = arith.constant dense<0.000000e+00> : vector<1xf32>
    %926 = vector.multi_reduction <add>, %925, %cst_217 [1, 2] : vector<1x4x256xf32> to vector<1xf32>
    %927 = vector.shape_cast %926 : vector<1xf32> to vector<1x1x1xf32>
    %928 = vector.extract %927[0, 0, 0] : f32 from vector<1x1x1xf32>
    %929 = vector.broadcast %928 : f32 to vector<1x1xf32>
    %cst_218 = arith.constant 9.765625E-4 : f32
    %930 = vector.broadcast %cst_218 : f32 to vector<1x1xf32>
    %931 = arith.mulf %929, %930 : vector<1x1xf32>
    %932 = vector.broadcast %931 : vector<1x1xf32> to vector<4x256xf32>
    %933 = arith.subf %924, %932 : vector<4x256xf32>
    %934 = arith.mulf %933, %933 : vector<4x256xf32>
    %935 = vector.shape_cast %934 : vector<4x256xf32> to vector<1x4x256xf32>
    %cst_219 = arith.constant dense<0.000000e+00> : vector<1xf32>
    %936 = vector.multi_reduction <add>, %935, %cst_219 [1, 2] : vector<1x4x256xf32> to vector<1xf32>
    %937 = vector.shape_cast %936 : vector<1xf32> to vector<1x1x1xf32>
    %938 = vector.extract %937[0, 0, 0] : f32 from vector<1x1x1xf32>
    %939 = vector.broadcast %938 : f32 to vector<1x1xf32>
    %cst_220 = arith.constant 9.765625E-4 : f32
    %940 = vector.broadcast %cst_220 : f32 to vector<1x1xf32>
    %941 = arith.mulf %939, %940 : vector<1x1xf32>
    %cst_221 = arith.constant 9.99999974E-6 : f32
    %942 = vector.broadcast %cst_221 : f32 to vector<1x1xf32>
    %943 = arith.addf %941, %942 : vector<1x1xf32>
    %944 = math.rsqrt %943 : vector<1x1xf32>
    %945 = vector.broadcast %944 : vector<1x1xf32> to vector<4x256xf32>
    %946 = arith.mulf %933, %945 : vector<4x256xf32>
    %947 = vector.extract_strided_slice %921 {offsets = [0, 0], sizes = [4, 1], strides = [1, 1]} : vector<16x1xf32> to vector<4x1xf32>
    %948 = vector.broadcast %947 : vector<4x1xf32> to vector<4x256xf32>
    %949 = arith.mulf %946, %948 : vector<4x256xf32>
    %950 = vector.extract_strided_slice %923 {offsets = [0, 0], sizes = [4, 1], strides = [1, 1]} : vector<16x1xf32> to vector<4x1xf32>
    %951 = vector.broadcast %950 : vector<4x1xf32> to vector<4x256xf32>
    %952 = arith.addf %949, %951 : vector<4x256xf32>
    %953 = vector.extract_strided_slice %68 {offsets = [0, 0], sizes = [4, 256], strides = [1, 1]} : vector<16x256xf32> to vector<4x256xf32>
    %954 = arith.addf %952, %953 : vector<4x256xf32>
    %c0_222 = arith.constant 0 : index
    %c0_223 = arith.constant 0 : index
    %955 = vector.load %arg20[%c0_222, %c0_223] : memref<16x256xf32, #tpu.memory_space<vmem>>, vector<4x256xf32>
    tpu.vector_store %arg20[%c0_222, %c0_223], %954 {strides = array<i32>} : memref<16x256xf32, #tpu.memory_space<vmem>>, vector<4x256xf32>,
    %956 = vector.extract_strided_slice %919 {offsets = [4, 0], sizes = [4, 256], strides = [1, 1]} : vector<16x256xf32> to vector<4x256xf32>
    %957 = vector.shape_cast %956 : vector<4x256xf32> to vector<1x4x256xf32>
    %cst_224 = arith.constant dense<0.000000e+00> : vector<1xf32>
    %958 = vector.multi_reduction <add>, %957, %cst_224 [1, 2] : vector<1x4x256xf32> to vector<1xf32>
    %959 = vector.shape_cast %958 : vector<1xf32> to vector<1x1x1xf32>
    %960 = vector.extract %959[0, 0, 0] : f32 from vector<1x1x1xf32>
    %961 = vector.broadcast %960 : f32 to vector<1x1xf32>
    %cst_225 = arith.constant 9.765625E-4 : f32
    %962 = vector.broadcast %cst_225 : f32 to vector<1x1xf32>
    %963 = arith.mulf %961, %962 : vector<1x1xf32>
    %964 = vector.broadcast %963 : vector<1x1xf32> to vector<4x256xf32>
    %965 = arith.subf %956, %964 : vector<4x256xf32>
    %966 = arith.mulf %965, %965 : vector<4x256xf32>
    %967 = vector.shape_cast %966 : vector<4x256xf32> to vector<1x4x256xf32>
    %cst_226 = arith.constant dense<0.000000e+00> : vector<1xf32>
    %968 = vector.multi_reduction <add>, %967, %cst_226 [1, 2] : vector<1x4x256xf32> to vector<1xf32>
    %969 = vector.shape_cast %968 : vector<1xf32> to vector<1x1x1xf32>
    %970 = vector.extract %969[0, 0, 0] : f32 from vector<1x1x1xf32>
    %971 = vector.broadcast %970 : f32 to vector<1x1xf32>
    %cst_227 = arith.constant 9.765625E-4 : f32
    %972 = vector.broadcast %cst_227 : f32 to vector<1x1xf32>
    %973 = arith.mulf %971, %972 : vector<1x1xf32>
    %cst_228 = arith.constant 9.99999974E-6 : f32
    %974 = vector.broadcast %cst_228 : f32 to vector<1x1xf32>
    %975 = arith.addf %973, %974 : vector<1x1xf32>
    %976 = math.rsqrt %975 : vector<1x1xf32>
    %977 = vector.broadcast %976 : vector<1x1xf32> to vector<4x256xf32>
    %978 = arith.mulf %965, %977 : vector<4x256xf32>
    %979 = vector.extract_strided_slice %921 {offsets = [4, 0], sizes = [4, 1], strides = [1, 1]} : vector<16x1xf32> to vector<4x1xf32>
    %980 = vector.broadcast %979 : vector<4x1xf32> to vector<4x256xf32>
    %981 = arith.mulf %978, %980 : vector<4x256xf32>
    %982 = vector.extract_strided_slice %923 {offsets = [4, 0], sizes = [4, 1], strides = [1, 1]} : vector<16x1xf32> to vector<4x1xf32>
    %983 = vector.broadcast %982 : vector<4x1xf32> to vector<4x256xf32>
    %984 = arith.addf %981, %983 : vector<4x256xf32>
    %985 = vector.extract_strided_slice %68 {offsets = [4, 0], sizes = [4, 256], strides = [1, 1]} : vector<16x256xf32> to vector<4x256xf32>
    %986 = arith.addf %984, %985 : vector<4x256xf32>
    %c4 = arith.constant 4 : index
    %c0_229 = arith.constant 0 : index
    %987 = vector.load %arg20[%c4, %c0_229] : memref<16x256xf32, #tpu.memory_space<vmem>>, vector<4x256xf32>
    tpu.vector_store %arg20[%c4, %c0_229], %986 {strides = array<i32>} : memref<16x256xf32, #tpu.memory_space<vmem>>, vector<4x256xf32>,
    %988 = vector.extract_strided_slice %919 {offsets = [8, 0], sizes = [4, 256], strides = [1, 1]} : vector<16x256xf32> to vector<4x256xf32>
    %989 = vector.shape_cast %988 : vector<4x256xf32> to vector<1x4x256xf32>
    %cst_230 = arith.constant dense<0.000000e+00> : vector<1xf32>
    %990 = vector.multi_reduction <add>, %989, %cst_230 [1, 2] : vector<1x4x256xf32> to vector<1xf32>
    %991 = vector.shape_cast %990 : vector<1xf32> to vector<1x1x1xf32>
    %992 = vector.extract %991[0, 0, 0] : f32 from vector<1x1x1xf32>
    %993 = vector.broadcast %992 : f32 to vector<1x1xf32>
    %cst_231 = arith.constant 9.765625E-4 : f32
    %994 = vector.broadcast %cst_231 : f32 to vector<1x1xf32>
    %995 = arith.mulf %993, %994 : vector<1x1xf32>
    %996 = vector.broadcast %995 : vector<1x1xf32> to vector<4x256xf32>
    %997 = arith.subf %988, %996 : vector<4x256xf32>
    %998 = arith.mulf %997, %997 : vector<4x256xf32>
    %999 = vector.shape_cast %998 : vector<4x256xf32> to vector<1x4x256xf32>
    %cst_232 = arith.constant dense<0.000000e+00> : vector<1xf32>
    %1000 = vector.multi_reduction <add>, %999, %cst_232 [1, 2] : vector<1x4x256xf32> to vector<1xf32>
    %1001 = vector.shape_cast %1000 : vector<1xf32> to vector<1x1x1xf32>
    %1002 = vector.extract %1001[0, 0, 0] : f32 from vector<1x1x1xf32>
    %1003 = vector.broadcast %1002 : f32 to vector<1x1xf32>
    %cst_233 = arith.constant 9.765625E-4 : f32
    %1004 = vector.broadcast %cst_233 : f32 to vector<1x1xf32>
    %1005 = arith.mulf %1003, %1004 : vector<1x1xf32>
    %cst_234 = arith.constant 9.99999974E-6 : f32
    %1006 = vector.broadcast %cst_234 : f32 to vector<1x1xf32>
    %1007 = arith.addf %1005, %1006 : vector<1x1xf32>
    %1008 = math.rsqrt %1007 : vector<1x1xf32>
    %1009 = vector.broadcast %1008 : vector<1x1xf32> to vector<4x256xf32>
    %1010 = arith.mulf %997, %1009 : vector<4x256xf32>
    %1011 = vector.extract_strided_slice %921 {offsets = [8, 0], sizes = [4, 1], strides = [1, 1]} : vector<16x1xf32> to vector<4x1xf32>
    %1012 = vector.broadcast %1011 : vector<4x1xf32> to vector<4x256xf32>
    %1013 = arith.mulf %1010, %1012 : vector<4x256xf32>
    %1014 = vector.extract_strided_slice %923 {offsets = [8, 0], sizes = [4, 1], strides = [1, 1]} : vector<16x1xf32> to vector<4x1xf32>
    %1015 = vector.broadcast %1014 : vector<4x1xf32> to vector<4x256xf32>
    %1016 = arith.addf %1013, %1015 : vector<4x256xf32>
    %1017 = vector.extract_strided_slice %68 {offsets = [8, 0], sizes = [4, 256], strides = [1, 1]} : vector<16x256xf32> to vector<4x256xf32>
    %1018 = arith.addf %1016, %1017 : vector<4x256xf32>
    %c8 = arith.constant 8 : index
    %c0_235 = arith.constant 0 : index
    %1019 = vector.load %arg20[%c8, %c0_235] : memref<16x256xf32, #tpu.memory_space<vmem>>, vector<4x256xf32>
    tpu.vector_store %arg20[%c8, %c0_235], %1018 {strides = array<i32>} : memref<16x256xf32, #tpu.memory_space<vmem>>, vector<4x256xf32>,
    %1020 = vector.extract_strided_slice %919 {offsets = [12, 0], sizes = [4, 256], strides = [1, 1]} : vector<16x256xf32> to vector<4x256xf32>
    %1021 = vector.shape_cast %1020 : vector<4x256xf32> to vector<1x4x256xf32>
    %cst_236 = arith.constant dense<0.000000e+00> : vector<1xf32>
    %1022 = vector.multi_reduction <add>, %1021, %cst_236 [1, 2] : vector<1x4x256xf32> to vector<1xf32>
    %1023 = vector.shape_cast %1022 : vector<1xf32> to vector<1x1x1xf32>
    %1024 = vector.extract %1023[0, 0, 0] : f32 from vector<1x1x1xf32>
    %1025 = vector.broadcast %1024 : f32 to vector<1x1xf32>
    %cst_237 = arith.constant 9.765625E-4 : f32
    %1026 = vector.broadcast %cst_237 : f32 to vector<1x1xf32>
    %1027 = arith.mulf %1025, %1026 : vector<1x1xf32>
    %1028 = vector.broadcast %1027 : vector<1x1xf32> to vector<4x256xf32>
    %1029 = arith.subf %1020, %1028 : vector<4x256xf32>
    %1030 = arith.mulf %1029, %1029 : vector<4x256xf32>
    %1031 = vector.shape_cast %1030 : vector<4x256xf32> to vector<1x4x256xf32>
    %cst_238 = arith.constant dense<0.000000e+00> : vector<1xf32>
    %1032 = vector.multi_reduction <add>, %1031, %cst_238 [1, 2] : vector<1x4x256xf32> to vector<1xf32>
    %1033 = vector.shape_cast %1032 : vector<1xf32> to vector<1x1x1xf32>
    %1034 = vector.extract %1033[0, 0, 0] : f32 from vector<1x1x1xf32>
    %1035 = vector.broadcast %1034 : f32 to vector<1x1xf32>
    %cst_239 = arith.constant 9.765625E-4 : f32
    %1036 = vector.broadcast %cst_239 : f32 to vector<1x1xf32>
    %1037 = arith.mulf %1035, %1036 : vector<1x1xf32>
    %cst_240 = arith.constant 9.99999974E-6 : f32
    %1038 = vector.broadcast %cst_240 : f32 to vector<1x1xf32>
    %1039 = arith.addf %1037, %1038 : vector<1x1xf32>
    %1040 = math.rsqrt %1039 : vector<1x1xf32>
    %1041 = vector.broadcast %1040 : vector<1x1xf32> to vector<4x256xf32>
    %1042 = arith.mulf %1029, %1041 : vector<4x256xf32>
    %1043 = vector.extract_strided_slice %921 {offsets = [12, 0], sizes = [4, 1], strides = [1, 1]} : vector<16x1xf32> to vector<4x1xf32>
    %1044 = vector.broadcast %1043 : vector<4x1xf32> to vector<4x256xf32>
    %1045 = arith.mulf %1042, %1044 : vector<4x256xf32>
    %1046 = vector.extract_strided_slice %923 {offsets = [12, 0], sizes = [4, 1], strides = [1, 1]} : vector<16x1xf32> to vector<4x1xf32>
    %1047 = vector.broadcast %1046 : vector<4x1xf32> to vector<4x256xf32>
    %1048 = arith.addf %1045, %1047 : vector<4x256xf32>
    %1049 = vector.extract_strided_slice %68 {offsets = [12, 0], sizes = [4, 256], strides = [1, 1]} : vector<16x256xf32> to vector<4x256xf32>
    %1050 = arith.addf %1048, %1049 : vector<4x256xf32>
    %c12 = arith.constant 12 : index
    %c0_241 = arith.constant 0 : index
    %1051 = vector.load %arg20[%c12, %c0_241] : memref<16x256xf32, #tpu.memory_space<vmem>>, vector<4x256xf32>
    tpu.vector_store %arg20[%c12, %c0_241], %1050 {strides = array<i32>} : memref<16x256xf32, #tpu.memory_space<vmem>>, vector<4x256xf32>,
    %c1_i32_242 = arith.constant 1 : i32
    %1052 = arith.cmpi eq, %arg1, %c1_i32_242 : i32
    %1053 = arith.extui %1052 : i1 to i32
    %c0_i32_243 = arith.constant 0 : i32
    %1054 = arith.cmpi ne, %1053, %c0_i32_243 : i32
    scf.if %1054 {
      %c0_244 = arith.constant 0 : index
      %c0_245 = arith.constant 0 : index
      %1055 = vector.load %arg20[%c0_244, %c0_245] : memref<16x256xf32, #tpu.memory_space<vmem>>, vector<16x256xf32>
      %c0_246 = arith.constant 0 : index
      %c128_247 = arith.constant 128 : index
      %1056 = vector.load %arg21[%c0_246, %c128_247] : memref<16x401xf32, #tpu.memory_space<vmem>>, vector<16x256xf32>
      tpu.vector_store %arg21[%c0_246, %c128_247], %1055 {strides = array<i32>} : memref<16x401xf32, #tpu.memory_space<vmem>>, vector<16x256xf32>,
      %c0_248 = arith.constant 0 : index
      %c0_249 = arith.constant 0 : index
      %1057 = vector.load %arg17[%c0_248, %c0_249] : memref<12x144xbf16, #tpu.memory_space<vmem>>, vector<12x144xbf16>
      %c0_250 = arith.constant 0 : index
      %c0_251 = arith.constant 0 : index
      %1058 = vector.load %arg18[%c0_250, %c0_251] : memref<12x1xf32, #tpu.memory_space<vmem>>, vector<12x1xf32>
      %c0_252 = arith.constant 0 : index
      %c111_253 = arith.constant 111 : index
      %1059 = vector.load %arg21[%c0_252, %c111_253] : memref<16x401xf32, #tpu.memory_space<vmem>>, vector<16x256xf32>
      %1060 = vector.broadcast %24 : vector<1x256xf32> to vector<16x256xf32>
      %1061 = arith.mulf %1059, %1060 : vector<16x256xf32>
      %1062 = arith.truncf %1061 : vector<16x256xf32> to vector<16x256xbf16>
      %c0_254 = arith.constant 0 : index
      %c0_255 = arith.constant 0 : index
      %1063 = vector.load %arg25[%c0_254, %c0_255] : memref<288x256xbf16, #tpu.memory_space<vmem>>, vector<16x256xbf16>
      tpu.vector_store %arg25[%c0_254, %c0_255], %1062 {strides = array<i32>} : memref<288x256xbf16, #tpu.memory_space<vmem>>, vector<16x256xbf16>,
      %c0_256 = arith.constant 0 : index
      %c112_257 = arith.constant 112 : index
      %1064 = vector.load %arg21[%c0_256, %c112_257] : memref<16x401xf32, #tpu.memory_space<vmem>>, vector<16x256xf32>
      %1065 = arith.truncf %1064 : vector<16x256xf32> to vector<16x256xbf16>
      %c16_258 = arith.constant 16 : index
      %c0_259 = arith.constant 0 : index
      %1066 = vector.load %arg25[%c16_258, %c0_259] : memref<288x256xbf16, #tpu.memory_space<vmem>>, vector<16x256xbf16>
      tpu.vector_store %arg25[%c16_258, %c0_259], %1065 {strides = array<i32>} : memref<288x256xbf16, #tpu.memory_space<vmem>>, vector<16x256xbf16>,
      %c0_260 = arith.constant 0 : index
      %c113_261 = arith.constant 113 : index
      %1067 = vector.load %arg21[%c0_260, %c113_261] : memref<16x401xf32, #tpu.memory_space<vmem>>, vector<16x256xf32>
      %1068 = vector.broadcast %32 : vector<1x256xf32> to vector<16x256xf32>
      %1069 = arith.mulf %1067, %1068 : vector<16x256xf32>
      %1070 = arith.truncf %1069 : vector<16x256xf32> to vector<16x256xbf16>
      %c32_262 = arith.constant 32 : index
      %c0_263 = arith.constant 0 : index
      %1071 = vector.load %arg25[%c32_262, %c0_263] : memref<288x256xbf16, #tpu.memory_space<vmem>>, vector<16x256xbf16>
      tpu.vector_store %arg25[%c32_262, %c0_263], %1070 {strides = array<i32>} : memref<288x256xbf16, #tpu.memory_space<vmem>>, vector<16x256xbf16>,
      %c0_264 = arith.constant 0 : index
      %c127_265 = arith.constant 127 : index
      %1072 = vector.load %arg21[%c0_264, %c127_265] : memref<16x401xf32, #tpu.memory_space<vmem>>, vector<16x256xf32>
      %1073 = vector.broadcast %24 : vector<1x256xf32> to vector<16x256xf32>
      %1074 = arith.mulf %1072, %1073 : vector<16x256xf32>
      %1075 = arith.truncf %1074 : vector<16x256xf32> to vector<16x256xbf16>
      %c48_266 = arith.constant 48 : index
      %c0_267 = arith.constant 0 : index
      %1076 = vector.load %arg25[%c48_266, %c0_267] : memref<288x256xbf16, #tpu.memory_space<vmem>>, vector<16x256xbf16>
      tpu.vector_store %arg25[%c48_266, %c0_267], %1075 {strides = array<i32>} : memref<288x256xbf16, #tpu.memory_space<vmem>>, vector<16x256xbf16>,
      %c0_268 = arith.constant 0 : index
      %c128_269 = arith.constant 128 : index
      %1077 = vector.load %arg21[%c0_268, %c128_269] : memref<16x401xf32, #tpu.memory_space<vmem>>, vector<16x256xf32>
      %1078 = arith.truncf %1077 : vector<16x256xf32> to vector<16x256xbf16>
      %c64_270 = arith.constant 64 : index
      %c0_271 = arith.constant 0 : index
      %1079 = vector.load %arg25[%c64_270, %c0_271] : memref<288x256xbf16, #tpu.memory_space<vmem>>, vector<16x256xbf16>
      tpu.vector_store %arg25[%c64_270, %c0_271], %1078 {strides = array<i32>} : memref<288x256xbf16, #tpu.memory_space<vmem>>, vector<16x256xbf16>,
      %c0_272 = arith.constant 0 : index
      %c129_273 = arith.constant 129 : index
      %1080 = vector.load %arg21[%c0_272, %c129_273] : memref<16x401xf32, #tpu.memory_space<vmem>>, vector<16x256xf32>
      %1081 = vector.broadcast %32 : vector<1x256xf32> to vector<16x256xf32>
      %1082 = arith.mulf %1080, %1081 : vector<16x256xf32>
      %1083 = arith.truncf %1082 : vector<16x256xf32> to vector<16x256xbf16>
      %c80_274 = arith.constant 80 : index
      %c0_275 = arith.constant 0 : index
      %1084 = vector.load %arg25[%c80_274, %c0_275] : memref<288x256xbf16, #tpu.memory_space<vmem>>, vector<16x256xbf16>
      tpu.vector_store %arg25[%c80_274, %c0_275], %1083 {strides = array<i32>} : memref<288x256xbf16, #tpu.memory_space<vmem>>, vector<16x256xbf16>,
      %c0_276 = arith.constant 0 : index
      %c143_277 = arith.constant 143 : index
      %1085 = vector.load %arg21[%c0_276, %c143_277] : memref<16x401xf32, #tpu.memory_space<vmem>>, vector<16x256xf32>
      %1086 = vector.broadcast %24 : vector<1x256xf32> to vector<16x256xf32>
      %1087 = arith.mulf %1085, %1086 : vector<16x256xf32>
      %1088 = arith.truncf %1087 : vector<16x256xf32> to vector<16x256xbf16>
      %c96_278 = arith.constant 96 : index
      %c0_279 = arith.constant 0 : index
      %1089 = vector.load %arg25[%c96_278, %c0_279] : memref<288x256xbf16, #tpu.memory_space<vmem>>, vector<16x256xbf16>
      tpu.vector_store %arg25[%c96_278, %c0_279], %1088 {strides = array<i32>} : memref<288x256xbf16, #tpu.memory_space<vmem>>, vector<16x256xbf16>,
      %c0_280 = arith.constant 0 : index
      %c144_281 = arith.constant 144 : index
      %1090 = vector.load %arg21[%c0_280, %c144_281] : memref<16x401xf32, #tpu.memory_space<vmem>>, vector<16x256xf32>
      %1091 = arith.truncf %1090 : vector<16x256xf32> to vector<16x256xbf16>
      %c112_282 = arith.constant 112 : index
      %c0_283 = arith.constant 0 : index
      %1092 = vector.load %arg25[%c112_282, %c0_283] : memref<288x256xbf16, #tpu.memory_space<vmem>>, vector<16x256xbf16>
      tpu.vector_store %arg25[%c112_282, %c0_283], %1091 {strides = array<i32>} : memref<288x256xbf16, #tpu.memory_space<vmem>>, vector<16x256xbf16>,
      %c0_284 = arith.constant 0 : index
      %c145_285 = arith.constant 145 : index
      %1093 = vector.load %arg21[%c0_284, %c145_285] : memref<16x401xf32, #tpu.memory_space<vmem>>, vector<16x256xf32>
      %1094 = vector.broadcast %32 : vector<1x256xf32> to vector<16x256xf32>
      %1095 = arith.mulf %1093, %1094 : vector<16x256xf32>
      %1096 = arith.truncf %1095 : vector<16x256xf32> to vector<16x256xbf16>
      %c128_286 = arith.constant 128 : index
      %c0_287 = arith.constant 0 : index
      %1097 = vector.load %arg25[%c128_286, %c0_287] : memref<288x256xbf16, #tpu.memory_space<vmem>>, vector<16x256xbf16>
      tpu.vector_store %arg25[%c128_286, %c0_287], %1096 {strides = array<i32>} : memref<288x256xbf16, #tpu.memory_space<vmem>>, vector<16x256xbf16>,
      %c0_288 = arith.constant 0 : index
      %c0_289 = arith.constant 0 : index
      %1098 = vector.load %arg25[%c0_288, %c0_289] : memref<288x256xbf16, #tpu.memory_space<vmem>>, vector<144x256xbf16>
      %cst_290 = arith.constant dense<0.000000e+00> : vector<12x256xf32>
      %1099 = tpu.matmul %1057, %1098, %cst_290 {dimension_numbers = #tpu.dot_dimension_numbers<[1], [0], [0], [1], [0, 0, 1, 1], [], []>} : vector<12x144xbf16>, vector<144x256xbf16>, vector<12x256xf32> -> vector<12x256xf32>
      %1100 = vector.broadcast %1058 : vector<12x1xf32> to vector<12x256xf32>
      %1101 = arith.addf %1099, %1100 : vector<12x256xf32>
      %c0_291 = arith.constant 0 : index
      %c0_292 = arith.constant 0 : index
      %c0_293 = arith.constant 0 : index
      %1102 = vector.load %arg2[%c0_291, %c0_292, %c0_293] : memref<1x16x256xf32, #tpu.memory_space<vmem>>, vector<1x16x256xf32>
      %1103 = vector.shape_cast %1102 : vector<1x16x256xf32> to vector<16x256xf32>
      %1104 = vector.extract_strided_slice %1103 {offsets = [0, 0], sizes = [1, 256], strides = [1, 1]} : vector<16x256xf32> to vector<1x256xf32>
      %1105 = vector.shape_cast %1104 : vector<1x256xf32> to vector<1x256xf32>
      %1106 = vector.broadcast %1105 : vector<1x256xf32> to vector<4x256xf32>
      %1107 = vector.extract_strided_slice %1103 {offsets = [1, 0], sizes = [1, 256], strides = [1, 1]} : vector<16x256xf32> to vector<1x256xf32>
      %1108 = vector.shape_cast %1107 : vector<1x256xf32> to vector<1x256xf32>
      %1109 = vector.broadcast %1108 : vector<1x256xf32> to vector<4x256xf32>
      %1110 = vector.extract_strided_slice %1103 {offsets = [2, 0], sizes = [1, 256], strides = [1, 1]} : vector<16x256xf32> to vector<1x256xf32>
      %1111 = vector.shape_cast %1110 : vector<1x256xf32> to vector<1x256xf32>
      %1112 = vector.broadcast %1111 : vector<1x256xf32> to vector<4x256xf32>
      %1113 = tpu.concatenate %1106, %1109, %1112 in 0 : vector<4x256xf32>, vector<4x256xf32>, vector<4x256xf32> -> vector<12x256xf32>
      %1114 = arith.addf %1101, %1113 : vector<12x256xf32>
      %c0_294 = arith.constant 0 : index
      %c0_295 = arith.constant 0 : index
      %c0_296 = arith.constant 0 : index
      %1115 = vector.load %arg19[%c0_294, %c0_295, %c0_296] : memref<1x12x256xf32, #tpu.memory_space<vmem>>, vector<1x12x256xf32>
      %1116 = vector.shape_cast %1115 : vector<1x12x256xf32> to vector<12x256xf32>
      %1117 = vector.shape_cast %1114 : vector<12x256xf32> to vector<1x12x256xf32>
      tpu.vector_store %arg19[%c0_294, %c0_295, %c0_296], %1117 {strides = array<i32>} : memref<1x12x256xf32, #tpu.memory_space<vmem>>, vector<1x12x256xf32>,
    } else {
    }
    return
  }
  func.func @transform_0(%arg0: i32, %arg1: i32) -> (i32, i32, i32) {
    %c0_i32 = arith.constant 0 : i32
    %c0_i32_0 = arith.constant 0 : i32
    %c0_i32_1 = arith.constant 0 : i32
    return %arg0, %c0_i32, %c0_i32_0 : i32, i32, i32
  }
  func.func @transform_1(%arg0: i32, %arg1: i32) -> (i32, i32) {
    %c0_i32 = arith.constant 0 : i32
    %c0_i32_0 = arith.constant 0 : i32
    %c0_i32_1 = arith.constant 0 : i32
    return %c0_i32, %c0_i32_0 : i32, i32
  }
  func.func @transform_2(%arg0: i32, %arg1: i32) -> (i32, i32) {
    %c0_i32 = arith.constant 0 : i32
    %c0_i32_0 = arith.constant 0 : i32
    %c0_i32_1 = arith.constant 0 : i32
    return %c0_i32, %c0_i32_0 : i32, i32
  }
  func.func @transform_3(%arg0: i32, %arg1: i32) -> (i32, i32, i32) {
    %c0_i32 = arith.constant 0 : i32
    %c0_i32_0 = arith.constant 0 : i32
    %c0_i32_1 = arith.constant 0 : i32
    return %arg1, %c0_i32, %c0_i32_0 : i32, i32, i32
  }
  func.func @transform_4(%arg0: i32, %arg1: i32) -> (i32, i32, i32) {
    %c0_i32 = arith.constant 0 : i32
    %c0_i32_0 = arith.constant 0 : i32
    %c0_i32_1 = arith.constant 0 : i32
    return %arg1, %c0_i32, %c0_i32_0 : i32, i32, i32
  }
  func.func @transform_5(%arg0: i32, %arg1: i32) -> (i32, i32, i32) {
    %c0_i32 = arith.constant 0 : i32
    %c0_i32_0 = arith.constant 0 : i32
    %c0_i32_1 = arith.constant 0 : i32
    return %arg1, %c0_i32, %c0_i32_0 : i32, i32, i32
  }
  func.func @transform_6(%arg0: i32, %arg1: i32) -> (i32, i32, i32) {
    %c0_i32 = arith.constant 0 : i32
    %c0_i32_0 = arith.constant 0 : i32
    %c0_i32_1 = arith.constant 0 : i32
    return %arg1, %c0_i32, %c0_i32_0 : i32, i32, i32
  }
  func.func @transform_7(%arg0: i32, %arg1: i32) -> (i32, i32, i32) {
    %c0_i32 = arith.constant 0 : i32
    %c0_i32_0 = arith.constant 0 : i32
    %c0_i32_1 = arith.constant 0 : i32
    return %arg1, %c0_i32, %c0_i32_0 : i32, i32, i32
  }
  func.func @transform_8(%arg0: i32, %arg1: i32) -> (i32, i32, i32) {
    %c0_i32 = arith.constant 0 : i32
    %c0_i32_0 = arith.constant 0 : i32
    %c0_i32_1 = arith.constant 0 : i32
    return %arg1, %c0_i32, %c0_i32_0 : i32, i32, i32
  }
  func.func @transform_9(%arg0: i32, %arg1: i32) -> (i32, i32, i32) {
    %c0_i32 = arith.constant 0 : i32
    %c0_i32_0 = arith.constant 0 : i32
    %c0_i32_1 = arith.constant 0 : i32
    return %arg1, %c0_i32, %c0_i32_0 : i32, i32, i32
  }
  func.func @transform_10(%arg0: i32, %arg1: i32) -> (i32, i32, i32) {
    %c0_i32 = arith.constant 0 : i32
    %c0_i32_0 = arith.constant 0 : i32
    %c0_i32_1 = arith.constant 0 : i32
    return %arg1, %c0_i32, %c0_i32_0 : i32, i32, i32
  }
  func.func @transform_11(%arg0: i32, %arg1: i32) -> (i32, i32, i32) {
    %c0_i32 = arith.constant 0 : i32
    %c0_i32_0 = arith.constant 0 : i32
    %c0_i32_1 = arith.constant 0 : i32
    return %arg1, %c0_i32, %c0_i32_0 : i32, i32, i32
  }
  func.func @transform_12(%arg0: i32, %arg1: i32) -> (i32, i32, i32) {
    %c0_i32 = arith.constant 0 : i32
    %c0_i32_0 = arith.constant 0 : i32
    %c0_i32_1 = arith.constant 0 : i32
    return %arg1, %c0_i32, %c0_i32_0 : i32, i32, i32
  }
  func.func @transform_13(%arg0: i32, %arg1: i32) -> (i32, i32, i32) {
    %c0_i32 = arith.constant 0 : i32
    %c0_i32_0 = arith.constant 0 : i32
    %c0_i32_1 = arith.constant 0 : i32
    return %arg1, %c0_i32, %c0_i32_0 : i32, i32, i32
  }
  func.func @transform_14(%arg0: i32, %arg1: i32) -> (i32, i32, i32) {
    %c0_i32 = arith.constant 0 : i32
    %c0_i32_0 = arith.constant 0 : i32
    %c0_i32_1 = arith.constant 0 : i32
    return %arg1, %c0_i32, %c0_i32_0 : i32, i32, i32
  }
  func.func @transform_15(%arg0: i32, %arg1: i32) -> (i32, i32) {
    %c0_i32 = arith.constant 0 : i32
    %c0_i32_0 = arith.constant 0 : i32
    %c0_i32_1 = arith.constant 0 : i32
    return %c0_i32, %c0_i32_0 : i32, i32
  }
  func.func @transform_16(%arg0: i32, %arg1: i32) -> (i32, i32) {
    %c0_i32 = arith.constant 0 : i32
    %c0_i32_0 = arith.constant 0 : i32
    %c0_i32_1 = arith.constant 0 : i32
    return %c0_i32, %c0_i32_0 : i32, i32
  }
  func.func @transform_17(%arg0: i32, %arg1: i32) -> (i32, i32, i32) {
    %c0_i32 = arith.constant 0 : i32
    %c0_i32_0 = arith.constant 0 : i32
    %c0_i32_1 = arith.constant 0 : i32
    return %arg0, %c0_i32, %c0_i32_0 : i32, i32, i32
  }
}

</mosaic_0001>

<bundles_post_ra>
// kernel: realplksr_forward.1
= control target key start
LH: loop header
LB: loop body
LE: loop exit
PB: predicated region body
PF: predicated region fallthrough
CT: control target
= control target key end

     0   :  { %s11806_s24 = smov 0   ;;  %s11808_s25 = smov 0   ;;  %s16734_s0 = inlined_call_operand.vmem [shape: f32[2,16,256], index: 0, kind: input, shape index: {}]   ;;  %s16735_s1 = inlined_call_operand.vmem [shape: bf16[16,144], index: 1, kind: input, shape index: {}]   ;;  %s16736_s2 = inlined_call_operand.vmem [shape: f32[16,1], index: 2, kind: input, shape index: {}]   ;;  %s16737_s3 = inlined_call_operand.vmem [shape: bf16[2,32,144], index: 3, kind: input, shape index: {}]   ;;  %s16738_s4 = inlined_call_operand.vmem [shape: f32[2,32,1], index: 4, kind: input, shape index: {}]   ;;  %s16739_s5 = inlined_call_operand.vmem [shape: bf16[2,16,288], index: 5, kind: input, shape index: {}]   ;;  %s16740_s6 = inlined_call_operand.vmem [shape: f32[2,16,1], index: 6, kind: input, shape index: {}]   ;;  %s16741_s7 = inlined_call_operand.vmem [shape: f32[2,4,100], index: 7, kind: input, shape index: {}]   ;;  %s16742_s8 = inlined_call_operand.vmem [shape: f32[2,4,1], index: 8, kind: input, shape index: {}]   ;;  %s16743_s9 = inlined_call_operand.vmem [shape: bf16[2,16,144], index: 9, kind: input, shape index: {}]   ;;  %s16744_s10 = inlined_call_operand.vmem [shape: f32[2,16,1], index: 10, kind: input, shape index: {}]   ;;  %s16745_s11 = inlined_call_operand.vmem [shape: bf16[2,16,16], index: 11, kind: input, shape index: {}]   ;;  %s16746_s12 = inlined_call_operand.vmem [shape: f32[2,16,1], index: 12, kind: input, shape index: {}]   ;;  %s16747_s13 = inlined_call_operand.vmem [shape: f32[2,16,1], index: 13, kind: input, shape index: {}]   ;;  %s16748_s14 = inlined_call_operand.vmem [shape: f32[2,16,1], index: 14, kind: input, shape index: {}]   ;;  %s16749_s15 = inlined_call_operand.vmem [shape: bf16[12,144], index: 15, kind: input, shape index: {}]   ;;  %s16750_s16 = inlined_call_operand.vmem [shape: f32[12,1], index: 16, kind: input, shape index: {}]   ;;  %s16751_s17 = inlined_call_operand.vmem [shape: f32[2,12,256], index: 17, kind: output, shape index: {}]  }
   0x1   :  { %17109 = sst [smem:[#allocation195_spill]] %s16734_s0  ;;  %s11810_s26 = smov 0  }
   0x2   :  { %17110 = sst [smem:[#allocation196_spill]] %s16735_s1  ;;  %s11812_s27 = smov 0  }
   0x3   :  { %17111 = sst [smem:[#allocation197_spill]] %s16737_s3  ;;  %s11814_s28 = smov 0  }
   0x4   :  { %17112 = sst [smem:[#allocation198_spill]] %s16738_s4 }
   0x5   :  { %17113 = sst [smem:[#allocation199_spill]] %s16739_s5 }
   0x6   :  { %17114 = sst [smem:[#allocation200_spill]] %s16740_s6 }
   0x7   :  { %17115 = sst [smem:[#allocation201_spill]] %s16741_s7 }
   0x8   :  { %17116 = sst [smem:[#allocation202_spill]] %s16742_s8 }
   0x9   :  { %17117 = sst [smem:[#allocation203_spill]] %s16743_s9 }
   0xa   :  { %17118 = sst [smem:[#allocation204_spill]] %s16744_s10 }
   0xb   :  { %17119 = sst [smem:[#allocation205_spill]] %s16749_s15 }
   0xc   :  { %17120 = sst [smem:[#allocation206_spill]] %s16750_s16 }
   0xd LB: > { %17121 = sst [smem:[#allocation8_spill]] %s11547_s26  ;;  %s36_s29 = sadd.s32 1, %s11547_s26  ;;  %s11555_s28 = sphi %s11814_s28, %s27_s28   ;;  %s11551_s27 = sphi %s11812_s27, %s17857_s27   ;;  %s11547_s26 = sphi %s11810_s26, %s17856_s26   ;;  %s11543_s25 = sphi %s11808_s25, %s17855_s25   ;;  %s11539_s24 = sphi %s11806_s24, %s17854_s24  }
   0xe   : > { %17122 = sst [smem:[#allocation9_spill]] %s11551_s27  ;;  %s39_s0 = sadd.s32 1, %s11551_s27 }
   0xf   : > { %17123 = sst [smem:[#allocation10_spill]] %s11555_s28  ;;  %p37_p0 = scmp.ge.s32.totalorder %s36_s29, 2 }
  0x10   : > { %p10454_p1 = scmp.ge.s32.totalorder %s11555_s28, 1  ;;  %p617_p2 = scmp.lt.s32.totalorder %s11555_s28, 5 }
  0x11   : > { %s17859_s29 = smov (%p37_p0, %s36_s29), 0  ;;  %s17861_s0 = smov (!%p37_p0, %s39_s0), %s11551_s27 }
  0x12   : > { %17124 = sst [smem:[#allocation11_spill]] %s17859_s29  ;;  %p618_p3 = pnand %p10454_p1, %p617_p2 }
  0x13   : > { %p41_p4 = scmp.ge.s32.totalorder %s17861_s0, 2 }
  0x14   : > { %621 = sbr.rel (%p618_p3) target bundleno = 4466 (0x1172), region = 88 }
  0x15   : > { %s17863_s0 = smov (%p41_p4, %s17861_s0), 0 }
  0x16   : > { %17125 = sst [smem:[#allocation12_spill]] %s17863_s0 }
  0x19   : > { %p727_p5 = scmp.lt.s32.totalorder %s11543_s25, 1  ;;  %p732_p6 = scmp.lt.s32.totalorder %s11539_s24, 1  ;;  %v16763_v0 = vlaneseq  ;;  %v11557_v5 = vmov 0.0  }
  0x1a   : > { %s17126_s20 = sld [smem:[#allocation195_spill]]  ;;  %p10480_p7 = scmp.ne.s32.totalorder %s11539_s24, 0 }
  0x1b   : > { %s17865_s25 = smov (!%p727_p5, %s11543_s25), 1  ;;  %v797_v1 = vand.u32 127, %v16763_v0  ;;  %s17127_s3 = sld [smem:[#allocation197_spill]] }
  0x1c   : > { %s11843_s30 = scalar_select %p732_p6, %s11539_s24, 1 }
  0x1d   : > { %s16757_s18 = sshll.u32 %s17865_s25, 5  ;;  %v798_v2 = vadd.s32 128, %v797_v1  ;;  %v803_v3 = vand.u32 15, %v797_v1  ;;  %s17129_s4 = sld [smem:[#allocation198_spill]] }
  0x1e   : > { %s10822_s22 = sshll.u32 %s11843_s30, 5  ;;  %s11036_s16 = smul.u32 24, %s11843_s30 }
  0x1f   : > { %v810_v4 = vand.u32 15, %v798_v2  ;;  %vm823_vm0 = vcmp.ge.s32.totalorder %v803_v3, 1  ;;  %vm833_vm1 = vcmp.lt.s32.totalorder %v803_v3, 15  ;;  %vm839_vm2 = vcmp.ge.s32.totalorder %v803_v3, 2  ;;  %s10824_s19 = sshll.u32 %s11843_s30, 4  ;;  %s17130_s6 = sld [smem:[#allocation200_spill]] }
  0x20   : > { %s11851_s21 = scalar_lea.vmem %s17126_s20, %s16757_s18  ;;  %v11866_v6 = vsel %vm823_vm0, 1.0, %v11557_v5  ;;  %v11868_v7 = vsel %vm833_vm1, 1.0, %v11557_v5  ;;  %v11870_v8 = vsel %vm839_vm2, 1.0, %v11557_v5  ;;  %vm849_vm3 = vcmp.lt.s32.totalorder %v803_v3, 14  ;;  %s10464_s27 = sshll.u32 %s11843_s30, 2 }
  0x21   : > { %s11857_s29 = scalar_lea.vmem %s17127_s3, %s10822_s22  ;;  %vm824_vm4 = vcmp.ge.s32.totalorder %v810_v4, 1  ;;  %vm834_vm5 = vcmp.lt.s32.totalorder %v810_v4, 15  ;;  %vm840_vm6 = vcmp.ge.s32.totalorder %v810_v4, 2  ;;  %vm850_vm7 = vcmp.lt.s32.totalorder %v810_v4, 14  ;;  %s17131_s5 = sld [smem:[#allocation199_spill]] }
  0x22   : > { %17128 = sst [smem:[#allocation13_spill]] %s11857_s29  ;;  %v11888_v9 = vsel %vm824_vm4, 1.0, %v11557_v5  ;;  %v11890_v10 = vsel %vm834_vm5, 1.0, %v11557_v5  ;;  %v11892_v11 = vsel %vm840_vm6, 1.0, %v11557_v5  ;;  %v11894_v12 = vsel %vm849_vm3, 1.0, %v11557_v5  ;;  %s11922_s1 = scalar_lea.vmem %s16746_s12, %s10824_s19 }
  0x23   : > { %s11862_s28 = scalar_lea.vmem %s17129_s4, %s10822_s22  ;;  %s17133_s7 = sld [smem:[#allocation201_spill]]  ;;  %v11906_v13 = vsel %vm850_vm7, 1.0, %v11557_v5 }
  0x24   : > { %s17134_s8 = sld [smem:[#allocation202_spill]]  ;;  %s11932_s18 = scalar_lea.vmem %s16748_s14, %s10824_s19 }
  0x25   : > { %s11875_s26 = scalar_lea.vmem %s17130_s6, %s10824_s19  ;;  %s17135_s9 = sld [smem:[#allocation203_spill]] }
  0x26   : > { %s17136_s10 = sld [smem:[#allocation204_spill]]  ;;  %s11565_s0 = smov (!%p10480_p7), 112  }
  0x27   : > { %s11881_s23 = scalar_lea.vmem %s17131_s5, %s11036_s16  ;;  %s11566_s16 = smov (!%p10480_p7), 16  }
  0x28   : > { %17132 = sst [smem:[#allocation14_spill]] %s11881_s23  ;;  %s11563_s23 = smov (!%p10480_p7), 111  }
  0x29   : > { %s11886_s4 = scalar_lea.vmem %s17133_s7, %s10464_s27  ;;  %s10827_s7 = sshll.u32 %s11843_s30, 3 }
  0x2a   : > { %s11899_s20 = scalar_lea.vmem %s17134_s8, %s10464_s27  ;;  %s11917_s29 = scalar_lea.vmem %s16745_s11, %s10827_s7 }
  0x2b   : > { %s11904_s5 = scalar_lea.vmem %s17135_s9, %s10824_s19  ;;  %s11927_s8 = scalar_lea.vmem %s16747_s13, %s10824_s19 }
  0x2c   : > { %s11911_s6 = scalar_lea.vmem %s17136_s10, %s10824_s19  ;;  %s17137_s30 = sshll.u32 %s17865_s25, 5 }
  0x2d   : > { %s11939_s7 = scalar_lea.vmem %s16751_s17, %s17137_s30  ;;  %858 = sbr.rel (%p10480_p7) target bundleno = 545 (0x221), region = 92 }
  0x2e   : > { %s11558_s9 = smov (!%p10480_p7), 15   ;;  %s11559_s10 = smov (!%p10480_p7), 127  }
  0x2f   : > { %s11561_s25 = smov (!%p10480_p7), 1   ;;  %s11562_s19 = smov (!%p10480_p7), 113  }
  0x30   : > { %s11564_s27 = smov (!%p10480_p7), 17   ;;  %s17138_s30 = sld [smem:[#allocation196_spill]] (!%p10480_p7) }
  0x32   : > { %v11252_v14 = vpack.i.bf16 %v11888_v9, %v11866_v6  ;;  %v11945_v15 = vld [vmem:[%s11851_s21] sm:$0xff]  ;;  %v11948_v16 = vld [vmem:[%s11851_s21 + $0x8] sm:$0xff]  ;;  %v11951_v17 = vld [vmem:[%s11851_s21 + $0x10] sm:$0xff]  ;;  %v11257_v18 = vpack.i.bf16 %v11890_v10, %v11868_v7  ;;  %vm862_vm8 = vcmask 138240   ;;  %v11560_v20 = vmov 0.0  }
  0x33   : > { %v11956_v19 = vld [vmem:[%s11851_s21 + $0x18] sm:$0xff]  ;;  %863 = vst.msk [vmem:[#allocation3 + $0x18] sm:$0xff] %vm862_vm8, %v11560_v20  ;;  %868 = vst [vmem:[#allocation4] sm:$0xff] %v11560_v20  ;;  %vm885_vm9 = vcmask 1043456   ;;  %vm886_vm10 = vcmask 277508   ;;  %v10858_v21 = vpack.c.bf16 %v11948_v16, %v11945_v15  ;;  %v10837_v27 = vpack.c.bf16 %v11948_v16, %v11948_v16 }
  0x34   : > { %11253 = vrot.lane.b32.xlu0 %v11252_v14, %s11558_s9  ;;  %11263 = vrot.lane.b32.xlu1 %v11252_v14, %s11559_s10  ;;  %871 = vst.msk [vmem:[#allocation4 + $0x18] sm:$0xff] %vm862_vm8, %v11560_v20  ;;  %872 = vst [vmem:[#allocation4 + $0x20] sm:$0xff] %v11560_v20  ;;  %v10860_v22 = vpack.c.bf16 %v11956_v19, %v11951_v17  ;;  %v10836_v28 = vpack.c.bf16 %v11945_v15, %v11560_v20  ;;  %vm1057_vm12 = vcmask 121856   ;;  %vm1115_vm13 = vcmask 7168  }
  0x35   : > { %875 = vst.msk [vmem:[#allocation4 + $0x38] sm:$0xff] %vm862_vm8, %v11560_v20  ;;  %876 = vst [vmem:[#allocation4 + $0x40] sm:$0xff] %v11560_v20  ;;  %v10839_v29 = vpack.c.bf16 %v11956_v19, %v11956_v19  ;;  %v10838_v30 = vpack.c.bf16 %v11951_v17, %v11560_v20  ;;  %vm1075_vm14 = vcmask 1039360   ;;  %vm1017_vm15 = vcmask 924672  }
  0x36   : > { %879 = vst.msk [vmem:[#allocation4 + $0x58] sm:$0xff] %vm862_vm8, %v11560_v20  ;;  %880 = vst [vmem:[#allocation4 + $0x60] sm:$0xff] %v11560_v20  ;;  %vm1292_vm0 = vcmask 916480   ;;  %vm997_vm1 = vcmask 130048   ;;  %vm913_vm2 = vcmask 908288  }
  0x37   : > { %881 = vst [vmem:[#allocation4 + $0x68] sm:$0xff] %v11560_v20  ;;  %882 = vst [vmem:[#allocation4 + $0x70] sm:$0xff] %v11560_v20 }
  0x38   : > { %883 = vst.msk [vmem:[#allocation4 + $0x78] sm:$0xff] %vm862_vm8, %v11560_v20  ;;  %884 = vst [vmem:[#allocation5] sm:$0xff] %v11560_v20  ;;  %11258 = vrot.lane.b32.xlu0 %v11257_v18, %s11561_s25  ;;  %11268 = vrot.lane.b32.xlu1 %v11257_v18, %s11562_s19 }
  0x39   : > { %859 = vst [vmem:[#allocation3] sm:$0xff] %v11560_v20  ;;  %864 = vst [vmem:[#allocation3 + $0x20] sm:$0xff] %v11560_v20 }
  0x3a   : > { %867 = vst.msk [vmem:[#allocation3 + $0x38] sm:$0xff] %vm862_vm8, %v11560_v20  ;;  %vm887_vm11 = vmor %vm886_vm10, %vm885_vm9  ;;  %v11973_v23 = vld [vmem:[#allocation3 + $0x18] sm:$0xff] }
  0x3b   : > { %888 = vst.msk [vmem:[#allocation5 + $0x8] sm:$0xff] %vm887_vm11, %v11560_v20  ;;  %v10859_v24 = vpack.c.bf16 %v11973_v23, %v11973_v23 }
  0x3c   : > { %11273 = vrot.lane.b32.xlu0 %v11252_v14, %s11563_s23  ;;  %11278 = vrot.lane.b32.xlu1 %v11257_v18, %s11564_s27 }
  0x40   : > { %1281 = vrot.lane.b32.xlu1 %v10859_v24, %s11565_s0  ;;  %1279 = vrot.lane.b32.xlu0 %v10858_v21, %s11565_s0 }
  0x41   : > { %v11979_v25 = vld [vmem:[#allocation3 + $0x38] sm:$0xff] }
  0x42   : > { %v10861_v26 = vpack.c.bf16 %v11979_v25, %v11979_v25 }
  0x44   : > { %1285 = vrot.lane.b32.xlu1 %v10861_v26, %s11565_s0  ;;  %1283 = vrot.lane.b32.xlu0 %v10860_v22, %s11565_s0 }
  0x48   : > { %986 = vrot.lane.b32.xlu1 %v10837_v27, %s11566_s16  ;;  %984 = vrot.lane.b32.xlu0 %v10836_v28, %s11566_s16 }
  0x4c   : > { %990 = vrot.lane.b32.xlu1 %v10839_v29, %s11566_s16  ;;  %988 = vrot.lane.b32.xlu0 %v10838_v30, %s11566_s16 }
  0xa6   : > { %v11254_v31 = vpop.permute.xlu0 %11253  ;;  %v11264_v32 = vpop.permute.xlu1 %11263 }
  0xa7   : > { %v11256_v33 = vunpack.i.h.bf16 %v11254_v31  ;;  %v11255_v34 = vunpack.i.l.bf16 %v11254_v31  ;;  %v11266_v55 = vunpack.i.h.bf16 %v11264_v32  ;;  %v11265_v56 = vunpack.i.l.bf16 %v11264_v32 }
  0xa9   : > { %v1210_v35 = vsel %vm1057_vm12, %v11255_v34, %v11256_v33  ;;  %v1216_v36 = vmul.f32 %v11256_v33, %v11973_v23  ;;  %v1214_v37 = vmul.f32 %v11255_v34, %v11945_v15  ;;  %v1219_v44 = vmul.f32 %v11256_v33, %v11979_v25 }
  0xaa   : > { %v11259_v38 = vpop.permute.xlu0 %11258  ;;  %v1215_v39 = vmul.f32 %v1210_v35, %v11948_v16  ;;  %v11993_v40 = vpop.permute.xlu1 %11268  ;;  %v1217_v46 = vmul.f32 %v11255_v34, %v11951_v17  ;;  %v1218_v47 = vmul.f32 %v1210_v35, %v11956_v19  ;;  %v1076_v62 = vsel %vm1075_vm14, %v11265_v56, %v11266_v55 }
  0xab   : > { %v11261_v41 = vunpack.i.h.bf16 %v11259_v38  ;;  %v11260_v42 = vunpack.i.l.bf16 %v11259_v38  ;;  %v10855_v43 = vpack.c.bf16 %v1216_v36, %v1216_v36  ;;  %v10857_v54 = vpack.c.bf16 %v1219_v44, %v1219_v44 }
  0xac   : > { %v10854_v45 = vpack.c.bf16 %v1215_v39, %v1214_v37  ;;  %v10856_v57 = vpack.c.bf16 %v1218_v47, %v1217_v46  ;;  %v1082_v3 = vmul.f32 %v11266_v55, %v11948_v16  ;;  %v11271_v4 = vunpack.i.h.bf16 %v11993_v40 }
  0xad   : > { %v1152_v48 = vsel %vm1115_vm13, %v11260_v42, %v11261_v41  ;;  %1238 = vrot.lane.b32.xlu1 %v10855_v43, %s11562_s19  ;;  %v1158_v49 = vmul.f32 %v11261_v41, %v11973_v23  ;;  %v1156_v50 = vmul.f32 %v11260_v42, %v11945_v15  ;;  %v1161_v63 = vmul.f32 %v11261_v41, %v11979_v25 }
  0xae   : > { %1236 = vrot.lane.b32.xlu0 %v10854_v45, %s11562_s19  ;;  %v1157_v51 = vmul.f32 %v1152_v48, %v11948_v16  ;;  %v12004_v52 = vpop.permute.xlu0 %11273  ;;  %v12006_v53 = vpop.permute.xlu1 %11278  ;;  %v1159_v1 = vmul.f32 %v11260_v42, %v11951_v17  ;;  %v1160_v2 = vmul.f32 %v1152_v48, %v11956_v19  ;;  %v11270_v5 = vunpack.i.l.bf16 %v11993_v40 }
  0xaf   : > { %v10851_v58 = vpack.c.bf16 %v1158_v49, %v1158_v49  ;;  %v1080_v14 = vmul.f32 0.0, %v11265_v56  ;;  %v1081_v18 = vmul.f32 %v1076_v62, %v11945_v15  ;;  %v10853_v22 = vpack.c.bf16 %v1161_v63, %v1161_v63 }
  0xb0   : > { %v10850_v59 = vpack.c.bf16 %v1157_v51, %v1156_v50  ;;  %v10852_v24 = vpack.c.bf16 %v1160_v2, %v1159_v1  ;;  %v10845_v26 = vpack.c.bf16 %v1082_v3, %v1082_v3  ;;  %v1085_v27 = vmul.f32 %v11266_v55, %v11956_v19 }
  0xb1   : > { %1242 = vrot.lane.b32.xlu1 %v10857_v54, %s11562_s19  ;;  %v1018_v28 = vsel %vm1017_vm15, %v11270_v5, %v11271_v4  ;;  %v10844_v29 = vpack.c.bf16 %v1081_v18, %v1080_v14  ;;  %v1084_v34 = vmul.f32 %v1076_v62, %v11951_v17  ;;  %v11276_v38 = vunpack.i.h.bf16 %v12004_v52 }
  0xb2   : > { %1240 = vrot.lane.b32.xlu0 %v10856_v57, %s11562_s19  ;;  %v1282_v60 = vpop.permute.xlu1 %1281  ;;  %v1280_v61 = vpop.permute.xlu0 %1279  ;;  %v11275_v39 = vunpack.i.l.bf16 %v12004_v52  ;;  %v10847_v42 = vpack.c.bf16 %v1085_v27, %v1085_v27  ;;  %v1024_v43 = vmul.f32 %v11271_v4, %v11948_v16  ;;  %v1022_v46 = vmul.f32 0.0, %v11270_v5 }
  0xb3   : > { %v1288_v30 = vrot.slane %v1282_v60, 4  ;;  %v1287_v31 = vrot.slane %v1280_v61, 4  ;;  %v1023_v47 = vmul.f32 %v1018_v28, %v11945_v15  ;;  %v10846_v57 = vpack.c.bf16 %v1084_v34, %v1080_v14 }
  0xb4   : > { %v914_v63 = vsel %vm913_vm2, %v11275_v39, %v11276_v38  ;;  %v1027_v1 = vmul.f32 %v11271_v4, %v11956_v19  ;;  %v1026_v5 = vmul.f32 %v1018_v28, %v11951_v17  ;;  %v920_v14 = vmul.f32 %v11276_v38, %v11948_v16 }
  0xb5   : > { %1180 = vrot.lane.b32.xlu1 %v10851_v58, %s11559_s10  ;;  %v1291_v40 = vsel %vm885_vm9, %v1287_v31, %v1288_v30  ;;  %v918_v18 = vmul.f32 0.0, %v11275_v39  ;;  %v11281_v4 = vunpack.i.h.bf16 %v12006_v53  ;;  %v922_v30 = vmul.f32 %v914_v63, %v11951_v17  ;;  %v11286_v39 = vld [vmem:[%s17138_s30 + $0x4] ss:$8 sps:$4 sm:$0xff]  }
  0xb6   : > { %1178 = vrot.lane.b32.xlu0 %v10850_v59, %s11559_s10  ;;  %v1286_v20 = vpop.permute.xlu1 %1285  ;;  %v1284_v21 = vpop.permute.xlu0 %1283  ;;  %v1293_v44 = vsel %vm1292_vm0, %v1280_v61, %v1291_v40  ;;  %v10841_v59 = vpack.c.bf16 %v1024_v43, %v1024_v43  ;;  %v10840_v61 = vpack.c.bf16 %v1023_v47, %v1022_v46  ;;  %10535 = vmatprep.mubr.msk.bf16.mxu0 %vm997_vm1, %v11286_v39  ;;  %v899_v43 = vld [vmem:[%s16736_s2] sm:$0xff] }
  0xb7   : > { %v1290_v35 = vrot.slane %v1286_v20, 4  ;;  %v1289_v36 = vrot.slane %v1284_v21, 4  ;;  %v919_v20 = vmul.f32 %v914_v63, %v11945_v15  ;;  %v1316_v31 = vmul.f32 %v11281_v4, %v11973_v23 }
  0xb8   : > { %v10834_v34 = vpack.c.bf16 %v922_v30, %v918_v18 }
  0xb9   : > { %1184 = vrot.lane.b32.xlu1 %v10853_v22, %s11559_s10  ;;  %v1294_v45 = vsel %vm885_vm9, %v1289_v36, %v1290_v35  ;;  %v11280_v22 = vunpack.i.l.bf16 %v12006_v53  ;;  %v10832_v27 = vpack.c.bf16 %v919_v20, %v918_v18  ;;  %v10863_v35 = vpack.c.bf16 %v1316_v31, %v1316_v31 }
  0xba   : > { %1182 = vrot.lane.b32.xlu0 %v10852_v24, %s11559_s10  ;;  %v987_v32 = vpop.permute.xlu1 %986  ;;  %v985_v33 = vpop.permute.xlu0 %984  ;;  %v1295_v48 = vsel %vm1292_vm0, %v1284_v21, %v1294_v45  ;;  %v10843_v21 = vpack.c.bf16 %v1027_v1, %v1027_v1  ;;  %v10842_v24 = vpack.c.bf16 %v1026_v5, %v1022_v46 }
  0xbb   : > { %v993_v37 = vrot.slane %v987_v32, 4  ;;  %v992_v41 = vrot.slane %v985_v33, 4  ;;  %v10532_v56 = vcombine.high %v1293_v44, %v1295_v48  ;;  %v10531_v58 = vcombine.low %v1293_v44, %v1295_v48 }
  0xbc   : > { %v1310_v28 = vsel %vm862_vm8, %v11280_v22, %v11281_v4  ;;  %v1314_v53 = vmul.f32 %v11280_v22, %v11945_v15 }
  0xbd   : > { %1104 = vrot.lane.b32.xlu1 %v10845_v26, %s11561_s25  ;;  %v996_v49 = vsel %vm885_vm9, %v992_v41, %v993_v37  ;;  %1488 = vmatprep.subr.bf16.mxu0 %v10532_v56  ;;  %v10833_v26 = vpack.c.bf16 %v920_v14, %v920_v14  ;;  %v1315_v32 = vmul.f32 %v1310_v28, %v11948_v16 }
  0xbe   : > { %1102 = vrot.lane.b32.xlu0 %v10844_v29, %s11561_s25  ;;  %v991_v50 = vpop.permute.xlu1 %990  ;;  %v989_v51 = vpop.permute.xlu0 %988  ;;  %v12037_v52 = vsel %vm997_vm1, %v985_v33, %v996_v49  ;;  %1489 = vmatpush1.bf16.msra.mxu0 %v10531_v58  ;;  %v923_v29 = vmul.f32 %v11276_v38, %v11956_v19  ;;  %v1319_v37 = vmul.f32 %v11281_v4, %v11979_v25  ;;  %v900_v25 = vld [vmem:[%s16736_s2 + $0x8] sm:$0xff] }
  0xbf   : > { %v995_v54 = vrot.slane %v991_v50, 4  ;;  %v994_v55 = vrot.slane %v989_v51, 4  ;;  %v10862_v36 = vpack.c.bf16 %v1315_v32, %v1314_v53  ;;  %v1317_v38 = vmul.f32 %v11280_v22, %v11951_v17 }
  0xc0   : > { %v10835_v33 = vpack.c.bf16 %v923_v29, %v923_v29  ;;  %v1318_v23 = vmul.f32 %v1310_v28, %v11956_v19  ;;  %v10865_v40 = vpack.c.bf16 %v1319_v37, %v1319_v37  ;;  %v11509_v53 = vpack.c.bf16 %v11956_v19, %v11948_v16 }
  0xc1   : > { %1108 = vrot.lane.b32.xlu1 %v10847_v42, %s11561_s25  ;;  %v999_v60 = vsel %vm885_vm9, %v994_v55, %v995_v54  ;;  %v11567_v42 = vmov 0   ;;  %v11510_v37 = vpack.c.bf16 %v11951_v17, %v11945_v15 }
  0xc2   : > { %1106 = vrot.lane.b32.xlu0 %v10846_v57, %s11561_s25  ;;  %v12043_v62 = vsel %vm997_vm1, %v989_v51, %v999_v60  ;;  %v10864_v41 = vpack.c.bf16 %v1318_v23, %v1317_v38  ;;  %11283 = vset.pattern.permute.xlu1 %v11567_v42 }
  0xc3   : > { %v10520_v2 = vcombine.high %v12037_v52, %v12043_v62  ;;  %v10519_v3 = vcombine.low %v12037_v52, %v12043_v62  ;;  %11282 = vset.pattern.permute.xlu0 %v11567_v42 }
  0xc5   : > { %1046 = vrot.lane.b32.xlu1 %v10841_v59, %s11558_s9 }
  0xc6   : > { %1044 = vrot.lane.b32.xlu0 %v10840_v61, %s11558_s9 }
  0xc9   : > { %1050 = vrot.lane.b32.xlu1 %v10843_v21, %s11558_s9 }
  0xca   : > { %1048 = vrot.lane.b32.xlu0 %v10842_v24, %s11558_s9 }
  0xcd   : > { %942 = vrot.lane.b32.xlu1 %v10833_v26, %s11564_s27 }
  0xce   : > { %940 = vrot.lane.b32.xlu0 %v10832_v27, %s11564_s27 }
  0xd1   : > { %946 = vrot.lane.b32.xlu1 %v10835_v33, %s11564_s27 }
  0xd2   : > { %944 = vrot.lane.b32.xlu0 %v10834_v34, %s11564_s27 }
  0xd5   : > { %1338 = vrot.lane.b32.xlu1 %v10863_v35, %s11563_s23 }
  0xd6   : > { %1336 = vrot.lane.b32.xlu0 %v10862_v36, %s11563_s23 }
  0xd9   : > { %1342 = vrot.lane.b32.xlu1 %v10865_v40, %s11563_s23 }
  0xda   : > { %1340 = vrot.lane.b32.xlu0 %v10864_v41, %s11563_s23 }
  0xdd   : > { %1382 = vperm.xlu1 %11283, %v900_v25  }
  0xde   : > { %1377 = vperm.xlu0 %11282, %v899_v43  }
 0x11f   : > { %v1239_v44 = vpop.permute.xlu1 %1238 }
 0x120   : > { %v1245_v45 = vrot.slane %v1239_v44, 4  ;;  %v1237_v46 = vpop.permute.xlu0 %1236 }
 0x121   : > { %v1244_v47 = vrot.slane %v1237_v46, 4 }
 0x123   : > { %v1248_v48 = vsel %vm885_vm9, %v1244_v47, %v1245_v45  ;;  %v1243_v49 = vpop.permute.xlu1 %1242 }
 0x124   : > { %v1250_v50 = vsel %vm1017_vm15, %v1237_v46, %v1248_v48  ;;  %v1247_v51 = vrot.slane %v1243_v49, 4  ;;  %v1241_v54 = vpop.permute.xlu0 %1240 }
 0x125   : > { %v1246_v55 = vrot.slane %v1241_v54, 4 }
 0x127   : > { %v1251_v56 = vsel %vm885_vm9, %v1246_v55, %v1247_v51  ;;  %v1181_v57 = vpop.permute.xlu1 %1180 }
 0x128   : > { %v1252_v58 = vsel %vm1017_vm15, %v1241_v54, %v1251_v56  ;;  %v1187_v59 = vrot.slane %v1181_v57, 4  ;;  %v1179_v60 = vpop.permute.xlu0 %1178 }
 0x129   : > { %v1186_v61 = vrot.slane %v1179_v60, 4  ;;  %v10530_v63 = vcombine.high %v1250_v50, %v1252_v58  ;;  %v10529_v1 = vcombine.low %v1250_v50, %v1252_v58 }
 0x12b   : > { %v1190_v5 = vsel %vm885_vm9, %v1186_v61, %v1187_v59  ;;  %v1185_v14 = vpop.permute.xlu1 %1184  ;;  %1490 = vmatprep.subr.bf16.mxu0 %v10530_v63 }
 0x12c   : > { %v1192_v18 = vsel %vm1075_vm14, %v1179_v60, %v1190_v5  ;;  %v1189_v20 = vrot.slane %v1185_v14, 4  ;;  %v1183_v21 = vpop.permute.xlu0 %1182  ;;  %1491 = vmatpush1.bf16.msra.mxu0 %v10529_v1 }
 0x12d   : > { %v1188_v4 = vrot.slane %v1183_v21, 4 }
 0x12f   : > { %v1193_v22 = vsel %vm885_vm9, %v1188_v4, %v1189_v20  ;;  %v1105_v24 = vpop.permute.xlu1 %1104 }
 0x130   : > { %v1194_v26 = vsel %vm1075_vm14, %v1183_v21, %v1193_v22  ;;  %v1111_v27 = vrot.slane %v1105_v24, 4  ;;  %v1103_v28 = vpop.permute.xlu0 %1102 }
 0x131   : > { %v1110_v29 = vrot.slane %v1103_v28, 4  ;;  %v10528_v30 = vcombine.high %v1192_v18, %v1194_v26  ;;  %v10527_v31 = vcombine.low %v1192_v18, %v1194_v26 }
 0x133   : > { %v1114_v32 = vsel %vm885_vm9, %v1110_v29, %v1111_v27  ;;  %v1109_v33 = vpop.permute.xlu1 %1108  ;;  %1492 = vmatprep.subr.bf16.mxu0 %v10528_v30 }
 0x134   : > { %v1116_v34 = vsel %vm1115_vm13, %v1103_v28, %v1114_v32  ;;  %v1113_v35 = vrot.slane %v1109_v33, 4  ;;  %v1107_v36 = vpop.permute.xlu0 %1106  ;;  %1493 = vmatpush1.bf16.msra.mxu0 %v10527_v31 }
 0x135   : > { %v1112_v38 = vrot.slane %v1107_v36, 4  ;;  %1494 = vmatprep.subr.bf16.mxu0 %v11509_v53 }
 0x137   : > { %v1117_v23 = vsel %vm885_vm9, %v1112_v38, %v1113_v35  ;;  %v1047_v39 = vpop.permute.xlu1 %1046 }
 0x138   : > { %v1118_v40 = vsel %vm1115_vm13, %v1107_v36, %v1117_v23  ;;  %v1053_v16 = vrot.slane %v1047_v39, 4  ;;  %v1045_v19 = vpop.permute.xlu0 %1044  ;;  %1495 = vmatpush1.bf16.msra.mxu0 %v11510_v37 }
 0x139   : > { %v1052_v41 = vrot.slane %v1045_v19, 4  ;;  %v10524_v42 = vcombine.high %v1116_v34, %v1118_v40  ;;  %v10523_v25 = vcombine.low %v1116_v34, %v1118_v40 }
 0x13b   : > { %v1056_v43 = vsel %vm885_vm9, %v1052_v41, %v1053_v16  ;;  %v1051_v44 = vpop.permute.xlu1 %1050  ;;  %1496 = vmatprep.subr.bf16.mxu0 %v10524_v42 }
 0x13c   : > { %v1058_v45 = vsel %vm1057_vm12, %v1045_v19, %v1056_v43  ;;  %v1055_v15 = vrot.slane %v1051_v44, 4  ;;  %v1049_v17 = vpop.permute.xlu0 %1048  ;;  %1497 = vmatpush1.bf16.msra.mxu0 %v10523_v25 }
 0x13d   : > { %v1054_v46 = vrot.slane %v1049_v17, 4 }
 0x13f   : > { %v1059_v47 = vsel %vm885_vm9, %v1054_v46, %v1055_v15  ;;  %v943_v48 = vpop.permute.xlu1 %942 }
 0x140   : > { %v1060_v49 = vsel %vm1057_vm12, %v1049_v17, %v1059_v47  ;;  %v949_v50 = vrot.slane %v943_v48, 4  ;;  %v941_v51 = vpop.permute.xlu0 %940 }
 0x141   : > { %v948_v54 = vrot.slane %v941_v51, 4  ;;  %v10522_v55 = vcombine.high %v1058_v45, %v1060_v49  ;;  %v10521_v56 = vcombine.low %v1058_v45, %v1060_v49 }
 0x143   : > { %v953_v57 = vsel %vm885_vm9, %v948_v54, %v949_v50  ;;  %v947_v58 = vpop.permute.xlu1 %946  ;;  %1498 = vmatprep.subr.bf16.mxu0 %v10522_v55 }
 0x144   : > { %v955_v59 = vsel %vm862_vm8, %v941_v51, %v953_v57  ;;  %v951_v60 = vrot.slane %v947_v58, 4  ;;  %v945_v61 = vpop.permute.xlu0 %944  ;;  %1499 = vmatpush1.bf16.msra.mxu0 %v10521_v56 }
 0x145   : > { %v950_v63 = vrot.slane %v945_v61, 4  ;;  %1500 = vmatprep.subr.bf16.mxu0 %v10520_v2 }
 0x147   : > { %v956_v1 = vsel %vm885_vm9, %v950_v63, %v951_v60  ;;  %v1339_v5 = vpop.permute.xlu1 %1338 }
 0x148   : > { %v957_v14 = vsel %vm862_vm8, %v945_v61, %v956_v1  ;;  %v1345_v18 = vrot.slane %v1339_v5, 4  ;;  %v1337_v20 = vpop.permute.xlu0 %1336  ;;  %1501 = vmatpush1.bf16.msra.mxu0 %v10519_v3  ;;  %v11284_v3 = vld [vmem:[%s17138_s30] ss:$8 sps:$4 sm:$0xff]  }
 0x149   : > { %v1344_v21 = vrot.slane %v1337_v20, 4  ;;  %v10518_v4 = vcombine.high %v955_v59, %v957_v14  ;;  %v10517_v22 = vcombine.low %v955_v59, %v957_v14 }
 0x14b   : > { %v1348_v24 = vsel %vm885_vm9, %v1344_v21, %v1345_v18  ;;  %v1343_v26 = vpop.permute.xlu1 %1342  ;;  %1502 = vmatprep.subr.bf16.mxu0 %v10518_v4 }
 0x14c   : > { %v1350_v2 = vsel %vm913_vm2, %v1337_v20, %v1348_v24  ;;  %v1347_v27 = vrot.slane %v1343_v26, 4  ;;  %v1341_v28 = vpop.permute.xlu0 %1340  ;;  %1503 = vmatpush1.bf16.msra.mxu0 %v10517_v22 }
 0x14d   : > { %1355 = vst [vmem:[#allocation7 + $0x88] sm:$0xff] %v1350_v2  ;;  %v1346_v29 = vrot.slane %v1341_v28, 4 }
 0x14f   : > { %v1351_v30 = vsel %vm885_vm9, %v1346_v29, %v1347_v27 }
 0x150   : > { %v1352_v31 = vsel %vm913_vm2, %v1341_v28, %v1351_v30 }
 0x151   : > { %1356 = vst [vmem:[#allocation7 + $0x70] sm:$0xff] %v1352_v31  ;;  %v10534_v52 = vcombine.high %v1350_v2, %v1352_v31  ;;  %v10533_v62 = vcombine.low %v1350_v2, %v1352_v31 }
 0x153   : > { %1518 = vmatprep.subr.bf16.mxu0 %v10534_v52 }
 0x154   : > { %1519 = vmatpush2.bf16.msra.mxu0 %v10533_v62 }
 0x157   : > { %1521 = vmatmul.mubr.bf16.vlgmr.msra.gmra.mxu0 %v11284_v3 }
 0x158   : > { %v1383_v35 = vpop.permute.xlu1 %1382 }
 0x159   : > { %v1378_v53 = vpop.permute.xlu0 %1377 }
 0x217   : > { %v1522_v32 = vpop.f32.mrf.mxu0 }
 0x218   : > { %v1523_v33 = vadd.f32 %v1522_v32, %v1378_v53 }
 0x219   : > { %v1524_v34 = vpop.f32.mrf.mxu0 }
 0x21a   : > { %1531 = vst [vmem:[#allocation2 + $0x10] sm:$0xff] %v1523_v33  ;;  %v1525_v36 = vadd.f32 %v1524_v34, %v1378_v53 }
 0x21b   : > { %v1526_v37 = vpop.f32.mrf.mxu0 }
 0x21c   : > { %1532 = vst [vmem:[#allocation2] sm:$0xff] %v1525_v36  ;;  %v1527_v38 = vadd.f32 %v1526_v37, %v1383_v35 }
 0x21d   : > { %v1528_v23 = vpop.f32.mrf.mxu0 }
 0x21e   : > { %1533 = vst [vmem:[#allocation2 + $0x18] sm:$0xff] %v1527_v38  ;;  %v1529_v39 = vadd.f32 %v1528_v23, %v1383_v35 }
 0x220   : > { %1534 = vst [vmem:[#allocation2 + $0x8] sm:$0xff] %v1529_v39 }
 0x221 PF: > { %v11287_v40 = vpack.i.bf16 %v11888_v9, %v11866_v6  ;;  %s11568_s27 = smov 15   ;;  %v11292_v16 = vpack.i.bf16 %v11890_v10, %v11868_v7  ;;  %s11569_s0 = smov 127   ;;  %v16761_v19 = vmov 0   ;;  %v12132_v41 = vld [vmem:[#allocation3 + $0x18] sm:$0xff]  ;;  %v12134_v42 = vld [vmem:[#allocation2 + $0x10] sm:$0xff]  ;;  %v12158_v48 = vld [vmem:[#allocation3] sm:$0xff] }
 0x222   : > { %11317 = vset.pattern.permute.xlu0 %v16761_v19  ;;  %11318 = vset.pattern.permute.xlu1 %v16761_v19  ;;  %s16908_s16 = smov 1   ;;  %s11572_s22 = smov 113   ;;  %v10893_v43 = vpack.c.bf16 %v12132_v41, %v12132_v41  ;;  %v12146_v45 = vld [vmem:[#allocation3 + $0x38] sm:$0xff]  ;;  %v10870_v50 = vpack.c.bf16 %v12134_v42, %v12158_v48  ;;  %v12166_v51 = vld [vmem:[#allocation3 + $0x20] sm:$0xff]  ;;  %v1549_v56 = vld [vmem:[%s11862_s28 + $0x10] sm:$0xff]  ;;  %vm1707_vm3 = vcmask 121856  }
 0x223   : > { %11288 = vrot.lane.b32.xlu0 %v11287_v40, %s11568_s27  ;;  %11298 = vrot.lane.b32.xlu1 %v11287_v40, %s11569_s0  ;;  %v12138_v25 = vld [vmem:[#allocation2] sm:$0xff]  ;;  %s11573_s3 = smov 111   ;;  %s16954_s15 = smov 17   ;;  %v10895_v46 = vpack.c.bf16 %v12146_v45, %v12146_v45  ;;  %v1550_v57 = vld [vmem:[%s11862_s28 + $0x18] sm:$0xff]  ;;  %v1548_v58 = vld [vmem:[%s11862_s28 + $0x8] sm:$0xff]  ;;  %vm1602_vm4 = vcmask 1043456  }
 0x224   : > { %v10892_v44 = vpack.c.bf16 %v12138_v25, %v12134_v42  ;;  %s11575_s9 = smov 112   ;;  %v10871_v49 = vpack.c.bf16 %v12138_v25, %v12138_v25  ;;  %s16897_s10 = smov 16   ;;  %v12179_v59 = vld [vmem:[#allocation4 + $0x58] sm:$0xff]  ;;  %v1547_v60 = vld [vmem:[%s11862_s28] sm:$0xff]  ;;  %vm1942_vm5 = vcmask 916480   ;;  %vm1765_vm6 = vcmask 7168  }
 0x225   : > { %v12148_v15 = vld [vmem:[#allocation2 + $0x18] sm:$0xff]  ;;  %v10957_v61 = vpack.c.bf16 %v12179_v59, %v12179_v59  ;;  %vm1725_vm7 = vcmask 1039360   ;;  %vm1667_vm8 = vcmask 924672   ;;  %vm1563_vm9 = vcmask 908288   ;;  %s17157_s28 = sld [smem:[#allocation13_spill]]  ;;  %s16764_s25 = smov 95  }
 0x226   : > { %v10872_v55 = vpack.c.bf16 %v12148_v15, %v12166_v51  ;;  %v12184_v63 = vld [vmem:[#allocation4 + $0x78] sm:$0xff]  ;;  %vm1604_vm10 = vcmask 138240   ;;  %vm1647_vm11 = vcmask 130048   ;;  %s11592_s19 = smov 97   ;;  %s11596_s23 = smov 98   ;;  %vm3321_vm12 = vcmask 261120  }
 0x227   : > { %11293 = vrot.lane.b32.xlu0 %v11292_v16, %s16908_s16  ;;  %11303 = vrot.lane.b32.xlu1 %v11292_v16, %s11572_s22  ;;  %v12150_v17 = vld [vmem:[#allocation2 + $0x8] sm:$0xff]  ;;  %v10959_v1 = vpack.c.bf16 %v12184_v63, %v12184_v63  ;;  %v12189_v5 = vld [vmem:[#allocation4 + $0x18] sm:$0xff]  ;;  %vm3594_vm13 = vcmask 777216   ;;  %vm4019_vm14 = vcmask 793600   ;;  %vm4240_vm15 = vcmask 801792   ;;  %p10763_p8 = scmp.ne.s32.totalorder %s11539_s24, 1 }
 0x228   : > { %v10894_v47 = vpack.c.bf16 %v12150_v17, %v12148_v15  ;;  %v10873_v54 = vpack.c.bf16 %v12150_v17, %v12150_v17  ;;  %v10953_v14 = vpack.c.bf16 %v12189_v5, %v12189_v5  ;;  %v12194_v18 = vld [vmem:[#allocation4 + $0x38] sm:$0xff]  ;;  %vm4458_vm0 = vcmask 900096   ;;  %s11707_s24 = smov (!%p10763_p8), 112  }
 0x229   : > { %v10955_v20 = vpack.c.bf16 %v12194_v18, %v12194_v18  ;;  %vm5315_vm1 = vcmask 932864   ;;  %vm3853_vm2 = vcmask 1031168  }
 0x22b   : > { %11308 = vrot.lane.b32.xlu0 %v11287_v40, %s11573_s3  ;;  %11313 = vrot.lane.b32.xlu1 %v11292_v16, %s16954_s15 }
 0x22f   : > { %1931 = vrot.lane.b32.xlu1 %v10893_v43, %s11575_s9  ;;  %1929 = vrot.lane.b32.xlu0 %v10892_v44, %s11575_s9 }
 0x233   : > { %1935 = vrot.lane.b32.xlu1 %v10895_v46, %s11575_s9  ;;  %1933 = vrot.lane.b32.xlu0 %v10894_v47, %s11575_s9 }
 0x237   : > { %1636 = vrot.lane.b32.xlu1 %v10871_v49, %s16897_s10  ;;  %1634 = vrot.lane.b32.xlu0 %v10870_v50, %s16897_s10 }
 0x23b   : > { %1640 = vrot.lane.b32.xlu1 %v10873_v54, %s16897_s10  ;;  %1638 = vrot.lane.b32.xlu0 %v10872_v55, %s16897_s10 }
 0x23f   : > { %2038 = vperm.xlu0 %11317, %v1549_v56   ;;  %2043 = vperm.xlu1 %11318, %v1550_v57  }
 0x243   : > { %2033 = vperm.xlu0 %11317, %v1548_v58   ;;  %2028 = vperm.xlu1 %11318, %v1547_v60  }
 0x247   : > { %2954 = vrot.lane.b32.xlu0 %v10957_v61, %s11575_s9 }
 0x24b   : > { %2958 = vrot.lane.b32.xlu0 %v10959_v1, %s11575_s9 }
 0x24f   : > { %2946 = vrot.lane.b32.xlu0 %v10953_v14, %s11575_s9 }
 0x253   : > { %2950 = vrot.lane.b32.xlu0 %v10955_v20, %s11575_s9 }
 0x295   : > { %v11289_v21 = vpop.permute.xlu0 %11288  ;;  %v12202_v22 = vpop.permute.xlu1 %11298 }
 0x296   : > { %v12200_v4 = vunpack.i.h.bf16 %v11289_v21  ;;  %v12227_v35 = vunpack.i.h.bf16 %v12202_v22  ;;  %v12235_v39 = vunpack.i.l.bf16 %v11289_v21 }
 0x298   : > { %17139 = vst [vmem:[#allocation15_spill] sm:$0xff] %v12200_v4  ;;  %v1866_v24 = vmul.f32 %v12200_v4, %v12132_v41  ;;  %v2824_v26 = vmul.f32 %v12200_v4, %v12179_v59  ;;  %v1869_v27 = vmul.f32 %v12200_v4, %v12146_v45  ;;  %v2827_v31 = vmul.f32 %v12200_v4, %v12184_v63 }
 0x299   : > { %v11294_v2 = vpop.permute.xlu0 %11293  ;;  %v12214_v52 = vpop.permute.xlu1 %11303  ;;  %v2818_v32 = vmul.f32 %v12200_v4, %v12189_v5  ;;  %17141 = vst [vmem:[#allocation17_spill] sm:$0xff] %v12227_v35  ;;  %v2821_v23 = vmul.f32 %v12200_v4, %v12194_v18  ;;  %17142 = vst [vmem:[#allocation18_spill] sm:$0xff] %v12235_v39  ;;  %v1732_v43 = vmul.f32 %v12227_v35, %v12138_v25 }
 0x29a   : > { %v10889_v28 = vpack.c.bf16 %v1866_v24, %v1866_v24  ;;  %v10949_v29 = vpack.c.bf16 %v2824_v26, %v2824_v26  ;;  %v12210_v30 = vunpack.i.h.bf16 %v11294_v2  ;;  %v10891_v3 = vpack.c.bf16 %v1869_v27, %v1869_v27 }
 0x29b   : > { %v10951_v53 = vpack.c.bf16 %v2827_v31, %v2827_v31  ;;  %v10945_v38 = vpack.c.bf16 %v2818_v32, %v2818_v32  ;;  %v10947_v47 = vpack.c.bf16 %v2821_v23, %v2821_v23  ;;  %v1735_v49 = vmul.f32 %v12227_v35, %v12150_v17 }
 0x29c   : > { %17140 = vst [vmem:[#allocation16_spill] sm:$0xff] %v12210_v30  ;;  %1888 = vrot.lane.b32.xlu1 %v10889_v28, %s11572_s22  ;;  %2870 = vrot.lane.b32.xlu0 %v10949_v29, %s11572_s22  ;;  %v1808_v62 = vmul.f32 %v12210_v30, %v12132_v41  ;;  %v1811_v36 = vmul.f32 %v12210_v30, %v12146_v45  ;;  %v12253_v57 = vunpack.i.h.bf16 %v12214_v52  ;;  %v12259_v20 = vunpack.i.l.bf16 %v11294_v2 }
 0x29d   : > { %v12222_v33 = vpop.permute.xlu1 %11313  ;;  %v12231_v37 = vpop.permute.xlu0 %11308  ;;  %v2728_v44 = vmul.f32 %v12210_v30, %v12179_v59  ;;  %v12248_v50 = vsel %vm1707_vm3, %v12235_v39, %v12200_v4  ;;  %v10879_v55 = vpack.c.bf16 %v1732_v43, %v1732_v43  ;;  %v1864_v61 = vmul.f32 %v12235_v39, %v12134_v42 }
 0x29e   : > { %v10885_v34 = vpack.c.bf16 %v1808_v62, %v1808_v62  ;;  %v10887_v16 = vpack.c.bf16 %v1811_v36, %v1811_v36  ;;  %17143 = vst [vmem:[#allocation19_spill] sm:$0xff] %v12248_v50  ;;  %17144 = vst [vmem:[#allocation20_spill] sm:$0xff] %v12253_v57  ;;  %v1865_v1 = vmul.f32 %v12248_v50, %v12138_v25 }
 0x29f   : > { %v10941_v56 = vpack.c.bf16 %v2728_v44, %v2728_v44  ;;  %17145 = vst [vmem:[#allocation21_spill] sm:$0xff] %v12259_v20  ;;  %v10881_v24 = vpack.c.bf16 %v1735_v49, %v1735_v49  ;;  %v1674_v26 = vmul.f32 %v12253_v57, %v12138_v25  ;;  %v1867_v31 = vmul.f32 %v12235_v39, %v12148_v15 }
 0x2a0   : > { %1892 = vrot.lane.b32.xlu1 %v10891_v3, %s11572_s22  ;;  %2874 = vrot.lane.b32.xlu0 %v10951_v53, %s11572_s22  ;;  %v10888_v29 = vpack.c.bf16 %v1865_v1, %v1864_v61  ;;  %v1868_v2 = vmul.f32 %v12248_v50, %v12150_v17  ;;  %v12274_v3 = vsel %vm1765_vm6, %v12259_v20, %v12210_v30 }
 0x2a1   : > { %v1932_v40 = vpop.permute.xlu1 %1931  ;;  %v1930_v46 = vpop.permute.xlu0 %1929  ;;  %17146 = vst [vmem:[#allocation22_spill] sm:$0xff] %v12274_v3  ;;  %v10875_v32 = vpack.c.bf16 %v1674_v26, %v1674_v26  ;;  %v1677_v36 = vmul.f32 %v12253_v57, %v12150_v17  ;;  %v1807_v43 = vmul.f32 %v12274_v3, %v12138_v25  ;;  %v12317_v26 = vunpack.i.l.bf16 %v12214_v52 }
 0x2a2   : > { %v1938_v54 = vrot.slane %v1932_v40, 4  ;;  %v1937_v58 = vrot.slane %v1930_v46, 4  ;;  %v10890_v40 = vpack.c.bf16 %v1868_v2, %v1867_v31 }
 0x2a3   : > { %17151 = vst [vmem:[#allocation27_spill] sm:$0xff] %v12317_v26  ;;  %v12330_v52 = vsel %vm1667_vm8, %v12317_v26, %v12253_v57 }
 0x2a4   : > { %1830 = vrot.lane.b32.xlu1 %v10885_v34, %s11569_s0  ;;  %2862 = vrot.lane.b32.xlu0 %v10945_v38, %s11572_s22  ;;  %v1941_v21 = vsel %vm1602_vm4, %v1937_v58, %v1938_v54  ;;  %v12280_v34 = vunpack.i.h.bf16 %v12231_v37  ;;  %17152 = vst [vmem:[#allocation28_spill] sm:$0xff] %v12330_v52 }
 0x2a5   : > { %v1936_v60 = vpop.permute.xlu1 %1935  ;;  %v1934_v14 = vpop.permute.xlu0 %1933  ;;  %v1943_v62 = vsel %vm1942_vm5, %v1930_v46, %v1941_v21  ;;  %v12290_v46 = vunpack.i.l.bf16 %v12202_v22 }
 0x2a6   : > { %v1940_v27 = vrot.slane %v1936_v60, 4  ;;  %v1939_v28 = vrot.slane %v1934_v14, 4  ;;  %17147 = vst [vmem:[#allocation23_spill] sm:$0xff] %v12280_v34  ;;  %v1570_v49 = vmul.f32 %v12280_v34, %v12138_v25  ;;  %v12308_v60 = vunpack.i.h.bf16 %v12222_v33 }
 0x2a7   : > { %17148 = vst [vmem:[#allocation24_spill] sm:$0xff] %v12290_v46  ;;  %v12303_v22 = vsel %vm1725_vm7, %v12290_v46, %v12227_v35  ;;  %v1573_v61 = vmul.f32 %v12280_v34, %v12150_v17  ;;  %v1733_v31 = vmul.f32 %v12290_v46, %v12166_v51 }
 0x2a8   : > { %1834 = vrot.lane.b32.xlu1 %v10887_v16, %s11569_s0  ;;  %2866 = vrot.lane.b32.xlu0 %v10947_v47, %s11572_s22  ;;  %v1944_v53 = vsel %vm1602_vm4, %v1939_v28, %v1940_v27  ;;  %v1806_v16 = vmul.f32 %v12259_v20, %v12134_v42  ;;  %v10877_v47 = vpack.c.bf16 %v1677_v36, %v1677_v36 }
 0x2a9   : > { %v1945_v38 = vsel %vm1942_vm5, %v1934_v14, %v1944_v53  ;;  %17149 = vst [vmem:[#allocation25_spill] sm:$0xff] %v12303_v22  ;;  %v10867_v58 = vpack.c.bf16 %v1570_v49, %v1570_v49  ;;  %17150 = vst [vmem:[#allocation26_spill] sm:$0xff] %v12308_v60  ;;  %v1730_v14 = vmul.f32 %v12290_v46, %v12158_v48 }
 0x2aa   : > { %v10589_v23 = vcombine.high %v1943_v62, %v1945_v38  ;;  %v10588_v44 = vcombine.low %v1943_v62, %v1945_v38  ;;  %v10884_v54 = vpack.c.bf16 %v1807_v43, %v1806_v16  ;;  %v1731_v21 = vmul.f32 %v12303_v22, %v12134_v42 }
 0x2ab   : > { %v10869_v27 = vpack.c.bf16 %v1573_v61, %v1573_v61  ;;  %v1967_v28 = vmul.f32 %v12308_v60, %v12132_v41  ;;  %v1734_v2 = vmul.f32 %v12303_v22, %v12148_v15  ;;  %v1970_v41 = vmul.f32 %v12308_v60, %v12146_v45  ;;  %v12370_v61 = vld [vmem:[%s11886_s4] sm:$0xf] }
 0x2ac   : > { %1754 = vrot.lane.b32.xlu1 %v10879_v55, %s16908_s16  ;;  %2774 = vrot.lane.b32.xlu0 %v10941_v56, %s11569_s0  ;;  %v1809_v55 = vmul.f32 %v12259_v20, %v12148_v15  ;;  %v1810_v56 = vmul.f32 %v12274_v3, %v12150_v17  ;;  %v1673_v36 = vmul.f32 %v12330_v52, %v12134_v42  ;;  %v12341_v38 = vunpack.i.l.bf16 %v12231_v37  ;;  %v2298_v37 = vld [vmem:[%s11875_s26] sm:$0xff] }
 0x2ad   : > { %2161 = vmatprep.subr.bf16.mxu0 %v10589_v23  ;;  %v10897_v62 = vpack.c.bf16 %v1967_v28, %v1967_v28  ;;  %v10880_v53 = vpack.c.bf16 %v1734_v2, %v1733_v31  ;;  %v10899_v23 = vpack.c.bf16 %v1970_v41, %v1970_v41  ;;  %v1675_v45 = vmul.f32 %v12317_v26, %v12166_v51 }
 0x2ae   : > { %2162 = vmatpush1.bf16.msra.mxu0 %v10588_v44  ;;  %v10886_v1 = vpack.c.bf16 %v1810_v56, %v1809_v55  ;;  %17153 = vst [vmem:[#allocation29_spill] sm:$0xff] %v12341_v38  ;;  %v1676_v16 = vmul.f32 %v12330_v52, %v12148_v15  ;;  %v12352_v43 = vsel %vm1563_vm9, %v12341_v38, %v12280_v34  ;;  %v11580_v31 = vmov 7  }
 0x2af   : > { %17154 = vst [vmem:[#allocation30_spill] sm:$0xff] %v12352_v43  ;;  %v1569_v49 = vmul.f32 %v12352_v43, %v12134_v42  ;;  %v1571_v56 = vmul.f32 %v12341_v38, %v12166_v51  ;;  %v2731_v2 = vmul.f32 %v12210_v30, %v12184_v63  ;;  %v2722_v41 = vmul.f32 %v12210_v30, %v12189_v5 }
 0x2b0   : > { %1758 = vrot.lane.b32.xlu1 %v10881_v24, %s16908_s16  ;;  %1886 = vrot.lane.b32.xlu0 %v10888_v29, %s11572_s22  ;;  %v11577_v24 = vmov 5   ;;  %v10878_v29 = vpack.c.bf16 %v1731_v21, %v1730_v14  ;;  %v10876_v44 = vpack.c.bf16 %v1676_v16, %v1675_v45  ;;  %v11579_v21 = vmov 6  }
 0x2b1   : > { %11320 = vset.pattern.permute.xlu0 %v11577_v24  ;;  %v11582_v45 = vmov 10  }
 0x2b4   : > { %1696 = vrot.lane.b32.xlu1 %v10875_v32, %s11568_s27  ;;  %1890 = vrot.lane.b32.xlu0 %v10890_v40, %s11572_s22  ;;  %v1672_v32 = vmul.f32 %v12317_v26, %v12158_v48 }
 0x2b6   : > { %v10874_v40 = vpack.c.bf16 %v1673_v36, %v1672_v32  ;;  %v11422_v32 = vld [vmem:[%s17157_s28 + $0x4] ss:$8 sps:$4 sm:$0xff]   ;;  %v12400_v36 = vpop.permute.xlu0 %1634 }
 0x2b7   : > { %10592 = vmatprep.mubr.msk.bf16.mxu0 %vm1647_vm11, %v11422_v32 }
 0x2b8   : > { %1700 = vrot.lane.b32.xlu1 %v10877_v47, %s11568_s27  ;;  %1828 = vrot.lane.b32.xlu0 %v10884_v54, %s11569_s0  ;;  %v1568_v47 = vmul.f32 %v12341_v38, %v12158_v48  ;;  %v12362_v54 = vunpack.i.l.bf16 %v12222_v33  ;;  %v11578_v33 = vmov 4  }
 0x2ba   : > { %17155 = vst [vmem:[#allocation31_spill] sm:$0xff] %v12362_v54  ;;  %v10866_v55 = vpack.c.bf16 %v1569_v49, %v1568_v47  ;;  %v12375_v48 = vsel %vm1604_vm10, %v12362_v54, %v12308_v60  ;;  %v1965_v51 = vmul.f32 %v12362_v54, %v12134_v42  ;;  %v11583_v47 = vmov 11  }
 0x2bb   : > { %17156 = vst [vmem:[#allocation32_spill] sm:$0xff] %v12375_v48  ;;  %v1966_v14 = vmul.f32 %v12375_v48, %v12138_v25  ;;  %v1969_v28 = vmul.f32 %v12375_v48, %v12150_v17 }
 0x2bc   : > { %1592 = vrot.lane.b32.xlu1 %v10867_v58, %s16954_s15  ;;  %1832 = vrot.lane.b32.xlu0 %v10886_v1, %s11569_s0  ;;  %v1572_v58 = vmul.f32 %v12352_v43, %v12148_v15 }
 0x2bd   : > { %v10896_v24 = vpack.c.bf16 %v1966_v14, %v1965_v51  ;;  %v11585_v14 = vmov 14  }
 0x2be   : > { %v10868_v1 = vpack.c.bf16 %v1572_v58, %v1571_v56 }
 0x2c0   : > { %1596 = vrot.lane.b32.xlu1 %v10869_v27, %s16954_s15  ;;  %1752 = vrot.lane.b32.xlu0 %v10878_v29, %s16908_s16  ;;  %v1968_v27 = vmul.f32 %v12362_v54, %v12148_v15 }
 0x2c2   : > { %v10898_v29 = vpack.c.bf16 %v1969_v28, %v1968_v27  ;;  %v11586_v27 = vmov 15   ;;  %v12434_v28 = vcombine.low %v11866_v6, %v11888_v9  ;;  %v11589_v9 = vmov 18  }
 0x2c4   : > { %1989 = vrot.lane.b32.xlu1 %v10897_v62, %s11573_s3  ;;  %1756 = vrot.lane.b32.xlu0 %v10880_v53, %s16908_s16  ;;  %v10943_v62 = vpack.c.bf16 %v2731_v2, %v2731_v2  ;;  %v11581_v53 = vmov 9  }
 0x2c8   : > { %1993 = vrot.lane.b32.xlu1 %v10899_v23, %s11573_s3  ;;  %1694 = vrot.lane.b32.xlu0 %v10874_v40, %s11568_s27  ;;  %v10937_v23 = vpack.c.bf16 %v2722_v41, %v2722_v41  ;;  %v2725_v40 = vmul.f32 %v12210_v30, %v12194_v18  ;;  %v11591_v41 = vmov 19   ;;  %v11646_v30 = vmov 53  }
 0x2ca   : > { %v10939_v16 = vpack.c.bf16 %v2725_v40, %v2725_v40  ;;  %v11593_v40 = vmov 12  }
 0x2cc   : > { %3118 = vperm.xlu1 %11318, %v2298_v37   ;;  %1698 = vrot.lane.b32.xlu0 %v10876_v44, %s11568_s27  ;;  %v3004_v37 = vmul.f32 %v12308_v60, %v12179_v59  ;;  %v12408_v44 = vpop.permute.xlu0 %1638  ;;  %v2998_v59 = vmul.f32 %v12308_v60, %v12189_v5  ;;  %v12429_v5 = vpop.permute.xlu1 %1636 }
 0x2ce   : > { %v10965_v49 = vpack.c.bf16 %v3004_v37, %v3004_v37  ;;  %v11595_v37 = vmov 22  }
 0x2d0   : > { %1590 = vrot.lane.b32.xlu0 %v10866_v55, %s16954_s15  ;;  %11319 = vset.pattern.permute.xlu1 %v11578_v33  ;;  %v3007_v55 = vmul.f32 %v12308_v60, %v12184_v63  ;;  %v12415_v56 = vpop.permute.xlu0 %2038  ;;  %v11584_v33 = vmov 13   ;;  %v3001_v63 = vmul.f32 %v12308_v60, %v12194_v18  ;;  %v11645_v60 = vmov 52  }
 0x2d1   : > { %3601 = vperm.xlu1 %11319, %v12370_v61  }
 0x2d2   : > { %v10967_v58 = vpack.c.bf16 %v3007_v55, %v3007_v55  ;;  %v11597_v55 = vmov 16  }
 0x2d4   : > { %1594 = vrot.lane.b32.xlu0 %v10868_v1, %s16954_s15  ;;  %v10961_v1 = vpack.c.bf16 %v2998_v59, %v2998_v59  ;;  %v12421_v51 = vpop.permute.xlu0 %2033 }
 0x2d5   : > { %11321 = vset.pattern.permute.xlu1 %v11579_v21  ;;  %v10963_v21 = vpack.c.bf16 %v3001_v63, %v3001_v63  ;;  %v11600_v63 = vmov 20  }
 0x2d6   : > { %3705 = vperm.xlu1 %11321, %v12370_v61  }
 0x2d8   : > { %1987 = vrot.lane.b32.xlu0 %v10896_v24, %s11573_s3  ;;  %v12427_v24 = vpop.permute.xlu0 %2954 }
 0x2d9   : > { %17158 = vst [vmem:[#allocation33_spill] sm:$0xff] %v12427_v24 }
 0x2da   : > { %11322 = vset.pattern.permute.xlu1 %v11580_v31  ;;  %v12441_v31 = vpop.permute.xlu1 %1640 }
 0x2db   : > { %3756 = vperm.xlu1 %11322, %v12370_v61  }
 0x2dc   : > { %1991 = vrot.lane.b32.xlu0 %v10898_v29, %s11573_s3  ;;  %v12437_v18 = vpop.permute.xlu0 %2958  ;;  %v11588_v29 = vmov 17  }
 0x2dd   : > { %17159 = vst [vmem:[#allocation34_spill] sm:$0xff] %v12437_v18 }
 0x2de   : > { %v12445_v2 = vpop.permute.xlu1 %2043 }
 0x2df   : > { %11324 = vset.pattern.permute.xlu1 %v11581_v53  ;;  %v12453_v53 = vcombine.low %v11868_v7, %v11890_v10  ;;  %v12465_v7 = vcombine.low %v11894_v12, %v11906_v13  ;;  %v11598_v13 = vmov 23  }
 0x2e0   : > { %2778 = vrot.lane.b32.xlu0 %v10943_v62, %s11569_s0  ;;  %3863 = vperm.xlu1 %11324, %v12370_v61   ;;  %v12447_v6 = vpop.permute.xlu0 %2946  ;;  %v11590_v62 = vmov 8  }
 0x2e2   : > { %v12455_v32 = vpop.permute.xlu1 %2028 }
 0x2e4   : > { %2766 = vrot.lane.b32.xlu0 %v10937_v23, %s11569_s0  ;;  %11325 = vset.pattern.permute.xlu1 %v11582_v45  ;;  %v12457_v23 = vpop.permute.xlu0 %2950  ;;  %v11594_v45 = vmov 21  }
 0x2e5   : > { %3914 = vperm.xlu1 %11325, %v12370_v61   ;;  %17160 = vst [vmem:[#allocation35_spill] sm:$0xff] %v12457_v23 }
 0x2e8   : > { %2770 = vrot.lane.b32.xlu0 %v10939_v16, %s11569_s0 }
 0x2e9   : > { %11326 = vset.pattern.permute.xlu1 %v11583_v47 }
 0x2ea   : > { %3965 = vperm.xlu1 %11326, %v12370_v61  }
 0x2ec   : > { %3050 = vrot.lane.b32.xlu0 %v10965_v49, %s11573_s3 }
 0x2ee   : > { %11328 = vset.pattern.permute.xlu1 %v11584_v33  ;;  %v12479_v33 = vcombine.low %v11870_v8, %v11892_v11  ;;  %v11602_v8 = vmov 26  }
 0x2ef   : > { %4080 = vperm.xlu1 %11328, %v12370_v61  }
 0x2f0   : > { %3054 = vrot.lane.b32.xlu0 %v10967_v58, %s11573_s3 }
 0x2f3   : > { %11329 = vset.pattern.permute.xlu1 %v11585_v14  ;;  %v11601_v14 = vmov 25  }
 0x2f4   : > { %3042 = vrot.lane.b32.xlu0 %v10961_v1, %s11573_s3  ;;  %4131 = vperm.xlu1 %11329, %v12370_v61  }
 0x2f8   : > { %3046 = vrot.lane.b32.xlu0 %v10963_v21, %s11573_s3  ;;  %11330 = vset.pattern.permute.xlu1 %v11586_v27 }
 0x2f9   : > { %4182 = vperm.xlu1 %11330, %v12370_v61  }
 0x2fc   : > { %3591 = vrot.lane.b32.xlu0 %v12434_v28, %s16764_s25  ;;  %s11618_s25 = smov 126  }
 0x2fd   : > { %11332 = vset.pattern.permute.xlu1 %v11588_v29 }
 0x2fe   : > { %4301 = vperm.xlu1 %11332, %v12370_v61  }
 0x300   : > { %3654 = vperm.xlu0 %11320, %v12370_v61  }
 0x302   : > { %11333 = vset.pattern.permute.xlu1 %v11589_v9  ;;  %v11603_v9 = vmov 24  }
 0x303   : > { %4352 = vperm.xlu1 %11333, %v12370_v61  }
 0x304   : > { %11323 = vset.pattern.permute.xlu0 %v11590_v62 }
 0x305   : > { %3809 = vperm.xlu0 %11323, %v12370_v61  }
 0x307   : > { %11334 = vset.pattern.permute.xlu1 %v11591_v41 }
 0x308   : > { %4403 = vperm.xlu1 %11334, %v12370_v61  }
 0x309   : > { %4016 = vrot.lane.b32.xlu0 %v12453_v53, %s11592_s19  ;;  %s11599_s19 = smov 110  }
 0x30a   : > { %11327 = vset.pattern.permute.xlu0 %v11593_v40  ;;  %v11604_v40 = vmov 28  }
 0x30c   : > { %11336 = vset.pattern.permute.xlu1 %v11594_v45 }
 0x30d   : > { %4519 = vperm.xlu1 %11336, %v12370_v61   ;;  %4026 = vperm.xlu0 %11327, %v12370_v61  }
 0x30e   : > { %v1889_v10 = vpop.permute.xlu1 %1888  ;;  %v12467_v16 = vpop.permute.xlu0 %2870 }
 0x30f   : > { %17161 = vst [vmem:[#allocation36_spill] sm:$0xff] %v12467_v16  ;;  %v1895_v41 = vrot.slane %v1889_v10, 4 }
 0x311   : > { %11337 = vset.pattern.permute.xlu1 %v11595_v37  ;;  %4237 = vrot.lane.b32.xlu0 %v12465_v7, %s11596_s23  ;;  %s16766_s23 = smov 94  }
 0x312   : > { %v1893_v47 = vpop.permute.xlu1 %1892  ;;  %v12470_v49 = vpop.permute.xlu0 %2874  ;;  %4570 = vperm.xlu1 %11337, %v12370_v61   ;;  %11331 = vset.pattern.permute.xlu0 %v11597_v55 }
 0x313   : > { %17162 = vst [vmem:[#allocation37_spill] sm:$0xff] %v12470_v49  ;;  %v1897_v55 = vrot.slane %v1893_v47, 4  ;;  %v11607_v47 = vmov 30  }
 0x315   : > { %4247 = vperm.xlu0 %11331, %v12370_v61  }
 0x316   : > { %v12474_v58 = vpop.permute.xlu0 %2862  ;;  %v1831_v12 = vpop.permute.xlu1 %1830  ;;  %11338 = vset.pattern.permute.xlu1 %v11598_v13 }
 0x317   : > { %17163 = vst [vmem:[#allocation38_spill] sm:$0xff] %v12474_v58  ;;  %4621 = vperm.xlu1 %11338, %v12370_v61  }
 0x319   : > { %4455 = vrot.lane.b32.xlu0 %v12479_v33, %s11599_s19 }
 0x31a   : > { %v12483_v59 = vpop.permute.xlu0 %2866  ;;  %v1835_v1 = vpop.permute.xlu1 %1834  ;;  %11335 = vset.pattern.permute.xlu0 %v11600_v63 }
 0x31b   : > { %17164 = vst [vmem:[#allocation39_spill] sm:$0xff] %v12483_v59  ;;  %11340 = vset.pattern.permute.xlu1 %v11601_v14 }
 0x31c   : > { %4735 = vperm.xlu1 %11340, %v12370_v61  }
 0x31d   : > { %4465 = vperm.xlu0 %11335, %v12370_v61  }
 0x31e   : > { %v12487_v21 = vpop.permute.xlu0 %2774  ;;  %v12489_v27 = vpop.permute.xlu1 %1754 }
 0x31f   : > { %17165 = vst [vmem:[#allocation40_spill] sm:$0xff] %v12487_v21 }
 0x320   : > { %11341 = vset.pattern.permute.xlu1 %v11602_v8  ;;  %v11605_v8 = vmov 27  }
 0x321   : > { %4786 = vperm.xlu1 %11341, %v12370_v61   ;;  %4673 = vrot.lane.b32.xlu0 %v12434_v28, %s11573_s3 }
 0x322   : > { %v1887_v11 = vpop.permute.xlu0 %1886  ;;  %v12494_v29 = vpop.permute.xlu1 %1758  ;;  %11339 = vset.pattern.permute.xlu0 %v11603_v9 }
 0x323   : > { %v1894_v62 = vrot.slane %v1887_v11, 4 }
 0x325   : > { %11343 = vset.pattern.permute.xlu1 %v11604_v40  ;;  %4682 = vperm.xlu0 %11339, %v12370_v61   ;;  %v1898_v13 = vsel %vm1602_vm4, %v1894_v62, %v1895_v41 }
 0x326   : > { %v1891_v45 = vpop.permute.xlu0 %1890  ;;  %4890 = vperm.xlu1 %11343, %v12370_v61   ;;  %v12498_v37 = vpop.permute.xlu1 %1696  ;;  %v1900_v9 = vsel %vm1667_vm8, %v1887_v11, %v1898_v13  ;;  %v1839_v11 = vrot.slane %v1835_v1, 4 }
 0x327   : > { %v1896_v63 = vrot.slane %v1891_v45, 4 }
 0x329   : > { %v1901_v14 = vsel %vm1602_vm4, %v1896_v63, %v1897_v55  ;;  %11342 = vset.pattern.permute.xlu0 %v11605_v8  ;;  %v1837_v55 = vrot.slane %v1831_v12, 4 }
 0x32a   : > { %v1902_v10 = vsel %vm1667_vm8, %v1891_v45, %v1901_v14  ;;  %v1829_v40 = vpop.permute.xlu0 %1828  ;;  %3428 = vrot.lane.b32.xlu1 %v12479_v33, %s16766_s23  ;;  %4837 = vperm.xlu0 %11342, %v12370_v61   ;;  %v12507_v0 = vpop.permute.xlu1 %1700  ;;  %v11608_v14 = vmov 29   ;;  %s11620_s23 = smov 114  }
 0x32b   : > { %v1836_v19 = vrot.slane %v1829_v40, 4  ;;  %11345 = vset.pattern.permute.xlu1 %v11607_v47  ;;  %v10587_v62 = vcombine.high %v1900_v9, %v1902_v10  ;;  %v10586_v41 = vcombine.low %v1900_v9, %v1902_v10 }
 0x32d   : > { %2163 = vmatprep.subr.bf16.mxu0 %v10587_v62  ;;  %v1840_v45 = vsel %vm1602_vm4, %v1836_v19, %v1837_v55  ;;  %v11609_v62 = vmov 1   ;;  %v11511_v55 = vpack.c.bf16 %v12150_v17, %v12138_v25  ;;  %v1643_v17 = vrot.slane %v12429_v5, 4 }
 0x32e   : > { %v1833_v63 = vpop.permute.xlu0 %1832  ;;  %4994 = vperm.xlu1 %11345, %v12370_v61   ;;  %2164 = vmatpush1.bf16.msra.mxu0 %v10586_v41  ;;  %v1842_v9 = vsel %vm1725_vm7, %v1829_v40, %v1840_v45  ;;  %v12515_v47 = vpop.permute.xlu1 %1592  ;;  %v1761_v40 = vrot.slane %v12489_v27, 4  ;;  %v1763_v45 = vrot.slane %v12494_v29, 4 }
 0x32f   : > { %v1838_v13 = vrot.slane %v1833_v63, 4  ;;  %11344 = vset.pattern.permute.xlu0 %v11608_v14  ;;  %v11610_v14 = vmov 2  }
 0x330   : > { %4943 = vperm.xlu0 %11344, %v12370_v61  }
 0x331   : > { %v1843_v8 = vsel %vm1602_vm4, %v1838_v13, %v1839_v11  ;;  %v11512_v11 = vpack.c.bf16 %v12148_v15, %v12134_v42 }
 0x332   : > { %v1844_v10 = vsel %vm1725_vm7, %v1833_v63, %v1843_v8  ;;  %v1753_v12 = vpop.permute.xlu0 %1752  ;;  %5095 = vrot.lane.b32.xlu1 %v12453_v53, %s11572_s22  ;;  %v12528_v25 = vpop.permute.xlu1 %1596 }
 0x333   : > { %v1760_v1 = vrot.slane %v1753_v12, 4  ;;  %11346 = vset.pattern.permute.xlu1 %v11609_v62  ;;  %v10585_v19 = vcombine.high %v1842_v9, %v1844_v10  ;;  %v10584_v41 = vcombine.low %v1842_v9, %v1844_v10  ;;  %v11611_v9 = vmov 33  }
 0x334   : > { %11348 = vset.pattern.permute.xlu0 %v11610_v14  ;;  %v1642_v10 = vrot.slane %v12400_v36, 4  ;;  %v1645_v62 = vrot.slane %v12441_v31, 4  ;;  %v1703_v14 = vrot.slane %v12498_v37, 4 }
 0x335   : > { %2165 = vmatprep.subr.bf16.mxu0 %v10585_v19  ;;  %3515 = vperm.xlu0 %11348, %v12370_v61   ;;  %v1764_v13 = vsel %vm1602_vm4, %v1760_v1, %v1761_v40  ;;  %v11612_v1 = vmov 31   ;;  %v1644_v19 = vrot.slane %v12408_v44, 4 }
 0x336   : > { %v1757_v63 = vpop.permute.xlu0 %1756  ;;  %3478 = vperm.xlu1 %11346, %v12370_v61   ;;  %2166 = vmatpush1.bf16.msra.mxu0 %v10584_v41  ;;  %v1766_v42 = vsel %vm1765_vm6, %v1753_v12, %v1764_v13  ;;  %v1646_v31 = vsel %vm1602_vm4, %v1642_v10, %v1643_v17  ;;  %v12541_v40 = vpop.permute.xlu1 %1989 }
 0x337   : > { %v1762_v8 = vrot.slane %v1757_v63, 4  ;;  %2167 = vmatprep.subr.bf16.mxu0 %v11511_v55  ;;  %v1648_v17 = vsel %vm1647_vm11, %v12400_v36, %v1646_v31 }
 0x339   : > { %v1767_v27 = vsel %vm1602_vm4, %v1762_v8, %v1763_v45  ;;  %11351 = vset.pattern.permute.xlu0 %v11611_v9  ;;  %v11613_v8 = vmov 32  }
 0x33a   : > { %v1768_v15 = vsel %vm1765_vm6, %v1757_v63, %v1767_v27  ;;  %v1695_v29 = vpop.permute.xlu0 %1694  ;;  %11347 = vset.pattern.permute.xlu1 %v11612_v1  ;;  %2168 = vmatpush1.bf16.msra.mxu0 %v11512_v11  ;;  %v1649_v63 = vsel %vm1602_vm4, %v1644_v19, %v1645_v62  ;;  %v1705_v11 = vrot.slane %v12507_v0, 4  ;;  %v11614_v27 = vmov 35   ;;  %v1994_v19 = vpop.permute.xlu1 %1993 }
 0x33b   : > { %v1702_v41 = vrot.slane %v1695_v29, 4  ;;  %5045 = vperm.xlu1 %11347, %v12370_v61   ;;  %v10581_v5 = vcombine.high %v1766_v42, %v1768_v15  ;;  %v10580_v55 = vcombine.low %v1766_v42, %v1768_v15  ;;  %5158 = vperm.xlu0 %11351, %v12370_v61   ;;  %v1650_v9 = vsel %vm1647_vm11, %v12408_v44, %v1649_v63 }
 0x33c   : > { %v10577_v36 = vcombine.high %v1648_v17, %v1650_v9  ;;  %v10576_v63 = vcombine.low %v1648_v17, %v1650_v9  ;;  %v11619_v9 = vmov 39  }
 0x33d   : > { %2169 = vmatprep.subr.bf16.mxu0 %v10581_v5  ;;  %v1706_v45 = vsel %vm1602_vm4, %v1702_v41, %v1703_v14  ;;  %v11615_v41 = vmov 3   ;;  %v11616_v5 = vmov 37  }
 0x33e   : > { %v1699_v12 = vpop.permute.xlu0 %1698  ;;  %2170 = vmatpush1.bf16.msra.mxu0 %v10580_v55  ;;  %v1708_v0 = vsel %vm1707_vm3, %v1695_v29, %v1706_v45  ;;  %v1599_v55 = vrot.slane %v12515_v47, 4  ;;  %v1601_v29 = vrot.slane %v12528_v25, 4  ;;  %v11617_v47 = vmov 34  }
 0x33f   : > { %v1704_v13 = vrot.slane %v1699_v12, 4  ;;  %11349 = vset.pattern.permute.xlu1 %v11613_v8  ;;  %11353 = vset.pattern.permute.xlu0 %v11614_v27 }
 0x340   : > { %5104 = vperm.xlu1 %11349, %v12370_v61   ;;  %5260 = vperm.xlu0 %11353, %v12370_v61  }
 0x341   : > { %v1709_v37 = vsel %vm1602_vm4, %v1704_v13, %v1705_v11 }
 0x342   : > { %v1710_v10 = vsel %vm1707_vm3, %v1699_v12, %v1709_v37  ;;  %v1591_v62 = vpop.permute.xlu0 %1590 }
 0x343   : > { %v1598_v42 = vrot.slane %v1591_v62, 4  ;;  %v10579_v15 = vcombine.high %v1708_v0, %v1710_v10  ;;  %v10578_v1 = vcombine.low %v1708_v0, %v1710_v10  ;;  %v1996_v0 = vrot.slane %v12541_v40, 4 }
 0x344   : > { %11350 = vset.pattern.permute.xlu1 %v11615_v41  ;;  %11355 = vset.pattern.permute.xlu0 %v11616_v5 }
 0x345   : > { %3552 = vperm.xlu1 %11350, %v12370_v61   ;;  %2171 = vmatprep.subr.bf16.mxu0 %v10579_v15  ;;  %v1603_v14 = vsel %vm1602_vm4, %v1598_v42, %v1599_v55 }
 0x346   : > { %v1595_v44 = vpop.permute.xlu0 %1594  ;;  %2172 = vmatpush1.bf16.msra.mxu0 %v10578_v1  ;;  %5376 = vperm.xlu0 %11355, %v12370_v61   ;;  %v1605_v45 = vsel %vm1604_vm10, %v1591_v62, %v1603_v14  ;;  %v1998_v62 = vrot.slane %v1994_v19, 4  ;;  %v11621_v1 = vmov 36   ;;  %v11420_v14 = vld [vmem:[%s17157_s28] ss:$8 sps:$4 sm:$0xff]  }
 0x347   : > { %v1600_v31 = vrot.slane %v1595_v44, 4  ;;  %2173 = vmatprep.subr.bf16.mxu0 %v10577_v36  ;;  %v12560_v12 = vpop.permute.xlu1 %3118 }
 0x348   : > { %17166 = vst [vmem:[#allocation41_spill] sm:$0xff] %v12560_v12 }
 0x349   : > { %v1606_v11 = vsel %vm1602_vm4, %v1600_v31, %v1601_v29  ;;  %11352 = vset.pattern.permute.xlu1 %v11617_v47  ;;  %v11622_v29 = vmov 43   ;;  %v11623_v31 = vmov 38  }
 0x34a   : > { %v1607_v13 = vsel %vm1604_vm10, %v1595_v44, %v1606_v11  ;;  %v1988_v8 = vpop.permute.xlu0 %1987  ;;  %5209 = vperm.xlu1 %11352, %v12370_v61   ;;  %2174 = vmatpush1.bf16.msra.mxu0 %v10576_v63  ;;  %v11423_v63 = vld [vmem:[%s17157_s28 + $0x14] ss:$8 sps:$4 sm:$0xff]  }
 0x34b   : > { %v1995_v25 = vrot.slane %v1988_v8, 4  ;;  %v10575_v27 = vcombine.high %v1605_v45, %v1607_v13  ;;  %v10574_v37 = vcombine.low %v1605_v45, %v1607_v13  ;;  %5530 = vrot.lane.b32.xlu0 %v12479_v33, %s11618_s25  ;;  %v11624_v45 = vmov 40  }
 0x34c   : > { %v12568_v17 = vpop.permute.xlu1 %3601  ;;  %11357 = vset.pattern.permute.xlu0 %v11619_v9 }
 0x34d   : > { %17167 = vst [vmem:[#allocation42_spill] sm:$0xff] %v12568_v17  ;;  %2175 = vmatprep.subr.bf16.mxu0 %v10575_v27  ;;  %v1999_v42 = vsel %vm1602_vm4, %v1995_v25, %v1996_v0  ;;  %v11425_v27 = vld [vmem:[%s17157_s28 + $0x10] ss:$8 sps:$4 sm:$0xff]   ;;  %s11631_s28 = smov 14  }
 0x34e   : > { %v1992_v10 = vpop.permute.xlu0 %1991  ;;  %5312 = vrot.lane.b32.xlu1 %v12465_v7, %s11620_s23  ;;  %2176 = vmatpush1.bf16.msra.mxu0 %v10574_v37  ;;  %v2001_v40 = vsel %vm1563_vm9, %v1988_v8, %v1999_v42  ;;  %v11625_v8 = vmov 51   ;;  %v11626_v37 = vmov 41   ;;  %s11627_s23 = smov 2  }
 0x34f   : > { %v1997_v15 = vrot.slane %v1992_v10, 4  ;;  %11354 = vset.pattern.permute.xlu1 %v11621_v1  ;;  %5478 = vperm.xlu0 %11357, %v12370_v61   ;;  %v11630_v1 = vmov 44  }
 0x351   : > { %v2002_v41 = vsel %vm1602_vm4, %v1997_v15, %v1998_v62  ;;  %v12575_v5 = vpop.permute.xlu1 %3705  ;;  %v11629_v62 = vmov 42  }
 0x352   : > { %17168 = vst [vmem:[#allocation43_spill] sm:$0xff] %v12575_v5  ;;  %v2003_v55 = vsel %vm1563_vm9, %v1992_v10, %v2002_v41  ;;  %v12579_v36 = vpop.permute.xlu0 %2778  ;;  %5322 = vperm.xlu1 %11354, %v12370_v61   ;;  %v11628_v10 = vmov 55  }
 0x353   : > { %17169 = vst [vmem:[#allocation44_spill] sm:$0xff] %v12579_v36  ;;  %v10591_v19 = vcombine.high %v2001_v40, %v2003_v55  ;;  %v10590_v44 = vcombine.low %v2001_v40, %v2003_v55  ;;  %5747 = vrot.lane.b32.xlu0 %v12434_v28, %s11569_s0  ;;  %v11632_v40 = vmov 59  }
 0x354   : > { %11361 = vset.pattern.permute.xlu0 %v11622_v29  ;;  %v11634_v29 = vmov 46  }
 0x355   : > { %2191 = vmatprep.subr.bf16.mxu0 %v10591_v19  ;;  %v11633_v19 = vmov 45  }
 0x356   : > { %11356 = vset.pattern.permute.xlu1 %v11623_v31  ;;  %2192 = vmatpush2.bf16.msra.mxu0 %v10590_v44  ;;  %v12586_v11 = vpop.permute.xlu1 %3756  ;;  %v12588_v47 = vpop.permute.xlu0 %2766  ;;  %v11635_v31 = vmov 63  }
 0x357   : > { %17170 = vst [vmem:[#allocation45_spill] sm:$0xff] %v12586_v11  ;;  %17171 = vst [vmem:[#allocation46_spill] sm:$0xff] %v12588_v47  ;;  %5427 = vperm.xlu1 %11356, %v12370_v61   ;;  %5695 = vperm.xlu0 %11361, %v12370_v61   ;;  %v11673_v11 = vmov 83  }
 0x359   : > { %2194 = vmatmul.mubr.bf16.vlgmr.msra.gmra.mxu0 %v11420_v14 }
 0x35a   : > { %10593 = vmatprep.mubr.msk.bf16.mxu0 %vm1647_vm11, %v11423_v63  ;;  %v12598_v25 = vpop.permute.xlu0 %2770 }
 0x35b   : > { %11358 = vset.pattern.permute.xlu1 %v11624_v45  ;;  %v12593_v13 = vpop.permute.xlu1 %3863  ;;  %6113 = vrot.lane.b32.xlu0 %v12453_v53, %s16908_s16  ;;  %17173 = vst [vmem:[#allocation48_spill] sm:$0xff] %v12598_v25  ;;  %v11636_v45 = vmov 47  }
 0x35c   : > { %17172 = vst [vmem:[#allocation47_spill] sm:$0xff] %v12593_v13  ;;  %5539 = vperm.xlu1 %11358, %v12370_v61   ;;  %11369 = vset.pattern.permute.xlu0 %v11625_v8 }
 0x35e   : > { %v12605_v0 = vpop.permute.xlu0 %3050 }
 0x35f   : > { %6075 = vperm.xlu0 %11369, %v12370_v61   ;;  %17175 = vst [vmem:[#allocation50_spill] sm:$0xff] %v12605_v0 }
 0x360   : > { %11359 = vset.pattern.permute.xlu1 %v11626_v37  ;;  %v12602_v9 = vpop.permute.xlu1 %3914  ;;  %v11637_v37 = vmov 71  }
 0x361   : > { %17174 = vst [vmem:[#allocation49_spill] sm:$0xff] %v12602_v9  ;;  %5593 = vperm.xlu1 %11359, %v12370_v61   ;;  %2204 = vmatmul.mubr.bf16.gmra.mxu0 %v11425_v27 }
 0x362   : > { %v12612_v15 = vpop.permute.xlu0 %3054 }
 0x363   : > { %6330 = vrot.lane.b32.xlu0 %v12465_v7, %s11627_s23  ;;  %17177 = vst [vmem:[#allocation52_spill] sm:$0xff] %v12612_v15  ;;  %s11640_s23 = smov 18  }
 0x364   : > { %11373 = vset.pattern.permute.xlu0 %v11628_v10  ;;  %v11638_v10 = vmov 48  }
 0x365   : > { %11360 = vset.pattern.permute.xlu1 %v11629_v62  ;;  %v12608_v42 = vpop.permute.xlu1 %3965 }
 0x366   : > { %17176 = vst [vmem:[#allocation51_spill] sm:$0xff] %v12608_v42  ;;  %5644 = vperm.xlu1 %11360, %v12370_v61   ;;  %v12618_v55 = vpop.permute.xlu0 %3042 }
 0x367   : > { %6278 = vperm.xlu0 %11373, %v12370_v61   ;;  %17179 = vst [vmem:[#allocation54_spill] sm:$0xff] %v12618_v55 }
 0x36a   : > { %11362 = vset.pattern.permute.xlu1 %v11630_v1  ;;  %v12614_v41 = vpop.permute.xlu1 %4080  ;;  %v12628_v63 = vpop.permute.xlu0 %3046 }
 0x36b   : > { %17178 = vst [vmem:[#allocation53_spill] sm:$0xff] %v12614_v41  ;;  %5756 = vperm.xlu1 %11362, %v12370_v61   ;;  %6548 = vrot.lane.b32.xlu0 %v12479_v33, %s11631_s28  ;;  %17182 = vst [vmem:[#allocation57_spill] sm:$0xff] %v12628_v63  ;;  %s11643_s28 = smov 30   ;;  %v11663_v41 = vmov 69  }
 0x36c   : > { %11377 = vset.pattern.permute.xlu0 %v11632_v40  ;;  %v11639_v40 = vmov 49  }
 0x36e   : > { %v12634_v27 = vpop.permute.xlu0 %3591 }
 0x36f   : > { %11363 = vset.pattern.permute.xlu1 %v11633_v19  ;;  %v12620_v44 = vpop.permute.xlu1 %4131  ;;  %6496 = vperm.xlu0 %11377, %v12370_v61   ;;  %17184 = vst [vmem:[#allocation59_spill] sm:$0xff] %v12634_v27 }
 0x370   : > { %17180 = vst [vmem:[#allocation55_spill] sm:$0xff] %v12620_v44  ;;  %5809 = vperm.xlu1 %11363, %v12370_v61  }
 0x373   : > { %6766 = vrot.lane.b32.xlu0 %v12434_v28, %s11568_s27 }
 0x374   : > { %11364 = vset.pattern.permute.xlu1 %v11634_v29  ;;  %v12626_v14 = vpop.permute.xlu1 %4182  ;;  %11381 = vset.pattern.permute.xlu0 %v11635_v31  ;;  %v11641_v29 = vmov 75  }
 0x375   : > { %17181 = vst [vmem:[#allocation56_spill] sm:$0xff] %v12626_v14  ;;  %5860 = vperm.xlu1 %11364, %v12370_v61   ;;  %v11655_v14 = vmov 61  }
 0x377   : > { %6714 = vperm.xlu0 %11381, %v12370_v61  }
 0x379   : > { %11365 = vset.pattern.permute.xlu1 %v11636_v45  ;;  %v12632_v8 = vpop.permute.xlu1 %4301  ;;  %v11642_v45 = vmov 50  }
 0x37a   : > { %17183 = vst [vmem:[#allocation58_spill] sm:$0xff] %v12632_v8  ;;  %5911 = vperm.xlu1 %11365, %v12370_v61  }
 0x37b   : > { %7190 = vrot.lane.b32.xlu0 %v12453_v53, %s16954_s15  ;;  %v12642_v1 = vpop.permute.xlu0 %3654 }
 0x37c   : > { %11389 = vset.pattern.permute.xlu0 %v11637_v37  ;;  %17186 = vst [vmem:[#allocation61_spill] sm:$0xff] %v12642_v1 }
 0x37e   : > { %11366 = vset.pattern.permute.xlu1 %v11638_v10  ;;  %v12639_v62 = vpop.permute.xlu1 %4352 }
 0x37f   : > { %17185 = vst [vmem:[#allocation60_spill] sm:$0xff] %v12639_v62  ;;  %5963 = vperm.xlu1 %11366, %v12370_v61   ;;  %7140 = vperm.xlu0 %11389, %v12370_v61  }
 0x380   : > { %v12649_v31 = vpop.permute.xlu0 %3809 }
 0x381   : > { %17188 = vst [vmem:[#allocation63_spill] sm:$0xff] %v12649_v31  ;;  %v11681_v31 = vmov 90  }
 0x383   : > { %11367 = vset.pattern.permute.xlu1 %v11639_v40  ;;  %v12645_v19 = vpop.permute.xlu1 %4403  ;;  %7407 = vrot.lane.b32.xlu0 %v12465_v7, %s11640_s23  ;;  %v11644_v40 = vmov 79   ;;  %s11672_s23 = smov 31  }
 0x384   : > { %17187 = vst [vmem:[#allocation62_spill] sm:$0xff] %v12645_v19  ;;  %6001 = vperm.xlu1 %11367, %v12370_v61   ;;  %11393 = vset.pattern.permute.xlu0 %v11641_v29  ;;  %v12655_v10 = vpop.permute.xlu0 %4016  ;;  %v11651_v19 = vmov 84  }
 0x385   : > { %17190 = vst [vmem:[#allocation65_spill] sm:$0xff] %v12655_v10 }
 0x387   : > { %7355 = vperm.xlu0 %11393, %v12370_v61  }
 0x388   : > { %11368 = vset.pattern.permute.xlu1 %v11642_v45  ;;  %v12652_v37 = vpop.permute.xlu1 %4519  ;;  %v12662_v45 = vpop.permute.xlu0 %4026 }
 0x389   : > { %17189 = vst [vmem:[#allocation64_spill] sm:$0xff] %v12652_v37  ;;  %6038 = vperm.xlu1 %11368, %v12370_v61   ;;  %17192 = vst [vmem:[#allocation67_spill] sm:$0xff] %v12662_v45  ;;  %v11647_v37 = vmov 81  }
 0x38b   : > { %7625 = vrot.lane.b32.xlu0 %v12479_v33, %s11643_s28  ;;  %v11648_v33 = vmov 54   ;;  %s16858_s28 = smov 93  }
 0x38c   : > { %11397 = vset.pattern.permute.xlu0 %v11644_v40  ;;  %v12670_v40 = vpop.permute.xlu0 %4237 }
 0x38d   : > { %11370 = vset.pattern.permute.xlu1 %v11645_v60  ;;  %v12658_v29 = vpop.permute.xlu1 %4570  ;;  %17195 = vst [vmem:[#allocation70_spill] sm:$0xff] %v12670_v40  ;;  %v11661_v40 = vmov 67  }
 0x38e   : > { %17191 = vst [vmem:[#allocation66_spill] sm:$0xff] %v12658_v29  ;;  %6122 = vperm.xlu1 %11370, %v12370_v61   ;;  %v11649_v29 = vmov 82  }
 0x38f   : > { %7573 = vperm.xlu0 %11397, %v12370_v61  }
 0x392   : > { %11371 = vset.pattern.permute.xlu1 %v11646_v30  ;;  %v12664_v4 = vpop.permute.xlu1 %4621  ;;  %v11650_v30 = vmov 56  }
 0x393   : > { %17193 = vst [vmem:[#allocation68_spill] sm:$0xff] %v12664_v4  ;;  %6176 = vperm.xlu1 %11371, %v12370_v61   ;;  %11399 = vset.pattern.permute.xlu0 %v11647_v37  ;;  %v12677_v37 = vpop.permute.xlu0 %4247 }
 0x394   : > { %7689 = vperm.xlu0 %11399, %v12370_v61   ;;  %17197 = vst [vmem:[#allocation72_spill] sm:$0xff] %v12677_v37 }
 0x397   : > { %11372 = vset.pattern.permute.xlu1 %v11648_v33  ;;  %v12668_v60 = vpop.permute.xlu1 %4735  ;;  %v11652_v33 = vmov 57  }
 0x398   : > { %17194 = vst [vmem:[#allocation69_spill] sm:$0xff] %v12668_v60  ;;  %6227 = vperm.xlu1 %11372, %v12370_v61   ;;  %11400 = vset.pattern.permute.xlu0 %v11649_v29  ;;  %v12683_v29 = vpop.permute.xlu0 %4455 }
 0x399   : > { %7740 = vperm.xlu0 %11400, %v12370_v61   ;;  %17199 = vst [vmem:[#allocation74_spill] sm:$0xff] %v12683_v29  ;;  %v11657_v29 = vmov 62  }
 0x39c   : > { %11374 = vset.pattern.permute.xlu1 %v11650_v30  ;;  %v12674_v4 = vpop.permute.xlu1 %4786  ;;  %v11653_v30 = vmov 58   ;;  %v12690_v8 = vpop.permute.xlu0 %4465 }
 0x39d   : > { %17196 = vst [vmem:[#allocation71_spill] sm:$0xff] %v12674_v4  ;;  %6340 = vperm.xlu1 %11374, %v12370_v61   ;;  %11402 = vset.pattern.permute.xlu0 %v11651_v19  ;;  %17202 = vst [vmem:[#allocation77_spill] sm:$0xff] %v12690_v8  ;;  %v11654_v19 = vmov 60   ;;  %v11658_v8 = vmov 64  }
 0x39e   : > { %7853 = vperm.xlu0 %11402, %v12370_v61  }
 0x3a0   : > { %v12695_v37 = vpop.permute.xlu0 %4673 }
 0x3a1   : > { %11375 = vset.pattern.permute.xlu1 %v11652_v33  ;;  %v12680_v60 = vpop.permute.xlu1 %4890  ;;  %17204 = vst [vmem:[#allocation79_spill] sm:$0xff] %v12695_v37  ;;  %v11659_v37 = vmov 65  }
 0x3a2   : > { %17198 = vst [vmem:[#allocation73_spill] sm:$0xff] %v12680_v60  ;;  %6394 = vperm.xlu1 %11375, %v12370_v61  }
 0x3a4   : > { %v12700_v44 = vpop.permute.xlu0 %4682 }
 0x3a5   : > { %v12685_v62 = vpop.permute.xlu1 %3428  ;;  %17206 = vst [vmem:[#allocation81_spill] sm:$0xff] %v12700_v44 }
 0x3a6   : > { %17200 = vst [vmem:[#allocation75_spill] sm:$0xff] %v12685_v62  ;;  %11376 = vset.pattern.permute.xlu1 %v11653_v30  ;;  %v11656_v30 = vmov 91  }
 0x3a7   : > { %6445 = vperm.xlu1 %11376, %v12370_v61   ;;  %11409 = vset.pattern.permute.xlu0 %v11656_v30 }
 0x3a9   : > { %v12688_v4 = vpop.permute.xlu1 %4994 }
 0x3aa   : > { %17201 = vst [vmem:[#allocation76_spill] sm:$0xff] %v12688_v4 }
 0x3ab   : > { %11378 = vset.pattern.permute.xlu1 %v11654_v19 }
 0x3ac   : > { %6558 = vperm.xlu1 %11378, %v12370_v61  }
 0x3ad   : > { %v12693_v33 = vpop.permute.xlu1 %5095 }
 0x3ae   : > { %17203 = vst [vmem:[#allocation78_spill] sm:$0xff] %v12693_v33 }
 0x3b0   : > { %11379 = vset.pattern.permute.xlu1 %v11655_v14  ;;  %v12708_v14 = vpop.permute.xlu0 %4837 }
 0x3b1   : > { %6612 = vperm.xlu1 %11379, %v12370_v61   ;;  %v12698_v62 = vpop.permute.xlu1 %3478  ;;  %17209 = vst [vmem:[#allocation84_spill] sm:$0xff] %v12708_v14 }
 0x3b2   : > { %17205 = vst [vmem:[#allocation80_spill] sm:$0xff] %v12698_v62  ;;  %v11660_v62 = vmov 66  }
 0x3b5   : > { %11380 = vset.pattern.permute.xlu1 %v11657_v29  ;;  %v12713_v29 = vpop.permute.xlu0 %4943 }
 0x3b6   : > { %6663 = vperm.xlu1 %11380, %v12370_v61   ;;  %v12703_v19 = vpop.permute.xlu1 %5045  ;;  %17211 = vst [vmem:[#allocation86_spill] sm:$0xff] %v12713_v29  ;;  %v11679_v29 = vmov 89  }
 0x3b7   : > { %17207 = vst [vmem:[#allocation82_spill] sm:$0xff] %v12703_v19 }
 0x3ba   : > { %11382 = vset.pattern.permute.xlu1 %v11658_v8  ;;  %v12718_v8 = vpop.permute.xlu0 %3515 }
 0x3bb   : > { %6775 = vperm.xlu1 %11382, %v12370_v61   ;;  %v12706_v33 = vpop.permute.xlu1 %5104  ;;  %17213 = vst [vmem:[#allocation88_spill] sm:$0xff] %v12718_v8  ;;  %v11664_v8 = vmov 70  }
 0x3bc   : > { %17208 = vst [vmem:[#allocation83_spill] sm:$0xff] %v12706_v33 }
 0x3be   : > { %v12725_v14 = vpop.permute.xlu0 %5158 }
 0x3bf   : > { %11383 = vset.pattern.permute.xlu1 %v11659_v37  ;;  %17216 = vst [vmem:[#allocation91_spill] sm:$0xff] %v12725_v14 }
 0x3c0   : > { %6829 = vperm.xlu1 %11383, %v12370_v61   ;;  %v12711_v30 = vpop.permute.xlu1 %3552 }
 0x3c1   : > { %17210 = vst [vmem:[#allocation85_spill] sm:$0xff] %v12711_v30  ;;  %v11662_v30 = vmov 68  }
 0x3c4   : > { %11384 = vset.pattern.permute.xlu1 %v11660_v62 }
 0x3c5   : > { %6880 = vperm.xlu1 %11384, %v12370_v61   ;;  %v12716_v44 = vpop.permute.xlu1 %5209 }
 0x3c6   : > { %17212 = vst [vmem:[#allocation87_spill] sm:$0xff] %v12716_v44  ;;  %v12730_v44 = vpop.permute.xlu0 %5260 }
 0x3c7   : > { %17218 = vst [vmem:[#allocation93_spill] sm:$0xff] %v12730_v44  ;;  %v11666_v44 = vmov 73  }
 0x3c9   : > { %11385 = vset.pattern.permute.xlu1 %v11661_v40  ;;  %v12720_v33 = vpop.permute.xlu1 %5312 }
 0x3ca   : > { %17214 = vst [vmem:[#allocation89_spill] sm:$0xff] %v12720_v33  ;;  %6931 = vperm.xlu1 %11385, %v12370_v61   ;;  %v11667_v33 = vmov 74  }
 0x3cd   : > { %v12723_v37 = vpop.permute.xlu1 %5322 }
 0x3ce   : > { %17215 = vst [vmem:[#allocation90_spill] sm:$0xff] %v12723_v37  ;;  %11386 = vset.pattern.permute.xlu1 %v11662_v30  ;;  %v12736_v37 = vpop.permute.xlu0 %5376  ;;  %v11665_v30 = vmov 72  }
 0x3cf   : > { %6984 = vperm.xlu1 %11386, %v12370_v61   ;;  %17220 = vst [vmem:[#allocation95_spill] sm:$0xff] %v12736_v37  ;;  %v12764_v37 = vld [vmem:[%s11886_s4] sm:$0xf] }
 0x3d2   : > { %v12728_v62 = vpop.permute.xlu1 %5427 }
 0x3d3   : > { %17217 = vst [vmem:[#allocation92_spill] sm:$0xff] %v12728_v62  ;;  %11387 = vset.pattern.permute.xlu1 %v11663_v41  ;;  %v12741_v62 = vpop.permute.xlu0 %5530 }
 0x3d4   : > { %7038 = vperm.xlu1 %11387, %v12370_v61   ;;  %17222 = vst [vmem:[#allocation97_spill] sm:$0xff] %v12741_v62  ;;  %v11668_v62 = vmov 76  }
 0x3d7   : > { %v12733_v40 = vpop.permute.xlu1 %5539 }
 0x3d8   : > { %17219 = vst [vmem:[#allocation94_spill] sm:$0xff] %v12733_v40  ;;  %11388 = vset.pattern.permute.xlu1 %v11664_v8  ;;  %v12746_v40 = vpop.permute.xlu0 %5478 }
 0x3d9   : > { %7089 = vperm.xlu1 %11388, %v12370_v61   ;;  %17224 = vst [vmem:[#allocation99_spill] sm:$0xff] %v12746_v40 }
 0x3dc   : > { %v12738_v14 = vpop.permute.xlu1 %5593 }
 0x3dd   : > { %17221 = vst [vmem:[#allocation96_spill] sm:$0xff] %v12738_v14  ;;  %11390 = vset.pattern.permute.xlu1 %v11665_v30  ;;  %v12753_v14 = vpop.permute.xlu0 %5747 }
 0x3de   : > { %7199 = vperm.xlu1 %11390, %v12370_v61   ;;  %17227 = vst [vmem:[#allocation102_spill] sm:$0xff] %v12753_v14  ;;  %v17233_v14 = vlaneseq }
 0x3e1   : > { %v12743_v41 = vpop.permute.xlu1 %5644  ;;  %v12758_v40 = vpop.permute.xlu0 %5695 }
 0x3e2   : > { %17223 = vst [vmem:[#allocation98_spill] sm:$0xff] %v12743_v41  ;;  %11391 = vset.pattern.permute.xlu1 %v11666_v44  ;;  %v11669_v41 = vmov 77   ;;  %17229 = vst [vmem:[#allocation104_spill] sm:$0xff] %v12758_v40  ;;  %v11671_v40 = vmov 80  }
 0x3e3   : > { %7253 = vperm.xlu1 %11391, %v12370_v61  }
 0x3e6   : > { %v12748_v8 = vpop.permute.xlu1 %5756 }
 0x3e7   : > { %17225 = vst [vmem:[#allocation100_spill] sm:$0xff] %v12748_v8  ;;  %11392 = vset.pattern.permute.xlu1 %v11667_v33  ;;  %v11670_v33 = vmov 78  }
 0x3e8   : > { %7304 = vperm.xlu1 %11392, %v12370_v61  }
 0x3eb   : > { %v12751_v30 = vpop.permute.xlu1 %5809 }
 0x3ec   : > { %17226 = vst [vmem:[#allocation101_spill] sm:$0xff] %v12751_v30  ;;  %11394 = vset.pattern.permute.xlu1 %v11668_v62  ;;  %v12767_v30 = vpop.permute.xlu0 %6113 }
 0x3ed   : > { %7417 = vperm.xlu1 %11394, %v12370_v61   ;;  %17231 = vst [vmem:[#allocation106_spill] sm:$0xff] %v12767_v30 }
 0x3f0   : > { %v12756_v44 = vpop.permute.xlu1 %5860 }
 0x3f1   : > { %17228 = vst [vmem:[#allocation103_spill] sm:$0xff] %v12756_v44  ;;  %11395 = vset.pattern.permute.xlu1 %v11669_v41  ;;  %v16822_v44 = vrot.slane %v12767_v30, 4  ;;  %v12773_v41 = vshrl.u32 %v17233_v14, 7  ;;  %v12784_v14 = vpop.permute.xlu0 %6075 }
 0x3f2   : > { %7471 = vperm.xlu1 %11395, %v12370_v61   ;;  %v6112_v61 = vld [vmem:[#allocation5 + $0xc] sm:$0xf]  ;;  %17237 = vst [vmem:[#allocation111_spill] sm:$0xff] %v12784_v14 }
 0x3f3   : > { %17234 = vst [vmem:[#allocation108_spill] sm:$0xff] %v12773_v41  ;;  %v12788_v5 = vsub.s32 1, %v12773_v41  ;;  %v12806_v14 = vsub.s32 3, %v12773_v41 }
 0x3f5   : > { %v12761_v8 = vpop.permute.xlu1 %5911  ;;  %17238 = vst [vmem:[#allocation112_spill] sm:$0xff] %v12788_v5  ;;  %v12795_v1 = vpop.permute.xlu0 %6330 }
 0x3f6   : > { %17230 = vst [vmem:[#allocation105_spill] sm:$0xff] %v12761_v8  ;;  %11396 = vset.pattern.permute.xlu1 %v11670_v33  ;;  %v6120_v33 = vmul.f32 %v16822_v44, %v6112_v61  ;;  %v12779_v8 = vsub.s32 0, %v12773_v41  ;;  %17240 = vst [vmem:[#allocation114_spill] sm:$0xff] %v12795_v1  ;;  %v16839_v27 = vrot.slane %v12795_v1, 4 }
 0x3f7   : > { %7522 = vperm.xlu1 %11396, %v12764_v37  }
 0x3f8   : > { %17235 = vst [vmem:[#allocation109_spill] sm:$0xff] %v12779_v8  ;;  %v6190_v30 = vrot.slane %v6120_v33, %v12788_v5 }
 0x3fa   : > { %v12769_v62 = vpop.permute.xlu1 %5963 }
 0x3fb   : > { %17232 = vst [vmem:[#allocation107_spill] sm:$0xff] %v12769_v62  ;;  %11398 = vset.pattern.permute.xlu1 %v11671_v40  ;;  %v6138_v40 = vrot.slane %v6120_v33, %v12779_v8 }
 0x3fc   : > { %7635 = vperm.xlu1 %11398, %v12764_v37  }
 0x3fd   : > { %v6153_v44 = vrot.slane %v6138_v40, %v12779_v8  ;;  %v6205_v40 = vrot.slane %v6190_v30, %v12788_v5 }
 0x3ff   : > { %v12781_v45 = vpop.permute.xlu1 %6001 }
 0x400   : > { %17236 = vst [vmem:[#allocation110_spill] sm:$0xff] %v12781_v45  ;;  %7843 = vrot.lane.b32.xlu1 %v12434_v28, %s11672_s23  ;;  %v11674_v28 = vmov 85   ;;  %v11676_v45 = vmov 86   ;;  %s16873_s23 = smov 92  }
 0x401   : > { %11401 = vset.pattern.permute.xlu1 %v11673_v11  ;;  %v12798_v11 = vsub.s32 2, %v12773_v41 }
 0x403   : > { %17241 = vst [vmem:[#allocation115_spill] sm:$0xff] %v12798_v11 }
 0x404   : > { %7791 = vperm.xlu1 %11401, %v12764_v37   ;;  %v12791_v61 = vpop.permute.xlu1 %6038 }
 0x405   : > { %17239 = vst [vmem:[#allocation113_spill] sm:$0xff] %v12791_v61  ;;  %v6329_v61 = vld [vmem:[#allocation5 + $0xc] sm:$0xf] }
 0x408   : > { %11403 = vset.pattern.permute.xlu1 %v11674_v28  ;;  %v6241_v28 = vrot.slane %v6120_v33, %v12798_v11 }
 0x409   : > { %7907 = vperm.xlu1 %11403, %v12764_v37   ;;  %v12801_v17 = vpop.permute.xlu1 %6122 }
 0x40a   : > { %17242 = vst [vmem:[#allocation116_spill] sm:$0xff] %v12801_v17  ;;  %v6156_v10 = vmul.f32 %v6153_v44, %v12801_v17  ;;  %v12816_v44 = vmul.f32 %v16839_v27, %v6329_v61  ;;  %v6292_v17 = vrot.slane %v6120_v33, %v12806_v14  ;;  %v6256_v19 = vrot.slane %v6241_v28, %v12798_v11  ;;  %v12828_v61 = vpop.permute.xlu0 %6278 }
 0x40b   : > { %17245 = vst [vmem:[#allocation119_spill] sm:$0xff] %v12828_v61 }
 0x40c   : > { %6164 = vrot.lane.b32.xlu0 %v6156_v10, %s16858_s28  ;;  %v11677_v10 = vmov 87   ;;  %v6356_v4 = vrot.slane %v12816_v44, %v12779_v8 }
 0x40d   : > { %11404 = vset.pattern.permute.xlu1 %v11676_v45  ;;  %v6307_v45 = vrot.slane %v6292_v17, %v12806_v14  ;;  %v6408_v17 = vrot.slane %v12816_v44, %v12788_v5 }
 0x40e   : > { %7958 = vperm.xlu1 %11404, %v12764_v37   ;;  %v12812_v62 = vpop.permute.xlu1 %6176  ;;  %v6371_v28 = vrot.slane %v6356_v4, %v12779_v8  ;;  %v12845_v4 = vpop.permute.xlu0 %6548 }
 0x40f   : > { %17243 = vst [vmem:[#allocation117_spill] sm:$0xff] %v12812_v62  ;;  %v6208_v30 = vmul.f32 %v6205_v40, %v12812_v62  ;;  %v6310_v40 = vmul.f32 %v6307_v45, %v12828_v61  ;;  %v6423_v45 = vrot.slane %v6408_v17, %v12788_v5  ;;  %17247 = vst [vmem:[#allocation121_spill] sm:$0xff] %v12845_v4 }
 0x411   : > { %6216 = vrot.lane.b32.xlu0 %v6208_v30, %s16858_s28  ;;  %v11678_v30 = vmov 88  }
 0x412   : > { %11405 = vset.pattern.permute.xlu1 %v11677_v10 }
 0x413   : > { %8009 = vperm.xlu1 %11405, %v12764_v37   ;;  %v12826_v1 = vpop.permute.xlu1 %6227 }
 0x414   : > { %17244 = vst [vmem:[#allocation118_spill] sm:$0xff] %v12826_v1  ;;  %v6259_v33 = vmul.f32 %v6256_v19, %v12826_v1 }
 0x416   : > { %6267 = vrot.lane.b32.xlu0 %v6259_v33, %s16858_s28 }
 0x417   : > { %11406 = vset.pattern.permute.xlu1 %v11678_v30  ;;  %v6459_v30 = vrot.slane %v12816_v44, %v12798_v11 }
 0x418   : > { %v12836_v10 = vpop.permute.xlu1 %6340  ;;  %8062 = vperm.xlu1 %11406, %v12764_v37  }
 0x419   : > { %17246 = vst [vmem:[#allocation120_spill] sm:$0xff] %v12836_v10  ;;  %v2195_v27 = vpop.f32.mrf.mxu0  ;;  %v6374_v19 = vmul.f32 %v6371_v28, %v12836_v10  ;;  %v6474_v42 = vrot.slane %v6459_v30, %v12798_v11 }
 0x41a   : > { %v12840_v62 = vadd.f32 %v2195_v27, %v12455_v32  ;;  %6318 = vrot.lane.b32.xlu0 %v6310_v40, %s16858_s28  ;;  %s11682_s28 = smov 33  }
 0x41b   : > { %v2197_v33 = vpop.f32.mrf.mxu0 }
 0x41c   : > { %v2214_v61 = vmin.f32 %v12840_v62, 20.0  ;;  %v12851_v1 = vadd.f32 %v2197_v33, %v12455_v32  ;;  %11407 = vset.pattern.permute.xlu1 %v11679_v29  ;;  %v6547_v33 = vld [vmem:[#allocation5 + $0xc] sm:$0xf] }
 0x41d   : > { %v2199_v27 = vpop.f32.mrf.mxu0  ;;  %v12853_v60 = vpop.permute.xlu1 %6394  ;;  %8116 = vperm.xlu1 %11407, %v12764_v37  }
 0x41e   : > { %17248 = vst [vmem:[#allocation122_spill] sm:$0xff] %v12853_v60  ;;  %v2222_v28 = vmul.f32 1.442695, %v2214_v61  ;;  %v2215_v17 = vmin.f32 %v12851_v1, 20.0  ;;  %v12859_v10 = vadd.f32 %v2199_v27, %v12421_v51  ;;  %6382 = vrot.lane.b32.xlu0 %v6374_v19, %s16873_s23  ;;  %v6426_v32 = vmul.f32 %v6423_v45, %v12853_v60 }
 0x41f   : > { %v2201_v29 = vpop.f32.mrf.mxu0  ;;  %v17249_v27 = vrot.slane %v12845_v4, 4  ;;  %v6510_v19 = vrot.slane %v12816_v44, %v12806_v14 }
 0x420   : > { %11437 = vpow2.f32 %v2222_v28  ;;  %v2224_v9 = vmul.f32 1.442695, %v2215_v17  ;;  %v2216_v13 = vmin.f32 %v12859_v10, 20.0  ;;  %v12866_v61 = vadd.f32 %v2201_v29, %v12421_v51 }
 0x421   : > { %v2205_v40 = vpop.f32.mrf.mxu0  ;;  %11408 = vset.pattern.permute.xlu1 %v11681_v31  ;;  %v12870_v41 = vmul.f32 %v17249_v27, %v6547_v33 }
 0x422   : > { %11439 = vpow2.f32 %v2224_v9  ;;  %v2226_v45 = vmul.f32 1.442695, %v2216_v13  ;;  %v2217_v30 = vmin.f32 %v12866_v61, 20.0  ;;  %v12876_v28 = vadd.f32 %v2205_v40, %v12415_v56  ;;  %6434 = vrot.lane.b32.xlu0 %v6426_v32, %s16873_s23  ;;  %8167 = vperm.xlu1 %11408, %v12764_v37   ;;  %v12880_v51 = vpop.permute.xlu1 %6445 }
 0x423   : > { %17250 = vst [vmem:[#allocation123_spill] sm:$0xff] %v12880_v51  ;;  %v2207_v31 = vpop.f32.mrf.mxu0  ;;  %v6477_v17 = vmul.f32 %v6474_v42, %v12880_v51  ;;  %v6525_v40 = vrot.slane %v6510_v19, %v12806_v14  ;;  %v6574_v32 = vrot.slane %v12870_v41, %v12779_v8 }
 0x424   : > { %11441 = vpow2.f32 %v2226_v45  ;;  %v2228_v33 = vmul.f32 1.442695, %v2217_v30  ;;  %v2218_v44 = vmin.f32 %v12876_v28, 20.0  ;;  %v12885_v13 = vadd.f32 %v2207_v31, %v12415_v56  ;;  %v12896_v56 = vpop.permute.xlu0 %6496 }
 0x425   : > { %v2209_v9 = vpop.f32.mrf.mxu0  ;;  %17251 = vst [vmem:[#allocation124_spill] sm:$0xff] %v12896_v56  ;;  %v11683_v45 = vmov 92  }
 0x426   : > { %11443 = vpow2.f32 %v2228_v33  ;;  %v2230_v29 = vmul.f32 1.442695, %v2218_v44  ;;  %v2219_v27 = vmin.f32 %v12885_v13, 20.0  ;;  %v12892_v60 = vadd.f32 %v2209_v9, %v12445_v2  ;;  %8268 = vrot.lane.b32.xlu0 %v12453_v53, %s11682_s28  ;;  %6485 = vrot.lane.b32.xlu1 %v6477_v17, %s16873_s23  ;;  %s11686_s28 = smov 80  }
 0x427   : > { %v2211_v42 = vpop.f32.mrf.mxu0  ;;  %11410 = vset.pattern.permute.xlu1 %v11683_v45  ;;  %v12898_v19 = vpop.permute.xlu1 %6558  ;;  %v6528_v44 = vmul.f32 %v6525_v40, %v12896_v56  ;;  %v6626_v53 = vrot.slane %v12870_v41, %v12788_v5 }
 0x428   : > { %17252 = vst [vmem:[#allocation125_spill] sm:$0xff] %v12898_v19  ;;  %11445 = vpow2.f32 %v2230_v29  ;;  %v2232_v30 = vmul.f32 1.442695, %v2219_v27  ;;  %v2220_v31 = vmin.f32 %v12892_v60, 20.0  ;;  %v12902_v33 = vadd.f32 %v2211_v42, %v12445_v2 }
 0x429   : > { %v6589_v29 = vrot.slane %v6574_v32, %v12779_v8  ;;  %v6677_v2 = vrot.slane %v12870_v41, %v12798_v11  ;;  %v6641_v56 = vrot.slane %v6626_v53, %v12788_v5  ;;  %v11685_v32 = vmov 95  }
 0x42a   : > { %11447 = vpow2.f32 %v2232_v30  ;;  %v2234_v17 = vmul.f32 1.442695, %v2220_v31  ;;  %v2221_v9 = vmin.f32 %v12902_v33, 20.0  ;;  %8218 = vperm.xlu0 %11409, %v12764_v37   ;;  %8278 = vperm.xlu1 %11410, %v12764_v37   ;;  %v11684_v30 = vmov 93  }
 0x42b   : > { %v6592_v31 = vmul.f32 %v6589_v29, %v12898_v19  ;;  %v6692_v4 = vrot.slane %v6677_v2, %v12798_v11  ;;  %v11687_v29 = vmov 94  }
 0x42c   : > { %11449 = vpow2.f32 %v2234_v17  ;;  %v2236_v27 = vmul.f32 1.442695, %v2221_v9  ;;  %v12913_v40 = vpop.permute.xlu1 %6612 }
 0x42d   : > { %v11438_v42 = vpop.eup %11437  ;;  %17253 = vst [vmem:[#allocation126_spill] sm:$0xff] %v12913_v40 }
 0x42e   : > { %v2238_v45 = vadd.f32 2.0, %v11438_v42  ;;  %11451 = vpow2.f32 %v2236_v27  ;;  %11411 = vset.pattern.permute.xlu1 %v11684_v30  ;;  %6536 = vrot.lane.b32.xlu0 %v6528_v44, %s16873_s23  ;;  %v6644_v44 = vmul.f32 %v6641_v56, %v12913_v40  ;;  %s16891_s23 = smov 34  }
 0x42f   : > { %v11440_v51 = vpop.eup %11439  ;;  %8332 = vperm.xlu1 %11411, %v12764_v37   ;;  %11413 = vset.pattern.permute.xlu0 %v11685_v32 }
 0x430   : > { %v2246_v17 = vmul.f32 %v11438_v42, %v2238_v45  ;;  %v2239_v9 = vadd.f32 2.0, %v11440_v51 }
 0x431   : > { %v11442_v12 = vpop.eup %11441  ;;  %v12920_v15 = vpop.permute.xlu1 %6663 }
 0x432   : > { %17254 = vst [vmem:[#allocation127_spill] sm:$0xff] %v12920_v15  ;;  %v2262_v27 = vadd.f32 2.0, %v2246_v17  ;;  %v2247_v30 = vmul.f32 %v11440_v51, %v2239_v9  ;;  %v2240_v36 = vadd.f32 2.0, %v11442_v12  ;;  %6600 = vrot.lane.b32.xlu0 %v6592_v31, %s11686_s28  ;;  %v6695_v2 = vmul.f32 %v6692_v4, %v12920_v15 }
 0x433   : > { %v11444_v53 = vpop.eup %11443  ;;  %11412 = vset.pattern.permute.xlu1 %v11687_v29 }
 0x434   : > { %11453 = vrcp.f32 %v2262_v27  ;;  %v2263_v32 = vadd.f32 2.0, %v2247_v30  ;;  %v2248_v42 = vmul.f32 %v11442_v12, %v2240_v36  ;;  %8383 = vperm.xlu1 %11412, %v12764_v37   ;;  %v2241_v19 = vadd.f32 2.0, %v11444_v53 }
 0x435   : > { %v11446_v45 = vpop.eup %11445 }
 0x436   : > { %11455 = vrcp.f32 %v2263_v32  ;;  %v2264_v51 = vadd.f32 2.0, %v2248_v42  ;;  %v2242_v9 = vadd.f32 2.0, %v11446_v45  ;;  %6652 = vrot.lane.b32.xlu0 %v6644_v44, %s11686_s28  ;;  %v12927_v31 = vpop.permute.xlu1 %6775  ;;  %v2249_v40 = vmul.f32 %v11444_v53, %v2241_v19 }
 0x437   : > { %17255 = vst [vmem:[#allocation128_spill] sm:$0xff] %v12927_v31  ;;  %v11448_v56 = vpop.eup %11447 }
 0x438   : > { %11457 = vrcp.f32 %v2264_v51  ;;  %v2250_v29 = vmul.f32 %v11446_v45, %v2242_v9  ;;  %v2243_v27 = vadd.f32 2.0, %v11448_v56  ;;  %6703 = vrot.lane.b32.xlu1 %v6695_v2, %s11686_s28  ;;  %v2265_v36 = vadd.f32 2.0, %v2249_v40 }
 0x439   : > { %v11450_v12 = vpop.eup %11449  ;;  %v11689_v45 = vmov 96  }
 0x43a   : > { %v2266_v49 = vadd.f32 2.0, %v2250_v29  ;;  %v2251_v4 = vmul.f32 %v11448_v56, %v2243_v27  ;;  %v2244_v15 = vadd.f32 2.0, %v11450_v12  ;;  %8486 = vrot.lane.b32.xlu0 %v12465_v7, %s16891_s23  ;;  %11459 = vrcp.f32 %v2265_v36  ;;  %11415 = vset.pattern.permute.xlu1 %v11689_v45  ;;  %v2396_v45 = vld [vmem:[#allocation4] sm:$0xff]  ;;  %s16899_s23 = smov 79  }
 0x43b   : > { %v11452_v32 = vpop.eup %11451  ;;  %v12932_v44 = vpop.permute.xlu1 %6829  ;;  %v2254_v56 = vmul.f32 %v2246_v17, %v12840_v62  ;;  %v2256_v62 = vmul.f32 %v2248_v42, %v12859_v10  ;;  %v2588_v42 = vmul.f32 %v12290_v46, %v2396_v45  ;;  %v2492_v16 = vmul.f32 %v12317_v26, %v2396_v45 }
 0x43c   : > { %17256 = vst [vmem:[#allocation129_spill] sm:$0xff] %v12932_v44  ;;  %11461 = vrcp.f32 %v2266_v49  ;;  %v2267_v19 = vadd.f32 2.0, %v2251_v4  ;;  %v2252_v53 = vmul.f32 %v11450_v12, %v2244_v15  ;;  %v2245_v51 = vadd.f32 2.0, %v11452_v32  ;;  %v12941_v15 = vpop.permute.xlu0 %6766 }
 0x43d   : > { %v2255_v49 = vmul.f32 %v2247_v30, %v12851_v1  ;;  %17258 = vst [vmem:[#allocation131_spill] sm:$0xff] %v12941_v15  ;;  %v17259_v12 = vmov 0  }
 0x43e   : > { %11463 = vrcp.f32 %v2267_v19  ;;  %v2268_v2 = vadd.f32 2.0, %v2252_v53  ;;  %8434 = vperm.xlu0 %11413, %v12764_v37   ;;  %v2253_v9 = vmul.f32 %v11452_v32, %v2245_v51 }
 0x440   : > { %11465 = vrcp.f32 %v2268_v2  ;;  %v12936_v27 = vpop.permute.xlu1 %6880  ;;  %v2269_v36 = vadd.f32 2.0, %v2253_v9 }
 0x441   : > { %17257 = vst [vmem:[#allocation130_spill] sm:$0xff] %v12936_v27  ;;  %v11454_v7 = vpop.eup %11453 }
 0x442   : > { %v12938_v18 = vmul.f32 %v11454_v7, %v2254_v56  ;;  %11414 = vset.pattern.permute.xlu0 %v17259_v12  ;;  %11467 = vrcp.f32 %v2269_v36  ;;  %v12956_v56 = vpop.permute.xlu0 %6714  ;;  %v2257_v7 = vmul.f32 %v2249_v40, %v12866_v61  ;;  %v2259_v61 = vmul.f32 %v2251_v4, %v12885_v13 }
 0x443   : > { %v11456_v19 = vpop.eup %11455  ;;  %17261 = vst [vmem:[#allocation133_spill] sm:$0xff] %v12956_v56 }
 0x444   : > { %v12944_v0 = vmul.f32 %v11456_v19, %v2255_v49  ;;  %v10908_v17 = vpack.c.bf16 %v12938_v18, %v2396_v45  ;;  %v2589_v32 = vmul.f32 %v12938_v18, %v12303_v22  ;;  %v2258_v19 = vmul.f32 %v2250_v29, %v12876_v28 }
 0x445   : > { %v11458_v51 = vpop.eup %11457  ;;  %v12950_v2 = vpop.permute.xlu1 %6931  ;;  %v2313_v4 = vmul.f32 %v12938_v18, %v12352_v43  ;;  %v2816_v63 = vmul.f32 %v12235_v39, %v12938_v18  ;;  %v2720_v47 = vmul.f32 %v12259_v20, %v12938_v18 }
 0x446   : > { %17260 = vst [vmem:[#allocation132_spill] sm:$0xff] %v12950_v2  ;;  %v10932_v1 = vpack.c.bf16 %v12944_v0, %v12938_v18  ;;  %v12954_v30 = vmul.f32 %v11458_v51, %v2256_v62  ;;  %2440 = vrot.lane.b32.xlu1 %v10908_v17, %s16897_s10  ;;  %v10909_v10 = vpack.c.bf16 %v12944_v0, %v12944_v0 }
 0x447   : > { %v2590_v36 = vmul.f32 %v12227_v35, %v12944_v0  ;;  %v11460_v49 = vpop.eup %11459  ;;  %v10924_v62 = vpack.c.bf16 %v2589_v32, %v2588_v42  ;;  %v2493_v17 = vmul.f32 %v12938_v18, %v12330_v52  ;;  %v2494_v29 = vmul.f32 %v12253_v57, %v12944_v0  ;;  %v12980_v32 = vpop.permute.xlu0 %7190 }
 0x448   : > { %2704 = vst [vmem:[#allocation7 + $0x88] sm:$0xff] %v10932_v1  ;;  %2442 = vrot.lane.b32.xlu0 %v10909_v10, %s16897_s10  ;;  %v12969_v21 = vmul.f32 %v11460_v49, %v2257_v7  ;;  %17262 = vst [vmem:[#allocation134_spill] sm:$0xff] %v12980_v32  ;;  %v2260_v49 = vmul.f32 %v2252_v53, %v12892_v60 }
 0x449   : > { %v11462_v51 = vpop.eup %11461  ;;  %v10925_v28 = vpack.c.bf16 %v2590_v36, %v2590_v36  ;;  %v10916_v13 = vpack.c.bf16 %v2493_v17, %v2492_v16  ;;  %v2261_v16 = vmul.f32 %v2253_v9, %v12902_v33 }
 0x44a   : > { %v12972_v24 = vmul.f32 %v11462_v51, %v2258_v19  ;;  %2632 = vrot.lane.b32.xlu1 %v10924_v62, %s16908_s16  ;;  %v12976_v40 = vpop.permute.xlu1 %6984  ;;  %v12984_v42 = vpack.c.bf16 %v12969_v21, %v12954_v30  ;;  %v10917_v62 = vpack.c.bf16 %v2494_v29, %v2494_v29  ;;  %v2312_v51 = vmul.f32 %v12341_v38, %v2396_v45 }
 0x44b   : > { %v11464_v10 = vpop.eup %11463  ;;  %v12999_v60 = vpop.permute.xlu0 %7140  ;;  %v10911_v9 = vpack.c.bf16 %v12969_v21, %v12969_v21  ;;  %v2497_v25 = vmul.f32 %v12253_v57, %v12969_v21  ;;  %v2317_v23 = vmul.f32 %v12280_v34, %v12969_v21 }
 0x44c   : > { %v12986_v7 = vmul.f32 %v11464_v10, %v2259_v61  ;;  %2634 = vrot.lane.b32.xlu0 %v10925_v28, %s16908_s16  ;;  %2705 = vst [vmem:[#allocation7 + $0x70] sm:$0xff] %v12984_v42  ;;  %v2314_v61 = vmul.f32 %v12280_v34, %v12944_v0  ;;  %17263 = vst [vmem:[#allocation135_spill] sm:$0xff] %v12999_v60  ;;  %v10900_v28 = vpack.c.bf16 %v2313_v4, %v2312_v51 }
 0x44d   : > { %v11466_v36 = vpop.eup %11465  ;;  %v10919_v55 = vpack.c.bf16 %v2497_v25, %v2497_v25  ;;  %v2996_v25 = vmul.f32 %v12362_v54, %v12938_v18 }
 0x44e   : > { %v12993_v19 = vmul.f32 %v11466_v36, %v2260_v49  ;;  %2536 = vrot.lane.b32.xlu1 %v10916_v13, %s11568_s27  ;;  %v10901_v45 = vpack.c.bf16 %v2314_v61, %v2314_v61  ;;  %v2593_v49 = vmul.f32 %v12227_v35, %v12969_v21  ;;  %v2399_v13 = vld [vmem:[#allocation4 + $0x20] sm:$0xff]  ;;  %v13022_v4 = vpack.c.bf16 %v12986_v7, %v12972_v24 }
 0x44f   : > { %v13002_v53 = vpop.permute.xlu1 %7038  ;;  %v11468_v17 = vpop.eup %11467  ;;  %v10910_v36 = vpack.c.bf16 %v12954_v30, %v2399_v13  ;;  %v13034_v51 = vmul.f32 %v12986_v7, %v12248_v50 }
 0x450   : > { %2292 = vst [vmem:[#allocation4 + $0x68] sm:$0xff] %v12993_v19  ;;  %2538 = vrot.lane.b32.xlu0 %v10917_v62, %s11568_s27  ;;  %v13006_v10 = vmul.f32 %v11468_v17, %v2261_v16  ;;  %v13013_v33 = vpop.permute.xlu0 %7407  ;;  %v2817_v62 = vmul.f32 %v12944_v0, %v12248_v50  ;;  %v13040_v16 = vmul.f32 %v12259_v20, %v12972_v24  ;;  %2706 = vst [vmem:[#allocation7 + $0xc0] sm:$0xff] %v13022_v4 }
 0x451   : > { %17265 = vst [vmem:[#allocation137_spill] sm:$0xff] %v13013_v33  ;;  %v13044_v17 = vmul.f32 %v12986_v7, %v12274_v3 }
 0x452   : > { %2356 = vrot.lane.b32.xlu1 %v10900_v28, %s16954_s15  ;;  %2293 = vst [vmem:[#allocation4 + $0x70] sm:$0xff] %v13006_v10  ;;  %v13048_v28 = vmul.f32 %v12362_v54, %v12972_v24 }
 0x454   : > { %v13010_v29 = vpop.permute.xlu1 %7089  ;;  %2358 = vrot.lane.b32.xlu0 %v10901_v45, %s16954_s15  ;;  %v13052_v45 = vmul.f32 %v12986_v7, %v12375_v48  ;;  %v13060_v59 = vpop.permute.xlu0 %7355 }
 0x455   : > { %17264 = vst [vmem:[#allocation136_spill] sm:$0xff] %v13010_v29  ;;  %17267 = vst [vmem:[#allocation139_spill] sm:$0xff] %v13060_v59  ;;  %v10903_v29 = vpack.c.bf16 %v2317_v23, %v2317_v23  ;;  %v2596_v23 = vmul.f32 %v12227_v35, %v12986_v7 }
 0x456   : > { %2944 = vrot.lane.b32.xlu1 %v10932_v1, %s11575_s9  ;;  %v13030_v1 = vmul.f32 %v12235_v39, %v12972_v24 }
 0x458   : > { %2446 = vrot.lane.b32.xlu0 %v10911_v9, %s16897_s10  ;;  %v10927_v9 = vpack.c.bf16 %v2593_v49, %v2593_v49  ;;  %v13070_v49 = vpack.c.bf16 %v13006_v10, %v12993_v19 }
 0x459   : > { %v13036_v61 = vpop.permute.xlu1 %7199 }
 0x45a   : > { %17266 = vst [vmem:[#allocation138_spill] sm:$0xff] %v13036_v61  ;;  %2444 = vrot.lane.b32.xlu1 %v10910_v36, %s16897_s10  ;;  %v10944_v36 = vpack.c.bf16 %v2817_v62, %v2816_v63  ;;  %v2721_v61 = vmul.f32 %v12944_v0, %v12274_v3  ;;  %2707 = vst [vmem:[#allocation7 + $0x68] sm:$0xff] %v13070_v49  ;;  %v2997_v63 = vmul.f32 %v12944_v0, %v12375_v48  ;;  %v13086_v62 = vpop.permute.xlu0 %7625 }
 0x45b   : > { %17269 = vst [vmem:[#allocation141_spill] sm:$0xff] %v13086_v62  ;;  %v2591_v0 = vmul.f32 %v12290_v46, %v2399_v13 }
 0x45c   : > { %2638 = vrot.lane.b32.xlu0 %v10927_v9, %s16908_s16  ;;  %v10936_v9 = vpack.c.bf16 %v2721_v61, %v2720_v47  ;;  %v10960_v12 = vpack.c.bf16 %v2997_v63, %v2996_v25  ;;  %v10913_v47 = vpack.c.bf16 %v12986_v7, %v12986_v7  ;;  %v2495_v63 = vmul.f32 %v12317_v26, %v2399_v13 }
 0x45d   : > { %v2500_v25 = vmul.f32 %v12253_v57, %v12986_v7 }
 0x45e   : > { %v13076_v58 = vpop.permute.xlu1 %7253  ;;  %2860 = vrot.lane.b32.xlu1 %v10944_v36, %s11572_s22  ;;  %v13102_v61 = vpop.permute.xlu0 %7573 }
 0x45f   : > { %17268 = vst [vmem:[#allocation140_spill] sm:$0xff] %v13076_v58  ;;  %17271 = vst [vmem:[#allocation143_spill] sm:$0xff] %v13102_v61 }
 0x460   : > { %2542 = vrot.lane.b32.xlu0 %v10919_v55, %s11568_s27  ;;  %v2592_v55 = vmul.f32 %v12954_v30, %v12303_v22 }
 0x462   : > { %2764 = vrot.lane.b32.xlu1 %v10936_v9, %s11569_s0  ;;  %v2496_v9 = vmul.f32 %v12954_v30, %v12330_v52  ;;  %v13116_v62 = vpop.permute.xlu0 %7689 }
 0x463   : > { %v13091_v36 = vpop.permute.xlu1 %7304  ;;  %17273 = vst [vmem:[#allocation145_spill] sm:$0xff] %v13116_v62  ;;  %v6728_v62 = vrot.slane %v12870_v41, %v12806_v14 }
 0x464   : > { %17270 = vst [vmem:[#allocation142_spill] sm:$0xff] %v13091_v36  ;;  %2362 = vrot.lane.b32.xlu0 %v10903_v29, %s16954_s15  ;;  %v10926_v29 = vpack.c.bf16 %v2592_v55, %v2591_v0  ;;  %v10918_v36 = vpack.c.bf16 %v2496_v9, %v2495_v63  ;;  %v2315_v0 = vmul.f32 %v12341_v38, %v2399_v13 }
 0x465   : > { %v10915_v13 = vpack.c.bf16 %v13006_v10, %v13006_v10 }
 0x466   : > { %3040 = vrot.lane.b32.xlu1 %v10960_v12, %s11573_s3  ;;  %v10929_v12 = vpack.c.bf16 %v2596_v23, %v2596_v23  ;;  %v2320_v23 = vmul.f32 %v12280_v34, %v12986_v7  ;;  %v13128_v63 = vpop.permute.xlu0 %7740  ;;  %v2599_v7 = vmul.f32 %v12227_v35, %v13006_v10 }
 0x467   : > { %17276 = vst [vmem:[#allocation148_spill] sm:$0xff] %v13128_v63  ;;  %v2724_v63 = vmul.f32 %v12969_v21, %v12274_v3 }
 0x468   : > { %v13104_v18 = vpop.permute.xlu1 %7417  ;;  %2450 = vrot.lane.b32.xlu0 %v10913_v47, %s16897_s10  ;;  %v10921_v47 = vpack.c.bf16 %v2500_v25, %v2500_v25  ;;  %v10905_v9 = vpack.c.bf16 %v2320_v23, %v2320_v23  ;;  %v10931_v23 = vpack.c.bf16 %v2599_v7, %v2599_v7  ;;  %v2723_v7 = vmul.f32 %v12259_v20, %v12954_v30 }
 0x469   : > { %17272 = vst [vmem:[#allocation144_spill] sm:$0xff] %v13104_v18  ;;  %v2316_v18 = vmul.f32 %v12954_v30, %v12352_v43 }
 0x46a   : > { %2636 = vrot.lane.b32.xlu1 %v10926_v29, %s16908_s16 }
 0x46b   : > { %v10902_v29 = vpack.c.bf16 %v2316_v18, %v2315_v0  ;;  %v2402_v18 = vld [vmem:[#allocation4 + $0x40] sm:$0xff]  ;;  %v13143_v0 = vpop.permute.xlu0 %7853 }
 0x46c   : > { %2642 = vrot.lane.b32.xlu0 %v10929_v12, %s16908_s16  ;;  %v10912_v25 = vpack.c.bf16 %v12972_v24, %v2402_v18  ;;  %17278 = vst [vmem:[#allocation150_spill] sm:$0xff] %v13143_v0 }
 0x46d   : > { %v13118_v55 = vpop.permute.xlu1 %7471 }
 0x46e   : > { %17274 = vst [vmem:[#allocation146_spill] sm:$0xff] %v13118_v55  ;;  %2540 = vrot.lane.b32.xlu1 %v10918_v36, %s11568_s27 }
 0x470   : > { %2546 = vrot.lane.b32.xlu0 %v10921_v47, %s11568_s27  ;;  %v2820_v47 = vmul.f32 %v12969_v21, %v12248_v50 }
 0x472   : > { %v13125_v12 = vpop.permute.xlu1 %7522  ;;  %2360 = vrot.lane.b32.xlu1 %v10902_v29, %s16954_s15  ;;  %v2819_v29 = vmul.f32 %v12235_v39, %v12954_v30 }
 0x473   : > { %17275 = vst [vmem:[#allocation147_spill] sm:$0xff] %v13125_v12 }
 0x474   : > { %2366 = vrot.lane.b32.xlu0 %v10905_v9, %s16954_s15  ;;  %v6765_v9 = vld [vmem:[#allocation5 + $0xc] sm:$0xf] }
 0x476   : > { %2948 = vrot.lane.b32.xlu1 %v12984_v42, %s11575_s9  ;;  %v16886_v42 = vrot.slane %v12941_v15, 4 }
 0x477   : > { %v13137_v36 = vpop.permute.xlu1 %7635 }
 0x478   : > { %17277 = vst [vmem:[#allocation149_spill] sm:$0xff] %v13137_v36  ;;  %2454 = vrot.lane.b32.xlu0 %v10915_v13, %s16897_s10  ;;  %v10946_v13 = vpack.c.bf16 %v2820_v47, %v2819_v29  ;;  %v6773_v0 = vmul.f32 %v16886_v42, %v6765_v9  ;;  %v10938_v29 = vpack.c.bf16 %v2724_v63, %v2723_v7 }
 0x479   : > { %v3000_v9 = vmul.f32 %v12969_v21, %v12375_v48  ;;  %v2595_v21 = vmul.f32 %v12972_v24, %v12303_v22 }
 0x47a   : > { %2448 = vrot.lane.b32.xlu1 %v10912_v25, %s16897_s10  ;;  %v6791_v41 = vrot.slane %v6773_v0, %v12779_v8 }
 0x47b   : > { %v13149_v35 = vpop.permute.xlu1 %7843 }
 0x47c   : > { %17279 = vst [vmem:[#allocation151_spill] sm:$0xff] %v13149_v35  ;;  %2646 = vrot.lane.b32.xlu0 %v10931_v23, %s16908_s16  ;;  %v2503_v23 = vmul.f32 %v12253_v57, %v13006_v10  ;;  %v6806_v7 = vrot.slane %v6791_v41, %v12779_v8 }
 0x47e   : > { %2864 = vrot.lane.b32.xlu1 %v10946_v13, %s11572_s22  ;;  %v13161_v25 = vpop.permute.xlu0 %6164  ;;  %v6743_v13 = vrot.slane %v6728_v62, %v12806_v14  ;;  %v10923_v42 = vpack.c.bf16 %v2503_v23, %v2503_v23  ;;  %v6809_v41 = vmul.f32 %v6806_v7, %v12927_v31  ;;  %v2318_v7 = vmul.f32 %v12341_v38, %v2402_v18 }
 0x47f   : > { %17280 = vst [vmem:[#allocation152_spill] sm:$0xff] %v13161_v25  ;;  %v13165_v47 = vpop.permute.xlu1 %7791  ;;  %v2999_v25 = vmul.f32 %v12362_v54, %v12954_v30  ;;  %v2594_v30 = vmul.f32 %v12290_v46, %v2402_v18 }
 0x480   : > { %17281 = vst [vmem:[#allocation153_spill] sm:$0xff] %v13165_v47  ;;  %3439 = vperm.xlu0 %11414, %v12764_v37   ;;  %v6746_v62 = vmul.f32 %v6743_v13, %v12956_v56  ;;  %v17326_v56 = vld [vmem:[#allocation40_spill] sm:$0xff] }
 0x481   : > { %v10962_v63 = vpack.c.bf16 %v3000_v9, %v2999_v25  ;;  %v10928_v23 = vpack.c.bf16 %v2595_v21, %v2594_v30  ;;  %v2319_v21 = vmul.f32 %v12972_v24, %v12352_v43 }
 0x482   : > { %2768 = vrot.lane.b32.xlu1 %v10938_v29, %s11569_s0  ;;  %v6843_v29 = vrot.slane %v6773_v0, %v12788_v5 }
 0x483   : > { %v13175_v35 = vpop.permute.xlu0 %6216 }
 0x484   : > { %17282 = vst [vmem:[#allocation154_spill] sm:$0xff] %v13175_v35  ;;  %v13177_v57 = vpop.permute.xlu1 %7907  ;;  %2550 = vrot.lane.b32.xlu0 %v10923_v42, %s11568_s27  ;;  %v2499_v42 = vmul.f32 %v12972_v24, %v12330_v52  ;;  %v6858_v13 = vrot.slane %v6843_v29, %v12788_v5  ;;  %v6894_v35 = vrot.slane %v6773_v0, %v12798_v11 }
 0x485   : > { %17283 = vst [vmem:[#allocation155_spill] sm:$0xff] %v13177_v57  ;;  %v2323_v29 = vmul.f32 %v12280_v34, %v13006_v10  ;;  %v13220_v10 = vld [vmem:[#allocation5 + $0xc] sm:$0xf] }
 0x486   : > { %3044 = vrot.lane.b32.xlu1 %v10962_v63, %s11573_s3  ;;  %v2498_v63 = vmul.f32 %v12317_v26, %v2402_v18  ;;  %v6861_v30 = vmul.f32 %v6858_v13, %v12932_v44  ;;  %v6909_v24 = vrot.slane %v6894_v35, %v12798_v11  ;;  %v7052_v35 = vrot.slane %v13220_v10, %v12788_v5 }
 0x487   : > { %v10907_v13 = vpack.c.bf16 %v2323_v29, %v2323_v29 }
 0x488   : > { %6754 = vrot.lane.b32.xlu0 %v6746_v62, %s11686_s28  ;;  %v13192_v9 = vpop.permute.xlu0 %6267  ;;  %v10920_v62 = vpack.c.bf16 %v2499_v42, %v2498_v63  ;;  %v10904_v42 = vpack.c.bf16 %v2319_v21, %v2318_v7  ;;  %v16896_v21 = vrot.slane %v12980_v32, 4  ;;  %v7154_v7 = vrot.slane %v13220_v10, %v12806_v14 }
 0x489   : > { %v13190_v25 = vpop.permute.xlu1 %7958  ;;  %17285 = vst [vmem:[#allocation157_spill] sm:$0xff] %v13192_v9 }
 0x48a   : > { %17284 = vst [vmem:[#allocation156_spill] sm:$0xff] %v13190_v25  ;;  %2640 = vrot.lane.b32.xlu1 %v10928_v23, %s16908_s16  ;;  %v7169_v34 = vrot.slane %v7154_v7, %v12806_v14  ;;  %v16901_v7 = vrot.slane %v13013_v33, 4 }
 0x48c   : > { %6817 = vrot.lane.b32.xlu0 %v6809_v41, %s16899_s23  ;;  %v13209_v9 = vpop.permute.xlu0 %6318  ;;  %v6945_v41 = vrot.slane %v6773_v0, %v12806_v14  ;;  %v2405_v0 = vld [vmem:[#allocation4 + $0x60] sm:$0xff] }
 0x48d   : > { %17287 = vst [vmem:[#allocation159_spill] sm:$0xff] %v13209_v9 }
 0x48e   : > { %2544 = vrot.lane.b32.xlu1 %v10920_v62, %s11568_s27  ;;  %v13207_v23 = vpop.permute.xlu1 %8009  ;;  %v6912_v62 = vmul.f32 %v6909_v24, %v12936_v27 }
 0x48f   : > { %17286 = vst [vmem:[#allocation158_spill] sm:$0xff] %v13207_v23  ;;  %v17313_v23 = vld [vmem:[#allocation54_spill] sm:$0xff] }
 0x490   : > { %6869 = vrot.lane.b32.xlu0 %v6861_v30, %s16899_s23  ;;  %v13215_v63 = vpop.permute.xlu0 %6382  ;;  %v6960_v30 = vrot.slane %v6945_v41, %v12806_v14 }
 0x491   : > { %17288 = vst [vmem:[#allocation160_spill] sm:$0xff] %v13215_v63 }
 0x492   : > { %2364 = vrot.lane.b32.xlu1 %v10904_v42, %s16954_s15  ;;  %v10914_v42 = vpack.c.bf16 %v12993_v19, %v2405_v0  ;;  %v6963_v41 = vmul.f32 %v6960_v30, %v12950_v2 }
 0x493   : > { %v13217_v18 = vpop.permute.xlu1 %8062 }
 0x494   : > { %17289 = vst [vmem:[#allocation161_spill] sm:$0xff] %v13217_v18  ;;  %2370 = vrot.lane.b32.xlu0 %v10907_v13, %s16954_s15  ;;  %v13235_v24 = vpop.permute.xlu0 %6434  ;;  %v7067_v13 = vrot.slane %v7052_v35, %v12788_v5  ;;  %v17293_v35 = vpack.c.bf16 %v13034_v51, %v13030_v1  ;;  %v17296_v1 = vpack.c.bf16 %v13044_v17, %v13040_v16 }
 0x495   : > { %17291 = vst [vmem:[#allocation163_spill] sm:$0xff] %v13235_v24  ;;  %v2598_v51 = vmul.f32 %v12993_v19, %v12303_v22  ;;  %v17299_v17 = vpack.c.bf16 %v13052_v45, %v13048_v28  ;;  %v2501_v45 = vmul.f32 %v12317_v26, %v2405_v0 }
 0x496   : > { %2952 = vrot.lane.b32.xlu1 %v13022_v4, %s11575_s9  ;;  %v13243_v4 = vmul.f32 %v16896_v21, %v13220_v10  ;;  %v7070_v63 = vmul.f32 %v7067_v13, %v13002_v53  ;;  %v7172_v21 = vmul.f32 %v7169_v34, %v12999_v60 }
 0x498   : > { %v13231_v29 = vpop.permute.xlu1 %8116  ;;  %6920 = vrot.lane.b32.xlu0 %v6912_v62, %s16899_s23  ;;  %v7267_v30 = vrot.slane %v13243_v4, %v12788_v5  ;;  %v7369_v9 = vrot.slane %v13243_v4, %v12806_v14 }
 0x499   : > { %17290 = vst [vmem:[#allocation162_spill] sm:$0xff] %v13231_v29 }
 0x49a   : > { %2452 = vrot.lane.b32.xlu1 %v10914_v42, %s16897_s10  ;;  %v13256_v42 = vpop.permute.xlu0 %8268  ;;  %s11691_s10 = smov 78   ;;  %v7282_v13 = vrot.slane %v7267_v30, %v12788_v5  ;;  %v7384_v16 = vrot.slane %v7369_v9, %v12806_v14 }
 0x49b   : > { %17294 = vst [vmem:[#allocation165_spill] sm:$0xff] %v13256_v42  ;;  %v17312_v42 = vld [vmem:[#allocation46_spill] sm:$0xff] }
 0x49c   : > { %6971 = vrot.lane.b32.xlu0 %v6963_v41, %s16899_s23  ;;  %v7406_v41 = vld [vmem:[#allocation5 + $0xc] sm:$0xf]  ;;  %s11692_s23 = smov 77   ;;  %v7387_v9 = vmul.f32 %v7384_v16, %v13060_v59  ;;  %v2781_v29 = vrot.slane %v17312_v42, 4 }
 0x49d   : > { %v13247_v62 = vpop.permute.xlu1 %8167  ;;  %v13272_v34 = vmul.f32 %v16901_v7, %v7406_v41 }
 0x49e   : > { %17292 = vst [vmem:[#allocation164_spill] sm:$0xff] %v13247_v62  ;;  %2868 = vrot.lane.b32.xlu1 %v17293_v35, %s11572_s22  ;;  %v7285_v35 = vmul.f32 %v7282_v13, %v13076_v58 }
 0x49f   : > { %v7587_v22 = vrot.slane %v13272_v34, %v12806_v14 }
 0x4a0   : > { %7078 = vrot.lane.b32.xlu0 %v7070_v63, %s11691_s10 }
 0x4a1   : > { %v13261_v24 = vpop.permute.xlu1 %6485  ;;  %v7602_v16 = vrot.slane %v7587_v22, %v12806_v14 }
 0x4a2   : > { %17295 = vst [vmem:[#allocation166_spill] sm:$0xff] %v13261_v24  ;;  %2772 = vrot.lane.b32.xlu1 %v17296_v1, %s11569_s0  ;;  %v7485_v24 = vrot.slane %v13272_v34, %v12788_v5  ;;  %v2502_v1 = vmul.f32 %v12993_v19, %v12330_v52 }
 0x4a4   : > { %7180 = vrot.lane.b32.xlu0 %v7172_v21, %s11691_s10  ;;  %v2597_v21 = vmul.f32 %v12290_v46, %v2405_v0  ;;  %v7500_v7 = vrot.slane %v7485_v24, %v12788_v5 }
 0x4a5   : > { %v13277_v63 = vpop.permute.xlu0 %8218  ;;  %v13279_v30 = vpop.permute.xlu1 %8278 }
 0x4a6   : > { %17297 = vst [vmem:[#allocation167_spill] sm:$0xff] %v13277_v63  ;;  %17298 = vst [vmem:[#allocation168_spill] sm:$0xff] %v13279_v30  ;;  %3048 = vrot.lane.b32.xlu1 %v17299_v17, %s11573_s3  ;;  %v10930_v41 = vpack.c.bf16 %v2598_v51, %v2597_v21  ;;  %v10922_v51 = vpack.c.bf16 %v2502_v1, %v2501_v45  ;;  %v7503_v24 = vmul.f32 %v7500_v7, %v13118_v55  ;;  %v17311_v30 = vld [vmem:[#allocation138_spill] sm:$0xff] }
 0x4a7   : > { %v2321_v21 = vmul.f32 %v12341_v38, %v2405_v0 }
 0x4a8   : > { %7293 = vrot.lane.b32.xlu0 %v7285_v35, %s11692_s23  ;;  %v2322_v35 = vmul.f32 %v12993_v19, %v12352_v43  ;;  %v7605_v19 = vmul.f32 %v7602_v16, %v13102_v61 }
 0x4a9   : > { %v13293_v13 = vpop.permute.xlu0 %6536 }
 0x4aa   : > { %17300 = vst [vmem:[#allocation169_spill] sm:$0xff] %v13293_v13  ;;  %v13299_v28 = vpop.permute.xlu1 %8332  ;;  %2644 = vrot.lane.b32.xlu1 %v10930_v41, %s16908_s16  ;;  %s11693_s16 = smov 76   ;;  %v10906_v41 = vpack.c.bf16 %v2322_v35, %v2321_v21  ;;  %v11694_v35 = vmov 97   ;;  %v7000_v21 = vrot.slane %v13220_v10, %v12779_v8 }
 0x4ab   : > { %17301 = vst [vmem:[#allocation170_spill] sm:$0xff] %v13299_v28 }
 0x4ac   : > { %7395 = vrot.lane.b32.xlu0 %v7387_v9, %s11692_s23  ;;  %v7015_v43 = vrot.slane %v7000_v21, %v12779_v8  ;;  %v7215_v21 = vrot.slane %v13243_v4, %v12779_v8 }
 0x4ad   : > { %v13306_v17 = vpop.permute.xlu0 %6600 }
 0x4ae   : > { %17302 = vst [vmem:[#allocation171_spill] sm:$0xff] %v13306_v17  ;;  %2548 = vrot.lane.b32.xlu1 %v10922_v51, %s11568_s27 }
 0x4af   : > { %v13312_v52 = vpop.permute.xlu1 %8383 }
 0x4b0   : > { %17303 = vst [vmem:[#allocation172_spill] sm:$0xff] %v13312_v52  ;;  %7511 = vrot.lane.b32.xlu0 %v7503_v24, %s11693_s16 }
 0x4b1   : > { %v13315_v1 = vpop.permute.xlu0 %6652 }
 0x4b2   : > { %17304 = vst [vmem:[#allocation173_spill] sm:$0xff] %v13315_v1  ;;  %2368 = vrot.lane.b32.xlu1 %v10906_v41, %s16954_s15  ;;  %v11695_v41 = vmov 98   ;;  %s11697_s15 = smov 64  }
 0x4b3   : > { %v13319_v9 = vpop.permute.xlu1 %6703 }
 0x4b4   : > { %17305 = vst [vmem:[#allocation174_spill] sm:$0xff] %v13319_v9  ;;  %7613 = vrot.lane.b32.xlu0 %v7605_v19, %s11693_s16  ;;  %v11494_v19 = vld [vmem:[%s11886_s4] sm:$0xf]  ;;  %v2961_v9 = vrot.slane %v12447_v6, 4  ;;  %v17308_v6 = vmov 0   ;;  %s17319_s4 = sld [smem:[#allocation14_spill]] }
 0x4b5   : > { %v13322_v22 = vpop.permute.xlu0 %8486 }
 0x4b6   : > { %17306 = vst [vmem:[#allocation175_spill] sm:$0xff] %v13322_v22  ;;  %2956 = vrot.lane.b32.xlu1 %v13070_v49, %s11575_s9 }
 0x4b8   : > { %v13326_v0 = vpop.permute.xlu1 %2440 }
 0x4b9   : > { %v13328_v7 = vpop.permute.xlu0 %8434 }
 0x4ba   : > { %17307 = vst [vmem:[#allocation176_spill] sm:$0xff] %v13328_v7  ;;  %8496 = vperm.xlu1 %11415, %v12764_v37  }
 0x4bc   : > { %v13331_v45 = vpop.permute.xlu1 %2632 }
 0x4bd   : > { %v13333_v51 = vpop.permute.xlu0 %2442 }
 0x4be   : > { %11416 = vset.pattern.permute.xlu1 %v11694_v35  ;;  %v7103_v35 = vrot.slane %v13220_v10, %v12798_v11 }
 0x4bf   : > { %8550 = vperm.xlu1 %11416, %v12764_v37   ;;  %v11696_v37 = vmov 99  }
 0x4c0   : > { %v13336_v24 = vpop.permute.xlu1 %2536  ;;  %v7118_v17 = vrot.slane %v7103_v35, %v12798_v11  ;;  %v7230_v35 = vrot.slane %v7215_v21, %v12779_v8 }
 0x4c1   : > { %v13338_v16 = vpop.permute.xlu0 %2634 }
 0x4c3   : > { %11417 = vset.pattern.permute.xlu1 %v11695_v41  ;;  %v7018_v41 = vmul.f32 %v7015_v43, %v12976_v40 }
 0x4c4   : > { %8601 = vperm.xlu1 %11417, %v11494_v19   ;;  %v13343_v38 = vpop.permute.xlu1 %2356 }
 0x4c5   : > { %v13348_v26 = vpop.permute.xlu0 %2538 }
 0x4c8   : > { %11418 = vset.pattern.permute.xlu1 %v11696_v37  ;;  %v2945_v46 = vpop.permute.xlu1 %2944 }
 0x4c9   : > { %v2960_v1 = vrot.slane %v2945_v46, 4  ;;  %8652 = vperm.xlu1 %11418, %v11494_v19   ;;  %v13362_v37 = vpop.permute.xlu0 %2358  ;;  %v17309_v19 = vld [vmem:[#allocation136_spill] sm:$0xff] }
 0x4ca   : > { %v7121_v43 = vmul.f32 %v7118_v17, %v17309_v19 }
 0x4cb   : > { %v2968_v13 = vsel %vm1602_vm4, %v2960_v1, %v2961_v9  ;;  %v2814_v1 = vld [vmem:[#allocation4 + $0x70] sm:$0xff]  ;;  %v17310_v9 = vld [vmem:[#allocation38_spill] sm:$0xff] }
 0x4cc   : > { %v13357_v10 = vsel %vm1942_vm5, %v2945_v46, %v2968_v13  ;;  %v13359_v7 = vpop.permute.xlu1 %2444  ;;  %v2877_v22 = vrot.slane %v17310_v9, 4  ;;  %v2813_v46 = vld [vmem:[#allocation4 + $0x68] sm:$0xff]  ;;  %v2826_v63 = vmul.f32 %v2814_v1, %v12248_v50 }
 0x4cd   : > { %7026 = vrot.lane.b32.xlu1 %v7018_v41, %s11691_s10  ;;  %v7233_v41 = vmul.f32 %v7230_v35, %v17311_v30  ;;  %v13372_v62 = vpop.permute.xlu0 %2446  ;;  %v2729_v42 = vmul.f32 %v12259_v20, %v2813_v46 }
 0x4ce   : > { %11419 = vset.pattern.permute.xlu1 %v17308_v6 }
 0x4d0   : > { %v2861_v52 = vpop.permute.xlu1 %2860 }
 0x4d1   : > { %v2876_v28 = vrot.slane %v2861_v52, 4  ;;  %7129 = vrot.lane.b32.xlu1 %v7121_v43, %s11691_s10  ;;  %v2825_v43 = vmul.f32 %v12235_v39, %v2813_v46  ;;  %v13388_v25 = vpop.permute.xlu0 %2638 }
 0x4d3   : > { %v2884_v13 = vsel %vm1602_vm4, %v2876_v28, %v2877_v22  ;;  %v10950_v28 = vpack.c.bf16 %v2826_v63, %v2825_v43  ;;  %v2730_v22 = vmul.f32 %v2814_v1, %v12274_v3  ;;  %v3006_v63 = vmul.f32 %v2814_v1, %v12375_v48  ;;  %v17318_v48 = vld [vmem:[#allocation35_spill] sm:$0xff] }
 0x4d4   : > { %v13375_v17 = vsel %vm1667_vm8, %v2861_v52, %v2884_v13  ;;  %v2765_v21 = vpop.permute.xlu1 %2764  ;;  %v3057_v52 = vrot.slane %v17313_v23, 4  ;;  %v3005_v23 = vmul.f32 %v12362_v54, %v2813_v46  ;;  %v7536_v46 = vrot.slane %v13272_v34, %v12798_v11 }
 0x4d5   : > { %v2780_v18 = vrot.slane %v2765_v21, 4  ;;  %7241 = vrot.lane.b32.xlu1 %v7233_v41, %s11692_s23  ;;  %v7318_v41 = vrot.slane %v13243_v4, %v12798_v11  ;;  %v7433_v4 = vrot.slane %v13272_v34, %v12779_v8  ;;  %v2963_v54 = vrot.slane %v17318_v48, 4 }
 0x4d6   : > { %v10966_v20 = vpack.c.bf16 %v3006_v63, %v3005_v23  ;;  %v7551_v63 = vrot.slane %v7536_v46, %v12798_v11  ;;  %v17317_v23 = vld [vmem:[#allocation144_spill] sm:$0xff] }
 0x4d7   : > { %v2788_v9 = vsel %vm1602_vm4, %v2780_v18, %v2781_v29  ;;  %v10942_v29 = vpack.c.bf16 %v2730_v22, %v2729_v42  ;;  %v7624_v22 = vld [vmem:[#allocation5 + $0xc] sm:$0xf] }
 0x4d8   : > { %v13383_v35 = vsel %vm1725_vm7, %v2765_v21, %v2788_v9  ;;  %v3041_v50 = vpop.permute.xlu1 %3040  ;;  %v7333_v9 = vrot.slane %v7318_v41, %v12798_v11  ;;  %v7448_v41 = vrot.slane %v7433_v4, %v12779_v8  ;;  %v7554_v4 = vmul.f32 %v7551_v63, %v13125_v12 }
 0x4d9   : > { %v3056_v13 = vrot.slane %v3041_v50, 4  ;;  %2872 = vrot.lane.b32.xlu1 %v10950_v28, %s11572_s22  ;;  %v17314_v28 = vld [vmem:[#allocation141_spill] sm:$0xff] }
 0x4da   : > { %v16949_v3 = vrot.slane %v17314_v28, 4 }
 0x4db   : > { %v3064_v18 = vsel %vm1602_vm4, %v3056_v13, %v3057_v52  ;;  %v13405_v52 = vpop.permute.xlu0 %2542 }
 0x4dc   : > { %v13395_v21 = vsel %vm1563_vm9, %v3041_v50, %v3064_v18  ;;  %v13397_v43 = vpop.permute.xlu1 %2636  ;;  %v17315_v50 = vld [vmem:[#allocation142_spill] sm:$0xff]  ;;  %v13415_v42 = vmul.f32 %v16949_v3, %v7624_v22 }
 0x4dd   : > { %2776 = vrot.lane.b32.xlu1 %v10942_v29, %s11569_s0  ;;  %v7336_v13 = vmul.f32 %v7333_v9, %v17315_v50  ;;  %v7451_v9 = vmul.f32 %v7448_v41, %v17317_v23  ;;  %v17325_v50 = vld [vmem:[#allocation36_spill] sm:$0xff] }
 0x4de   : > { %17316 = vst [vmem:[#allocation38_spill] sm:$0xff] %v13415_v42  ;;  %v2881_v58 = vrot.slane %v17325_v50, 4  ;;  %v17327_v50 = vld [vmem:[#allocation50_spill] sm:$0xff] }
 0x4df   : > { %v13421_v29 = vpop.permute.xlu0 %2362  ;;  %v3061_v31 = vrot.slane %v17327_v50, 4 }
 0x4e0   : > { %v13407_v1 = vpop.permute.xlu1 %2540 }
 0x4e1   : > { %3052 = vrot.lane.b32.xlu1 %v10966_v20, %s11573_s3  ;;  %v7651_v20 = vrot.slane %v13415_v42, %v12779_v8  ;;  %v17321_v42 = vld [vmem:[#allocation48_spill] sm:$0xff] }
 0x4e2   : > { %v2783_v41 = vrot.slane %v17321_v42, 4 }
 0x4e3   : > { %v13432_v39 = vpop.permute.xlu0 %2450 }
 0x4e4   : > { %v13418_v18 = vpop.permute.xlu1 %2360 }
 0x4e5   : > { %7344 = vrot.lane.b32.xlu1 %v7336_v13, %s11692_s23  ;;  %v7666_v13 = vrot.slane %v7651_v20, %v12779_v8 }
 0x4e7   : > { %v7669_v63 = vmul.f32 %v7666_v13, %v13137_v36 }
 0x4e8   : > { %v2949_v34 = vpop.permute.xlu1 %2948 }
 0x4e9   : > { %v2962_v22 = vrot.slane %v2949_v34, 4  ;;  %7459 = vrot.lane.b32.xlu1 %v7451_v9, %s11693_s16  ;;  %v17320_v9 = vld [vmem:[#allocation39_spill] sm:$0xff] }
 0x4eb   : > { %v2970_v3 = vsel %vm1602_vm4, %v2962_v22, %v2963_v54  ;;  %v2879_v54 = vrot.slane %v17320_v9, 4 }
 0x4ec   : > { %v13435_v46 = vsel %vm1942_vm5, %v2949_v34, %v2970_v3  ;;  %v13437_v57 = vpop.permute.xlu1 %2448  ;;  %v11431_v3 = vld [vmem:[%s17319_s4 + $0x4] ss:$12 sps:$4 sm:$0xff]   ;;  %v2643_v34 = vpop.permute.xlu0 %2642 }
 0x4ed   : > { %7562 = vrot.lane.b32.xlu1 %v7554_v4, %s11693_s16  ;;  %3357 = vmatprep.mubr.bf16.mxu1 %v11431_v3 }
 0x4f0   : > { %v2865_v20 = vpop.permute.xlu1 %2864  ;;  %v13458_v36 = vpop.permute.xlu0 %2546 }
 0x4f1   : > { %v2878_v22 = vrot.slane %v2865_v20, 4  ;;  %7677 = vrot.lane.b32.xlu1 %v7669_v63, %s11697_s15 }
 0x4f3   : > { %v2886_v47 = vsel %vm1602_vm4, %v2878_v22, %v2879_v54 }
 0x4f4   : > { %v13450_v4 = vsel %vm1667_vm8, %v2865_v20, %v2886_v47  ;;  %v2769_v48 = vpop.permute.xlu1 %2768  ;;  %v17322_v47 = vld [vmem:[#allocation57_spill] sm:$0xff] }
 0x4f5   : > { %v2782_v61 = vrot.slane %v2769_v48, 4  ;;  %v3059_v20 = vrot.slane %v17322_v47, 4 }
 0x4f7   : > { %v2790_v63 = vsel %vm1602_vm4, %v2782_v61, %v2783_v41 }
 0x4f8   : > { %v13461_v54 = vsel %vm1725_vm7, %v2769_v48, %v2790_v63  ;;  %v3045_v22 = vpop.permute.xlu1 %3044  ;;  %v13476_v63 = vpop.permute.xlu0 %2366 }
 0x4f9   : > { %v3058_v3 = vrot.slane %v3045_v22, 4 }
 0x4fb   : > { %v3066_v12 = vsel %vm1602_vm4, %v3058_v3, %v3059_v20  ;;  %v17323_v20 = vld [vmem:[#allocation33_spill] sm:$0xff] }
 0x4fc   : > { %v13470_v9 = vsel %vm1563_vm9, %v3045_v22, %v3066_v12  ;;  %v2641_v61 = vpop.permute.xlu1 %2640  ;;  %v13480_v42 = vpop.permute.xlu0 %2454  ;;  %v2965_v3 = vrot.slane %v17323_v20, 4 }
 0x500   : > { %v13478_v47 = vpop.permute.xlu1 %2544  ;;  %v2647_v22 = vpop.permute.xlu0 %2646 }
 0x501   : > { %v2655_v50 = vrot.slane %v2647_v22, 4 }
 0x504   : > { %v13482_v55 = vpop.permute.xlu1 %2364  ;;  %v13491_v41 = vpop.permute.xlu0 %3439 }
 0x505   : > { %17324 = vst [vmem:[#allocation46_spill] sm:$0xff] %v13491_v41  ;;  %v2652_v41 = vrot.slane %v2641_v61, 4 }
 0x508   : > { %v2953_v13 = vpop.permute.xlu1 %2952  ;;  %v2551_v2 = vpop.permute.xlu0 %2550 }
 0x509   : > { %v2964_v12 = vrot.slane %v2953_v13, 4 }
 0x50b   : > { %v2972_v28 = vsel %vm1602_vm4, %v2964_v12, %v2965_v3  ;;  %v2785_v3 = vrot.slane %v17326_v56, 4  ;;  %v2653_v56 = vrot.slane %v2643_v34, 4  ;;  %v2556_v34 = vrot.slane %v13478_v47, 4 }
 0x50c   : > { %v13487_v48 = vsel %vm1942_vm5, %v2953_v13, %v2972_v28  ;;  %v13489_v23 = vpop.permute.xlu1 %2452  ;;  %v2650_v13 = vrot.slane %v13397_v43, 4 }
 0x50d   : > { %v2660_v60 = vsel %vm1602_vm4, %v2652_v41, %v2653_v56 }
 0x510   : > { %v2869_v59 = vpop.permute.xlu1 %2868 }
 0x511   : > { %v2880_v33 = vrot.slane %v2869_v59, 4 }
 0x513   : > { %v2888_v30 = vsel %vm1602_vm4, %v2880_v33, %v2881_v58  ;;  %v2651_v33 = vrot.slane %v13388_v25, 4 }
 0x514   : > { %v13496_v20 = vsel %vm1667_vm8, %v2869_v59, %v2888_v30  ;;  %v2773_v27 = vpop.permute.xlu1 %2772  ;;  %v13506_v59 = vpop.permute.xlu0 %6754  ;;  %v2649_v30 = vrot.slane %v13338_v16, 4 }
 0x515   : > { %v2784_v12 = vrot.slane %v2773_v27, 4  ;;  %17328 = vst [vmem:[#allocation54_spill] sm:$0xff] %v13506_v59 }
 0x517   : > { %v2792_v28 = vsel %vm1602_vm4, %v2784_v12, %v2785_v3  ;;  %v2658_v3 = vsel %vm1602_vm4, %v2650_v13, %v2651_v33  ;;  %v2554_v13 = vrot.slane %v13407_v1, 4  ;;  %v2559_v33 = vrot.slane %v2551_v2, 4 }
 0x518   : > { %v13502_v44 = vsel %vm1725_vm7, %v2773_v27, %v2792_v28  ;;  %v3049_v32 = vpop.permute.xlu1 %3048  ;;  %v2648_v28 = vrot.slane %v13331_v45, 4  ;;  %v2659_v16 = vsel %vm1765_vm6, %v13397_v43, %v2658_v3  ;;  %v2555_v3 = vrot.slane %v13405_v52, 4 }
 0x519   : > { %v3060_v58 = vrot.slane %v3049_v32, 4  ;;  %v2552_v2 = vrot.slane %v13336_v24, 4 }
 0x51a   : > { %v2656_v25 = vsel %vm1602_vm4, %v2648_v28, %v2649_v30 }
 0x51b   : > { %v3068_v15 = vsel %vm1602_vm4, %v3060_v58, %v3061_v31  ;;  %v13524_v58 = vpop.permute.xlu0 %6817  ;;  %v2657_v43 = vsel %vm1765_vm6, %v13331_v45, %v2656_v25  ;;  %v2462_v45 = vrot.slane %v13489_v23, 4 }
 0x51c   : > { %v13512_v12 = vsel %vm1563_vm9, %v3049_v32, %v3068_v15  ;;  %v2645_v27 = vpop.permute.xlu1 %2644  ;;  %v2557_v15 = vrot.slane %v13458_v36, 4  ;;  %v2661_v32 = vsel %vm1765_vm6, %v2641_v61, %v2660_v60  ;;  %17329 = vst [vmem:[#allocation35_spill] sm:$0xff] %v13524_v58  ;;  %v10678_v61 = vcombine.high %v2657_v43, %v2659_v16 }
 0x51d   : > { %v2654_v19 = vrot.slane %v2645_v27, 4  ;;  %v10677_v25 = vcombine.low %v2657_v43, %v2659_v16  ;;  %v2461_v16 = vrot.slane %v13432_v39, 4 }
 0x51e   : > { %v2564_v36 = vsel %vm1602_vm4, %v2556_v34, %v2557_v15  ;;  %v2463_v15 = vrot.slane %v13480_v42, 4 }
 0x51f   : > { %v2662_v31 = vsel %vm1602_vm4, %v2654_v19, %v2655_v50  ;;  %v2553_v19 = vrot.slane %v13348_v26, 4  ;;  %v2565_v26 = vsel %vm1707_vm3, %v13478_v47, %v2564_v36  ;;  %v13539_v52 = vpop.permute.xlu0 %6869  ;;  %v2459_v47 = vrot.slane %v13372_v62, 4 }
 0x520   : > { %v2663_v41 = vsel %vm1765_vm6, %v2645_v27, %v2662_v31  ;;  %v2549_v22 = vpop.permute.xlu1 %2548  ;;  %v2562_v31 = vsel %vm1602_vm4, %v2554_v13, %v2555_v3  ;;  %17330 = vst [vmem:[#allocation39_spill] sm:$0xff] %v13539_v52  ;;  %v2458_v13 = vrot.slane %v13359_v7, 4  ;;  %v2457_v3 = vrot.slane %v13333_v51, 4  ;;  %v17427_v52 = vld [vmem:[#allocation78_spill] sm:$0xff] }
 0x521   : > { %v2558_v30 = vrot.slane %v2549_v22, 4  ;;  %v10680_v56 = vcombine.high %v2661_v32, %v2663_v41  ;;  %v10679_v28 = vcombine.low %v2661_v32, %v2663_v41  ;;  %v2560_v34 = vsel %vm1602_vm4, %v2552_v2, %v2553_v19 }
 0x522   : > { %v2460_v32 = vrot.slane %v13437_v57, 4  ;;  %v2561_v42 = vsel %vm1707_vm3, %v13336_v24, %v2560_v34  ;;  %v2456_v2 = vrot.slane %v13326_v0, 4 }
 0x523   : > { %v2566_v60 = vsel %vm1602_vm4, %v2558_v30, %v2559_v33  ;;  %3325 = vmatprep.subr.bf16.mxu1 %v10680_v56  ;;  %v2563_v30 = vsel %vm1707_vm3, %v13407_v1, %v2562_v31  ;;  %v2466_v31 = vsel %vm1602_vm4, %v2458_v13, %v2459_v47  ;;  %v2375_v13 = vrot.slane %v13421_v29, 4 }
 0x524   : > { %v2567_v27 = vsel %vm1707_vm3, %v2549_v22, %v2566_v60  ;;  %v2369_v50 = vpop.permute.xlu1 %2368  ;;  %3326 = vmatpush1.bf16.msra.mxu1 %v10679_v28  ;;  %v17331_v22 = vld [vmem:[#allocation34_spill] sm:$0xff]  ;;  %v2470_v28 = vsel %vm1602_vm4, %v2462_v45, %v2463_v15  ;;  %v2468_v36 = vsel %vm1602_vm4, %v2460_v32, %v2461_v16  ;;  %v10674_v60 = vcombine.high %v2561_v42, %v2563_v30 }
 0x525   : > { %3327 = vmatprep.subr.bf16.mxu1 %v10678_v61  ;;  %v10676_v41 = vcombine.high %v2565_v26, %v2567_v27  ;;  %v2967_v33 = vrot.slane %v17331_v22, 4  ;;  %v10675_v19 = vcombine.low %v2565_v26, %v2567_v27  ;;  %v2471_v62 = vsel %vm1647_vm11, %v13489_v23, %v2470_v28  ;;  %v2371_v61 = vpop.permute.xlu0 %2370 }
 0x526   : > { %v2378_v24 = vrot.slane %v2369_v50, 4  ;;  %v2469_v51 = vsel %vm1647_vm11, %v13437_v57, %v2468_v36  ;;  %v10673_v27 = vcombine.low %v2561_v42, %v2563_v30  ;;  %v2464_v45 = vsel %vm1602_vm4, %v2456_v2, %v2457_v3 }
 0x527   : > { %v2376_v26 = vrot.slane %v13482_v55, 4  ;;  %v10672_v23 = vcombine.high %v2469_v51, %v2471_v62  ;;  %v2467_v34 = vsel %vm1647_vm11, %v13359_v7, %v2466_v31  ;;  %v2374_v15 = vrot.slane %v13418_v18, 4 }
 0x528   : > { %v2957_v56 = vpop.permute.xlu1 %2956  ;;  %3328 = vmatpush1.bf16.msra.mxu1 %v10677_v25  ;;  %v2379_v25 = vrot.slane %v2371_v61, 4  ;;  %v2377_v32 = vrot.slane %v13476_v63, 4  ;;  %v2465_v57 = vsel %vm1647_vm11, %v13326_v0, %v2464_v45  ;;  %v10671_v22 = vcombine.low %v2469_v51, %v2471_v62  ;;  %v17341_v51 = vld [vmem:[#allocation37_spill] sm:$0xff] }
 0x529   : > { %v2966_v43 = vrot.slane %v2957_v56, 4  ;;  %3329 = vmatprep.subr.bf16.mxu1 %v10676_v41  ;;  %v2372_v47 = vrot.slane %v13343_v38, 4  ;;  %v2382_v63 = vsel %vm1602_vm4, %v2374_v15, %v2375_v13  ;;  %v10669_v28 = vcombine.low %v2465_v57, %v2467_v34 }
 0x52a   : > { %v2386_v41 = vsel %vm1602_vm4, %v2378_v24, %v2379_v25  ;;  %v2384_v30 = vsel %vm1602_vm4, %v2376_v26, %v2377_v32  ;;  %v17338_v61 = vcombine.low %v13357_v10, %v13435_v46  ;;  %v17342_v25 = vld [vmem:[#allocation44_spill] sm:$0xff]  ;;  %v17344_v13 = vcombine.high %v13375_v17, %v13450_v4 }
 0x52b   : > { %v2974_v1 = vsel %vm1602_vm4, %v2966_v43, %v2967_v33  ;;  %v2373_v33 = vrot.slane %v13362_v37, 4  ;;  %v2387_v7 = vsel %vm1604_vm10, %v2369_v50, %v2386_v41  ;;  %v2385_v0 = vsel %vm1604_vm10, %v13482_v55, %v2384_v30 }
 0x52c   : > { %v2975_v39 = vsel %vm1942_vm5, %v2957_v56, %v2974_v1  ;;  %3330 = vmatpush1.bf16.msra.mxu1 %v10675_v19  ;;  %v10670_v56 = vcombine.high %v2465_v57, %v2467_v34  ;;  %v10668_v29 = vcombine.high %v2385_v0, %v2387_v7  ;;  %v2383_v43 = vsel %vm1604_vm10, %v13418_v18, %v2382_v63  ;;  %v17343_v57 = vld [vmem:[#allocation52_spill] sm:$0xff] }
 0x52d   : > { %3331 = vmatprep.subr.bf16.mxu1 %v10674_v60  ;;  %v2380_v37 = vsel %vm1602_vm4, %v2372_v47, %v2373_v33  ;;  %v10667_v19 = vcombine.low %v2385_v0, %v2387_v7  ;;  %v10696_v1 = vcombine.high %v13487_v48, %v2975_v39  ;;  %v10695_v18 = vcombine.low %v13487_v48, %v2975_v39  ;;  %v11495_v0 = vld [vmem:[#allocation7 + $0xc0] sm:$0xff] }
 0x52e   : > { %v2381_v50 = vsel %vm1604_vm10, %v13343_v38, %v2380_v37  ;;  %v17336_v38 = vcombine.high %v13357_v10, %v13435_v46  ;;  %v2883_v48 = vrot.slane %v17341_v51, 4  ;;  %v17345_v7 = vcombine.low %v13375_v17, %v13450_v4  ;;  %v11496_v17 = vld [vmem:[#allocation7 + $0x68] sm:$0xff] }
 0x52f   : > { %v10666_v3 = vcombine.high %v2381_v50, %v2383_v43  ;;  %v10665_v36 = vcombine.low %v2381_v50, %v2383_v43  ;;  %v17346_v63 = vcombine.high %v13383_v35, %v13461_v54  ;;  %v17347_v37 = vcombine.low %v13383_v35, %v13461_v54  ;;  %v11429_v50 = vld [vmem:[%s17319_s4] ss:$12 sps:$4 sm:$0xff]   ;;  %v11432_v35 = vld [vmem:[%s17319_s4 + $0x8] ss:$12 sps:$4 sm:$0xff]   ;;  %s11700_s4 = smov 109  }
 0x530   : > { %3332 = vmatpush1.bf16.msra.mxu1 %v10673_v27  ;;  %v10683_v4 = vcombine.low %v11495_v0, %v11496_v17  ;;  %v17349_v54 = vcombine.low %v13395_v21, %v13470_v9 }
 0x531   : > { %3333 = vmatprep.subr.bf16.mxu1 %v10672_v23  ;;  %v2787_v23 = vrot.slane %v17342_v25, 4 }
 0x534   : > { %3334 = vmatpush1.bf16.msra.mxu1 %v10671_v22  ;;  %v3063_v22 = vrot.slane %v17343_v57, 4 }
 0x535   : > { %v13578_v16 = vpop.permute.xlu1 %8496  ;;  %3335 = vmatprep.subr.bf16.mxu1 %v10670_v56 }
 0x536   : > { %17332 = vst [vmem:[#allocation48_spill] sm:$0xff] %v13578_v16 }
 0x538   : > { %3336 = vmatpush1.bf16.msra.mxu1 %v10669_v28  ;;  %v10684_v28 = vcombine.high %v11495_v0, %v13070_v49  ;;  %v17348_v49 = vcombine.high %v13395_v21, %v13470_v9 }
 0x539   : > { %3337 = vmatprep.subr.bf16.mxu1 %v10668_v29  ;;  %v11426_v29 = vld [vmem:[#allocation7 + $0x8c] ss:$-24 sps:$4 sm:$0xff]  }
 0x53a   : > { %v13587_v42 = vpop.permute.xlu1 %8550 }
 0x53b   : > { %17333 = vst [vmem:[#allocation57_spill] sm:$0xff] %v13587_v42 }
 0x53c   : > { %3338 = vmatpush1.bf16.msra.mxu1 %v10667_v19 }
 0x53d   : > { %3339 = vmatprep.subr.bf16.mxu1 %v10666_v3 }
 0x53f   : > { %v13589_v55 = vpop.permute.xlu1 %8601 }
 0x540   : > { %17334 = vst [vmem:[#allocation33_spill] sm:$0xff] %v13589_v55  ;;  %3340 = vmatpush1.bf16.msra.mxu1 %v10665_v36 }
 0x541   : > { %3341 = vmatprep.subr.bf16.mxu1 %v10696_v1 }
 0x544   : > { %v13593_v60 = vpop.permute.xlu1 %8652  ;;  %3342 = vmatpush2.bf16.msra.mxu1 %v10695_v18  ;;  %v17352_v18 = vld [vmem:[#allocation41_spill] sm:$0xff] }
 0x545   : > { %17335 = vst [vmem:[#allocation36_spill] sm:$0xff] %v13593_v60  ;;  %3343 = vmatprep.subr.bf16.mxu1 %v17336_v38 }
 0x548   : > { %v13598_v62 = vpop.permute.xlu1 %7026  ;;  %3344 = vmatpush2.bf16.msra.mxu1 %v17338_v61 }
 0x549   : > { %17337 = vst [vmem:[#allocation40_spill] sm:$0xff] %v13598_v62 }
 0x54c   : > { %v13603_v2 = vpop.permute.xlu1 %7129 }
 0x54d   : > { %17339 = vst [vmem:[#allocation50_spill] sm:$0xff] %v13603_v2 }
 0x550   : > { %v13605_v31 = vpop.permute.xlu1 %7241 }
 0x551   : > { %17340 = vst [vmem:[#allocation34_spill] sm:$0xff] %v13605_v31 }
 0x554   : > { %v2873_v24 = vpop.permute.xlu1 %2872 }
 0x555   : > { %v2882_v39 = vrot.slane %v2873_v24, 4 }
 0x557   : > { %v2890_v27 = vsel %vm1602_vm4, %v2882_v39, %v2883_v48 }
 0x558   : > { %v2891_v45 = vsel %vm1667_vm8, %v2873_v24, %v2890_v27  ;;  %v2777_v26 = vpop.permute.xlu1 %2776 }
 0x559   : > { %v2786_v34 = vrot.slane %v2777_v26, 4  ;;  %v10692_v15 = vcombine.high %v13496_v20, %v2891_v45  ;;  %v10691_v10 = vcombine.low %v13496_v20, %v2891_v45 }
 0x55b   : > { %v2794_v46 = vsel %vm1602_vm4, %v2786_v34, %v2787_v23  ;;  %3345 = vmatprep.subr.bf16.mxu1 %v10692_v15 }
 0x55c   : > { %v2795_v32 = vsel %vm1725_vm7, %v2777_v26, %v2794_v46  ;;  %v3053_v41 = vpop.permute.xlu1 %3052  ;;  %3346 = vmatpush2.bf16.msra.mxu1 %v10691_v10 }
 0x55d   : > { %v3062_v33 = vrot.slane %v3053_v41, 4  ;;  %3347 = vmatprep.subr.bf16.mxu1 %v17344_v13  ;;  %v10688_v56 = vcombine.high %v13502_v44, %v2795_v32  ;;  %v10687_v47 = vcombine.low %v13502_v44, %v2795_v32  ;;  %v11428_v44 = vld [vmem:[#allocation7 + $0x88] ss:$-24 sps:$4 sm:$0xff]  }
 0x55f   : > { %v3070_v30 = vsel %vm1602_vm4, %v3062_v33, %v3063_v22  ;;  %v17354_v33 = vld [vmem:[#allocation63_spill] sm:$0xff] }
 0x560   : > { %v3071_v20 = vsel %vm1563_vm9, %v3053_v41, %v3070_v30  ;;  %3348 = vmatpush2.bf16.msra.mxu1 %v17345_v7  ;;  %v17355_v7 = vld [vmem:[#allocation47_spill] sm:$0xff] }
 0x561   : > { %3349 = vmatprep.subr.bf16.mxu1 %v10688_v56  ;;  %v10700_v43 = vcombine.high %v13512_v12, %v3071_v20  ;;  %v10699_v19 = vcombine.low %v13512_v12, %v3071_v20 }
 0x564   : > { %3350 = vmatpush2.bf16.msra.mxu1 %v10687_v47 }
 0x565   : > { %3351 = vmatprep.subr.bf16.mxu1 %v17346_v63 }
 0x568   : > { %3352 = vmatpush2.bf16.msra.mxu1 %v17347_v37 }
 0x569   : > { %3353 = vmatprep.subr.bf16.mxu1 %v10684_v28 }
 0x56c   : > { %3354 = vmatpush2.bf16.msra.mxu1 %v10683_v4 }
 0x56d   : > { %3355 = vmatprep.subr.bf16.mxu1 %v11426_v29 }
 0x570   : > { %3356 = vmatpush2.bf16.msra.mxu1 %v11428_v44 }
 0x571   : > { %3380 = vmatprep.subr.bf16.mxu1 %v10700_v43  ;;  %v17356_v43 = vld [vmem:[#allocation49_spill] sm:$0xff] }
 0x573   : > { %3358 = vmatmul.mubr.bf16.vlgmr.msra.gmra.mxu1 %v11429_v50 }
 0x574   : > { %3381 = vmatpush1.bf16.msra.mxu1 %v10699_v19  ;;  %3400 = vmatprep.mubr.bf16.mxu1 %v17308_v6 }
 0x575   : > { %3382 = vmatprep.subr.bf16.mxu1 %v17348_v49 }
 0x578   : > { %3383 = vmatpush1.bf16.msra.mxu1 %v17349_v54 }
 0x57b   : > { %10701 = vmatmul.mubr.msk.bf16.vlgmr.msra.gmra.mxu1 %vm3321_vm12, %v11432_v35  ;;  %vm6333_vm12 = vcmask 15360  }
 0x57c   : > { %9389 = vmatprep.mubr.bf16.mxu1 %v17308_v6  ;;  %v17353_v6 = vld [vmem:[#allocation108_spill] sm:$0xff] }
 0x57d   : > { %v13655_v45 = vsub.s32 4, %v17353_v6  ;;  %v13660_v25 = vsub.s32 5, %v17353_v6  ;;  %v13693_v4 = vsub.s32 6, %v17353_v6  ;;  %v13706_v54 = vsub.s32 7, %v17353_v6 }
 0x633   : > { %v3359_v3 = vpop.f32.mrf.mxu1 }
 0x634   : > { %v3360_v38 = vadd.f32 %v3359_v3, %v17352_v18 }
 0x635   : > { %v3361_v36 = vpop.f32.mrf.mxu1 }
 0x636   : > { %v3362_v24 = vadd.f32 %v3361_v36, %v17352_v18 }
 0x637   : > { %v13645_v12 = vpop.f32.mrf.mxu1 }
 0x638   : > { %17350 = vst [vmem:[#allocation37_spill] sm:$0xff] %v13645_v12 }
 0x639   : > { %v13647_v1 = vpop.f32.mrf.mxu1 }
 0x63a   : > { %17351 = vst [vmem:[#allocation44_spill] sm:$0xff] %v13647_v1 }
 0x63b   : > { %v3402_v61 = vpop.f32.mrf.mxu1 }
 0x63c   : > { %v3403_v51 = vadd.f32 %v3402_v61, %v3360_v38 }
 0x63d   : > { %v3404_v48 = vpop.f32.mrf.mxu1 }
 0x63e   : > { %3411 = vst [vmem:[#allocation6] sm:$0xff] %v3403_v51  ;;  %v3405_v21 = vadd.f32 %v3404_v48, %v3362_v24  ;;  %v17357_v51 = vld [vmem:[#allocation51_spill] sm:$0xff] }
 0x640   : > { %3412 = vst [vmem:[#allocation6 + $0x18] sm:$0xff] %v3405_v21 }
 0x645   : > { %v3415_v9 = vld [vmem:[#allocation6] sm:$0xf] }
 0x647   : > { %v3416_v39 = vld [vmem:[#allocation6 + $0x18] sm:$0xf] }
 0x648   : > { %v13651_v27 = vcombine.low %v3415_v9, %v3416_v39 }
 0x64a   : > { %3421 = vst [vmem:[#allocation5 + $0x4] sm:$0xff] %v13651_v27 }
 0x651   : > { %v13657_v26 = vld [vmem:[#allocation5] sm:$0xff]  ;;  %v13662_v23 = vld [vmem:[#allocation5 + $0x8] sm:$0xf] }
 0x652   : > { %v3821_v34 = vrot.slane %v13657_v26, %v13655_v45  ;;  %v3817_v15 = vrot.slane %v13657_v26, %v12779_v8  ;;  %v3873_v10 = vrot.slane %v13657_v26, %v13660_v25  ;;  %v3825_v46 = vrot.slane %v13662_v23, %v12779_v8  ;;  %v13724_v6 = vld [vmem:[#allocation5 + $0x8] sm:$0xf] }
 0x653   : > { %v3920_v56 = vrot.slane %v13657_v26, %v12798_v11  ;;  %v3869_v20 = vrot.slane %v13657_v26, %v12788_v5  ;;  %v3928_v37 = vrot.slane %v13662_v23, %v12798_v11  ;;  %v3877_v17 = vrot.slane %v13662_v23, %v12788_v5 }
 0x654   : > { %v3836_v32 = vrot.slane %v3821_v34, %v12779_v8  ;;  %v3832_v41 = vrot.slane %v3817_v15, %v12779_v8  ;;  %v3888_v57 = vrot.slane %v3873_v10, %v12788_v5  ;;  %v3840_v22 = vrot.slane %v3825_v46, %v12779_v8  ;;  %v17358_v46 = vld [vmem:[#allocation73_spill] sm:$0xff] }
 0x655   : > { %v3935_v0 = vrot.slane %v3920_v56, %v12798_v11  ;;  %v3884_v28 = vrot.slane %v3869_v20, %v12788_v5  ;;  %v3971_v29 = vrot.slane %v13657_v26, %v12806_v14  ;;  %v3924_v44 = vrot.slane %v13657_v26, %v13693_v4 }
 0x656   : > { %v3842_v13 = vmul.f32 %v3836_v32, %v17354_v33  ;;  %v3841_v30 = vmul.f32 %v3832_v41, %v17354_v33  ;;  %v3894_v47 = vmul.f32 %v3888_v57, %v17355_v7  ;;  %v3843_v63 = vmul.f32 %v3840_v22, %v17354_v33 }
 0x657   : > { %v3944_v50 = vmul.f32 %v3935_v0, %v17356_v43  ;;  %v3893_v19 = vmul.f32 %v3884_v28, %v17355_v7  ;;  %v3943_v49 = vrot.slane %v3928_v37, %v12798_v11  ;;  %v3892_v35 = vrot.slane %v3877_v17, %v12788_v5 }
 0x658   : > { %3849 = vrot.lane.b32.xlu1 %v3842_v13, %s11618_s25  ;;  %3847 = vrot.lane.b32.xlu0 %v3841_v30, %s11618_s25  ;;  %v3986_v3 = vrot.slane %v3971_v29, %v12806_v14  ;;  %v3975_v36 = vrot.slane %v13657_v26, %v13706_v54  ;;  %v3939_v61 = vrot.slane %v3924_v44, %v12798_v11  ;;  %v17359_v30 = vld [vmem:[#allocation86_spill] sm:$0xff] }
 0x659   : > { %v3946_v18 = vmul.f32 %v3943_v49, %v17356_v43  ;;  %v3895_v38 = vmul.f32 %v3892_v35, %v17355_v7  ;;  %v3979_v24 = vrot.slane %v13662_v23, %v12806_v14  ;;  %v4906_v10 = vrot.slane %v13724_v6, %v12779_v8 }
 0x65a   : > { %v3995_v48 = vmul.f32 %v3986_v3, %v17357_v51  ;;  %v3945_v21 = vmul.f32 %v3939_v61, %v17356_v43  ;;  %v3990_v9 = vrot.slane %v3975_v36, %v12806_v14  ;;  %v4923_v22 = vmul.f32 %v17358_v46, %v3836_v32  ;;  %v17360_v32 = vld [vmem:[#allocation76_spill] sm:$0xff] }
 0x65b   : > { %v3994_v39 = vrot.slane %v3979_v24, %v12806_v14  ;;  %v4922_v33 = vmul.f32 %v17358_v46, %v3832_v41  ;;  %v4921_v13 = vrot.slane %v4906_v10, %v12779_v8  ;;  %v4974_v56 = vmul.f32 %v17359_v30, %v3888_v57  ;;  %v17364_v10 = vld [vmem:[#allocation110_spill] sm:$0xff] }
 0x65c   : > { %3901 = vrot.lane.b32.xlu1 %v3894_v47, %s11618_s25  ;;  %3851 = vrot.lane.b32.xlu0 %v3843_v63, %s11618_s25  ;;  %v3996_v34 = vmul.f32 %v3990_v9, %v17357_v51  ;;  %v5008_v7 = vrot.slane %v13724_v6, %v12798_v11  ;;  %v4957_v47 = vrot.slane %v13724_v6, %v12788_v5 }
 0x65d   : > { %v3997_v15 = vmul.f32 %v3994_v39, %v17357_v51  ;;  %v4924_v20 = vmul.f32 %v4921_v13, %v17358_v46  ;;  %v5024_v41 = vmul.f32 %v17360_v32, %v3935_v0  ;;  %v4973_v63 = vmul.f32 %v17359_v30, %v3884_v28  ;;  %v17361_v28 = vld [vmem:[#allocation82_spill] sm:$0xff] }
 0x65e   : > { %v5023_v37 = vrot.slane %v5008_v7, %v12798_v11  ;;  %v4972_v57 = vrot.slane %v4957_v47, %v12788_v5  ;;  %v5059_v44 = vrot.slane %v13724_v6, %v12806_v14  ;;  %v5974_v0 = vrot.slane %v13651_v27, %v13655_v45 }
 0x65f   : > { %v5075_v43 = vmul.f32 %v17361_v28, %v3986_v3  ;;  %v5970_v49 = vrot.slane %v13651_v27, %v12779_v8  ;;  %v6007_v35 = vrot.slane %v13651_v27, %v12788_v5  ;;  %v6048_v36 = vrot.slane %v13651_v27, %v13693_v4 }
 0x660   : > { %3950 = vrot.lane.b32.xlu1 %v3944_v50, %s11618_s25  ;;  %3899 = vrot.lane.b32.xlu0 %v3893_v19, %s11618_s25  ;;  %v5026_v17 = vmul.f32 %v5023_v37, %v17360_v32  ;;  %v4975_v29 = vmul.f32 %v4972_v57, %v17359_v30  ;;  %v5025_v50 = vmul.f32 %v17360_v32, %v3939_v61 }
 0x661   : > { %v5074_v19 = vrot.slane %v5059_v44, %v12806_v14  ;;  %v5980_v61 = vrot.slane %v5970_v49, %v12779_v8  ;;  %v6011_v24 = vrot.slane %v13651_v27, %v13660_v25  ;;  %v6081_v51 = vrot.slane %v13651_v27, %v12806_v14 }
 0x662   : > { %v6017_v39 = vrot.slane %v6007_v35, %v12788_v5  ;;  %v6085_v32 = vrot.slane %v13651_v27, %v13706_v54 }
 0x663   : > { %v5077_v3 = vmul.f32 %v5074_v19, %v17361_v28  ;;  %v6021_v13 = vrot.slane %v6011_v24, %v12788_v5  ;;  %v6091_v30 = vrot.slane %v6081_v51, %v12806_v14 }
 0x664   : > { %3954 = vrot.lane.b32.xlu1 %v3946_v18, %s11618_s25  ;;  %3903 = vrot.lane.b32.xlu0 %v3895_v38, %s11618_s25  ;;  %v5076_v18 = vmul.f32 %v17361_v28, %v3990_v9  ;;  %v5984_v38 = vrot.slane %v5974_v0, %v12779_v8  ;;  %v6022_v46 = vmul.f32 %v6017_v39, %v17364_v10  ;;  %v3589_v28 = vld [vmem:[#allocation5 + $0x8] sm:$0xf] }
 0x665   : > { %v7068_v44 = vmul.f32 %v13002_v53, %v6017_v39 }
 0x666   : > { %v7017_v57 = vmul.f32 %v12976_v40, %v5984_v38 }
 0x668   : > { %4001 = vrot.lane.b32.xlu1 %v3995_v48, %s11618_s25  ;;  %3952 = vrot.lane.b32.xlu0 %v3945_v21, %s11618_s25  ;;  %v17362_v48 = vld [vmem:[#allocation107_spill] sm:$0xff] }
 0x669   : > { %v5986_v21 = vmul.f32 %v5984_v38, %v17362_v48  ;;  %v5985_v9 = vmul.f32 %v5980_v61, %v17362_v48 }
 0x66c   : > { %4003 = vrot.lane.b32.xlu1 %v3996_v34, %s11618_s25  ;;  %4005 = vrot.lane.b32.xlu0 %v3997_v15, %s11618_s25  ;;  %v6058_v34 = vrot.slane %v6048_v36, %v12798_v11  ;;  %s17363_s25 = smov 94   ;;  %v6044_v15 = vrot.slane %v13651_v27, %v12798_v11  ;;  %v13824_v36 = vpop.permute.xlu0 %6920 }
 0x66d   : > { %17369 = vst [vmem:[#allocation52_spill] sm:$0xff] %v13824_v36 }
 0x66e   : > { %v6054_v47 = vrot.slane %v6044_v15, %v12798_v11 }
 0x670   : > { %4930 = vrot.lane.b32.xlu1 %v4923_v22, %s11599_s19  ;;  %4928 = vrot.lane.b32.xlu0 %v4922_v33, %s11599_s19  ;;  %v17365_v22 = vld [vmem:[#allocation113_spill] sm:$0xff] }
 0x671   : > { %v6060_v33 = vmul.f32 %v6058_v34, %v17365_v22  ;;  %v6059_v37 = vmul.f32 %v6054_v47, %v17365_v22 }
 0x674   : > { %4981 = vrot.lane.b32.xlu1 %v4974_v56, %s11599_s19  ;;  %4932 = vrot.lane.b32.xlu0 %v4924_v20, %s11599_s19  ;;  %v6023_v56 = vmul.f32 %v6021_v13, %v17364_v10  ;;  %v17366_v20 = vld [vmem:[#allocation111_spill] sm:$0xff] }
 0x675   : > { %v6096_v7 = vmul.f32 %v6091_v30, %v17366_v20 }
 0x678   : > { %5030 = vrot.lane.b32.xlu1 %v5024_v41, %s11599_s19  ;;  %4979 = vrot.lane.b32.xlu0 %v4973_v63, %s11599_s19  ;;  %v17367_v41 = vld [vmem:[#allocation59_spill] sm:$0xff] }
 0x679   : > { %v3593_v63 = vrot.slane %v17367_v41, 4 }
 0x67b   : > { %v3595_v27 = vsel %vm3594_vm13, %v3593_v63, %v17367_v41  ;;  %v13822_v35 = vmul.f32 %v3593_v63, %v3589_v28 }
 0x67c   : > { %5034 = vrot.lane.b32.xlu1 %v5026_v17, %s11599_s19  ;;  %4983 = vrot.lane.b32.xlu0 %v4975_v29, %s11599_s19  ;;  %v6095_v17 = vrot.slane %v6085_v32, %v12806_v14  ;;  %v13814_v0 = vmul.f32 %v3595_v27, %v13657_v26 }
 0x67d   : > { %v3770_v22 = vrot.slane %v13822_v35, %v12806_v14 }
 0x67e   : > { %v6097_v29 = vmul.f32 %v6095_v17, %v17366_v20  ;;  %v3613_v49 = vrot.slane %v13814_v0, %v13655_v45  ;;  %v3609_v15 = vrot.slane %v13814_v0, %v12779_v8 }
 0x67f   : > { %v3785_v32 = vrot.slane %v3770_v22, %v12806_v14 }
 0x680   : > { %5081 = vrot.lane.b32.xlu1 %v5075_v43, %s11599_s19  ;;  %5032 = vrot.lane.b32.xlu0 %v5025_v50, %s11599_s19  ;;  %v7016_v43 = vmul.f32 %v12976_v40, %v5980_v61  ;;  %v17368_v50 = vld [vmem:[#allocation136_spill] sm:$0xff]  ;;  %v3628_v24 = vrot.slane %v3613_v49, %v12779_v8  ;;  %v3668_v40 = vrot.slane %v13822_v35, %v12788_v5  ;;  %v17371_v61 = vld [vmem:[#allocation65_spill] sm:$0xff] }
 0x681   : > { %v7120_v19 = vmul.f32 %v17368_v50, %v6058_v34  ;;  %v4018_v51 = vrot.slane %v17371_v61, 4  ;;  %v7119_v48 = vmul.f32 %v17368_v50, %v6054_v47  ;;  %v3715_v34 = vrot.slane %v13814_v0, %v13693_v4 }
 0x682   : > { %v3683_v39 = vrot.slane %v3668_v40, %v12788_v5  ;;  %v3624_v20 = vrot.slane %v3609_v15, %v12779_v8 }
 0x683   : > { %v4020_v10 = vsel %vm4019_vm14, %v4018_v51, %v17371_v61  ;;  %v13867_v63 = vmul.f32 %v4018_v51, %v13662_v23  ;;  %vm3431_vm14 = vcmask 769024  }
 0x684   : > { %5083 = vrot.lane.b32.xlu1 %v5076_v18, %s11599_s19  ;;  %5085 = vrot.lane.b32.xlu0 %v5077_v3, %s11599_s19  ;;  %v7069_v18 = vmul.f32 %v13002_v53, %v6021_v13  ;;  %v17370_v3 = vld [vmem:[#allocation135_spill] sm:$0xff]  ;;  %v17374_v13 = vld [vmem:[#allocation61_spill] sm:$0xff]  ;;  %s11699_s19 = smov 124  }
 0x685   : > { %v7170_v38 = vmul.f32 %v17370_v3, %v6091_v30  ;;  %v3686_v30 = vmul.f32 %v3683_v39, %v17374_v13  ;;  %v4042_v49 = vrot.slane %v13867_v63, %v12779_v8  ;;  %v4094_v39 = vrot.slane %v13867_v63, %v12788_v5 }
 0x687   : > { %v4057_v61 = vrot.slane %v4042_v49, %v12779_v8 }
 0x688   : > { %5991 = vrot.lane.b32.xlu1 %v5986_v21, %s17363_s25  ;;  %5989 = vrot.lane.b32.xlu0 %v5985_v9, %s17363_s25  ;;  %v13837_v21 = vpop.permute.xlu0 %6971  ;;  %v17373_v9 = vld [vmem:[#allocation42_spill] sm:$0xff] }
 0x689   : > { %17372 = vst [vmem:[#allocation41_spill] sm:$0xff] %v13837_v21  ;;  %v3634_v53 = vmul.f32 %v3628_v24, %v17373_v9 }
 0x68c   : > { %6026 = vrot.lane.b32.xlu1 %v6022_v46, %s17363_s25  ;;  %6065 = vrot.lane.b32.xlu0 %v6060_v33, %s17363_s25  ;;  %v7171_v46 = vmul.f32 %v17370_v3, %v6095_v17  ;;  %v13852_v33 = vmul.f32 %v4020_v10, %v13657_v26  ;;  %v13859_v47 = vpop.permute.xlu0 %7078  ;;  %v3633_v17 = vmul.f32 %v3624_v20, %v17373_v9  ;;  %v17379_v3 = vld [vmem:[#allocation67_spill] sm:$0xff] }
 0x68d   : > { %17375 = vst [vmem:[#allocation108_spill] sm:$0xff] %v13859_v47  ;;  %v4060_v15 = vmul.f32 %v4057_v61, %v17379_v3 }
 0x68e   : > { %v4034_v41 = vrot.slane %v13852_v33, %v12779_v8  ;;  %v4086_v24 = vrot.slane %v13852_v33, %v12788_v5 }
 0x690   : > { %6028 = vrot.lane.b32.xlu1 %v6023_v56, %s17363_s25  ;;  %6100 = vrot.lane.b32.xlu0 %v6096_v7, %s17363_s25  ;;  %v3730_v56 = vrot.slane %v3715_v34, %v12798_v11  ;;  %v3617_v7 = vrot.slane %v13822_v35, %v12779_v8  ;;  %v13878_v50 = vpop.permute.xlu0 %7180  ;;  %v3719_v34 = vrot.slane %v13822_v35, %v12798_v11 }
 0x691   : > { %17378 = vst [vmem:[#allocation63_spill] sm:$0xff] %v13878_v50 }
 0x692   : > { %v3632_v27 = vrot.slane %v3617_v7, %v12779_v8  ;;  %v17384_v7 = vld [vmem:[#allocation53_spill] sm:$0xff] }
 0x694   : > { %6063 = vrot.lane.b32.xlu1 %v6059_v37, %s17363_s25  ;;  %7024 = vrot.lane.b32.xlu0 %v7017_v57, %s11691_s10  ;;  %v17376_v37 = vld [vmem:[#allocation43_spill] sm:$0xff]  ;;  %v3635_v23 = vmul.f32 %v3632_v27, %v17373_v9  ;;  %v13896_v9 = vpop.permute.xlu0 %7293 }
 0x695   : > { %v3736_v57 = vmul.f32 %v3730_v56, %v17376_v37  ;;  %17380 = vst [vmem:[#allocation47_spill] sm:$0xff] %v13896_v9  ;;  %v4137_v56 = vrot.slane %v13852_v33, %v12798_v11 }
 0x697   : > { %v4152_v27 = vrot.slane %v4137_v56, %v12798_v11 }
 0x698   : > { %6102 = vrot.lane.b32.xlu1 %v6097_v29, %s17363_s25  ;;  %7074 = vrot.lane.b32.xlu0 %v7068_v44, %s11691_s10  ;;  %v3660_v29 = vrot.slane %v13814_v0, %v12788_v5  ;;  %v17377_v44 = vld [vmem:[#allocation45_spill] sm:$0xff]  ;;  %v13915_v20 = vpop.permute.xlu0 %7395  ;;  %s11701_s25 = smov 108  }
 0x699   : > { %v3788_v28 = vmul.f32 %v3785_v32, %v17377_v44  ;;  %17382 = vst [vmem:[#allocation51_spill] sm:$0xff] %v13915_v20 }
 0x69c   : > { %7022 = vrot.lane.b32.xlu1 %v7016_v43, %s11691_s10  ;;  %7127 = vrot.lane.b32.xlu0 %v7120_v19, %s11691_s10  ;;  %v4049_v43 = vrot.slane %v4034_v41, %v12779_v8  ;;  %v3675_v19 = vrot.slane %v3660_v29, %v12788_v5  ;;  %v3734_v41 = vrot.slane %v3719_v34, %v12798_v11 }
 0x69e   : > { %v3684_v40 = vmul.f32 %v3675_v19, %v17374_v13  ;;  %v3737_v29 = vmul.f32 %v3734_v41, %v17376_v37  ;;  %v13934_v19 = vpop.permute.xlu0 %7511  ;;  %v4233_v41 = vld [vmem:[#allocation5 + $0x8] sm:$0xf] }
 0x69f   : > { %17385 = vst [vmem:[#allocation86_spill] sm:$0xff] %v13934_v19 }
 0x6a0   : > { %7076 = vrot.lane.b32.xlu1 %v7069_v18, %s11691_s10  ;;  %7176 = vrot.lane.b32.xlu0 %v7170_v38, %s11691_s10  ;;  %v3664_v18 = vrot.slane %v13814_v0, %v13660_v25  ;;  %v4058_v38 = vmul.f32 %v4049_v43, %v17379_v3  ;;  %v4145_v43 = vrot.slane %v13867_v63, %v12798_v11 }
 0x6a2   : > { %v3679_v51 = vrot.slane %v3664_v18, %v12788_v5  ;;  %v17387_v18 = vld [vmem:[#allocation70_spill] sm:$0xff] }
 0x6a4   : > { %7125 = vrot.lane.b32.xlu1 %v7119_v48, %s11691_s10  ;;  %3641 = vrot.lane.b32.xlu0 %v3634_v53, %s11569_s0  ;;  %v3711_v48 = vrot.slane %v13814_v0, %v12798_v11  ;;  %v13898_v53 = vpop.permute.xlu1 %7344  ;;  %v3685_v10 = vmul.f32 %v3679_v51, %v17374_v13 }
 0x6a5   : > { %17381 = vst [vmem:[#allocation49_spill] sm:$0xff] %v13898_v53 }
 0x6a6   : > { %v3726_v22 = vrot.slane %v3711_v48, %v12798_v11  ;;  %v4038_v48 = vrot.slane %v13852_v33, %v13655_v45 }
 0x6a8   : > { %7178 = vrot.lane.b32.xlu1 %v7171_v46, %s11691_s10  ;;  %3694 = vrot.lane.b32.xlu0 %v3686_v30, %s11569_s0  ;;  %s11698_s10 = smov 125   ;;  %v4101_v46 = vrot.slane %v4086_v24, %v12788_v5  ;;  %v4109_v30 = vrot.slane %v4094_v39, %v12788_v5  ;;  %v13917_v35 = vpop.permute.xlu1 %7459  ;;  %v3735_v13 = vmul.f32 %v3726_v22, %v17376_v37  ;;  %v17388_v37 = vld [vmem:[#allocation55_spill] sm:$0xff] }
 0x6a9   : > { %17383 = vst [vmem:[#allocation73_spill] sm:$0xff] %v13917_v35  ;;  %v4161_v24 = vmul.f32 %v4152_v27, %v17388_v37 }
 0x6aa   : > { %v4110_v32 = vmul.f32 %v4101_v46, %v17384_v7  ;;  %v13957_v46 = vpop.permute.xlu0 %7613 }
 0x6ab   : > { %17389 = vst [vmem:[#allocation82_spill] sm:$0xff] %v13957_v46 }
 0x6ac   : > { %3743 = vrot.lane.b32.xlu0 %v3736_v57, %s11569_s0  ;;  %3639 = vrot.lane.b32.xlu1 %v3633_v17, %s11569_s0  ;;  %v3762_v57 = vrot.slane %v13814_v0, %v12806_v14  ;;  %v4112_v17 = vmul.f32 %v4109_v30, %v17384_v7  ;;  %v13936_v49 = vpop.permute.xlu1 %7562 }
 0x6ad   : > { %17386 = vst [vmem:[#allocation76_spill] sm:$0xff] %v13936_v49 }
 0x6b0   : > { %3796 = vrot.lane.b32.xlu0 %v3788_v28, %s11569_s0  ;;  %3643 = vrot.lane.b32.xlu1 %v3635_v23, %s11569_s0  ;;  %v3777_v28 = vrot.slane %v3762_v57, %v12806_v14  ;;  %v3766_v23 = vrot.slane %v13814_v0, %v13706_v54  ;;  %v4160_v0 = vrot.slane %v4145_v43, %v12798_v11  ;;  %v13959_v22 = vpop.permute.xlu1 %7677 }
 0x6b1   : > { %17390 = vst [vmem:[#allocation107_spill] sm:$0xff] %v13959_v22 }
 0x6b2   : > { %v3786_v61 = vmul.f32 %v3777_v28, %v17377_v44  ;;  %v3781_v51 = vrot.slane %v3766_v23, %v12806_v14  ;;  %v4163_v30 = vmul.f32 %v4160_v0, %v17388_v37  ;;  %v4141_v23 = vrot.slane %v13852_v33, %v13693_v4 }
 0x6b4   : > { %4064 = vrot.lane.b32.xlu0 %v4058_v38, %s11698_s10  ;;  %3690 = vrot.lane.b32.xlu1 %v3684_v40, %s11569_s0  ;;  %v4239_v38 = vrot.slane %v17387_v18, 4  ;;  %v4188_v40 = vrot.slane %v13852_v33, %v12806_v14  ;;  %v3787_v56 = vmul.f32 %v3781_v51, %v17377_v44  ;;  %v4156_v51 = vrot.slane %v4141_v23, %v12798_v11 }
 0x6b6   : > { %v4241_v39 = vsel %vm4240_vm15, %v4239_v38, %v17387_v18  ;;  %v4203_v34 = vrot.slane %v4188_v40, %v12806_v14  ;;  %v13981_v18 = vmul.f32 %v4239_v38, %v4233_v41  ;;  %vm6551_vm15 = vcmask 113664  }
 0x6b8   : > { %4068 = vrot.lane.b32.xlu0 %v4060_v15, %s11698_s10  ;;  %3692 = vrot.lane.b32.xlu1 %v3685_v10, %s11569_s0  ;;  %v4196_v15 = vrot.slane %v13867_v63, %v12806_v14  ;;  %v4090_v10 = vrot.slane %v13852_v33, %v13660_v25  ;;  %v17391_v63 = vld [vmem:[#allocation56_spill] sm:$0xff]  ;;  %v4263_v38 = vrot.slane %v13981_v18, %v12779_v8 }
 0x6b9   : > { %v4212_v57 = vmul.f32 %v4203_v34, %v17391_v63 }
 0x6ba   : > { %v4105_v27 = vrot.slane %v4090_v10, %v12788_v5  ;;  %v17393_v10 = vld [vmem:[#allocation72_spill] sm:$0xff] }
 0x6bc   : > { %4116 = vrot.lane.b32.xlu0 %v4110_v32, %s11698_s10  ;;  %3741 = vrot.lane.b32.xlu1 %v3735_v13, %s11569_s0  ;;  %v4053_v32 = vrot.slane %v4038_v48, %v12779_v8  ;;  %v13965_v13 = vmul.f32 %v4241_v39, %v13657_v26  ;;  %v4111_v40 = vmul.f32 %v4105_v27, %v17384_v7 }
 0x6bd   : > { %v4192_v48 = vrot.slane %v13852_v33, %v13706_v54  ;;  %v4278_v33 = vrot.slane %v4263_v38, %v12779_v8 }
 0x6be   : > { %v4059_v44 = vmul.f32 %v4053_v32, %v17379_v3  ;;  %v4255_v43 = vrot.slane %v13965_v13, %v12779_v8  ;;  %v4307_v7 = vrot.slane %v13965_v13, %v12788_v5  ;;  %v4259_v39 = vrot.slane %v13965_v13, %v13655_v45 }
 0x6bf   : > { %v4207_v32 = vrot.slane %v4192_v48, %v12806_v14  ;;  %v4311_v23 = vrot.slane %v13965_v13, %v13660_v25 }
 0x6c0   : > { %4120 = vrot.lane.b32.xlu0 %v4112_v17, %s11698_s10  ;;  %3745 = vrot.lane.b32.xlu1 %v3737_v29, %s11569_s0  ;;  %v4211_v17 = vrot.slane %v4196_v15, %v12806_v14  ;;  %v4270_v3 = vrot.slane %v4255_v43, %v12779_v8  ;;  %v4322_v41 = vrot.slane %v4307_v7, %v12788_v5 }
 0x6c1   : > { %v4274_v43 = vrot.slane %v4259_v39, %v12779_v8  ;;  %v4326_v39 = vrot.slane %v4311_v23, %v12788_v5 }
 0x6c4   : > { %4167 = vrot.lane.b32.xlu0 %v4161_v24, %s11698_s10  ;;  %3792 = vrot.lane.b32.xlu1 %v3786_v61, %s11569_s0  ;;  %v4214_v24 = vmul.f32 %v4211_v17, %v17391_v63 }
 0x6c8   : > { %4171 = vrot.lane.b32.xlu0 %v4163_v30, %s11698_s10  ;;  %3794 = vrot.lane.b32.xlu1 %v3787_v56, %s11569_s0  ;;  %v4279_v30 = vmul.f32 %v4270_v3, %v17393_v10  ;;  %v4162_v56 = vmul.f32 %v4156_v51, %v17388_v37  ;;  %v4281_v37 = vmul.f32 %v4278_v33, %v17393_v10  ;;  %v17397_v3 = vld [vmem:[#allocation58_spill] sm:$0xff] }
 0x6c9   : > { %v4331_v51 = vmul.f32 %v4322_v41, %v17397_v3 }
 0x6ca   : > { %v13972_v29 = vpop.permute.xlu1 %3849  ;;  %v13974_v28 = vpop.permute.xlu0 %3847 }
 0x6cc   : > { %4218 = vrot.lane.b32.xlu0 %v4212_v57, %s11698_s10  ;;  %4066 = vrot.lane.b32.xlu1 %v4059_v44, %s11698_s10  ;;  %v4315_v57 = vrot.slane %v13981_v18, %v12788_v5  ;;  %v4213_v44 = vmul.f32 %v4207_v32, %v17391_v63  ;;  %v4280_v63 = vmul.f32 %v4274_v43, %v17393_v10 }
 0x6cd   : > { %v4417_v10 = vrot.slane %v13981_v18, %v12806_v14 }
 0x6ce   : > { %v13987_v61 = vpop.permute.xlu1 %3901  ;;  %v13989_v0 = vpop.permute.xlu0 %3851  ;;  %v4330_v38 = vrot.slane %v4315_v57, %v12788_v5 }
 0x6cf   : > { %17392 = vst [vmem:[#allocation110_spill] sm:$0xff] %v13989_v0 }
 0x6d0   : > { %4222 = vrot.lane.b32.xlu0 %v4214_v24, %s11698_s10  ;;  %4118 = vrot.lane.b32.xlu1 %v4111_v40, %s11698_s10  ;;  %v17396_v24 = vld [vmem:[#allocation74_spill] sm:$0xff]  ;;  %v4333_v32 = vmul.f32 %v4330_v38, %v17397_v3 }
 0x6d1   : > { %v4457_v40 = vrot.slane %v17396_v24, 4 }
 0x6d2   : > { %v14003_v34 = vpop.permute.xlu1 %3950  ;;  %v14005_v15 = vpop.permute.xlu0 %3899 }
 0x6d3   : > { %v4459_v33 = vsel %vm4458_vm0, %v4457_v40, %v17396_v24  ;;  %v4366_v24 = vrot.slane %v13981_v18, %v12798_v11 }
 0x6d4   : > { %4285 = vrot.lane.b32.xlu0 %v4279_v30, %s11699_s19  ;;  %4169 = vrot.lane.b32.xlu1 %v4162_v56, %s11698_s10  ;;  %v4362_v30 = vrot.slane %v13965_v13, %v13693_v4  ;;  %v4358_v56 = vrot.slane %v13965_v13, %v12798_v11  ;;  %v14048_v41 = vmul.f32 %v4459_v33, %v13657_v26 }
 0x6d6   : > { %v14016_v17 = vpop.permute.xlu1 %3954  ;;  %v14018_v27 = vpop.permute.xlu0 %3903  ;;  %v4377_v43 = vrot.slane %v4362_v30, %v12798_v11  ;;  %v4373_v23 = vrot.slane %v4358_v56, %v12798_v11  ;;  %v4473_v38 = vrot.slane %v14048_v41, %v12779_v8  ;;  %v17401_v30 = vld [vmem:[#allocation60_spill] sm:$0xff]  ;;  %v4576_v19 = vrot.slane %v14048_v41, %v12798_v11 }
 0x6d7   : > { %17394 = vst [vmem:[#allocation113_spill] sm:$0xff] %v14016_v17  ;;  %17395 = vst [vmem:[#allocation111_spill] sm:$0xff] %v14018_v27  ;;  %v4580_v35 = vrot.slane %v14048_v41, %v13693_v4 }
 0x6d8   : > { %4289 = vrot.lane.b32.xlu0 %v4281_v37, %s11699_s19  ;;  %4220 = vrot.lane.b32.xlu1 %v4213_v44, %s11698_s10  ;;  %v4332_v44 = vmul.f32 %v4326_v39, %v17397_v3  ;;  %v4383_v56 = vmul.f32 %v4377_v43, %v17401_v30  ;;  %v4382_v18 = vmul.f32 %v4373_v23, %v17401_v30  ;;  %v17404_v43 = vld [vmem:[#allocation62_spill] sm:$0xff]  ;;  %s11702_s10 = smov 96  }
 0x6d9   : > { %v4488_v1 = vrot.slane %v4473_v38, %v12779_v8  ;;  %v17405_v38 = vld [vmem:[#allocation77_spill] sm:$0xff]  ;;  %v4591_v9 = vrot.slane %v4576_v19, %v12798_v11  ;;  %v4595_v31 = vrot.slane %v4580_v35, %v12798_v11  ;;  %v4672_v19 = vld [vmem:[#allocation5 + $0x8] sm:$0xf] }
 0x6da   : > { %v14030_v48 = vpop.permute.xlu1 %4001  ;;  %v14032_v7 = vpop.permute.xlu0 %3952  ;;  %v17416_v35 = vld [vmem:[#allocation66_spill] sm:$0xff] }
 0x6dc   : > { %4337 = vrot.lane.b32.xlu0 %v4331_v51, %s11699_s19  ;;  %4287 = vrot.lane.b32.xlu1 %v4280_v63, %s11699_s19  ;;  %v4454_v51 = vld [vmem:[#allocation5 + $0x8] sm:$0xf]  ;;  %v4409_v63 = vrot.slane %v13965_v13, %v12806_v14 }
 0x6dd   : > { %v14065_v33 = vmul.f32 %v4457_v40, %v4454_v51 }
 0x6de   : > { %v14050_v57 = vpop.permute.xlu1 %4003  ;;  %v14052_v37 = vpop.permute.xlu0 %4005 }
 0x6df   : > { %17398 = vst [vmem:[#allocation59_spill] sm:$0xff] %v14052_v37  ;;  %v4481_v40 = vrot.slane %v14065_v33, %v12779_v8 }
 0x6e0   : > { %4341 = vrot.lane.b32.xlu0 %v4333_v32, %s11699_s19  ;;  %4339 = vrot.lane.b32.xlu1 %v4332_v44, %s11699_s19  ;;  %v4432_v32 = vrot.slane %v4417_v10, %v12806_v14  ;;  %v4381_v44 = vrot.slane %v4366_v24, %v12798_v11  ;;  %v4424_v10 = vrot.slane %v4409_v63, %v12806_v14 }
 0x6e1   : > { %v4413_v24 = vrot.slane %v13965_v13, %v13706_v54  ;;  %v4525_v63 = vrot.slane %v14048_v41, %v12788_v5  ;;  %v4533_v13 = vrot.slane %v14065_v33, %v12788_v5 }
 0x6e2   : > { %v14067_v3 = vpop.permute.xlu1 %4930  ;;  %v14069_v39 = vpop.permute.xlu0 %4928  ;;  %v4435_v22 = vmul.f32 %v4432_v32, %v17404_v43  ;;  %v4384_v23 = vmul.f32 %v4381_v44, %v17401_v30  ;;  %v4433_v32 = vmul.f32 %v4424_v10, %v17404_v43 }
 0x6e3   : > { %17399 = vst [vmem:[#allocation136_spill] sm:$0xff] %v14067_v3  ;;  %17400 = vst [vmem:[#allocation135_spill] sm:$0xff] %v14069_v39  ;;  %v4428_v30 = vrot.slane %v4413_v24, %v12806_v14  ;;  %v4540_v10 = vrot.slane %v4525_v63, %v12788_v5  ;;  %v17413_v63 = vld [vmem:[#allocation64_spill] sm:$0xff] }
 0x6e4   : > { %4390 = vrot.lane.b32.xlu0 %v4383_v56, %s11699_s19  ;;  %4388 = vrot.lane.b32.xlu1 %v4382_v18, %s11699_s19  ;;  %v4497_v56 = vmul.f32 %v4488_v1, %v17405_v38  ;;  %v4496_v18 = vrot.slane %v4481_v40, %v12779_v8 }
 0x6e6   : > { %v14080_v51 = vpop.permute.xlu1 %4981  ;;  %v14082_v12 = vpop.permute.xlu0 %4932  ;;  %v4499_v1 = vmul.f32 %v4496_v18, %v17405_v38  ;;  %v17410_v18 = vld [vmem:[#allocation79_spill] sm:$0xff] }
 0x6e7   : > { %17402 = vst [vmem:[#allocation65_spill] sm:$0xff] %v14080_v51  ;;  %17403 = vst [vmem:[#allocation42_spill] sm:$0xff] %v14082_v12 }
 0x6e8   : > { %4443 = vrot.lane.b32.xlu0 %v4435_v22, %s11699_s19  ;;  %4392 = vrot.lane.b32.xlu1 %v4384_v23, %s11699_s19  ;;  %v4477_v22 = vrot.slane %v14048_v41, %v13655_v45  ;;  %v4434_v23 = vmul.f32 %v4428_v30, %v17404_v43 }
 0x6ea   : > { %v14093_v46 = vpop.permute.xlu1 %5030  ;;  %v14095_v49 = vpop.permute.xlu0 %4979  ;;  %v4492_v24 = vrot.slane %v4477_v22, %v12779_v8  ;;  %v4549_v22 = vmul.f32 %v4540_v10, %v17413_v63  ;;  %v4584_v10 = vrot.slane %v14065_v33, %v12798_v11 }
 0x6eb   : > { %17406 = vst [vmem:[#allocation61_spill] sm:$0xff] %v14093_v46  ;;  %17407 = vst [vmem:[#allocation43_spill] sm:$0xff] %v14095_v49 }
 0x6ec   : > { %4503 = vrot.lane.b32.xlu0 %v4497_v56, %s11575_s9  ;;  %4439 = vrot.lane.b32.xlu1 %v4433_v32, %s11699_s19  ;;  %v4529_v56 = vrot.slane %v14048_v41, %v13660_v25  ;;  %v4675_v32 = vrot.slane %v17410_v18, 4  ;;  %v4498_v20 = vmul.f32 %v4492_v24, %v17405_v38  ;;  %v4599_v2 = vrot.slane %v4584_v10, %v12798_v11 }
 0x6ee   : > { %v14108_v44 = vpop.permute.xlu1 %5034  ;;  %v14110_v40 = vpop.permute.xlu0 %4983  ;;  %v4676_v53 = vsel %vm1563_vm9, %v4675_v32, %v17410_v18  ;;  %v4600_v18 = vmul.f32 %v4591_v9, %v17416_v35  ;;  %v4631_v9 = vrot.slane %v14048_v41, %v13706_v54 }
 0x6ef   : > { %17408 = vst [vmem:[#allocation45_spill] sm:$0xff] %v14108_v44  ;;  %17409 = vst [vmem:[#allocation67_spill] sm:$0xff] %v14110_v40 }
 0x6f0   : > { %4507 = vrot.lane.b32.xlu0 %v4499_v1, %s11575_s9  ;;  %4441 = vrot.lane.b32.xlu1 %v4434_v23, %s11699_s19  ;;  %v4548_v1 = vrot.slane %v4533_v13, %v12788_v5  ;;  %v4544_v23 = vrot.slane %v4529_v56, %v12788_v5  ;;  %v14149_v56 = vmul.f32 %v4676_v53, %v13657_v26  ;;  %s17476_s19 = smov 95  }
 0x6f1   : > { %v4627_v53 = vrot.slane %v14048_v41, %v12806_v14 }
 0x6f2   : > { %v14124_v43 = vpop.permute.xlu1 %5081  ;;  %v14126_v30 = vpop.permute.xlu0 %5032  ;;  %v4551_v13 = vmul.f32 %v4548_v1, %v17413_v63  ;;  %v4550_v24 = vmul.f32 %v4544_v23, %v17413_v63  ;;  %v4690_v23 = vrot.slane %v14149_v56, %v12779_v8  ;;  %v4694_v41 = vrot.slane %v14149_v56, %v13655_v45 }
 0x6f3   : > { %17411 = vst [vmem:[#allocation53_spill] sm:$0xff] %v14124_v43  ;;  %17412 = vst [vmem:[#allocation70_spill] sm:$0xff] %v14126_v30  ;;  %v4642_v62 = vrot.slane %v4627_v53, %v12806_v14 }
 0x6f4   : > { %4555 = vrot.lane.b32.xlu0 %v4549_v22, %s11575_s9  ;;  %4505 = vrot.lane.b32.xlu1 %v4498_v20, %s11575_s9  ;;  %v4635_v20 = vrot.slane %v14065_v33, %v12806_v14  ;;  %v4601_v22 = vmul.f32 %v4595_v31, %v17416_v35  ;;  %v4602_v31 = vmul.f32 %v4599_v2, %v17416_v35 }
 0x6f5   : > { %v4646_v2 = vrot.slane %v4631_v9, %v12806_v14  ;;  %v4745_v9 = vrot.slane %v14149_v56, %v13660_v25 }
 0x6f6   : > { %v14140_v50 = vpop.permute.xlu1 %5083  ;;  %v14142_v38 = vpop.permute.xlu0 %5085  ;;  %v4650_v33 = vrot.slane %v4635_v20, %v12806_v14  ;;  %v17421_v20 = vld [vmem:[#allocation68_spill] sm:$0xff] }
 0x6f7   : > { %17414 = vst [vmem:[#allocation55_spill] sm:$0xff] %v14140_v50  ;;  %17415 = vst [vmem:[#allocation56_spill] sm:$0xff] %v14142_v38 }
 0x6f8   : > { %4559 = vrot.lane.b32.xlu0 %v4551_v13, %s11575_s9  ;;  %4557 = vrot.lane.b32.xlu1 %v4550_v24, %s11575_s9  ;;  %v14165_v13 = vmul.f32 %v4675_v32, %v4672_v19  ;;  %v4653_v47 = vmul.f32 %v4650_v33, %v17421_v20  ;;  %v4705_v32 = vrot.slane %v4690_v23, %v12779_v8  ;;  %v17424_v33 = vld [vmem:[#allocation81_spill] sm:$0xff] }
 0x6fa   : > { %v14156_v1 = vpop.permute.xlu1 %5991  ;;  %v14158_v63 = vpop.permute.xlu0 %5989  ;;  %v4698_v19 = vrot.slane %v14165_v13, %v12779_v8  ;;  %v4714_v53 = vmul.f32 %v4705_v32, %v17424_v33  ;;  %v4709_v32 = vrot.slane %v4694_v41, %v12779_v8 }
 0x6fb   : > { %17417 = vst [vmem:[#allocation72_spill] sm:$0xff] %v14156_v1  ;;  %17418 = vst [vmem:[#allocation74_spill] sm:$0xff] %v14158_v63 }
 0x6fc   : > { %4606 = vrot.lane.b32.xlu1 %v4600_v18, %s11575_s9  ;;  %4608 = vrot.lane.b32.xlu0 %v4601_v22, %s11575_s9  ;;  %v4651_v22 = vmul.f32 %v4642_v62, %v17421_v20  ;;  %v4713_v23 = vrot.slane %v4698_v19, %v12779_v8  ;;  %v4715_v41 = vmul.f32 %v4709_v32, %v17424_v33 }
 0x6fe   : > { %v14172_v10 = vpop.permute.xlu1 %6026  ;;  %v14174_v24 = vpop.permute.xlu0 %6065  ;;  %v4716_v62 = vmul.f32 %v4713_v23, %v17424_v33 }
 0x6ff   : > { %17419 = vst [vmem:[#allocation58_spill] sm:$0xff] %v14172_v10  ;;  %17420 = vst [vmem:[#allocation60_spill] sm:$0xff] %v14174_v24  ;;  %v14317_v24 = vld [vmem:[#allocation5] sm:$0xff] }
 0x700   : > { %4610 = vrot.lane.b32.xlu1 %v4602_v31, %s11575_s9  ;;  %4661 = vrot.lane.b32.xlu0 %v4653_v47, %s11575_s9  ;;  %v4741_v31 = vrot.slane %v14149_v56, %v12788_v5  ;;  %v4652_v47 = vmul.f32 %v4646_v2, %v17421_v20  ;;  %v4760_v20 = vrot.slane %v4745_v9, %v12788_v5 }
 0x701   : > { %v4792_v2 = vrot.slane %v14149_v56, %v12798_v11 }
 0x702   : > { %v14186_v35 = vpop.permute.xlu1 %6028  ;;  %v14188_v18 = vpop.permute.xlu0 %6100  ;;  %v4756_v19 = vrot.slane %v4741_v31, %v12788_v5  ;;  %v17430_v31 = vld [vmem:[#allocation69_spill] sm:$0xff] }
 0x703   : > { %17422 = vst [vmem:[#allocation62_spill] sm:$0xff] %v14186_v35  ;;  %17423 = vst [vmem:[#allocation77_spill] sm:$0xff] %v14188_v18  ;;  %v4766_v9 = vmul.f32 %v4760_v20, %v17430_v31 }
 0x704   : > { %4657 = vrot.lane.b32.xlu1 %v4651_v22, %s11575_s9  ;;  %4720 = vrot.lane.b32.xlu0 %v4714_v53, %s11573_s3  ;;  %v4749_v22 = vrot.slane %v14165_v13, %v12788_v5  ;;  %v5097_v53 = vrot.slane %v17427_v52, 4  ;;  %v4765_v58 = vmul.f32 %v4756_v19, %v17430_v31 }
 0x706   : > { %v14200_v21 = vpop.permute.xlu1 %6063  ;;  %v14202_v36 = vpop.permute.xlu0 %7024  ;;  %v4764_v59 = vrot.slane %v4749_v22, %v12788_v5 }
 0x707   : > { %17425 = vst [vmem:[#allocation79_spill] sm:$0xff] %v14200_v21  ;;  %17426 = vst [vmem:[#allocation64_spill] sm:$0xff] %v14202_v36  ;;  %v5311_v21 = vld [vmem:[#allocation5 + $0x8] sm:$0xf] }
 0x708   : > { %4659 = vrot.lane.b32.xlu1 %v4652_v47, %s11575_s9  ;;  %4724 = vrot.lane.b32.xlu0 %v4716_v62, %s11573_s3  ;;  %v4796_v47 = vrot.slane %v14149_v56, %v13693_v4  ;;  %v5098_v62 = vsel %vm1667_vm8, %v5097_v53, %v17427_v52  ;;  %v4767_v22 = vmul.f32 %v4764_v59, %v17430_v31 }
 0x709   : > { %v14231_v33 = vmul.f32 %v5098_v62, %v13657_v26  ;;  %v4800_v52 = vrot.slane %v14165_v13, %v12798_v11  ;;  %v17433_v26 = vld [vmem:[#allocation71_spill] sm:$0xff] }
 0x70a   : > { %v14215_v36 = vpop.permute.xlu1 %6102  ;;  %v14217_v23 = vpop.permute.xlu0 %7074 }
 0x70b   : > { %17428 = vst [vmem:[#allocation66_spill] sm:$0xff] %v14215_v36  ;;  %17429 = vst [vmem:[#allocation68_spill] sm:$0xff] %v14217_v23  ;;  %v4807_v23 = vrot.slane %v4792_v2, %v12798_v11  ;;  %v4811_v36 = vrot.slane %v4796_v47, %v12798_v11  ;;  %v4843_v2 = vrot.slane %v14149_v56, %v12806_v14 }
 0x70c   : > { %4722 = vrot.lane.b32.xlu1 %v4715_v41, %s11573_s3  ;;  %4771 = vrot.lane.b32.xlu0 %v4765_v58, %s11573_s3  ;;  %v4851_v58 = vrot.slane %v14165_v13, %v12806_v14  ;;  %v5112_v59 = vrot.slane %v14231_v33, %v12779_v8  ;;  %v4815_v13 = vrot.slane %v4800_v52, %v12798_v11  ;;  %v17438_v52 = vld [vmem:[#allocation84_spill] sm:$0xff] }
 0x70d   : > { %v4816_v20 = vmul.f32 %v4807_v23, %v17433_v26  ;;  %v4817_v47 = vmul.f32 %v4811_v36, %v17433_v26  ;;  %v4858_v23 = vrot.slane %v4843_v2, %v12806_v14 }
 0x70e   : > { %v14233_v32 = vpop.permute.xlu1 %7022  ;;  %v14235_v19 = vpop.permute.xlu0 %7127  ;;  %v4866_v62 = vrot.slane %v4851_v58, %v12806_v14  ;;  %v4818_v36 = vmul.f32 %v4815_v13, %v17433_v26  ;;  %v17440_v26 = vld [vmem:[#allocation83_spill] sm:$0xff] }
 0x70f   : > { %17431 = vst [vmem:[#allocation81_spill] sm:$0xff] %v14233_v32  ;;  %17432 = vst [vmem:[#allocation78_spill] sm:$0xff] %v14235_v19 }
 0x710   : > { %4773 = vrot.lane.b32.xlu1 %v4766_v9, %s11573_s3  ;;  %4775 = vrot.lane.b32.xlu0 %v4767_v22, %s11573_s3  ;;  %v14258_v9 = vmul.f32 %v5097_v53, %v13724_v6  ;;  %v4847_v22 = vrot.slane %v14149_v56, %v13706_v54  ;;  %v4869_v58 = vmul.f32 %v4866_v62, %v17438_v52 }
 0x711   : > { %v5127_v6 = vrot.slane %v5112_v59, %v12779_v8  ;;  %v5116_v59 = vrot.slane %v14231_v33, %v13655_v45 }
 0x712   : > { %v14250_v41 = vpop.permute.xlu1 %7076  ;;  %v14252_v31 = vpop.permute.xlu0 %7176  ;;  %v5120_v53 = vrot.slane %v14258_v9, %v12779_v8  ;;  %v4862_v56 = vrot.slane %v4847_v22, %v12806_v14  ;;  %v5168_v22 = vrot.slane %v14231_v33, %v13660_v25 }
 0x713   : > { %17434 = vst [vmem:[#allocation69_spill] sm:$0xff] %v14250_v41  ;;  %17435 = vst [vmem:[#allocation71_spill] sm:$0xff] %v14252_v31  ;;  %v5136_v13 = vmul.f32 %v5127_v6, %v17440_v26 }
 0x714   : > { %4822 = vrot.lane.b32.xlu1 %v4816_v20, %s11573_s3  ;;  %4824 = vrot.lane.b32.xlu0 %v4817_v47, %s11573_s3  ;;  %v4867_v20 = vmul.f32 %v4858_v23, %v17438_v52  ;;  %v5135_v62 = vrot.slane %v5120_v53, %v12779_v8  ;;  %v4868_v23 = vmul.f32 %v4862_v56, %v17438_v52  ;;  %v17441_v52 = vld [vmem:[#allocation89_spill] sm:$0xff] }
 0x715   : > { %v5314_v56 = vrot.slane %v17441_v52, 4 }
 0x716   : > { %v14265_v19 = vpop.permute.xlu1 %7125  ;;  %v14267_v41 = vpop.permute.xlu0 %3641  ;;  %v5138_v53 = vmul.f32 %v5135_v62, %v17440_v26  ;;  %v5215_v62 = vrot.slane %v14231_v33, %v12798_v11 }
 0x717   : > { %17436 = vst [vmem:[#allocation177_spill] sm:$0xff] %v14265_v19  ;;  %17437 = vst [vmem:[#allocation178_spill] sm:$0xff] %v14267_v41  ;;  %v5219_v19 = vrot.slane %v14231_v33, %v13693_v4 }
 0x718   : > { %4826 = vrot.lane.b32.xlu1 %v4818_v36, %s11573_s3  ;;  %4877 = vrot.lane.b32.xlu0 %v4869_v58, %s11573_s3  ;;  %v5164_v36 = vrot.slane %v14231_v33, %v12788_v5  ;;  %v5230_v1 = vrot.slane %v5215_v62, %v12798_v11 }
 0x719   : > { %v5234_v55 = vrot.slane %v5219_v19, %v12798_v11  ;;  %v17443_v19 = vld [vmem:[#allocation87_spill] sm:$0xff] }
 0x71a   : > { %v14278_v2 = vpop.permute.xlu1 %7178  ;;  %v14280_v47 = vpop.permute.xlu0 %3694  ;;  %v5179_v31 = vrot.slane %v5164_v36, %v12788_v5 }
 0x71b   : > { %17439 = vst [vmem:[#allocation84_spill] sm:$0xff] %v14278_v2  ;;  %v5131_v2 = vrot.slane %v5116_v59, %v12779_v8 }
 0x71c   : > { %4873 = vrot.lane.b32.xlu1 %v4867_v20, %s11573_s3  ;;  %5142 = vrot.lane.b32.xlu0 %v5136_v13, %s11700_s4  ;;  %v5172_v20 = vrot.slane %v14258_v9, %v12788_v5  ;;  %v5183_v13 = vrot.slane %v5168_v22, %v12788_v5  ;;  %v5316_v22 = vsel %vm5315_vm1, %v5314_v56, %v17441_v52  ;;  %vm7410_vm1 = vcmask 146432  }
 0x71d   : > { %v5137_v32 = vmul.f32 %v5131_v2, %v17440_v26  ;;  %v5270_v26 = vrot.slane %v14231_v33, %v13706_v54  ;;  %v5239_v52 = vmul.f32 %v5230_v1, %v17443_v19  ;;  %v5274_v1 = vrot.slane %v14258_v9, %v12806_v14 }
 0x71e   : > { %v14293_v58 = vpop.permute.xlu1 %3639  ;;  %v14295_v6 = vpop.permute.xlu0 %3743 }
 0x720   : > { %4875 = vrot.lane.b32.xlu1 %v4868_v23, %s11573_s3  ;;  %5146 = vrot.lane.b32.xlu0 %v5138_v53, %s11700_s4  ;;  %v17442_v23 = vld [vmem:[#allocation91_spill] sm:$0xff]  ;;  %v5187_v53 = vrot.slane %v5172_v20, %v12788_v5  ;;  %v5240_v20 = vmul.f32 %v5234_v55, %v17443_v19 }
 0x721   : > { %v5188_v60 = vmul.f32 %v5179_v31, %v17442_v23  ;;  %v5189_v35 = vmul.f32 %v5183_v13, %v17442_v23 }
 0x722   : > { %v14310_v59 = vpop.permute.xlu1 %3643  ;;  %v14312_v36 = vpop.permute.xlu0 %3796  ;;  %v5190_v31 = vmul.f32 %v5187_v53, %v17442_v23  ;;  %v5285_v23 = vrot.slane %v5270_v26, %v12806_v14 }
 0x724   : > { %5144 = vrot.lane.b32.xlu1 %v5137_v32, %s11700_s4  ;;  %5194 = vrot.lane.b32.xlu0 %v5188_v60, %s11700_s4  ;;  %v5223_v60 = vrot.slane %v14258_v9, %v12798_v11  ;;  %v14335_v32 = vmul.f32 %v5316_v22, %v14317_v24  ;;  %v5289_v9 = vrot.slane %v5274_v1, %v12806_v14 }
 0x726   : > { %v14325_v42 = vpop.permute.xlu1 %3690  ;;  %v14327_v2 = vpop.permute.xlu0 %4064  ;;  %v5238_v53 = vrot.slane %v5223_v60, %v12798_v11  ;;  %v5334_v22 = vrot.slane %v14335_v32, %v13655_v45  ;;  %v5386_v55 = vrot.slane %v14335_v32, %v13660_v25  ;;  %v17445_v60 = vld [vmem:[#allocation93_spill] sm:$0xff]  ;;  %v5433_v10 = vrot.slane %v14335_v32, %v12798_v11 }
 0x727   : > { %v5291_v16 = vmul.f32 %v5285_v23, %v17445_v60  ;;  %v5488_v50 = vrot.slane %v14335_v32, %v13706_v54 }
 0x728   : > { %5196 = vrot.lane.b32.xlu1 %v5189_v35, %s11700_s4  ;;  %5198 = vrot.lane.b32.xlu0 %v5190_v31, %s11700_s4  ;;  %v5266_v35 = vrot.slane %v14231_v33, %v12806_v14  ;;  %v5241_v18 = vmul.f32 %v5238_v53, %v17443_v19  ;;  %v5349_v33 = vrot.slane %v5334_v22, %v12779_v8  ;;  %v17447_v19 = vld [vmem:[#allocation90_spill] sm:$0xff] }
 0x72a   : > { %v14341_v13 = vpop.permute.xlu1 %3692  ;;  %v14343_v62 = vpop.permute.xlu0 %4068  ;;  %v5355_v53 = vmul.f32 %v5349_v33, %v17447_v19  ;;  %v17448_v33 = vld [vmem:[#allocation95_spill] sm:$0xff] }
 0x72b   : > { %17444 = vst [vmem:[#allocation83_spill] sm:$0xff] %v14343_v62 }
 0x72c   : > { %5247 = vrot.lane.b32.xlu1 %v5240_v20, %s11700_s4  ;;  %5245 = vrot.lane.b32.xlu0 %v5239_v52, %s11700_s4  ;;  %v5281_v20 = vrot.slane %v5266_v35, %v12806_v14  ;;  %v5401_v52 = vrot.slane %v5386_v55, %v12788_v5  ;;  %v14379_v35 = vmul.f32 %v5314_v56, %v5311_v21 }
 0x72d   : > { %v5448_v55 = vrot.slane %v5433_v10, %v12798_v11  ;;  %v17449_v10 = vld [vmem:[#allocation97_spill] sm:$0xff] }
 0x72e   : > { %v14357_v31 = vpop.permute.xlu1 %3741  ;;  %v14359_v26 = vpop.permute.xlu0 %4116  ;;  %v5290_v22 = vmul.f32 %v5281_v20, %v17445_v60  ;;  %v5407_v20 = vmul.f32 %v5401_v52, %v17448_v33  ;;  %v5441_v21 = vrot.slane %v14379_v35, %v12798_v11  ;;  %v5338_v56 = vrot.slane %v14379_v35, %v12779_v8 }
 0x72f   : > { %v5484_v52 = vrot.slane %v14335_v32, %v12806_v14 }
 0x730   : > { %5298 = vrot.lane.b32.xlu1 %v5291_v16, %s11700_s4  ;;  %5249 = vrot.lane.b32.xlu0 %v5241_v18, %s11700_s4  ;;  %v5330_v16 = vrot.slane %v14335_v32, %v12779_v8  ;;  %v5292_v18 = vmul.f32 %v5289_v9, %v17445_v60  ;;  %v5532_v60 = vrot.slane %v17449_v10, 4  ;;  %v17450_v9 = vld [vmem:[#allocation92_spill] sm:$0xff]  ;;  %v5456_v12 = vrot.slane %v5441_v21, %v12798_v11 }
 0x731   : > { %v5499_v43 = vrot.slane %v5484_v52, %v12806_v14  ;;  %v5503_v52 = vrot.slane %v5488_v50, %v12806_v14 }
 0x732   : > { %v14371_v63 = vpop.permute.xlu1 %3745  ;;  %v14373_v23 = vpop.permute.xlu0 %4120  ;;  %v5345_v44 = vrot.slane %v5330_v16, %v12779_v8  ;;  %v5459_v46 = vmul.f32 %v5456_v12, %v17450_v9  ;;  %v17454_v12 = vld [vmem:[#allocation99_spill] sm:$0xff] }
 0x733   : > { %17446 = vst [vmem:[#allocation89_spill] sm:$0xff] %v14373_v23  ;;  %v5508_v39 = vmul.f32 %v5499_v43, %v17454_v12  ;;  %v5509_v50 = vmul.f32 %v5503_v52, %v17454_v12 }
 0x734   : > { %5362 = vrot.lane.b32.xlu1 %v5355_v53, %s11701_s25  ;;  %5296 = vrot.lane.b32.xlu0 %v5290_v22, %s11700_s4  ;;  %v5457_v53 = vmul.f32 %v5448_v55, %v17450_v9  ;;  %v5354_v40 = vmul.f32 %v5345_v44, %v17447_v19  ;;  %v5533_v55 = vsel %vm3853_vm2, %v5532_v60, %v17449_v10 }
 0x735   : > { %v5390_v44 = vrot.slane %v14379_v35, %v12788_v5  ;;  %v14427_v10 = vmul.f32 %v5533_v55, %v14317_v24 }
 0x736   : > { %v14385_v1 = vpop.permute.xlu1 %3792  ;;  %v14387_v38 = vpop.permute.xlu0 %4167 }
 0x737   : > { %v5405_v30 = vrot.slane %v5390_v44, %v12788_v5  ;;  %v5654_v17 = vrot.slane %v14427_v10, %v13693_v4 }
 0x738   : > { %5414 = vrot.lane.b32.xlu1 %v5407_v20, %s11701_s25  ;;  %5300 = vrot.lane.b32.xlu0 %v5292_v18, %s11700_s4  ;;  %v5353_v20 = vrot.slane %v5338_v56, %v12779_v8  ;;  %v5382_v18 = vrot.slane %v14335_v32, %v12788_v5  ;;  %s17495_s4 = smov 93  }
 0x73a   : > { %v14401_v22 = vpop.permute.xlu1 %3794  ;;  %v14403_v16 = vpop.permute.xlu0 %4171 }
 0x73b   : > { %17451 = vst [vmem:[#allocation91_spill] sm:$0xff] %v14403_v16  ;;  %v5701_v16 = vrot.slane %v14427_v10, %v12806_v14 }
 0x73c   : > { %5463 = vrot.lane.b32.xlu1 %v5457_v53, %s11701_s25  ;;  %5360 = vrot.lane.b32.xlu0 %v5354_v40, %s11701_s25  ;;  %v5356_v53 = vmul.f32 %v5353_v20, %v17447_v19  ;;  %v5397_v40 = vrot.slane %v5382_v18, %v12788_v5  ;;  %v5551_v20 = vrot.slane %v14427_v10, %v13655_v45 }
 0x73d   : > { %v5408_v18 = vmul.f32 %v5405_v30, %v17448_v33  ;;  %v5650_v30 = vrot.slane %v14427_v10, %v12798_v11 }
 0x73e   : > { %v14419_v21 = vpop.permute.xlu1 %4066  ;;  %v14421_v56 = vpop.permute.xlu0 %4218  ;;  %v5406_v19 = vmul.f32 %v5397_v40, %v17448_v33  ;;  %v5566_v43 = vrot.slane %v5551_v20, %v12779_v8  ;;  %v5603_v40 = vrot.slane %v14427_v10, %v13660_v25  ;;  %v5547_v33 = vrot.slane %v14427_v10, %v12779_v8 }
 0x73f   : > { %17452 = vst [vmem:[#allocation87_spill] sm:$0xff] %v14421_v56  ;;  %v3424_v56 = vld [vmem:[#allocation5 + $0x8] sm:$0xf] }
 0x740   : > { %5467 = vrot.lane.b32.xlu1 %v5459_v46, %s11701_s25  ;;  %5364 = vrot.lane.b32.xlu0 %v5356_v53, %s11701_s25  ;;  %v5437_v46 = vrot.slane %v14335_v32, %v13693_v4  ;;  %v5529_v32 = vld [vmem:[#allocation5 + $0x8] sm:$0xf] }
 0x741   : > { %v14463_v52 = vmul.f32 %v5532_v60, %v5529_v32  ;;  %v5665_v60 = vrot.slane %v5650_v30, %v12798_v11 }
 0x742   : > { %v14433_v49 = vpop.permute.xlu1 %4118  ;;  %v14435_v51 = vpop.permute.xlu0 %4222  ;;  %v5452_v53 = vrot.slane %v5437_v46, %v12798_v11  ;;  %v17458_v46 = vld [vmem:[#allocation94_spill] sm:$0xff] }
 0x743   : > { %17453 = vst [vmem:[#allocation93_spill] sm:$0xff] %v14435_v51  ;;  %v5572_v3 = vmul.f32 %v5566_v43, %v17458_v46  ;;  %v5658_v32 = vrot.slane %v14463_v52, %v12798_v11  ;;  %v17461_v43 = vld [vmem:[#allocation96_spill] sm:$0xff] }
 0x744   : > { %5514 = vrot.lane.b32.xlu1 %v5508_v39, %s11701_s25  ;;  %5412 = vrot.lane.b32.xlu0 %v5406_v19, %s11701_s25  ;;  %v5492_v39 = vrot.slane %v14379_v35, %v12806_v14  ;;  %v5458_v35 = vmul.f32 %v5452_v53, %v17450_v9 }
 0x746   : > { %v14447_v55 = vpop.permute.xlu1 %4169  ;;  %v14449_v44 = vpop.permute.xlu0 %4285 }
 0x747   : > { %17455 = vst [vmem:[#allocation90_spill] sm:$0xff] %v14449_v44 }
 0x748   : > { %5516 = vrot.lane.b32.xlu1 %v5509_v50, %s11701_s25  ;;  %5416 = vrot.lane.b32.xlu0 %v5408_v18, %s11701_s25  ;;  %v5618_v50 = vrot.slane %v5603_v40, %v12788_v5  ;;  %v5507_v18 = vrot.slane %v5492_v39, %v12806_v14  ;;  %v5562_v40 = vrot.slane %v5547_v33, %v12779_v8  ;;  %v17462_v39 = vld [vmem:[#allocation102_spill] sm:$0xff] }
 0x749   : > { %v5749_v30 = vrot.slane %v17462_v39, 4 }
 0x74a   : > { %v14465_v19 = vpop.permute.xlu1 %4220  ;;  %v14467_v20 = vpop.permute.xlu0 %4289  ;;  %v5624_v9 = vmul.f32 %v5618_v50, %v17461_v43  ;;  %v5510_v53 = vmul.f32 %v5507_v18, %v17454_v12  ;;  %v17465_v12 = vld [vmem:[#allocation98_spill] sm:$0xff]  ;;  %v5571_v18 = vmul.f32 %v5562_v40, %v17458_v46 }
 0x74b   : > { %17456 = vst [vmem:[#allocation95_spill] sm:$0xff] %v14465_v19  ;;  %17457 = vst [vmem:[#allocation97_spill] sm:$0xff] %v14467_v20  ;;  %v5674_v33 = vmul.f32 %v5665_v60, %v17465_v12  ;;  %v5705_v60 = vrot.slane %v14427_v10, %v13706_v54 }
 0x74c   : > { %5579 = vrot.lane.b32.xlu1 %v5572_v3, %s11702_s10  ;;  %5465 = vrot.lane.b32.xlu0 %v5458_v35, %s11701_s25  ;;  %v5555_v3 = vrot.slane %v14463_v52, %v12779_v8  ;;  %v5673_v35 = vrot.slane %v5658_v32, %v12798_v11  ;;  %v5750_v32 = vsel %vm1725_vm7, %v5749_v30, %v17462_v39 }
 0x74d   : > { %v14519_v39 = vmul.f32 %v5750_v32, %v14317_v24 }
 0x74e   : > { %v14478_v51 = vpop.permute.xlu1 %4287  ;;  %v14480_v20 = vpop.permute.xlu0 %4337  ;;  %v5570_v62 = vrot.slane %v5555_v3, %v12779_v8 }
 0x74f   : > { %17459 = vst [vmem:[#allocation92_spill] sm:$0xff] %v14478_v51  ;;  %17460 = vst [vmem:[#allocation99_spill] sm:$0xff] %v14480_v20  ;;  %v5768_v32 = vrot.slane %v14519_v39, %v13655_v45 }
 0x750   : > { %5631 = vrot.lane.b32.xlu1 %v5624_v9, %s11702_s10  ;;  %5518 = vrot.lane.b32.xlu0 %v5510_v53, %s11701_s25  ;;  %v5599_v9 = vrot.slane %v14427_v10, %v12788_v5  ;;  %v5676_v53 = vmul.f32 %v5673_v35, %v17465_v12  ;;  %v5573_v37 = vmul.f32 %v5570_v62, %v17458_v46  ;;  %s17516_s25 = smov 92  }
 0x751   : > { %v5819_v10 = vrot.slane %v14519_v39, %v13660_v25 }
 0x752   : > { %v14493_v23 = vpop.permute.xlu1 %4339  ;;  %v14495_v50 = vpop.permute.xlu0 %4341 }
 0x753   : > { %17463 = vst [vmem:[#allocation94_spill] sm:$0xff] %v14493_v23  ;;  %17464 = vst [vmem:[#allocation96_spill] sm:$0xff] %v14495_v50  ;;  %v5716_v50 = vrot.slane %v5701_v16, %v12806_v14  ;;  %v17468_v16 = vld [vmem:[#allocation104_spill] sm:$0xff] }
 0x754   : > { %5680 = vrot.lane.b32.xlu1 %v5674_v33, %s11702_s10  ;;  %5577 = vrot.lane.b32.xlu0 %v5571_v18, %s11702_s10  ;;  %v5614_v33 = vrot.slane %v5599_v9, %v12788_v5  ;;  %v5607_v18 = vrot.slane %v14463_v52, %v12788_v5  ;;  %v5720_v9 = vrot.slane %v5705_v60, %v12806_v14 }
 0x755   : > { %v5725_v35 = vmul.f32 %v5716_v50, %v17468_v16 }
 0x756   : > { %v14510_v40 = vpop.permute.xlu1 %4388  ;;  %v14512_v3 = vpop.permute.xlu0 %4390  ;;  %v5623_v46 = vmul.f32 %v5614_v33, %v17461_v43  ;;  %v5622_v24 = vrot.slane %v5607_v18, %v12788_v5  ;;  %v5726_v60 = vmul.f32 %v5720_v9, %v17468_v16  ;;  %v5783_v18 = vrot.slane %v5768_v32, %v12779_v8 }
 0x757   : > { %17466 = vst [vmem:[#allocation102_spill] sm:$0xff] %v14510_v40  ;;  %17467 = vst [vmem:[#allocation98_spill] sm:$0xff] %v14512_v3 }
 0x758   : > { %5684 = vrot.lane.b32.xlu1 %v5676_v53, %s11702_s10  ;;  %5581 = vrot.lane.b32.xlu0 %v5573_v37, %s11702_s10  ;;  %v5669_v37 = vrot.slane %v5654_v17, %v12798_v11  ;;  %v5625_v33 = vmul.f32 %v5622_v24, %v17461_v43  ;;  %v17475_v24 = vld [vmem:[#allocation100_spill] sm:$0xff] }
 0x759   : > { %v5789_v32 = vmul.f32 %v5783_v18, %v17475_v24 }
 0x75a   : > { %v14526_v40 = vpop.permute.xlu1 %4392  ;;  %v14528_v62 = vpop.permute.xlu0 %4443  ;;  %v5675_v17 = vmul.f32 %v5669_v37, %v17465_v12  ;;  %v17477_v12 = vld [vmem:[#allocation101_spill] sm:$0xff] }
 0x75b   : > { %17469 = vst [vmem:[#allocation104_spill] sm:$0xff] %v14526_v40  ;;  %17470 = vst [vmem:[#allocation179_spill] sm:$0xff] %v14528_v62  ;;  %v5746_v62 = vld [vmem:[#allocation5 + $0x8] sm:$0xf]  ;;  %v5866_v40 = vrot.slane %v14519_v39, %v12798_v11 }
 0x75c   : > { %5731 = vrot.lane.b32.xlu1 %v5725_v35, %s11702_s10  ;;  %5629 = vrot.lane.b32.xlu0 %v5623_v46, %s11702_s10  ;;  %v5709_v35 = vrot.slane %v14463_v52, %v12806_v14  ;;  %v5834_v46 = vrot.slane %v5819_v10, %v12788_v5 }
 0x75d   : > { %v5881_v10 = vrot.slane %v5866_v40, %v12798_v11 }
 0x75e   : > { %v14540_v50 = vpop.permute.xlu1 %4439  ;;  %v14542_v53 = vpop.permute.xlu0 %4503  ;;  %v5724_v52 = vrot.slane %v5709_v35, %v12806_v14  ;;  %v5840_v37 = vmul.f32 %v5834_v46, %v17477_v12  ;;  %v5917_v46 = vrot.slane %v14519_v39, %v12806_v14 }
 0x75f   : > { %17471 = vst [vmem:[#allocation180_spill] sm:$0xff] %v14540_v50  ;;  %17472 = vst [vmem:[#allocation181_spill] sm:$0xff] %v14542_v53  ;;  %v14563_v53 = vmul.f32 %v5749_v30, %v5746_v62 }
 0x760   : > { %5733 = vrot.lane.b32.xlu1 %v5726_v60, %s11702_s10  ;;  %5633 = vrot.lane.b32.xlu0 %v5625_v33, %s11702_s10  ;;  %v5764_v60 = vrot.slane %v14519_v39, %v12779_v8  ;;  %v5727_v18 = vmul.f32 %v5724_v52, %v17468_v16 }
 0x761   : > { %v5874_v30 = vrot.slane %v14563_v53, %v12798_v11  ;;  %v5772_v62 = vrot.slane %v14563_v53, %v12779_v8 }
 0x762   : > { %v14555_v9 = vpop.permute.xlu1 %4441  ;;  %v14557_v43 = vpop.permute.xlu0 %4507  ;;  %v5779_v35 = vrot.slane %v5764_v60, %v12779_v8 }
 0x763   : > { %17473 = vst [vmem:[#allocation182_spill] sm:$0xff] %v14555_v9  ;;  %17474 = vst [vmem:[#allocation183_spill] sm:$0xff] %v14557_v43  ;;  %v5889_v60 = vrot.slane %v5874_v30, %v12798_v11  ;;  %v5921_v30 = vrot.slane %v14519_v39, %v13706_v54 }
 0x764   : > { %5796 = vrot.lane.b32.xlu1 %v5789_v32, %s17476_s19  ;;  %5682 = vrot.lane.b32.xlu0 %v5675_v17, %s11702_s10  ;;  %v17480_v17 = vld [vmem:[#allocation103_spill] sm:$0xff]  ;;  %v5788_v52 = vmul.f32 %v5779_v35, %v17475_v24  ;;  %v5932_v35 = vrot.slane %v5917_v46, %v12806_v14 }
 0x765   : > { %v5890_v40 = vmul.f32 %v5881_v10, %v17480_v17  ;;  %v17483_v10 = vld [vmem:[#allocation106_spill] sm:$0xff]  ;;  %v5936_v46 = vrot.slane %v5921_v30, %v12806_v14 }
 0x766   : > { %v14569_v33 = vpop.permute.xlu1 %4505  ;;  %v14571_v43 = vpop.permute.xlu0 %4555 }
 0x767   : > { %17478 = vst [vmem:[#allocation100_spill] sm:$0xff] %v14569_v33  ;;  %17479 = vst [vmem:[#allocation101_spill] sm:$0xff] %v14571_v43  ;;  %v5787_v43 = vrot.slane %v5772_v62, %v12779_v8  ;;  %v14593_v33 = vld [vmem:[#allocation5 + $0x4] sm:$0xff]  ;;  %v5823_v62 = vrot.slane %v14563_v53, %v12788_v5 }
 0x768   : > { %5847 = vrot.lane.b32.xlu1 %v5840_v37, %s17476_s19  ;;  %5735 = vrot.lane.b32.xlu0 %v5727_v18, %s11702_s10  ;;  %v5815_v37 = vrot.slane %v14519_v39, %v12788_v5  ;;  %v17484_v18 = vrot.slane %v17483_v10, 4  ;;  %s17544_s10 = smov 79  }
 0x76a   : > { %v14584_v32 = vpop.permute.xlu1 %4557  ;;  %v14586_v16 = vpop.permute.xlu0 %4559  ;;  %v5830_v9 = vrot.slane %v5815_v37, %v12788_v5 }
 0x76b   : > { %17481 = vst [vmem:[#allocation103_spill] sm:$0xff] %v14584_v32  ;;  %17482 = vst [vmem:[#allocation184_spill] sm:$0xff] %v14586_v16  ;;  %v6116_v16 = vsel %vm1765_vm6, %v17484_v18, %v17483_v10  ;;  %v5838_v18 = vrot.slane %v5823_v62, %v12788_v5 }
 0x76c   : > { %5896 = vrot.lane.b32.xlu1 %v5890_v40, %s17476_s19  ;;  %5794 = vrot.lane.b32.xlu0 %v5788_v52, %s17476_s19  ;;  %v5892_v40 = vmul.f32 %v5889_v60, %v17480_v17  ;;  %v5790_v52 = vmul.f32 %v5787_v43, %v17475_v24  ;;  %v6119_v10 = vmul.f32 %v6116_v16, %v14593_v33 }
 0x76d   : > { %v5839_v43 = vmul.f32 %v5830_v9, %v17477_v12  ;;  %v5870_v16 = vrot.slane %v14519_v39, %v13693_v4  ;;  %v5841_v30 = vmul.f32 %v5838_v18, %v17477_v12  ;;  %v5925_v39 = vrot.slane %v14563_v53, %v12806_v14 }
 0x76e   : > { %v14606_v32 = vpop.permute.xlu1 %4606  ;;  %v14608_v50 = vpop.permute.xlu0 %4608  ;;  %v6130_v24 = vrot.slane %v6119_v10, %v12779_v8  ;;  %v6182_v12 = vrot.slane %v6119_v10, %v12788_v5 }
 0x76f   : > { %17485 = vst [vmem:[#allocation106_spill] sm:$0xff] %v14606_v32  ;;  %17486 = vst [vmem:[#allocation185_spill] sm:$0xff] %v14608_v50  ;;  %v17489_v50 = vld [vmem:[#allocation105_spill] sm:$0xff]  ;;  %v5885_v9 = vrot.slane %v5870_v16, %v12798_v11  ;;  %v5940_v53 = vrot.slane %v5925_v39, %v12806_v14  ;;  %v17498_v39 = vld [vmem:[#allocation114_spill] sm:$0xff] }
 0x770   : > { %5900 = vrot.lane.b32.xlu1 %v5892_v40, %s17476_s19  ;;  %5798 = vrot.lane.b32.xlu0 %v5790_v52, %s17476_s19  ;;  %v5941_v60 = vmul.f32 %v5932_v35, %v17489_v50  ;;  %v5942_v37 = vmul.f32 %v5936_v46, %v17489_v50  ;;  %v6145_v35 = vrot.slane %v6130_v24, %v12779_v8 }
 0x771   : > { %v6134_v52 = vrot.slane %v6119_v10, %v13655_v45  ;;  %v6186_v46 = vrot.slane %v6119_v10, %v13660_v25  ;;  %v5891_v16 = vmul.f32 %v5885_v9, %v17480_v17  ;;  %v5943_v17 = vmul.f32 %v5940_v53, %v17489_v50 }
 0x772   : > { %v14618_v3 = vpop.permute.xlu1 %4610  ;;  %v14620_v32 = vpop.permute.xlu0 %4661  ;;  %v6197_v9 = vrot.slane %v6182_v12, %v12788_v5  ;;  %v17502_v12 = vld [vmem:[#allocation117_spill] sm:$0xff] }
 0x773   : > { %17487 = vst [vmem:[#allocation186_spill] sm:$0xff] %v14618_v3  ;;  %17488 = vst [vmem:[#allocation187_spill] sm:$0xff] %v14620_v32  ;;  %v6149_v32 = vrot.slane %v6134_v52, %v12779_v8  ;;  %v6233_v52 = vrot.slane %v6119_v10, %v12798_v11 }
 0x774   : > { %5947 = vrot.lane.b32.xlu1 %v5941_v60, %s17476_s19  ;;  %5845 = vrot.lane.b32.xlu0 %v5839_v43, %s17476_s19  ;;  %v17494_v43 = vld [vmem:[#allocation116_spill] sm:$0xff] }
 0x775   : > { %v6154_v24 = vmul.f32 %v6145_v35, %v17494_v43  ;;  %v6155_v35 = vmul.f32 %v6149_v32, %v17494_v43  ;;  %v6284_v32 = vrot.slane %v6119_v10, %v12806_v14 }
 0x776   : > { %v14631_v62 = vpop.permute.xlu1 %4657  ;;  %v14633_v40 = vpop.permute.xlu0 %4720 }
 0x777   : > { %17490 = vst [vmem:[#allocation105_spill] sm:$0xff] %v14631_v62  ;;  %17491 = vst [vmem:[#allocation188_spill] sm:$0xff] %v14633_v40 }
 0x778   : > { %5949 = vrot.lane.b32.xlu1 %v5942_v37, %s17476_s19  ;;  %5849 = vrot.lane.b32.xlu0 %v5841_v30, %s17476_s19  ;;  %v6201_v37 = vrot.slane %v6186_v46, %v12788_v5  ;;  %v6237_v30 = vrot.slane %v6119_v10, %v13693_v4  ;;  %v17499_v46 = vrot.slane %v17498_v39, 4 }
 0x77a   : > { %v14644_v18 = vpop.permute.xlu1 %4659  ;;  %v14646_v60 = vpop.permute.xlu0 %4724  ;;  %v6207_v53 = vmul.f32 %v6201_v37, %v17502_v12  ;;  %v17505_v37 = vld [vmem:[#allocation118_spill] sm:$0xff] }
 0x77b   : > { %17492 = vst [vmem:[#allocation189_spill] sm:$0xff] %v14644_v18  ;;  %17493 = vst [vmem:[#allocation190_spill] sm:$0xff] %v14646_v60 }
 0x77c   : > { %6160 = vrot.lane.b32.xlu1 %v6154_v24, %s17495_s4  ;;  %5898 = vrot.lane.b32.xlu0 %v5891_v16, %s17476_s19  ;;  %v6334_v24 = vsel %vm6333_vm12, %v17499_v46, %v17498_v39  ;;  %v6252_v16 = vrot.slane %v6237_v30, %v12798_v11  ;;  %vm4070_vm12 = vcmask 1022976  }
 0x77d   : > { %v14680_v40 = vmul.f32 %v6334_v24, %v14593_v33 }
 0x77e   : > { %v14656_v3 = vpop.permute.xlu1 %4722  ;;  %v14658_v60 = vpop.permute.xlu0 %4771 }
 0x77f   : > { %17496 = vst [vmem:[#allocation116_spill] sm:$0xff] %v14656_v3  ;;  %17497 = vst [vmem:[#allocation191_spill] sm:$0xff] %v14658_v60  ;;  %v6288_v60 = vrot.slane %v6119_v10, %v13706_v54  ;;  %v6299_v10 = vrot.slane %v6284_v32, %v12806_v14  ;;  %v6348_v24 = vrot.slane %v14680_v40, %v12779_v8 }
 0x780   : > { %6162 = vrot.lane.b32.xlu1 %v6155_v35, %s17495_s4  ;;  %5951 = vrot.lane.b32.xlu0 %v5943_v17, %s17476_s19  ;;  %v6206_v35 = vmul.f32 %v6197_v9, %v17502_v12  ;;  %v6248_v17 = vrot.slane %v6233_v52, %v12798_v11  ;;  %v6352_v52 = vrot.slane %v14680_v40, %v13655_v45  ;;  %v17506_v12 = vld [vmem:[#allocation75_spill] sm:$0xff]  ;;  %s17821_s19 = smov 16  }
 0x781   : > { %v6303_v30 = vrot.slane %v6288_v60, %v12806_v14  ;;  %v17507_v60 = vld [vmem:[#allocation119_spill] sm:$0xff] }
 0x782   : > { %v14672_v43 = vpop.permute.xlu1 %4773  ;;  %v14674_v50 = vpop.permute.xlu0 %4775  ;;  %v6257_v9 = vmul.f32 %v6248_v17, %v17505_v37 }
 0x783   : > { %17500 = vst [vmem:[#allocation114_spill] sm:$0xff] %v14672_v43  ;;  %17501 = vst [vmem:[#allocation192_spill] sm:$0xff] %v14674_v50  ;;  %v6258_v50 = vmul.f32 %v6252_v16, %v17505_v37  ;;  %v6309_v32 = vmul.f32 %v6303_v30, %v17507_v60  ;;  %v6308_v16 = vmul.f32 %v6299_v10, %v17507_v60  ;;  %v17511_v10 = vld [vmem:[#allocation121_spill] sm:$0xff] }
 0x784   : > { %6214 = vrot.lane.b32.xlu1 %v6207_v53, %s17495_s4  ;;  %6212 = vrot.lane.b32.xlu0 %v6206_v35, %s17495_s4  ;;  %v6367_v37 = vrot.slane %v6352_v52, %v12779_v8  ;;  %v6404_v53 = vrot.slane %v14680_v40, %v13660_v25  ;;  %v17512_v60 = vrot.slane %v17511_v10, 4  ;;  %v6451_v52 = vrot.slane %v14680_v40, %v12798_v11 }
 0x786   : > { %v14686_v39 = vpop.permute.xlu1 %4822  ;;  %v14688_v46 = vpop.permute.xlu0 %4824 }
 0x787   : > { %17503 = vst [vmem:[#allocation117_spill] sm:$0xff] %v14686_v39  ;;  %17504 = vst [vmem:[#allocation193_spill] sm:$0xff] %v14688_v46  ;;  %v6363_v39 = vrot.slane %v6348_v24, %v12779_v8  ;;  %v6455_v24 = vrot.slane %v14680_v40, %v13693_v4 }
 0x788   : > { %6265 = vrot.lane.b32.xlu1 %v6258_v50, %s17495_s4  ;;  %6263 = vrot.lane.b32.xlu0 %v6257_v9, %s17495_s4  ;;  %v6400_v50 = vrot.slane %v14680_v40, %v12788_v5  ;;  %v17510_v9 = vrot.slane %v17506_v12, 4 }
 0x78a   : > { %v14701_v35 = vpop.permute.xlu1 %4826  ;;  %v14703_v17 = vpop.permute.xlu0 %4877  ;;  %v3432_v30 = vsel %vm3431_vm14, %v17510_v9, %v17506_v12 }
 0x78b   : > { %17508 = vst [vmem:[#allocation118_spill] sm:$0xff] %v14701_v35  ;;  %17509 = vst [vmem:[#allocation75_spill] sm:$0xff] %v14703_v17  ;;  %v6552_v35 = vsel %vm6551_vm15, %v17512_v60, %v17511_v10  ;;  %v11497_v17 = vld [vmem:[#allocation5] sm:$0xff]  ;;  %v17515_v10 = vld [vmem:[#allocation120_spill] sm:$0xff]  ;;  %vm7628_vm15 = vcmask 244736  }
 0x78c   : > { %v14718_v46 = vmul.f32 %v11497_v17, %v3432_v30  ;;  %6316 = vrot.lane.b32.xlu1 %v6309_v32, %s17495_s4  ;;  %6314 = vrot.lane.b32.xlu0 %v6308_v16, %s17495_s4  ;;  %v14727_v43 = vmul.f32 %v6552_v35, %v14593_v33  ;;  %v6373_v17 = vmul.f32 %v6367_v37, %v17515_v10  ;;  %s11710_s4 = smov (!%p10763_p8), 1  }
 0x78d   : > { %v6372_v30 = vmul.f32 %v6363_v39, %v17515_v10  ;;  %v6419_v32 = vrot.slane %v6404_v53, %v12788_v5  ;;  %v6415_v16 = vrot.slane %v6400_v50, %v12788_v5  ;;  %v6502_v37 = vrot.slane %v14680_v40, %v12806_v14  ;;  %v17519_v50 = vld [vmem:[#allocation122_spill] sm:$0xff] }
 0x78e   : > { %v14729_v9 = vpop.permute.xlu1 %4873  ;;  %v14731_v3 = vpop.permute.xlu0 %5142  ;;  %v3447_v60 = vrot.slane %v14718_v46, %v12779_v8  ;;  %v3484_v35 = vrot.slane %v14718_v46, %v12788_v5  ;;  %v3558_v51 = vrot.slane %v14718_v46, %v12806_v14  ;;  %v6622_v19 = vrot.slane %v14727_v43, %v13660_v25 }
 0x78f   : > { %17513 = vst [vmem:[#allocation119_spill] sm:$0xff] %v14729_v9  ;;  %17514 = vst [vmem:[#allocation121_spill] sm:$0xff] %v14731_v3  ;;  %v6466_v3 = vrot.slane %v6451_v52, %v12798_v11  ;;  %v6425_v10 = vmul.f32 %v6419_v32, %v17519_v50  ;;  %v6424_v9 = vmul.f32 %v6415_v16, %v17519_v50 }
 0x790   : > { %6380 = vrot.lane.b32.xlu1 %v6373_v17, %s17516_s25  ;;  %6378 = vrot.lane.b32.xlu0 %v6372_v30, %s17516_s25  ;;  %v6470_v17 = vrot.slane %v6455_v24, %v12798_v11  ;;  %v6566_v30 = vrot.slane %v14727_v43, %v12779_v8  ;;  %v3462_v62 = vrot.slane %v3447_v60, %v12779_v8 }
 0x791   : > { %v3499_v52 = vrot.slane %v3484_v35, %v12788_v5  ;;  %v6506_v60 = vrot.slane %v14680_v40, %v13706_v54  ;;  %v3521_v35 = vrot.slane %v14718_v46, %v12798_v11  ;;  %v6570_v40 = vrot.slane %v14727_v43, %v13655_v45 }
 0x792   : > { %v14746_v39 = vpop.permute.xlu1 %4875  ;;  %v14748_v53 = vpop.permute.xlu0 %5146  ;;  %v6581_v50 = vrot.slane %v6566_v30, %v12779_v8  ;;  %v6673_v30 = vrot.slane %v14727_v43, %v13693_v4 }
 0x793   : > { %17517 = vst [vmem:[#allocation120_spill] sm:$0xff] %v14746_v39  ;;  %17518 = vst [vmem:[#allocation194_spill] sm:$0xff] %v14748_v53  ;;  %v17520_v39 = vld [vmem:[#allocation123_spill] sm:$0xff]  ;;  %v6517_v53 = vrot.slane %v6502_v37, %v12806_v14  ;;  %v3536_v44 = vrot.slane %v3521_v35, %v12798_v11  ;;  %v17533_v35 = vld [vmem:[#allocation126_spill] sm:$0xff] }
 0x794   : > { %6432 = vrot.lane.b32.xlu1 %v6425_v10, %s17516_s25  ;;  %6430 = vrot.lane.b32.xlu0 %v6424_v9, %s17516_s25  ;;  %v6475_v18 = vmul.f32 %v6466_v3, %v17520_v39  ;;  %v6476_v24 = vmul.f32 %v6470_v17, %v17520_v39  ;;  %v6618_v9 = vrot.slane %v14727_v43, %v12788_v5  ;;  %v17523_v3 = vld [vmem:[#allocation131_spill] sm:$0xff]  ;;  %v17526_v39 = vld [vmem:[#allocation80_spill] sm:$0xff] }
 0x795   : > { %v17524_v37 = vrot.slane %v17523_v3, 4  ;;  %v3508_v17 = vmul.f32 %v3499_v52, %v17526_v39 }
 0x796   : > { %v14761_v32 = vpop.permute.xlu1 %5144  ;;  %v14763_v16 = vpop.permute.xlu0 %5194  ;;  %v6633_v52 = vrot.slane %v6618_v9, %v12788_v5 }
 0x797   : > { %17521 = vst [vmem:[#allocation122_spill] sm:$0xff] %v14761_v32  ;;  %17522 = vst [vmem:[#allocation123_spill] sm:$0xff] %v14763_v16  ;;  %v6769_v10 = vsel %vm1707_vm3, %v17524_v37, %v17523_v3  ;;  %v17525_v32 = vld [vmem:[#allocation46_spill] sm:$0xff] }
 0x798   : > { %v3471_v16 = vmul.f32 %v3462_v62, %v17525_v32  ;;  %6481 = vrot.lane.b32.xlu1 %v6475_v18, %s17516_s25  ;;  %6483 = vrot.lane.b32.xlu0 %v6476_v24, %s17516_s25  ;;  %v14786_v20 = vmul.f32 %v6769_v10, %v14593_v33  ;;  %v17529_v62 = vld [vmem:[#allocation124_spill] sm:$0xff]  ;;  %v17530_v18 = vld [vmem:[#allocation125_spill] sm:$0xff]  ;;  %v6521_v24 = vrot.slane %v6506_v60, %v12806_v14 }
 0x799   : > { %v6526_v37 = vmul.f32 %v6517_v53, %v17529_v62  ;;  %v6590_v27 = vmul.f32 %v6581_v50, %v17530_v18  ;;  %v6688_v53 = vrot.slane %v6673_v30, %v12798_v11  ;;  %v3573_v30 = vrot.slane %v3558_v51, %v12806_v14 }
 0x79a   : > { %v14788_v23 = vpop.permute.xlu1 %5196  ;;  %v14790_v3 = vpop.permute.xlu0 %5198  ;;  %v3511_v10 = vadd.f32 %v3508_v17, %v3471_v16  ;;  %v6527_v9 = vmul.f32 %v6521_v24, %v17529_v62  ;;  %v17535_v17 = vld [vmem:[#allocation88_spill] sm:$0xff]  ;;  %v6669_v24 = vrot.slane %v14727_v43, %v12798_v11  ;;  %v6637_v51 = vrot.slane %v6622_v19, %v12788_v5 }
 0x79b   : > { %17527 = vst [vmem:[#allocation131_spill] sm:$0xff] %v14788_v23  ;;  %17528 = vst [vmem:[#allocation46_spill] sm:$0xff] %v14790_v3  ;;  %v6585_v3 = vrot.slane %v6570_v40, %v12779_v8  ;;  %v6642_v23 = vmul.f32 %v6633_v52, %v17533_v35  ;;  %v3545_v40 = vmul.f32 %v3536_v44, %v17535_v17  ;;  %v17538_v44 = vld [vmem:[#allocation127_spill] sm:$0xff] }
 0x79c   : > { %6532 = vrot.lane.b32.xlu1 %v6526_v37, %s17516_s25  ;;  %6596 = vrot.lane.b32.xlu0 %v6590_v27, %s11686_s28  ;;  %v6783_v37 = vrot.slane %v14786_v20, %v12779_v8  ;;  %v17534_v27 = vrot.slane %v17506_v12, 4  ;;  %v6835_v52 = vrot.slane %v14786_v20, %v12788_v5  ;;  %v6684_v19 = vrot.slane %v6669_v24, %v12798_v11  ;;  %v17542_v24 = vld [vmem:[#allocation134_spill] sm:$0xff] }
 0x79d   : > { %v3548_v62 = vadd.f32 %v3545_v40, %v3511_v10 }
 0x79e   : > { %v14803_v50 = vpop.permute.xlu1 %5247  ;;  %v14805_v60 = vpop.permute.xlu0 %5245  ;;  %v14815_v16 = vmul.f32 %v17534_v27, %v3424_v56  ;;  %v6591_v56 = vmul.f32 %v6585_v3, %v17530_v18  ;;  %v6694_v27 = vmul.f32 %v6688_v53, %v17538_v44  ;;  %v6850_v18 = vrot.slane %v6835_v52, %v12788_v5 }
 0x79f   : > { %17531 = vst [vmem:[#allocation80_spill] sm:$0xff] %v14803_v50  ;;  %17532 = vst [vmem:[#allocation124_spill] sm:$0xff] %v14805_v60  ;;  %v3645_v50 = vsel %vm1725_vm7, %v14293_v58, %v14267_v41  ;;  %v6720_v53 = vrot.slane %v14727_v43, %v12806_v14  ;;  %v17543_v52 = vrot.slane %v17542_v24, 4 }
 0x7a0   : > { %6534 = vrot.lane.b32.xlu1 %v6527_v9, %s17516_s25  ;;  %6648 = vrot.lane.b32.xlu0 %v6642_v23, %s11686_s28  ;;  %v6798_v9 = vrot.slane %v6783_v37, %v12779_v8  ;;  %v17539_v23 = vld [vmem:[#allocation85_spill] sm:$0xff]  ;;  %v3455_v40 = vrot.slane %v14815_v16, %v12779_v8  ;;  %v3696_v37 = vsel %vm1725_vm7, %v14325_v42, %v14341_v13  ;;  %s11711_s25 = smov (!%p10763_p8), 15  }
 0x7a1   : > { %v3582_v10 = vmul.f32 %v3573_v30, %v17539_v23  ;;  %v3529_v42 = vrot.slane %v14815_v16, %v12798_v11 }
 0x7a2   : > { %v14825_v60 = vpop.permute.xlu1 %5298  ;;  %v14827_v12 = vpop.permute.xlu0 %5249  ;;  %v3470_v0 = vrot.slane %v3455_v40, %v12779_v8  ;;  %v6735_v40 = vrot.slane %v6720_v53, %v12806_v14 }
 0x7a3   : > { %17536 = vst [vmem:[#allocation125_spill] sm:$0xff] %v14825_v60  ;;  %17537 = vst [vmem:[#allocation126_spill] sm:$0xff] %v14827_v12  ;;  %v3492_v12 = vrot.slane %v14815_v16, %v12788_v5  ;;  %v3585_v3 = vadd.f32 %v3582_v10, %v3548_v62  ;;  %v17541_v60 = vld [vmem:[#allocation128_spill] sm:$0xff]  ;;  %v6886_v62 = vrot.slane %v14786_v20, %v12798_v11 }
 0x7a4   : > { %6598 = vrot.lane.b32.xlu1 %v6591_v56, %s11686_s28  ;;  %6701 = vrot.lane.b32.xlu0 %v6694_v27, %s11686_s28  ;;  %v6643_v56 = vmul.f32 %v6637_v51, %v17533_v35  ;;  %v6807_v27 = vmul.f32 %v6798_v9, %v17541_v60  ;;  %v7193_v10 = vsel %vm1604_vm10, %v17543_v52, %v17542_v24  ;;  %v11498_v51 = vld [vmem:[#allocation5 + $0x4] sm:$0xff] }
 0x7a5   : > { %v3650_v41 = vadd.f32 %v3645_v50, %v3585_v3  ;;  %v3747_v35 = vsel %vm1725_vm7, %v14357_v31, %v14295_v6  ;;  %v14871_v9 = vmul.f32 %v11498_v51, %v7193_v10  ;;  %v6693_v50 = vmul.f32 %v6684_v19, %v17538_v44 }
 0x7a6   : > { %v14850_v58 = vpop.permute.xlu1 %5362  ;;  %v14852_v30 = vpop.permute.xlu0 %5296  ;;  %v6724_v3 = vrot.slane %v14727_v43, %v13706_v54  ;;  %v6901_v10 = vrot.slane %v6886_v62, %v12798_v11  ;;  %v3473_v19 = vmul.f32 %v3470_v0, %v17525_v32  ;;  %v3544_v53 = vrot.slane %v3529_v42, %v12798_v11  ;;  %v17549_v0 = vld [vmem:[#allocation130_spill] sm:$0xff] }
 0x7a7   : > { %17540 = vst [vmem:[#allocation88_spill] sm:$0xff] %v14850_v58  ;;  %v3507_v58 = vrot.slane %v3492_v12, %v12788_v5  ;;  %v3701_v24 = vadd.f32 %v3696_v37, %v3650_v41  ;;  %v3798_v12 = vsel %vm1725_vm7, %v14385_v1, %v14401_v22  ;;  %v6937_v41 = vrot.slane %v14786_v20, %v12806_v14  ;;  %v17547_v37 = vld [vmem:[#allocation133_spill] sm:$0xff] }
 0x7a8   : > { %6650 = vrot.lane.b32.xlu1 %v6643_v56, %s11686_s28  ;;  %6813 = vrot.lane.b32.xlu0 %v6807_v27, %s17544_s10  ;;  %v17546_v27 = vld [vmem:[#allocation129_spill] sm:$0xff]  ;;  %v3566_v1 = vrot.slane %v14815_v16, %v12806_v14  ;;  %v6744_v62 = vmul.f32 %v6735_v40, %v17547_v37  ;;  %v6739_v51 = vrot.slane %v6724_v3, %v12806_v14 }
 0x7a9   : > { %v6859_v52 = vmul.f32 %v6850_v18, %v17546_v27  ;;  %v3752_v44 = vadd.f32 %v3747_v35, %v3701_v24  ;;  %v3510_v43 = vmul.f32 %v3507_v58, %v17526_v39  ;;  %v6910_v58 = vmul.f32 %v6901_v10, %v17549_v0 }
 0x7aa   : > { %v14880_v31 = vpop.permute.xlu1 %5414  ;;  %v14882_v56 = vpop.permute.xlu0 %5300  ;;  %v6952_v42 = vrot.slane %v6937_v41, %v12806_v14  ;;  %v6787_v24 = vrot.slane %v14786_v20, %v13655_v45  ;;  %v3854_v16 = vsel %vm3853_vm2, %v13974_v28, %v13972_v29  ;;  %v3547_v3 = vmul.f32 %v3544_v53, %v17535_v17  ;;  %v17552_v28 = vld [vmem:[#allocation132_spill] sm:$0xff] }
 0x7ab   : > { %17545 = vst [vmem:[#allocation127_spill] sm:$0xff] %v14882_v56  ;;  %v3803_v18 = vadd.f32 %v3798_v12, %v3752_v44  ;;  %v3513_v40 = vadd.f32 %v3510_v43, %v3473_v19  ;;  %v3581_v12 = vrot.slane %v3566_v1, %v12806_v14  ;;  %v6745_v10 = vmul.f32 %v6739_v51, %v17547_v37 }
 0x7ac   : > { %6699 = vrot.lane.b32.xlu1 %v6693_v50, %s11686_s28  ;;  %6865 = vrot.lane.b32.xlu0 %v6859_v52, %s17544_s10  ;;  %v7211_v50 = vrot.slane %v14871_v9, %v13655_v45  ;;  %v6839_v41 = vrot.slane %v14786_v20, %v13660_v25  ;;  %v6961_v19 = vmul.f32 %v6952_v42, %v17552_v28 }
 0x7ad   : > { %v3859_v52 = vadd.f32 %v3854_v16, %v3803_v18  ;;  %v6802_v43 = vrot.slane %v6787_v24, %v12779_v8  ;;  %v3905_v1 = vsel %vm3853_vm2, %v14005_v15, %v13987_v61  ;;  %v3550_v18 = vadd.f32 %v3547_v3, %v3513_v40  ;;  %v17554_v15 = vld [vmem:[#allocation138_spill] sm:$0xff] }
 0x7ae   : > { %v14897_v56 = vpop.permute.xlu1 %5463  ;;  %v14899_v35 = vpop.permute.xlu0 %5360  ;;  %v7226_v53 = vrot.slane %v7211_v50, %v12779_v8  ;;  %v3584_v37 = vmul.f32 %v3581_v12, %v17539_v23  ;;  %v6890_v42 = vrot.slane %v14786_v20, %v13693_v4  ;;  %v17555_v12 = vld [vmem:[#allocation137_spill] sm:$0xff] }
 0x7af   : > { %17548 = vst [vmem:[#allocation85_spill] sm:$0xff] %v14897_v56  ;;  %v3910_v51 = vadd.f32 %v3905_v1, %v3859_v52  ;;  %v6808_v16 = vmul.f32 %v6802_v43, %v17541_v60  ;;  %v17556_v52 = vrot.slane %v17555_v12, 4 }
 0x7b0   : > { %6750 = vrot.lane.b32.xlu1 %v6744_v62, %s11686_s28  ;;  %6916 = vrot.lane.b32.xlu0 %v6910_v58, %s17544_s10  ;;  %v7259_v62 = vrot.slane %v14871_v9, %v12788_v5  ;;  %v6854_v58 = vrot.slane %v6839_v41, %v12788_v5  ;;  %v7232_v40 = vmul.f32 %v7226_v53, %v17554_v15 }
 0x7b1   : > { %v7411_v41 = vsel %vm7410_vm1, %v17556_v52, %v17555_v12  ;;  %v3587_v1 = vadd.f32 %v3584_v37, %v3550_v18  ;;  %v6905_v43 = vrot.slane %v6890_v42, %v12798_v11  ;;  %v6941_v53 = vrot.slane %v14786_v20, %v13706_v54  ;;  %v17559_v18 = vld [vmem:[#allocation140_spill] sm:$0xff] }
 0x7b2   : > { %v14917_v44 = vpop.permute.xlu1 %5467  ;;  %v14919_v56 = vpop.permute.xlu0 %5364  ;;  %v7274_v3 = vrot.slane %v7259_v62, %v12788_v5  ;;  %v14956_v62 = vmul.f32 %v7411_v41, %v14593_v33  ;;  %v3451_v42 = vrot.slane %v14718_v46, %v13655_v45  ;;  %v3488_v20 = vrot.slane %v14718_v46, %v13660_v25 }
 0x7b3   : > { %17550 = vst [vmem:[#allocation128_spill] sm:$0xff] %v14917_v44  ;;  %17551 = vst [vmem:[#allocation134_spill] sm:$0xff] %v14919_v56  ;;  %v3652_v52 = vadd.f32 %v14310_v59, %v3587_v1  ;;  %vm4291_vm1 = vcmask 1014784  }
 0x7b4   : > { %6752 = vrot.lane.b32.xlu1 %v6745_v10, %s11686_s28  ;;  %6967 = vrot.lane.b32.xlu0 %v6961_v19, %s17544_s10  ;;  %v7314_v10 = vrot.slane %v14871_v9, %v13693_v4  ;;  %v3956_v19 = vsel %vm3853_vm2, %v14003_v34, %v14032_v7  ;;  %v6860_v34 = vmul.f32 %v6854_v58, %v17546_v27  ;;  %s11706_s28 = smov 60  }
 0x7b5   : > { %v3961_v60 = vadd.f32 %v3956_v19, %v3910_v51  ;;  %v7283_v37 = vmul.f32 %v7274_v3, %v17559_v18  ;;  %v7361_v51 = vrot.slane %v14871_v9, %v12806_v14  ;;  %v6956_v58 = vrot.slane %v6941_v53, %v12806_v14 }
 0x7b6   : > { %v14935_v24 = vpop.permute.xlu1 %5514  ;;  %v14937_v50 = vpop.permute.xlu0 %5412  ;;  %v7207_v3 = vrot.slane %v14871_v9, %v12779_v8  ;;  %v6911_v19 = vmul.f32 %v6905_v43, %v17549_v0  ;;  %v3503_v53 = vrot.slane %v3488_v20, %v12788_v5  ;;  %v4071_v0 = vsel %vm4070_vm12, %v14327_v2, %v14419_v21 }
 0x7b7   : > { %17553 = vst [vmem:[#allocation129_spill] sm:$0xff] %v14935_v24  ;;  %v7376_v1 = vrot.slane %v7361_v51, %v12806_v14 }
 0x7b8   : > { %6815 = vrot.lane.b32.xlu1 %v6808_v16, %s17544_s10  ;;  %7239 = vrot.lane.b32.xlu0 %v7232_v40, %s11692_s23  ;;  %v7329_v16 = vrot.slane %v7314_v10, %v12798_v11  ;;  %v4007_v40 = vsel %vm3853_vm2, %v14030_v48, %v14050_v57  ;;  %v17561_v48 = vld [vmem:[#allocation142_spill] sm:$0xff]  ;;  %v7222_v51 = vrot.slane %v7207_v3, %v12779_v8 }
 0x7b9   : > { %v4012_v27 = vadd.f32 %v4007_v40, %v3961_v60  ;;  %v3466_v60 = vrot.slane %v3451_v42, %v12779_v8  ;;  %v3703_v40 = vadd.f32 %v14280_v47, %v3652_v52  ;;  %v7263_v42 = vrot.slane %v14871_v9, %v13660_v25 }
 0x7ba   : > { %v14958_v44 = vpop.permute.xlu1 %5516  ;;  %v14960_v12 = vpop.permute.xlu0 %5416  ;;  %v3562_v3 = vrot.slane %v14718_v46, %v13706_v54 }
 0x7bb   : > { %17557 = vst [vmem:[#allocation133_spill] sm:$0xff] %v14958_v44  ;;  %17558 = vst [vmem:[#allocation130_spill] sm:$0xff] %v14960_v12  ;;  %v7335_v12 = vmul.f32 %v7329_v16, %v17561_v48  ;;  %v4076_v43 = vadd.f32 %v4071_v0, %v4012_v27  ;;  %v6962_v16 = vmul.f32 %v6956_v58, %v17552_v28 }
 0x7bc   : > { %6867 = vrot.lane.b32.xlu1 %v6860_v34, %s17544_s10  ;;  %7289 = vrot.lane.b32.xlu0 %v7283_v37, %s11692_s23  ;;  %v7429_v34 = vrot.slane %v14956_v62, %v13655_v45  ;;  %v3525_v37 = vrot.slane %v14718_v46, %v13693_v4  ;;  %v3754_v20 = vadd.f32 %v14371_v63, %v3703_v40 }
 0x7bd   : > { %v3472_v28 = vmul.f32 %v3466_v60, %v17525_v32  ;;  %v3509_v27 = vmul.f32 %v3503_v53, %v17526_v39  ;;  %v4122_v40 = vsel %vm4070_vm12, %v14359_v26, %v14433_v49  ;;  %v7278_v39 = vrot.slane %v7263_v42, %v12788_v5 }
 0x7be   : > { %v14980_v10 = vpop.permute.xlu1 %5579  ;;  %v14982_v41 = vpop.permute.xlu0 %5465  ;;  %v3540_v58 = vrot.slane %v3525_v37, %v12798_v11  ;;  %v4127_v32 = vadd.f32 %v4122_v40, %v4076_v43  ;;  %v3805_v46 = vadd.f32 %v14312_v36, %v3754_v20  ;;  %v7231_v26 = vmul.f32 %v7222_v51, %v17554_v15  ;;  %v17567_v37 = vld [vmem:[#allocation144_spill] sm:$0xff] }
 0x7bf   : > { %17560 = vst [vmem:[#allocation132_spill] sm:$0xff] %v14980_v10  ;;  %v17564_v10 = vld [vmem:[#allocation139_spill] sm:$0xff]  ;;  %v3512_v42 = vadd.f32 %v3509_v27, %v3472_v28  ;;  %v4173_v20 = vsel %vm4070_vm12, %v14387_v38, %v14447_v55  ;;  %v7365_v51 = vrot.slane %v14871_v9, %v13706_v54  ;;  %v7579_v28 = vrot.slane %v14956_v62, %v12806_v14  ;;  %v17570_v27 = vld [vmem:[#allocation110_spill] sm:$0xff] }
 0x7c0   : > { %6918 = vrot.lane.b32.xlu1 %v6911_v19, %s17544_s10  ;;  %7342 = vrot.lane.b32.xlu0 %v7335_v12, %s11692_s23  ;;  %v7385_v2 = vmul.f32 %v7376_v1, %v17564_v10  ;;  %v7444_v19 = vrot.slane %v7429_v34, %v12779_v8  ;;  %v7477_v12 = vrot.slane %v14956_v62, %v12788_v5 }
 0x7c1   : > { %v7310_v1 = vrot.slane %v14871_v9, %v12798_v11  ;;  %v7532_v34 = vrot.slane %v14956_v62, %v13693_v4  ;;  %v3861_v38 = vadd.f32 %v17570_v27, %v3805_v46  ;;  %v17576_v46 = vld [vmem:[#allocation92_spill] sm:$0xff] }
 0x7c2   : > { %v15004_v56 = vpop.permute.xlu1 %5631  ;;  %v15006_v52 = vpop.permute.xlu0 %5518  ;;  %v7450_v0 = vmul.f32 %v7444_v19, %v17567_v37  ;;  %v4178_v19 = vadd.f32 %v4173_v20, %v4127_v32 }
 0x7c3   : > { %17562 = vst [vmem:[#allocation138_spill] sm:$0xff] %v15004_v56  ;;  %17563 = vst [vmem:[#allocation137_spill] sm:$0xff] %v15006_v52  ;;  %v3546_v52 = vmul.f32 %v3540_v58, %v17535_v17  ;;  %v3577_v56 = vrot.slane %v3562_v3, %v12806_v14  ;;  %v7325_v15 = vrot.slane %v7310_v1, %v12798_v11  ;;  %v17571_v58 = vld [vmem:[#allocation95_spill] sm:$0xff] }
 0x7c4   : > { %6969 = vrot.lane.b32.xlu1 %v6962_v16, %s17544_s10  ;;  %7391 = vrot.lane.b32.xlu0 %v7385_v2, %s11692_s23  ;;  %v7492_v16 = vrot.slane %v7477_v12, %v12788_v5  ;;  %v17568_v2 = vld [vmem:[#allocation141_spill] sm:$0xff]  ;;  %v7284_v12 = vmul.f32 %v7278_v39, %v17559_v18  ;;  %v7547_v17 = vrot.slane %v7532_v34, %v12798_v11  ;;  %v17572_v3 = vld [vmem:[#allocation87_spill] sm:$0xff]  ;;  %s11712_s10 = smov (!%p10763_p8), 16  }
 0x7c5   : > { %v17569_v43 = vrot.slane %v17568_v2, 4  ;;  %v3549_v18 = vadd.f32 %v3546_v52, %v3512_v42  ;;  %v7425_v39 = vrot.slane %v14956_v62, %v12779_v8  ;;  %v3583_v34 = vmul.f32 %v3577_v56, %v17539_v23  ;;  %v17580_v56 = vld [vmem:[#allocation111_spill] sm:$0xff] }
 0x7c6   : > { %v15028_v60 = vpop.permute.xlu1 %5680  ;;  %v15030_v53 = vpop.permute.xlu0 %5577  ;;  %v7594_v42 = vrot.slane %v7579_v28, %v12806_v14  ;;  %v3697_v28 = vsel %vm1725_vm7, %v14341_v13, %v14280_v47  ;;  %v3748_v47 = vsel %vm1725_vm7, %v14295_v6, %v14371_v63  ;;  %v17588_v13 = vld [vmem:[#allocation113_spill] sm:$0xff]  ;;  %v3799_v63 = vsel %vm1725_vm7, %v14401_v22, %v14312_v36  ;;  %v17594_v6 = vld [vmem:[#allocation100_spill] sm:$0xff]  ;;  %v17597_v36 = vld [vmem:[#allocation103_spill] sm:$0xff] }
 0x7c7   : > { %17565 = vst [vmem:[#allocation140_spill] sm:$0xff] %v15028_v60  ;;  %17566 = vst [vmem:[#allocation142_spill] sm:$0xff] %v15030_v53  ;;  %v7629_v40 = vsel %vm7628_vm15, %v17569_v43, %v17568_v2  ;;  %v17575_v2 = vld [vmem:[#allocation146_spill] sm:$0xff]  ;;  %v3912_v60 = vadd.f32 %v17580_v56, %v3861_v38  ;;  %v17582_v53 = vld [vmem:[#allocation99_spill] sm:$0xff]  ;;  %vm7846_vm15 = vcmask 252928  }
 0x7c8   : > { %7237 = vrot.lane.b32.xlu1 %v7231_v26, %s11692_s23  ;;  %7457 = vrot.lane.b32.xlu0 %v7450_v0, %s11693_s16  ;;  %v4224_v26 = vsel %vm4070_vm12, %v17572_v3, %v17571_v58  ;;  %v7501_v9 = vmul.f32 %v7492_v16, %v17575_v2  ;;  %v15062_v32 = vmul.f32 %v7629_v40, %v14593_v33  ;;  %v17577_v43 = vld [vmem:[#allocation90_spill] sm:$0xff]  ;;  %v17598_v22 = vld [vmem:[#allocation101_spill] sm:$0xff] }
 0x7c9   : > { %v4292_v20 = vsel %vm4291_vm1, %v17577_v43, %v17576_v46  ;;  %v7380_v3 = vrot.slane %v7365_v51, %v12806_v14  ;;  %v4229_v16 = vadd.f32 %v4224_v26, %v4178_v19  ;;  %v7334_v40 = vmul.f32 %v7325_v15, %v17561_v48  ;;  %v17581_v43 = vld [vmem:[#allocation94_spill] sm:$0xff] }
 0x7ca   : > { %v15056_v0 = vpop.permute.xlu1 %5684  ;;  %v15058_v1 = vpop.permute.xlu0 %5581  ;;  %v7647_v48 = vrot.slane %v15062_v32, %v13655_v45  ;;  %v3586_v15 = vadd.f32 %v3583_v34, %v3549_v18  ;;  %v17585_v38 = vld [vmem:[#allocation98_spill] sm:$0xff] }
 0x7cb   : > { %17573 = vst [vmem:[#allocation139_spill] sm:$0xff] %v15056_v0  ;;  %17574 = vst [vmem:[#allocation144_spill] sm:$0xff] %v15058_v1  ;;  %v17578_v0 = vld [vmem:[#allocation147_spill] sm:$0xff]  ;;  %v17579_v1 = vld [vmem:[#allocation178_spill] sm:$0xff]  ;;  %v4297_v19 = vadd.f32 %v4292_v20, %v4229_v16  ;;  %v7695_v16 = vrot.slane %v15062_v32, %v12788_v5 }
 0x7cc   : > { %7291 = vrot.lane.b32.xlu1 %v7284_v12, %s11692_s23  ;;  %7507 = vrot.lane.b32.xlu0 %v7501_v9, %s11693_s16  ;;  %v7553_v52 = vmul.f32 %v7547_v17, %v17578_v0  ;;  %v3646_v23 = vsel %vm1725_vm7, %v17579_v1, %v14310_v59  ;;  %v4343_v12 = vsel %vm4291_vm1, %v17582_v53, %v17581_v43  ;;  %v17586_v53 = vld [vmem:[#allocation102_spill] sm:$0xff] }
 0x7cd   : > { %v7440_v17 = vrot.slane %v7425_v39, %v12779_v8  ;;  %v7481_v59 = vrot.slane %v14956_v62, %v13660_v25  ;;  %v4394_v26 = vsel %vm4291_vm1, %v17586_v53, %v17585_v38  ;;  %v7386_v1 = vmul.f32 %v7380_v3, %v17564_v10  ;;  %v17587_v39 = vld [vmem:[#allocation143_spill] sm:$0xff]  ;;  %v17589_v53 = vld [vmem:[#allocation182_spill] sm:$0xff] }
 0x7ce   : > { %v15083_v9 = vpop.permute.xlu1 %5731  ;;  %v15085_v51 = vpop.permute.xlu0 %5629  ;;  %v3651_v18 = vadd.f32 %v3646_v23, %v3586_v15  ;;  %v4348_v34 = vadd.f32 %v4343_v12, %v4297_v19  ;;  %v7603_v20 = vmul.f32 %v7594_v42, %v17587_v39  ;;  %v7662_v3 = vrot.slane %v7647_v48, %v12779_v8  ;;  %v17593_v42 = vld [vmem:[#allocation38_spill] sm:$0xff] }
 0x7cf   : > { %17583 = vst [vmem:[#allocation141_spill] sm:$0xff] %v15083_v9  ;;  %17584 = vst [vmem:[#allocation110_spill] sm:$0xff] %v15085_v51  ;;  %v3963_v9 = vadd.f32 %v17588_v13, %v3912_v60  ;;  %v17590_v51 = vld [vmem:[#allocation180_spill] sm:$0xff]  ;;  %v7703_v23 = vrot.slane %v17593_v42, %v12788_v5  ;;  %v17595_v60 = vld [vmem:[#allocation181_spill] sm:$0xff]  ;;  %v7710_v44 = vrot.slane %v7695_v16, %v12788_v5 }
 0x7d0   : > { %7340 = vrot.lane.b32.xlu1 %v7334_v40, %s11692_s23  ;;  %7560 = vrot.lane.b32.xlu0 %v7553_v52, %s11693_s16  ;;  %v4445_v40 = vsel %vm4291_vm1, %v17590_v51, %v17589_v53  ;;  %v3702_v12 = vadd.f32 %v3697_v28, %v3651_v18  ;;  %v4399_v15 = vadd.f32 %v4394_v26, %v4348_v34  ;;  %v17596_v18 = vld [vmem:[#allocation59_spill] sm:$0xff] }
 0x7d1   : > { %v4510_v19 = vsel %vm1942_vm5, %v17595_v60, %v17594_v6  ;;  %v7528_v51 = vrot.slane %v14956_v62, %v12798_v11  ;;  %v7449_v28 = vmul.f32 %v7440_v17, %v17567_v37  ;;  %v7496_v26 = vrot.slane %v7481_v59, %v12788_v5  ;;  %v17602_v17 = vld [vmem:[#allocation185_spill] sm:$0xff]  ;;  %v17603_v59 = vld [vmem:[#allocation106_spill] sm:$0xff] }
 0x7d2   : > { %v15111_v52 = vpop.permute.xlu1 %5733  ;;  %v15113_v10 = vpop.permute.xlu0 %5633  ;;  %v3753_v48 = vadd.f32 %v3748_v47, %v3702_v12  ;;  %v4014_v34 = vadd.f32 %v17596_v18, %v3963_v9  ;;  %v7718_v37 = vrot.slane %v7703_v23, %v12788_v5  ;;  %v3855_v9 = vsel %vm3853_vm2, %v13972_v29, %v17570_v27  ;;  %v17604_v23 = vld [vmem:[#allocation83_spill] sm:$0xff]  ;;  %v17605_v29 = vld [vmem:[#allocation189_spill] sm:$0xff] }
 0x7d3   : > { %17591 = vst [vmem:[#allocation95_spill] sm:$0xff] %v15111_v52  ;;  %17592 = vst [vmem:[#allocation87_spill] sm:$0xff] %v15113_v10  ;;  %v4450_v10 = vadd.f32 %v4445_v40, %v4399_v15  ;;  %v4561_v52 = vsel %vm1942_vm5, %v17598_v22, %v17597_v36  ;;  %v4612_v12 = vsel %vm1942_vm5, %v17603_v59, %v17602_v17  ;;  %v17606_v27 = vld [vmem:[#allocation105_spill] sm:$0xff]  ;;  %v17610_v22 = vld [vmem:[#allocation151_spill] sm:$0xff] }
 0x7d4   : > { %7393 = vrot.lane.b32.xlu1 %v7386_v1, %s11692_s23  ;;  %7609 = vrot.lane.b32.xlu0 %v7603_v20, %s11693_s16  ;;  %v17601_v20 = vld [vmem:[#allocation149_spill] sm:$0xff]  ;;  %v3804_v47 = vadd.f32 %v3799_v63, %v3753_v48  ;;  %v7583_v16 = vrot.slane %v14956_v62, %v13706_v54  ;;  %v4078_v63 = vadd.f32 %v17604_v23, %v4014_v34  ;;  %s11705_s23 = smov 61  }
 0x7d5   : > { %v7668_v24 = vmul.f32 %v7662_v3, %v17601_v20  ;;  %v4515_v40 = vadd.f32 %v4510_v19, %v4450_v10  ;;  %v7543_v3 = vrot.slane %v7528_v51, %v12798_v11  ;;  %v7750_v10 = vrot.slane %v15062_v32, %v13693_v4 }
 0x7d6   : > { %v15134_v60 = vpop.permute.xlu1 %5796  ;;  %v15136_v1 = vpop.permute.xlu0 %5682  ;;  %v4663_v19 = vsel %vm1942_vm5, %v17606_v27, %v17605_v29  ;;  %v3860_v62 = vadd.f32 %v3855_v9, %v3804_v47  ;;  %v3906_v34 = vsel %vm3853_vm2, %v13987_v61, %v17580_v56  ;;  %v17611_v27 = vld [vmem:[#allocation116_spill] sm:$0xff] }
 0x7d7   : > { %17599 = vst [vmem:[#allocation146_spill] sm:$0xff] %v15134_v60  ;;  %17600 = vst [vmem:[#allocation92_spill] sm:$0xff] %v15136_v1  ;;  %v4566_v15 = vadd.f32 %v4561_v52, %v4515_v40  ;;  %v17609_v52 = vld [vmem:[#allocation145_spill] sm:$0xff]  ;;  %v7845_v40 = vrot.slane %v17610_v22, 4  ;;  %v17612_v1 = vld [vmem:[#allocation188_spill] sm:$0xff]  ;;  %v7765_v47 = vrot.slane %v7750_v10, %v12798_v11 }
 0x7d8   : > { %7455 = vrot.lane.b32.xlu1 %v7449_v28, %s11693_s16  ;;  %7675 = vrot.lane.b32.xlu0 %v7668_v24, %s11697_s15  ;;  %v7502_v24 = vmul.f32 %v7496_v26, %v17575_v2  ;;  %v7719_v51 = vmul.f32 %v7710_v44, %v17609_v52  ;;  %v7721_v60 = vmul.f32 %v7718_v37, %v17609_v52  ;;  %v17613_v37 = vld [vmem:[#allocation89_spill] sm:$0xff] }
 0x7d9   : > { %v4617_v59 = vadd.f32 %v4612_v12, %v4566_v15  ;;  %v7552_v2 = vmul.f32 %v7543_v3, %v17578_v0  ;;  %v7598_v26 = vrot.slane %v7583_v16, %v12806_v14  ;;  %v4129_v9 = vadd.f32 %v17613_v37, %v4078_v63  ;;  %v17614_v12 = vld [vmem:[#allocation114_spill] sm:$0xff]  ;;  %v17615_v15 = vld [vmem:[#allocation191_spill] sm:$0xff] }
 0x7da   : > { %v15158_v48 = vpop.permute.xlu1 %5847  ;;  %v15160_v28 = vpop.permute.xlu0 %5735  ;;  %v4777_v61 = vsel %vm1563_vm9, %v17615_v15, %v17614_v12  ;;  %v7797_v0 = vrot.slane %v15062_v32, %v12806_v14  ;;  %v7847_v3 = vsel %vm7846_vm15, %v7845_v40, %v17610_v22  ;;  %v7805_v16 = vrot.slane %v17593_v42, %v12806_v14 }
 0x7db   : > { %17607 = vst [vmem:[#allocation90_spill] sm:$0xff] %v15158_v48  ;;  %17608 = vst [vmem:[#allocation147_spill] sm:$0xff] %v15160_v28  ;;  %v4726_v48 = vsel %vm1563_vm9, %v17612_v1, %v17611_v27  ;;  %v4668_v44 = vadd.f32 %v4663_v19, %v4617_v59  ;;  %v3911_v10 = vadd.f32 %v3906_v34, %v3860_v62  ;;  %v17619_v59 = vld [vmem:[#allocation117_spill] sm:$0xff]  ;;  %v17620_v62 = vld [vmem:[#allocation148_spill] sm:$0xff]  ;;  %vm8271_vm15 = vcmask 269312  }
 0x7dc   : > { %7509 = vrot.lane.b32.xlu1 %v7502_v24, %s11693_s16  ;;  %7725 = vrot.lane.b32.xlu0 %v7719_v51, %s11697_s15  ;;  %v7643_v24 = vrot.slane %v15062_v32, %v12779_v8  ;;  %v3957_v19 = vsel %vm3853_vm2, %v14032_v7, %v17588_v13  ;;  %v17618_v51 = vld [vmem:[#allocation193_spill] sm:$0xff]  ;;  %v7699_v22 = vrot.slane %v15062_v32, %v13660_v25  ;;  %v17621_v7 = vld [vmem:[#allocation91_spill] sm:$0xff] }
 0x7dd   : > { %v4731_v63 = vadd.f32 %v4726_v48, %v4668_v44  ;;  %v4828_v15 = vsel %vm1563_vm9, %v17619_v59, %v17618_v51  ;;  %v7771_v48 = vmul.f32 %v7765_v47, %v17620_v62  ;;  %v15206_v34 = vmul.f32 %v7847_v3, %v14593_v33  ;;  %v17622_v44 = vld [vmem:[#allocation120_spill] sm:$0xff]  ;;  %v7842_v47 = vld [vmem:[#allocation5 + $0xc] sm:$0xf] }
 0x7de   : > { %v15181_v56 = vpop.permute.xlu1 %5896  ;;  %v15183_v1 = vpop.permute.xlu0 %5794  ;;  %v4180_v13 = vadd.f32 %v17621_v7, %v4129_v9  ;;  %v7658_v51 = vrot.slane %v7643_v24, %v12779_v8  ;;  %v7820_v33 = vrot.slane %v7805_v16, %v12806_v14  ;;  %v4008_v9 = vsel %vm3853_vm2, %v14050_v57, %v17596_v18  ;;  %v17628_v16 = vld [vmem:[#allocation153_spill] sm:$0xff] }
 0x7df   : > { %17616 = vst [vmem:[#allocation178_spill] sm:$0xff] %v15181_v56  ;;  %17617 = vst [vmem:[#allocation111_spill] sm:$0xff] %v15183_v1  ;;  %v4782_v28 = vadd.f32 %v4777_v61, %v4731_v63  ;;  %v7604_v56 = vmul.f32 %v7598_v26, %v17587_v39  ;;  %v17623_v1 = vld [vmem:[#allocation119_spill] sm:$0xff]  ;;  %v7812_v61 = vrot.slane %v7797_v0, %v12806_v14  ;;  %v17626_v0 = vld [vmem:[#allocation93_spill] sm:$0xff]  ;;  %vm5148_vm2 = vcmask 891904  }
 0x7e0   : > { %7558 = vrot.lane.b32.xlu1 %v7552_v2, %s11693_s16  ;;  %7729 = vrot.lane.b32.xlu0 %v7721_v60, %s11697_s15  ;;  %v4879_v59 = vsel %vm1563_vm9, %v17623_v1, %v17622_v44  ;;  %v3962_v39 = vadd.f32 %v3957_v19, %v3911_v10  ;;  %v7714_v3 = vrot.slane %v7699_v22, %v12788_v5 }
 0x7e1   : > { %v4833_v26 = vadd.f32 %v4828_v15, %v4782_v28  ;;  %v7746_v24 = vrot.slane %v15062_v32, %v12798_v11  ;;  %v4231_v10 = vadd.f32 %v17626_v0, %v4180_v13  ;;  %v7821_v19 = vmul.f32 %v7812_v61, %v17628_v16 }
 0x7e2   : > { %v15212_v2 = vpop.permute.xlu1 %5900  ;;  %v15214_v60 = vpop.permute.xlu0 %5798  ;;  %v7865_v15 = vrot.slane %v15206_v34, %v13655_v45  ;;  %v15236_v57 = vmul.f32 %v7845_v40, %v7842_v47  ;;  %v4013_v18 = vadd.f32 %v4008_v9, %v3962_v39  ;;  %v7754_v22 = vrot.slane %v17593_v42, %v12798_v11  ;;  %v17632_v39 = vld [vmem:[#allocation96_spill] sm:$0xff] }
 0x7e3   : > { %17624 = vst [vmem:[#allocation94_spill] sm:$0xff] %v15212_v2  ;;  %17625 = vst [vmem:[#allocation99_spill] sm:$0xff] %v15214_v60  ;;  %v4884_v1 = vadd.f32 %v4879_v59, %v4833_v26  ;;  %v17630_v59 = vld [vmem:[#allocation135_spill] sm:$0xff]  ;;  %v17631_v26 = vld [vmem:[#allocation97_spill] sm:$0xff]  ;;  %v7761_v40 = vrot.slane %v7746_v24, %v12798_v11  ;;  %v7913_v61 = vrot.slane %v15206_v34, %v12788_v5 }
 0x7e4   : > { %7611 = vrot.lane.b32.xlu1 %v7604_v56, %s11693_s16  ;;  %7778 = vrot.lane.b32.xlu0 %v7771_v48, %s11697_s15  ;;  %v7667_v56 = vmul.f32 %v7658_v51, %v17601_v20  ;;  %v17629_v48 = vld [vmem:[#allocation136_spill] sm:$0xff]  ;;  %v4299_v2 = vadd.f32 %v17631_v26, %v4231_v10  ;;  %v7823_v20 = vmul.f32 %v7820_v33, %v17628_v16  ;;  %s11703_s16 = smov 63  }
 0x7e5   : > { %v4934_v13 = vsel %vm4458_vm0, %v17630_v59, %v17629_v48  ;;  %v4072_v42 = vsel %vm4070_vm12, %v14419_v21, %v17604_v23  ;;  %v7880_v33 = vrot.slane %v7865_v15, %v12779_v8  ;;  %v17635_v59 = vld [vmem:[#allocation43_spill] sm:$0xff]  ;;  %v17636_v60 = vld [vmem:[#allocation104_spill] sm:$0xff]  ;;  %v7769_v23 = vrot.slane %v7754_v22, %v12798_v11 }
 0x7e6   : > { %v15228_v28 = vpop.permute.xlu1 %5947  ;;  %v15230_v63 = vpop.permute.xlu0 %5845  ;;  %v4939_v51 = vadd.f32 %v4934_v13, %v4884_v1  ;;  %v4350_v47 = vadd.f32 %v17632_v39, %v4299_v2  ;;  %v7921_v1 = vrot.slane %v15236_v57, %v12788_v5  ;;  %v4077_v24 = vadd.f32 %v4072_v42, %v4013_v18 }
 0x7e7   : > { %17627 = vst [vmem:[#allocation98_spill] sm:$0xff] %v15228_v28  ;;  %v7770_v42 = vmul.f32 %v7761_v40, %v17620_v62 }
 0x7e8   : > { %7673 = vrot.lane.b32.xlu1 %v7667_v56, %s11697_s15  ;;  %7827 = vrot.lane.b32.xlu0 %v7821_v19, %s11697_s15  ;;  %v7720_v56 = vmul.f32 %v7714_v3, %v17609_v52  ;;  %v17634_v19 = vld [vmem:[#allocation65_spill] sm:$0xff]  ;;  %v4401_v21 = vadd.f32 %v17636_v60, %v4350_v47  ;;  %v7801_v52 = vrot.slane %v15062_v32, %v13706_v54  ;;  %v17637_v47 = vld [vmem:[#allocation150_spill] sm:$0xff] }
 0x7e9   : > { %v4985_v13 = vsel %vm4458_vm0, %v17635_v59, %v17634_v19  ;;  %v4123_v3 = vsel %vm4070_vm12, %v14433_v49, %v17613_v37  ;;  %v7936_v22 = vrot.slane %v7921_v1, %v12788_v5  ;;  %v17638_v59 = vld [vmem:[#allocation70_spill] sm:$0xff]  ;;  %v7772_v49 = vmul.f32 %v7769_v23, %v17620_v62  ;;  %v17641_v1 = vld [vmem:[#allocation183_spill] sm:$0xff] }
 0x7ea   : > { %v15254_v9 = vpop.permute.xlu1 %5949  ;;  %v15256_v10 = vpop.permute.xlu0 %5849  ;;  %v4990_v2 = vadd.f32 %v4985_v13, %v4939_v51  ;;  %v4128_v51 = vadd.f32 %v4123_v3, %v4077_v24  ;;  %v17639_v13 = vld [vmem:[#allocation61_spill] sm:$0xff]  ;;  %v7816_v40 = vrot.slane %v7801_v52, %v12806_v14  ;;  %v7968_v62 = vrot.slane %v15206_v34, %v13693_v4 }
 0x7eb   : > { %17633 = vst [vmem:[#allocation102_spill] sm:$0xff] %v15256_v10  ;;  %v5036_v32 = vsel %vm4458_vm0, %v17639_v13, %v17638_v59  ;;  %v17640_v10 = vld [vmem:[#allocation179_spill] sm:$0xff] }
 0x7ec   : > { %7727 = vrot.lane.b32.xlu1 %v7720_v56, %s11697_s15  ;;  %7831 = vrot.lane.b32.xlu0 %v7823_v20, %s11697_s15  ;;  %v7886_v56 = vmul.f32 %v7880_v33, %v17637_v47  ;;  %v7928_v20 = vrot.slane %v7913_v61, %v12788_v5  ;;  %v4452_v28 = vadd.f32 %v17640_v10, %v4401_v21  ;;  %v17645_v13 = vld [vmem:[#allocation55_spill] sm:$0xff] }
 0x7ed   : > { %v5041_v37 = vadd.f32 %v5036_v32, %v4990_v2  ;;  %v7861_v61 = vrot.slane %v15206_v34, %v12779_v8  ;;  %v4174_v33 = vsel %vm4070_vm12, %v14447_v55, %v17621_v7  ;;  %v7869_v2 = vrot.slane %v15236_v57, %v12779_v8  ;;  %v17646_v32 = vld [vmem:[#allocation53_spill] sm:$0xff] }
 0x7ee   : > { %v15274_v15 = vpop.permute.xlu1 %6160  ;;  %v15276_v18 = vpop.permute.xlu0 %5898  ;;  %v4517_v24 = vadd.f32 %v17641_v1, %v4452_v28  ;;  %v4179_v52 = vadd.f32 %v4174_v33, %v4128_v51  ;;  %v5087_v55 = vsel %vm4458_vm0, %v17646_v32, %v17645_v13  ;;  %v4225_v7 = vsel %vm4070_vm12, %v17571_v58, %v17626_v0  ;;  %v17647_v28 = vld [vmem:[#allocation184_spill] sm:$0xff]  ;;  %v17648_v32 = vld [vmem:[#allocation186_spill] sm:$0xff] }
 0x7ef   : > { %v8015_v51 = vrot.slane %v15206_v34, %v12806_v14  ;;  %v4293_v33 = vsel %vm4291_vm1, %v17576_v46, %v17631_v26  ;;  %v4344_v46 = vsel %vm4291_vm1, %v17581_v43, %v17632_v39  ;;  %v17650_v26 = vld [vmem:[#allocation122_spill] sm:$0xff]  ;;  %v17652_v43 = vld [vmem:[#allocation187_spill] sm:$0xff]  ;;  %vm5366_vm12 = vcmask 883712  }
 0x7f0   : > { %7776 = vrot.lane.b32.xlu1 %v7770_v42, %s11697_s15  ;;  %7893 = vrot.lane.b32.xlu0 %v7886_v56, %s11703_s16  ;;  %v17644_v42 = vld [vmem:[#allocation155_spill] sm:$0xff] }
 0x7f1   : > { %v7937_v56 = vmul.f32 %v7928_v20, %v17644_v42  ;;  %v7939_v23 = vmul.f32 %v7936_v22, %v17644_v42  ;;  %v5092_v20 = vadd.f32 %v5087_v55, %v5041_v37  ;;  %v7876_v22 = vrot.slane %v7861_v61, %v12779_v8 }
 0x7f2   : > { %v15296_v21 = vpop.permute.xlu1 %6162  ;;  %v15298_v3 = vpop.permute.xlu0 %5951  ;;  %v7884_v37 = vrot.slane %v7869_v2, %v12779_v8  ;;  %v8023_v61 = vrot.slane %v15236_v57, %v12806_v14  ;;  %v7917_v2 = vrot.slane %v15206_v34, %v13660_v25 }
 0x7f3   : > { %17642 = vst [vmem:[#allocation143_spill] sm:$0xff] %v15296_v21  ;;  %17643 = vst [vmem:[#allocation113_spill] sm:$0xff] %v15298_v3  ;;  %v4568_v21 = vadd.f32 %v17647_v28, %v4517_v24  ;;  %v7983_v24 = vrot.slane %v7968_v62, %v12798_v11  ;;  %v7885_v62 = vmul.f32 %v7876_v22, %v17637_v47 }
 0x7f4   : > { %7780 = vrot.lane.b32.xlu1 %v7772_v49, %s11697_s15  ;;  %7943 = vrot.lane.b32.xlu0 %v7937_v56, %s11703_s16  ;;  %v7822_v49 = vmul.f32 %v7816_v40, %v17628_v16  ;;  %v4230_v56 = vadd.f32 %v4225_v7, %v4179_v52  ;;  %v4395_v52 = vsel %vm4291_vm1, %v17585_v38, %v17636_v60  ;;  %v17656_v38 = vld [vmem:[#allocation190_spill] sm:$0xff] }
 0x7f5   : > { %v4619_v3 = vadd.f32 %v17648_v32, %v4568_v21  ;;  %v17651_v21 = vld [vmem:[#allocation121_spill] sm:$0xff]  ;;  %v8038_v22 = vrot.slane %v8023_v61, %v12806_v14  ;;  %v17659_v61 = vld [vmem:[#allocation192_spill] sm:$0xff] }
 0x7f6   : > { %v15322_v58 = vpop.permute.xlu1 %6214  ;;  %v15324_v0 = vpop.permute.xlu0 %6212  ;;  %v5149_v55 = vsel %vm5148_vm2, %v17651_v21, %v17650_v26  ;;  %v4298_v16 = vadd.f32 %v4293_v33, %v4230_v56  ;;  %v4446_v56 = vsel %vm4291_vm1, %v17589_v53, %v17640_v10  ;;  %v4511_v10 = vsel %vm1942_vm5, %v17594_v6, %v17641_v1  ;;  %v17663_v1 = vld [vmem:[#allocation80_spill] sm:$0xff] }
 0x7f7   : > { %17649 = vst [vmem:[#allocation182_spill] sm:$0xff] %v15322_v58  ;;  %v5154_v40 = vadd.f32 %v5149_v55, %v5092_v20  ;;  %v4670_v39 = vadd.f32 %v17652_v43, %v4619_v3  ;;  %v7887_v20 = vmul.f32 %v7884_v37, %v17637_v47  ;;  %v17657_v3 = vld [vmem:[#allocation131_spill] sm:$0xff]  ;;  %v7964_v47 = vrot.slane %v15206_v34, %v12798_v11  ;;  %v15365_v37 = vld [vmem:[#allocation5 + $0x4] sm:$0xff] }
 0x7f8   : > { %7829 = vrot.lane.b32.xlu1 %v7822_v49, %s11697_s15  ;;  %7947 = vrot.lane.b32.xlu0 %v7939_v23, %s11703_s16  ;;  %v17655_v49 = vld [vmem:[#allocation156_spill] sm:$0xff]  ;;  %v8030_v23 = vrot.slane %v8015_v51, %v12806_v14  ;;  %v4349_v33 = vadd.f32 %v4344_v46, %v4298_v16  ;;  %v17658_v55 = vld [vmem:[#allocation123_spill] sm:$0xff]  ;;  %v8074_v53 = vrot.slane %v15365_v37, %v13655_v45  ;;  %s11704_s15 = smov 62   ;;  %vm5583_vm1 = vcmask 785408  }
 0x7f9   : > { %v7989_v58 = vmul.f32 %v7983_v24, %v17655_v49  ;;  %v4733_v60 = vadd.f32 %v17656_v38, %v4670_v39 }
 0x7fa   : > { %v15346_v7 = vpop.permute.xlu1 %6265  ;;  %v15348_v21 = vpop.permute.xlu0 %6263  ;;  %v4400_v51 = vadd.f32 %v4395_v52, %v4349_v33  ;;  %v7932_v52 = vrot.slane %v7917_v2, %v12788_v5  ;;  %v4562_v33 = vsel %vm1942_vm5, %v17597_v36, %v17647_v28  ;;  %v8122_v36 = vrot.slane %v15365_v37, %v12788_v5  ;;  %v15395_v28 = vld [vmem:[#allocation5 + $0xc] sm:$0xf] }
 0x7fb   : > { %17653 = vst [vmem:[#allocation180_spill] sm:$0xff] %v15346_v7  ;;  %17654 = vst [vmem:[#allocation38_spill] sm:$0xff] %v15348_v21  ;;  %v5200_v7 = vsel %vm5148_vm2, %v17658_v55, %v17657_v3  ;;  %v4784_v46 = vadd.f32 %v17659_v61, %v4733_v60  ;;  %v17662_v55 = vld [vmem:[#allocation118_spill] sm:$0xff]  ;;  %v17664_v60 = vld [vmem:[#allocation124_spill] sm:$0xff] }
 0x7fc   : > { %7891 = vrot.lane.b32.xlu1 %v7885_v62, %s11703_s16  ;;  %7996 = vrot.lane.b32.xlu0 %v7989_v58, %s11703_s16  ;;  %v5205_v24 = vadd.f32 %v5200_v7, %v5154_v40  ;;  %v17661_v58 = vld [vmem:[#allocation158_spill] sm:$0xff]  ;;  %v4451_v7 = vadd.f32 %v4446_v56, %v4400_v51  ;;  %v17665_v21 = vld [vmem:[#allocation125_spill] sm:$0xff]  ;;  %v7979_v56 = vrot.slane %v7964_v47, %v12798_v11 }
 0x7fd   : > { %v8039_v40 = vmul.f32 %v8030_v23, %v17661_v58  ;;  %v8041_v39 = vmul.f32 %v8038_v22, %v17661_v58  ;;  %v4835_v6 = vadd.f32 %v17662_v55, %v4784_v46  ;;  %v5302_v23 = vsel %vm5148_vm2, %v14852_v30, %v17665_v21  ;;  %v17666_v46 = vld [vmem:[#allocation88_spill] sm:$0xff] }
 0x7fe   : > { %v15373_v16 = vpop.permute.xlu1 %6316  ;;  %v15375_v62 = vpop.permute.xlu0 %6314  ;;  %v4516_v2 = vadd.f32 %v4511_v10, %v4451_v7  ;;  %v4613_v51 = vsel %vm1942_vm5, %v17602_v17, %v17648_v32  ;;  %v5367_v30 = vsel %vm5366_vm12, %v14899_v35, %v17666_v46  ;;  %v8089_v47 = vrot.slane %v8074_v53, %v12779_v8  ;;  %v17668_v32 = vld [vmem:[#allocation75_spill] sm:$0xff] }
 0x7ff   : > { %17660 = vst [vmem:[#allocation100_spill] sm:$0xff] %v15373_v16  ;;  %v5251_v16 = vsel %vm5148_vm2, %v17664_v60, %v17663_v1  ;;  %v7972_v10 = vrot.slane %v15236_v57, %v12798_v11  ;;  %v4664_v35 = vsel %vm1942_vm5, %v17605_v29, %v17652_v43  ;;  %v4886_v60 = vadd.f32 %v17668_v32, %v4835_v6  ;;  %v17669_v43 = vld [vmem:[#allocation85_spill] sm:$0xff] }
 0x800   : > { %7895 = vrot.lane.b32.xlu1 %v7887_v20, %s11703_s16  ;;  %8045 = vrot.lane.b32.xlu0 %v8039_v40, %s11703_s16  ;;  %v5256_v22 = vadd.f32 %v5251_v16, %v5205_v24  ;;  %v7938_v24 = vmul.f32 %v7932_v52, %v17644_v42  ;;  %v8130_v16 = vrot.slane %v15395_v28, %v12788_v5 }
 0x801   : > { %v4567_v7 = vadd.f32 %v4562_v33, %v4516_v2  ;;  %v5418_v42 = vsel %vm5366_vm12, %v14937_v50, %v14880_v31  ;;  %v8137_v52 = vrot.slane %v8122_v36, %v12788_v5  ;;  %v8019_v33 = vrot.slane %v15206_v34, %v13706_v54  ;;  %v17672_v2 = vld [vmem:[#allocation161_spill] sm:$0xff] }
 0x802   : > { %v15403_v20 = vpop.permute.xlu1 %6380  ;;  %v15405_v40 = vpop.permute.xlu0 %6378  ;;  %v5307_v17 = vadd.f32 %v5302_v23, %v5256_v22  ;;  %v4727_v29 = vsel %vm1563_vm9, %v17611_v27, %v17656_v38  ;;  %v5469_v6 = vsel %vm5366_vm12, %v17669_v43, %v14982_v41  ;;  %v8095_v22 = vmul.f32 %v8089_v47, %v17672_v2  ;;  %v17673_v38 = vld [vmem:[#allocation42_spill] sm:$0xff] }
 0x803   : > { %17667 = vst [vmem:[#allocation181_spill] sm:$0xff] %v15403_v20  ;;  %v4618_v57 = vadd.f32 %v4613_v51, %v4567_v7  ;;  %v8145_v36 = vrot.slane %v8130_v16, %v12788_v5  ;;  %v4778_v27 = vsel %vm1563_vm9, %v17614_v12, %v17659_v61  ;;  %v8034_v47 = vrot.slane %v8019_v33, %v12806_v14  ;;  %v17694_v20 = vld [vmem:[#allocation56_spill] sm:$0xff] }
 0x804   : > { %7945 = vrot.lane.b32.xlu1 %v7938_v24, %s11703_s16  ;;  %8049 = vrot.lane.b32.xlu0 %v8041_v39, %s11703_s16  ;;  %v5372_v53 = vadd.f32 %v5367_v30, %v5307_v17  ;;  %v7988_v39 = vmul.f32 %v7979_v56, %v17655_v49  ;;  %v7987_v30 = vrot.slane %v7972_v10, %v12798_v11 }
 0x805   : > { %v4669_v51 = vadd.f32 %v4664_v35, %v4618_v57  ;;  %v4941_v24 = vadd.f32 %v17673_v38, %v4886_v60  ;;  %v17676_v35 = vld [vmem:[#allocation162_spill] sm:$0xff]  ;;  %v8070_v61 = vrot.slane %v15365_v37, %v12779_v8  ;;  %v8177_v60 = vrot.slane %v15365_v37, %v13693_v4 }
 0x806   : > { %v15431_v50 = vpop.permute.xlu1 %6432  ;;  %v15433_v23 = vpop.permute.xlu0 %6430  ;;  %v5423_v34 = vadd.f32 %v5418_v42, %v5372_v53  ;;  %v7990_v16 = vmul.f32 %v7987_v30, %v17655_v49  ;;  %v8146_v12 = vmul.f32 %v8137_v52, %v17676_v35  ;;  %v8078_v42 = vrot.slane %v15395_v28, %v12779_v8  ;;  %v17677_v49 = vld [vmem:[#allocation193_spill] sm:$0xff] }
 0x807   : > { %17670 = vst [vmem:[#allocation59_spill] sm:$0xff] %v15431_v50  ;;  %17671 = vst [vmem:[#allocation103_spill] sm:$0xff] %v15433_v23  ;;  %v4732_v56 = vadd.f32 %v4727_v29, %v4669_v51  ;;  %v8148_v57 = vmul.f32 %v8145_v36, %v17676_v35  ;;  %v4829_v33 = vsel %vm1563_vm9, %v17677_v49, %v17662_v55  ;;  %v17678_v29 = vld [vmem:[#allocation67_spill] sm:$0xff]  ;;  %v17679_v52 = vld [vmem:[#allocation133_spill] sm:$0xff] }
 0x808   : > { %7994 = vrot.lane.b32.xlu1 %v7988_v39, %s11703_s16  ;;  %8102 = vrot.lane.b32.xlu0 %v8095_v22, %s11704_s15  ;;  %v5474_v7 = vadd.f32 %v5469_v6, %v5423_v34  ;;  %v4992_v43 = vadd.f32 %v17678_v29, %v4941_v24  ;;  %v17680_v6 = vld [vmem:[#allocation129_spill] sm:$0xff]  ;;  %v17681_v22 = vld [vmem:[#allocation132_spill] sm:$0xff]  ;;  %v17682_v51 = vld [vmem:[#allocation142_spill] sm:$0xff]  ;;  %v4880_v36 = vsel %vm1563_vm9, %v17622_v44, %v17668_v32 }
 0x809   : > { %v4783_v53 = vadd.f32 %v4778_v27, %v4732_v56  ;;  %v5520_v39 = vsel %vm5366_vm12, %v17680_v6, %v17679_v52  ;;  %v5584_v34 = vsel %vm5583_vm1, %v17682_v51, %v17681_v22  ;;  %v8040_v30 = vmul.f32 %v8034_v47, %v17661_v58  ;;  %v17683_v56 = vld [vmem:[#allocation138_spill] sm:$0xff]  ;;  %v17687_v32 = vld [vmem:[#allocation165_spill] sm:$0xff]  ;;  %v17690_v50 = vld [vmem:[#allocation140_spill] sm:$0xff] }
 0x80a   : > { %v15447_v17 = vpop.permute.xlu1 %6481  ;;  %v15449_v10 = vpop.permute.xlu0 %6483  ;;  %v5525_v55 = vadd.f32 %v5520_v39, %v5474_v7  ;;  %v8224_v27 = vrot.slane %v15365_v37, %v12806_v14  ;;  %v17684_v49 = vld [vmem:[#allocation110_spill] sm:$0xff]  ;;  %v8093_v44 = vrot.slane %v8078_v42, %v12779_v8  ;;  %v8270_v58 = vrot.slane %v17687_v32, 4  ;;  %v17688_v39 = vld [vmem:[#allocation45_spill] sm:$0xff] }
 0x80b   : > { %17674 = vst [vmem:[#allocation101_spill] sm:$0xff] %v15447_v17  ;;  %17675 = vst [vmem:[#allocation149_spill] sm:$0xff] %v15449_v10  ;;  %v4834_v24 = vadd.f32 %v4829_v33, %v4783_v53  ;;  %v5635_v6 = vsel %vm5583_vm1, %v17684_v49, %v17683_v56  ;;  %v8192_v10 = vrot.slane %v8177_v60, %v12798_v11  ;;  %v17689_v33 = vld [vmem:[#allocation92_spill] sm:$0xff] }
 0x80c   : > { %7998 = vrot.lane.b32.xlu1 %v7990_v16, %s11703_s16  ;;  %8152 = vrot.lane.b32.xlu0 %v8146_v12, %s11704_s15  ;;  %v8085_v12 = vrot.slane %v8070_v61, %v12779_v8  ;;  %v5589_v7 = vadd.f32 %v5584_v34, %v5525_v55  ;;  %v5043_v53 = vadd.f32 %v17688_v39, %v4992_v43  ;;  %v17693_v55 = vld [vmem:[#allocation164_spill] sm:$0xff] }
 0x80d   : > { %v4885_v47 = vadd.f32 %v4880_v36, %v4834_v24  ;;  %v5686_v49 = vsel %vm5583_vm1, %v17690_v50, %v17689_v33  ;;  %v8272_v61 = vsel %vm8271_vm15, %v8270_v58, %v17687_v32  ;;  %v8232_v60 = vrot.slane %v15395_v28, %v12806_v14 }
 0x80e   : > { %v15480_v51 = vpop.permute.xlu1 %6532  ;;  %v15482_v16 = vpop.permute.xlu0 %6596  ;;  %v5640_v42 = vadd.f32 %v5635_v6, %v5589_v7  ;;  %v8126_v34 = vrot.slane %v15365_v37, %v13660_v25  ;;  %v8094_v50 = vmul.f32 %v8085_v12, %v17672_v2  ;;  %v15508_v24 = vmul.f32 %v15365_v37, %v8272_v61 }
 0x80f   : > { %17685 = vst [vmem:[#allocation185_spill] sm:$0xff] %v15480_v51  ;;  %17686 = vst [vmem:[#allocation106_spill] sm:$0xff] %v15482_v16  ;;  %v4935_v6 = vsel %vm4458_vm0, %v17629_v48, %v17673_v38  ;;  %v5094_v16 = vadd.f32 %v17694_v20, %v5043_v53  ;;  %v8096_v12 = vmul.f32 %v8093_v44, %v17672_v2  ;;  %v17697_v38 = vld [vmem:[#allocation146_spill] sm:$0xff]  ;;  %v17701_v2 = vld [vmem:[#allocation167_spill] sm:$0xff]  ;;  %vm7243_vm15 = vcmask 629760  }
 0x810   : > { %8047 = vrot.lane.b32.xlu1 %v8040_v30, %s11703_s16  ;;  %8156 = vrot.lane.b32.xlu0 %v8148_v57, %s11704_s15  ;;  %v8198_v30 = vmul.f32 %v8192_v10, %v17693_v55  ;;  %v8239_v57 = vrot.slane %v8224_v27, %v12806_v14  ;;  %v5691_v32 = vadd.f32 %v5686_v49, %v5640_v42  ;;  %v17703_v51 = vld [vmem:[#allocation90_spill] sm:$0xff]  ;;  %s11713_s16 = smov (!%p10763_p8), 17  }
 0x811   : > { %v4940_v7 = vadd.f32 %v4935_v6, %v4885_v47  ;;  %v8247_v10 = vrot.slane %v8232_v60, %v12806_v14  ;;  %v8141_v27 = vrot.slane %v8126_v34, %v12788_v5  ;;  %v8173_v61 = vrot.slane %v15365_v37, %v12798_v11  ;;  %v17698_v47 = vld [vmem:[#allocation111_spill] sm:$0xff]  ;;  %v17702_v6 = vld [vmem:[#allocation194_spill] sm:$0xff] }
 0x812   : > { %v15500_v36 = vpop.permute.xlu1 %6534  ;;  %v15502_v43 = vpop.permute.xlu0 %6648  ;;  %v5800_v53 = vsel %vm3594_vm13, %v17698_v47, %v17697_v38  ;;  %v8248_v44 = vmul.f32 %v8239_v57, %v17701_v2  ;;  %v8290_v60 = vrot.slane %v15508_v24, %v13655_v45  ;;  %v8181_v34 = vrot.slane %v15395_v28, %v12798_v11 }
 0x813   : > { %17691 = vst [vmem:[#allocation83_spill] sm:$0xff] %v15500_v36  ;;  %17692 = vst [vmem:[#allocation189_spill] sm:$0xff] %v15502_v43  ;;  %v17695_v36 = vld [vmem:[#allocation95_spill] sm:$0xff]  ;;  %v17696_v43 = vld [vmem:[#allocation141_spill] sm:$0xff]  ;;  %v5156_v47 = vadd.f32 %v17702_v6, %v5094_v16  ;;  %v8250_v57 = vmul.f32 %v8247_v10, %v17701_v2  ;;  %v8147_v17 = vmul.f32 %v8141_v27, %v17676_v35 }
 0x814   : > { %8100 = vrot.lane.b32.xlu1 %v8094_v50, %s11704_s15  ;;  %8205 = vrot.lane.b32.xlu0 %v8198_v30, %s11704_s15  ;;  %v5737_v48 = vsel %vm5583_vm1, %v17696_v43, %v17695_v36  ;;  %v4986_v43 = vsel %vm4458_vm0, %v17634_v19, %v17678_v29  ;;  %v8188_v23 = vrot.slane %v8173_v61, %v12798_v11  ;;  %v17704_v19 = vld [vmem:[#allocation46_spill] sm:$0xff] }
 0x815   : > { %v5742_v50 = vadd.f32 %v5737_v48, %v5691_v32  ;;  %v4991_v30 = vadd.f32 %v4986_v43, %v4940_v7  ;;  %v5207_v29 = vadd.f32 %v17704_v19, %v5156_v47  ;;  %v17705_v32 = vld [vmem:[#allocation178_spill] sm:$0xff]  ;;  %v8338_v10 = vrot.slane %v15508_v24, %v12788_v5 }
 0x816   : > { %v15527_v49 = vpop.permute.xlu1 %6598  ;;  %v15529_v42 = vpop.permute.xlu0 %6701  ;;  %v5902_v16 = vsel %vm3594_vm13, %v17705_v32, %v15276_v18  ;;  %v15560_v48 = vmul.f32 %v8270_v58, %v15395_v28  ;;  %v5037_v35 = vsel %vm4458_vm0, %v17638_v59, %v17688_v39  ;;  %v8228_v28 = vrot.slane %v15365_v37, %v13706_v54  ;;  %v17708_v58 = vld [vmem:[#allocation127_spill] sm:$0xff]  ;;  %v17711_v37 = vld [vmem:[#allocation98_spill] sm:$0xff] }
 0x817   : > { %17699 = vst [vmem:[#allocation105_spill] sm:$0xff] %v15527_v49  ;;  %17700 = vst [vmem:[#allocation145_spill] sm:$0xff] %v15529_v42  ;;  %v5851_v42 = vsel %vm3594_vm13, %v15230_v63, %v17703_v51  ;;  %v5805_v49 = vadd.f32 %v5800_v53, %v5742_v50  ;;  %v5042_v61 = vadd.f32 %v5037_v35, %v4991_v30  ;;  %v17707_v53 = vld [vmem:[#allocation126_spill] sm:$0xff] }
 0x818   : > { %8104 = vrot.lane.b32.xlu1 %v8096_v12, %s11704_s15  ;;  %8254 = vrot.lane.b32.xlu0 %v8248_v44, %s11704_s15  ;;  %v8305_v12 = vrot.slane %v8290_v60, %v12779_v8  ;;  %v5258_v44 = vadd.f32 %v17707_v53, %v5207_v29  ;;  %v8196_v60 = vrot.slane %v8181_v34, %v12798_v11  ;;  %v17710_v29 = vld [vmem:[#allocation134_spill] sm:$0xff] }
 0x819   : > { %v5856_v27 = vadd.f32 %v5851_v42, %v5805_v49  ;;  %v8346_v43 = vrot.slane %v15560_v48, %v12788_v5  ;;  %v8197_v49 = vmul.f32 %v8188_v23, %v17693_v55  ;;  %v8353_v30 = vrot.slane %v8338_v10, %v12788_v5 }
 0x81a   : > { %v15552_v7 = vpop.permute.xlu1 %6650  ;;  %v15554_v63 = vpop.permute.xlu0 %6813  ;;  %v5309_v47 = vadd.f32 %v17708_v58, %v5258_v44  ;;  %v5088_v34 = vsel %vm4458_vm0, %v17645_v13, %v17694_v20  ;;  %v8199_v23 = vmul.f32 %v8196_v60, %v17693_v55  ;;  %v8243_v35 = vrot.slane %v8228_v28, %v12806_v14  ;;  %v17712_v13 = vld [vmem:[#allocation130_spill] sm:$0xff]  ;;  %v17715_v60 = vld [vmem:[#allocation175_spill] sm:$0xff] }
 0x81b   : > { %17706 = vst [vmem:[#allocation151_spill] sm:$0xff] %v15552_v7  ;;  %v5907_v50 = vadd.f32 %v5902_v16, %v5856_v27  ;;  %v5953_v16 = vsel %vm3594_vm13, %v17711_v37, %v15254_v9  ;;  %v17714_v44 = vld [vmem:[#allocation170_spill] sm:$0xff]  ;;  %v8294_v55 = vrot.slane %v15560_v48, %v12779_v8  ;;  %vm8489_vm0 = vcmask 277504   ;;  %v17717_v7 = vld [vmem:[#allocation128_spill] sm:$0xff] }
 0x81c   : > { %8154 = vrot.lane.b32.xlu1 %v8147_v17, %s11704_s15  ;;  %8258 = vrot.lane.b32.xlu0 %v8250_v57, %s11704_s15  ;;  %v17709_v17 = vld [vmem:[#allocation168_spill] sm:$0xff]  ;;  %v5093_v57 = vadd.f32 %v5088_v34, %v5042_v61  ;;  %v5374_v32 = vadd.f32 %v17710_v29, %v5309_v47  ;;  %v8362_v47 = vmul.f32 %v8353_v30, %v17714_v44 }
 0x81d   : > { %v8311_v42 = vmul.f32 %v8305_v12, %v17709_v17  ;;  %v8361_v12 = vrot.slane %v8346_v43, %v12788_v5  ;;  %v5958_v10 = vadd.f32 %v5953_v16, %v5907_v50  ;;  %v5150_v50 = vsel %vm5148_vm2, %v17650_v26, %v17702_v6  ;;  %v8484_v43 = vld [vmem:[#allocation5 + $0x4] sm:$0xff] }
 0x81e   : > { %v15574_v59 = vpop.permute.xlu1 %6699  ;;  %v15576_v39 = vpop.permute.xlu0 %6865  ;;  %v5425_v20 = vadd.f32 %v17712_v13, %v5374_v32  ;;  %v5155_v28 = vadd.f32 %v5150_v50, %v5093_v57  ;;  %v8448_v34 = vrot.slane %v15560_v48, %v12806_v14  ;;  %v17716_v32 = vld [vmem:[#allocation74_spill] sm:$0xff]  ;;  %v8440_v16 = vrot.slane %v15508_v24, %v12806_v14 }
 0x81f   : > { %v8364_v30 = vmul.f32 %v8361_v12, %v17714_v44  ;;  %v5997_v37 = vadd.f32 %v17716_v32, %v5958_v10  ;;  %v8249_v57 = vmul.f32 %v8243_v35, %v17701_v2  ;;  %v17720_v10 = vrot.slane %v17715_v60, 4  ;;  %v17721_v35 = vld [vmem:[#allocation137_spill] sm:$0xff] }
 0x820   : > { %8203 = vrot.lane.b32.xlu1 %v8197_v49, %s11704_s15  ;;  %8318 = vrot.lane.b32.xlu0 %v8311_v42, %s11705_s23  ;;  %v8286_v49 = vrot.slane %v15508_v24, %v12779_v8  ;;  %v8393_v42 = vrot.slane %v15508_v24, %v13693_v4 }
 0x821   : > { %v8490_v50 = vsel %vm8489_vm0, %v17720_v10, %v17715_v60  ;;  %v17722_v10 = vld [vmem:[#allocation58_spill] sm:$0xff] }
 0x822   : > { %v15594_v27 = vpop.permute.xlu1 %6750  ;;  %v15596_v61 = vpop.permute.xlu0 %6916  ;;  %v8408_v12 = vrot.slane %v8393_v42, %v12798_v11  ;;  %v15639_v42 = vmul.f32 %v8490_v50, %v8484_v43 }
 0x823   : > { %17713 = vst [vmem:[#allocation116_spill] sm:$0xff] %v15596_v61  ;;  %v5476_v61 = vadd.f32 %v17717_v7, %v5425_v20  ;;  %v5201_v20 = vsel %vm5148_vm2, %v17657_v3, %v17704_v19  ;;  %v8455_v3 = vrot.slane %v8440_v16, %v12806_v14  ;;  %v17725_v16 = vld [vmem:[#allocation87_spill] sm:$0xff] }
 0x824   : > { %8207 = vrot.lane.b32.xlu1 %v8199_v23, %s11704_s15  ;;  %8368 = vrot.lane.b32.xlu0 %v8362_v47, %s11705_s23  ;;  %v8301_v23 = vrot.slane %v8286_v49, %v12779_v8  ;;  %v8309_v47 = vrot.slane %v8294_v55, %v12779_v8  ;;  %v5206_v2 = vadd.f32 %v5201_v20, %v5155_v28 }
 0x825   : > { %v5527_v49 = vadd.f32 %v17721_v35, %v5476_v61  ;;  %v5303_v55 = vsel %vm5148_vm2, %v17665_v21, %v17708_v58  ;;  %v5368_v21 = vsel %vm5366_vm12, %v17666_v46, %v17710_v29  ;;  %v8463_v58 = vrot.slane %v8448_v34, %v12806_v14 }
 0x826   : > { %v15618_v26 = vpop.permute.xlu1 %6752  ;;  %v15620_v6 = vpop.permute.xlu0 %6967  ;;  %v8310_v43 = vmul.f32 %v8301_v23, %v17709_v17  ;;  %v5419_v23 = vsel %vm5366_vm12, %v14880_v31, %v17712_v13  ;;  %v8397_v31 = vrot.slane %v15560_v48, %v12798_v11  ;;  %v5470_v13 = vsel %vm5366_vm12, %v14982_v41, %v17717_v7 }
 0x827   : > { %17718 = vst [vmem:[#allocation188_spill] sm:$0xff] %v15618_v26  ;;  %17719 = vst [vmem:[#allocation89_spill] sm:$0xff] %v15620_v6  ;;  %v5252_v26 = vsel %vm5148_vm2, %v17663_v1, %v17707_v53  ;;  %v6034_v6 = vadd.f32 %v17722_v10, %v5997_v37  ;;  %v8342_v1 = vrot.slane %v15508_v24, %v13660_v25  ;;  %v17723_v53 = vld [vmem:[#allocation144_spill] sm:$0xff]  ;;  %vm6602_vm2 = vcmask 654336  }
 0x828   : > { %8256 = vrot.lane.b32.xlu1 %v8249_v57, %s11704_s15  ;;  %8372 = vrot.lane.b32.xlu0 %v8364_v30, %s11705_s23  ;;  %v5257_v19 = vadd.f32 %v5252_v26, %v5206_v2  ;;  %v5591_v61 = vadd.f32 %v17723_v53, %v5527_v49  ;;  %v17724_v30 = vld [vmem:[#allocation172_spill] sm:$0xff]  ;;  %v8312_v26 = vmul.f32 %v8309_v47, %v17709_v17 }
 0x829   : > { %v8414_v50 = vmul.f32 %v8408_v12, %v17724_v30  ;;  %v17726_v12 = vld [vmem:[#allocation79_spill] sm:$0xff]  ;;  %v8357_v49 = vrot.slane %v8342_v1, %v12788_v5  ;;  %v8508_v17 = vrot.slane %v15639_v42, %v13655_v45  ;;  %v5521_v45 = vsel %vm5366_vm12, %v17679_v52, %v17721_v35 }
 0x82a   : > { %v15649_v28 = vpop.permute.xlu1 %6815  ;;  %v15651_v57 = vpop.permute.xlu0 %7239  ;;  %v5308_v37 = vadd.f32 %v5303_v55, %v5257_v19  ;;  %v5642_v20 = vadd.f32 %v17725_v16, %v5591_v61  ;;  %v6071_v2 = vadd.f32 %v17726_v12, %v6034_v6  ;;  %v17727_v55 = vld [vmem:[#allocation176_spill] sm:$0xff]  ;;  %v8389_v61 = vrot.slane %v15508_v24, %v12798_v11  ;;  %v8485_v6 = vld [vmem:[#allocation5 + $0xc] sm:$0xf] }
 0x82b   : > { %v8464_v19 = vmul.f32 %v8455_v3, %v17727_v55  ;;  %v8466_v47 = vmul.f32 %v8463_v58, %v17727_v55  ;;  %v17729_v3 = vld [vmem:[#allocation77_spill] sm:$0xff]  ;;  %v8556_v41 = vrot.slane %v15639_v42, %v12788_v5  ;;  %v17730_v58 = vld [vmem:[#allocation147_spill] sm:$0xff]  ;;  %v17731_v52 = vrot.slane %v17715_v60, 4 }
 0x82c   : > { %8316 = vrot.lane.b32.xlu1 %v8310_v43, %s11705_s23  ;;  %8421 = vrot.lane.b32.xlu0 %v8414_v50, %s11705_s23  ;;  %v5373_v46 = vadd.f32 %v5368_v21, %v5308_v37  ;;  %v17728_v43 = vld [vmem:[#allocation139_spill] sm:$0xff]  ;;  %v6108_v48 = vadd.f32 %v17729_v3, %v6071_v2  ;;  %v8363_v21 = vmul.f32 %v8357_v49, %v17714_v44  ;;  %vm6819_vm12 = vcmask 646144  }
 0x82d   : > { %v5693_v50 = vadd.f32 %v17728_v43, %v5642_v20  ;;  %v15702_v35 = vmul.f32 %v17731_v52, %v8485_v6  ;;  %v5585_v44 = vsel %vm5583_vm1, %v17681_v22, %v17723_v53  ;;  %v8412_v2 = vrot.slane %v8397_v31, %v12798_v11  ;;  %v17733_v31 = vld [vmem:[#allocation102_spill] sm:$0xff] }
 0x82e   : > { %v15668_v29 = vpop.permute.xlu1 %6867  ;;  %v15670_v34 = vpop.permute.xlu0 %7289  ;;  %v5424_v1 = vadd.f32 %v5419_v23, %v5373_v46  ;;  %v8523_v46 = vrot.slane %v8508_v17, %v12779_v8  ;;  %v6172_v60 = vadd.f32 %v15274_v15, %v6108_v48  ;;  %v8571_v17 = vrot.slane %v8556_v41, %v12788_v5 }
 0x82f   : > { %v5744_v37 = vadd.f32 %v17730_v58, %v5693_v50  ;;  %v8444_v22 = vrot.slane %v15508_v24, %v13706_v54  ;;  %v8415_v24 = vmul.f32 %v8412_v2, %v17724_v30  ;;  %v5738_v41 = vsel %vm5583_vm1, %v17695_v36, %v17730_v58 }
 0x830   : > { %8320 = vrot.lane.b32.xlu1 %v8312_v26, %s11705_s23  ;;  %8470 = vrot.lane.b32.xlu0 %v8464_v19, %s11705_s23  ;;  %v5475_v7 = vadd.f32 %v5470_v13, %v5424_v1  ;;  %v8404_v26 = vrot.slane %v8389_v61, %v12798_v11  ;;  %v17732_v19 = vld [vmem:[#allocation99_spill] sm:$0xff]  ;;  %v5636_v61 = vsel %vm5583_vm1, %v17683_v56, %v17725_v16 }
 0x831   : > { %v5807_v13 = vadd.f32 %v17732_v19, %v5744_v37  ;;  %v8564_v56 = vrot.slane %v15702_v35, %v12788_v5  ;;  %v5687_v16 = vsel %vm5583_vm1, %v17689_v33, %v17728_v43  ;;  %v8459_v37 = vrot.slane %v8444_v22, %v12806_v14  ;;  %v17735_v43 = vld [vmem:[#allocation94_spill] sm:$0xff] }
 0x832   : > { %v15694_v23 = vpop.permute.xlu1 %6918  ;;  %v15696_v20 = vpop.permute.xlu0 %7342  ;;  %v5526_v49 = vadd.f32 %v5521_v45, %v5475_v7  ;;  %v17734_v45 = vld [vmem:[#allocation48_spill] sm:$0xff]  ;;  %v6223_v7 = vadd.f32 %v15324_v0, %v6172_v60  ;;  %v5801_v58 = vsel %vm3594_vm13, %v17697_v38, %v17732_v19  ;;  %vm7028_vm1 = vcmask 637952  }
 0x833   : > { %v5858_v6 = vadd.f32 %v17733_v31, %v5807_v13  ;;  %v8579_v36 = vrot.slane %v8564_v56, %v12788_v5  ;;  %v8465_v38 = vmul.f32 %v8459_v37, %v17727_v55 }
 0x834   : > { %8370 = vrot.lane.b32.xlu1 %v8363_v21, %s11705_s23  ;;  %8474 = vrot.lane.b32.xlu0 %v8466_v47, %s11705_s23  ;;  %v5590_v53 = vadd.f32 %v5585_v44, %v5526_v49  ;;  %v8413_v47 = vmul.f32 %v8404_v26, %v17724_v30  ;;  %v8529_v21 = vmul.f32 %v8523_v46, %v17734_v45  ;;  %v17736_v44 = vld [vmem:[#allocation57_spill] sm:$0xff] }
 0x835   : > { %v8504_v26 = vrot.slane %v15639_v42, %v12779_v8  ;;  %v5909_v30 = vadd.f32 %v17735_v43, %v5858_v6  ;;  %v8580_v2 = vmul.f32 %v8571_v17, %v17736_v44  ;;  %v8611_v49 = vrot.slane %v15639_v42, %v13693_v4  ;;  %v17738_v4 = vld [vmem:[#allocation38_spill] sm:$0xff] }
 0x836   : > { %v15719_v1 = vpop.permute.xlu1 %6969  ;;  %v15721_v50 = vpop.permute.xlu0 %7391  ;;  %v5641_v48 = vadd.f32 %v5636_v61, %v5590_v53  ;;  %v17737_v61 = vld [vmem:[#allocation113_spill] sm:$0xff]  ;;  %v8582_v22 = vmul.f32 %v8579_v36, %v17736_v44  ;;  %v5852_v17 = vsel %vm3594_vm13, %v17703_v51, %v17733_v31  ;;  %v6274_v53 = vadd.f32 %v17738_v4, %v6223_v7  ;;  %v17741_v36 = vld [vmem:[#allocation62_spill] sm:$0xff] }
 0x837   : > { %v5960_v60 = vadd.f32 %v17737_v61, %v5909_v30  ;;  %v8519_v19 = vrot.slane %v8504_v26, %v12779_v8  ;;  %v8626_v56 = vrot.slane %v8611_v49, %v12798_v11  ;;  %v8512_v51 = vrot.slane %v15702_v35, %v12779_v8 }
 0x838   : > { %8419 = vrot.lane.b32.xlu1 %v8413_v47, %s11705_s23  ;;  %8536 = vrot.lane.b32.xlu0 %v8529_v21, %s11706_s28  ;;  %v5692_v33 = vadd.f32 %v5687_v16, %v5641_v48  ;;  %v5903_v16 = vsel %vm3594_vm13, %v15276_v18, %v17735_v43  ;;  %v5954_v55 = vsel %vm3594_vm13, %v15254_v9, %v17737_v61  ;;  %v8702_v61 = vld [vmem:[%s11899_s20] sm:$0xf]  ;;  %vm6166_vm13 = vcmask 760832   ;;  %s17819_s20 = smov 1  }
 0x839   : > { %v8528_v26 = vmul.f32 %v8519_v19, %v17734_v45  ;;  %v8560_v30 = vrot.slane %v15639_v42, %v13660_v25  ;;  %v8527_v49 = vrot.slane %v8512_v51, %v12779_v8 }
 0x83a   : > { %v15741_v46 = vpop.permute.xlu1 %7237  ;;  %v15743_v52 = vpop.permute.xlu0 %7457  ;;  %v5743_v13 = vadd.f32 %v5738_v41, %v5692_v33  ;;  %v6325_v41 = vadd.f32 %v15375_v62, %v6274_v53  ;;  %v17740_v33 = vld [vmem:[#allocation33_spill] sm:$0xff]  ;;  %v8607_v53 = vrot.slane %v15639_v42, %v12798_v11 }
 0x83b   : > { %v8632_v43 = vmul.f32 %v8626_v56, %v17740_v33  ;;  %v17742_v56 = vld [vmem:[#allocation60_spill] sm:$0xff] }
 0x83c   : > { %8423 = vrot.lane.b32.xlu1 %v8415_v24, %s11705_s23  ;;  %8586 = vrot.lane.b32.xlu0 %v8580_v2, %s11706_s28  ;;  %v5806_v6 = vadd.f32 %v5801_v58, %v5743_v13  ;;  %v17739_v24 = vld [vmem:[#allocation72_spill] sm:$0xff]  ;;  %v8666_v2 = vrot.slane %v15702_v35, %v12806_v14  ;;  %v6390_v13 = vadd.f32 %v15405_v40, %v6325_v41 }
 0x83d   : > { %v5999_v48 = vadd.f32 %v17739_v24, %v5960_v60  ;;  %v8530_v60 = vmul.f32 %v8527_v49, %v17734_v45  ;;  %v17743_v45 = vld [vmem:[#allocation103_spill] sm:$0xff]  ;;  %v17746_v49 = vld [vmem:[#allocation66_spill] sm:$0xff] }
 0x83e   : > { %v15760_v47 = vpop.permute.xlu1 %7291  ;;  %v15762_v21 = vpop.permute.xlu0 %7507  ;;  %v5857_v31 = vadd.f32 %v5852_v17, %v5806_v6  ;;  %v8575_v17 = vrot.slane %v8560_v30, %v12788_v5  ;;  %v5993_v6 = vsel %vm3431_vm14, %v17716_v32, %v17739_v24  ;;  %v6441_v51 = vadd.f32 %v17743_v45, %v6390_v13 }
 0x83f   : > { %v6036_v58 = vadd.f32 %v17741_v36, %v5999_v48  ;;  %v8622_v32 = vrot.slane %v8607_v53, %v12798_v11  ;;  %v6030_v24 = vsel %vm3431_vm14, %v17722_v10, %v17741_v36  ;;  %v8615_v30 = vrot.slane %v15702_v35, %v12798_v11 }
 0x840   : > { %8472 = vrot.lane.b32.xlu1 %v8465_v38, %s11705_s23  ;;  %8590 = vrot.lane.b32.xlu0 %v8582_v22, %s11706_s28  ;;  %v5908_v7 = vadd.f32 %v5903_v16, %v5857_v31  ;;  %v8681_v38 = vrot.slane %v8666_v2, %v12806_v14  ;;  %v17744_v31 = vld [vmem:[#allocation36_spill] sm:$0xff]  ;;  %v8658_v36 = vrot.slane %v15639_v42, %v12806_v14 }
 0x841   : > { %v6073_v16 = vadd.f32 %v17742_v56, %v6036_v58  ;;  %v8631_v10 = vmul.f32 %v8622_v32, %v17740_v33  ;;  %v6067_v35 = vsel %vm3431_vm14, %v17726_v12, %v17742_v56  ;;  %v8662_v56 = vrot.slane %v15639_v42, %v13706_v54 }
 0x842   : > { %v15779_v37 = vpop.permute.xlu1 %7340  ;;  %v15781_v18 = vpop.permute.xlu0 %7560  ;;  %v5959_v9 = vadd.f32 %v5954_v55, %v5908_v7  ;;  %v8684_v48 = vmul.f32 %v8681_v38, %v17744_v31  ;;  %v8581_v7 = vmul.f32 %v8575_v17, %v17736_v44  ;;  %v17747_v44 = vld [vmem:[#allocation185_spill] sm:$0xff]  ;;  %v17749_v17 = vld [vmem:[#allocation143_spill] sm:$0xff]  ;;  %v8673_v12 = vrot.slane %v8658_v36, %v12806_v14 }
 0x843   : > { %v8677_v42 = vrot.slane %v8662_v56, %v12806_v14  ;;  %v17757_v56 = vld [vmem:[#allocation100_spill] sm:$0xff] }
 0x844   : > { %8534 = vrot.lane.b32.xlu1 %v8528_v26, %s11706_s28  ;;  %8639 = vrot.lane.b32.xlu0 %v8632_v43, %s11706_s28  ;;  %v5998_v19 = vadd.f32 %v5993_v6, %v5959_v9  ;;  %v17745_v26 = vld [vmem:[#allocation101_spill] sm:$0xff]  ;;  %v6110_v9 = vadd.f32 %v17746_v49, %v6073_v16  ;;  %v8630_v6 = vrot.slane %v8615_v30, %v12798_v11  ;;  %v17750_v16 = vld [vmem:[#allocation106_spill] sm:$0xff] }
 0x845   : > { %v6492_v43 = vadd.f32 %v17745_v26, %v6441_v51  ;;  %v17752_v30 = vld [vmem:[#allocation182_spill] sm:$0xff]  ;;  %v8682_v54 = vmul.f32 %v8673_v12, %v17744_v31  ;;  %v17756_v12 = vld [vmem:[#allocation159_spill] sm:$0xff] }
 0x846   : > { %v15796_v22 = vpop.permute.xlu1 %7393  ;;  %v15798_v25 = vpop.permute.xlu0 %7609  ;;  %v6035_v2 = vadd.f32 %v6030_v24, %v5998_v19  ;;  %v6104_v24 = vsel %vm3431_vm14, %v17729_v3, %v17746_v49  ;;  %v6167_v3 = vsel %vm6166_vm13, %v15274_v15, %v17749_v17  ;;  %v17754_v49 = vld [vmem:[#allocation157_spill] sm:$0xff]  ;;  %vm6384_vm14 = vcmask 752640  }
 0x847   : > { %v6543_v58 = vadd.f32 %v17747_v44, %v6492_v43  ;;  %v17751_v43 = vld [vmem:[#allocation154_spill] sm:$0xff]  ;;  %v8683_v15 = vmul.f32 %v8677_v42, %v17744_v31 }
 0x848   : > { %8538 = vrot.lane.b32.xlu1 %v8530_v60, %s11706_s28  ;;  %8705 = vperm.xlu0 %11414, %v8702_v61   ;;  %v17748_v60 = vld [vmem:[#allocation152_spill] sm:$0xff]  ;;  %v6072_v38 = vadd.f32 %v6067_v35, %v6035_v2  ;;  %v6219_v2 = vsel %vm6166_vm13, %v17752_v30, %v17751_v43 }
 0x849   : > { %v6168_v53 = vsel %vm6166_vm13, %v17749_v17, %v17748_v60  ;;  %v6608_v51 = vadd.f32 %v17750_v16, %v6543_v58  ;;  %v17755_v60 = vld [vmem:[#allocation180_spill] sm:$0xff]  ;;  %v6218_v17 = vsel %vm6166_vm13, %v15324_v0, %v17752_v30 }
 0x84a   : > { %v15811_v55 = vpop.permute.xlu1 %7455  ;;  %v15813_v41 = vpop.permute.xlu0 %7675  ;;  %v6174_v19 = vadd.f32 %v6168_v53, %v6110_v9  ;;  %v6109_v9 = vadd.f32 %v6104_v24, %v6072_v38  ;;  %v6270_v53 = vsel %vm6166_vm13, %v17755_v60, %v17754_v49  ;;  %v6321_v24 = vsel %vm6166_vm13, %v17757_v56, %v17756_v12  ;;  %v17763_v12 = vld [vmem:[#allocation166_spill] sm:$0xff] }
 0x84b   : > { %v6269_v0 = vsel %vm6166_vm13, %v17738_v4, %v17755_v60 }
 0x84c   : > { %8588 = vrot.lane.b32.xlu1 %v8581_v7, %s11706_s28  ;;  %8692 = vrot.lane.b32.xlu0 %v8684_v48, %s11706_s28  ;;  %v8633_v48 = vmul.f32 %v8630_v6, %v17740_v33  ;;  %v6225_v58 = vadd.f32 %v6219_v2, %v6174_v19  ;;  %v17753_v33 = vld [vmem:[#allocation189_spill] sm:$0xff]  ;;  %v6173_v38 = vadd.f32 %v6167_v3, %v6109_v9  ;;  %v17758_v9 = vld [vmem:[#allocation160_spill] sm:$0xff]  ;;  %v2299_v3 = vld [vmem:[%s11875_s26 + $0x8] sm:$0xff]  ;;  %s17805_s26 = smov 34  }
 0x84e   : > { %v15827_v13 = vpop.permute.xlu1 %7509  ;;  %v15829_v61 = vpop.permute.xlu0 %7725  ;;  %v6276_v19 = vadd.f32 %v6270_v53, %v6225_v58  ;;  %v6224_v43 = vadd.f32 %v6218_v17, %v6173_v38  ;;  %v17759_v58 = vld [vmem:[#allocation181_spill] sm:$0xff]  ;;  %v17760_v53 = vld [vmem:[#allocation163_spill] sm:$0xff]  ;;  %v6320_v17 = vsel %vm6166_vm13, %v15375_v62, %v17757_v56  ;;  %vm7461_vm13 = vcmask 621568  }
 0x84f   : > { %v6385_v62 = vsel %vm6384_vm14, %v15405_v40, %v17759_v58  ;;  %v17768_v56 = vld [vmem:[#allocation171_spill] sm:$0xff] }
 0x850   : > { %8637 = vrot.lane.b32.xlu1 %v8631_v10, %s11706_s28  ;;  %v6659_v10 = vadd.f32 %v17753_v33, %v6608_v51  ;;  %v6327_v2 = vadd.f32 %v6321_v24, %v6276_v19  ;;  %v6275_v30 = vadd.f32 %v6269_v0, %v6224_v43  ;;  %v17764_v24 = vld [vmem:[#allocation149_spill] sm:$0xff] }
 0x851   : > { %v6488_v4 = vsel %vm6384_vm14, %v17764_v24, %v17763_v12  ;;  %v17769_v12 = vld [vmem:[#allocation105_spill] sm:$0xff] }
 0x852   : > { %v15844_v7 = vpop.permute.xlu1 %7558  ;;  %v15846_v32 = vpop.permute.xlu0 %7729  ;;  %v6710_v6 = vadd.f32 %v15574_v59, %v6659_v10  ;;  %v6386_v10 = vsel %vm6384_vm14, %v17759_v58, %v17758_v9  ;;  %v6326_v60 = vadd.f32 %v6320_v17, %v6275_v30  ;;  %v17766_v9 = vld [vmem:[#allocation83_spill] sm:$0xff]  ;;  %v6604_v30 = vsel %vm6602_vm2, %v17769_v12, %v17768_v56 }
 0x853   : > { %v6392_v49 = vadd.f32 %v6386_v10, %v6327_v2  ;;  %v17765_v2 = vld [vmem:[#allocation169_spill] sm:$0xff]  ;;  %v6487_v58 = vsel %vm6384_vm14, %v17745_v26, %v17764_v24  ;;  %v17777_v24 = vld [vmem:[#allocation54_spill] sm:$0xff] }
 0x854   : > { %8641 = vrot.lane.b32.xlu1 %v8633_v48, %s11706_s28  ;;  %v6761_v51 = vadd.f32 %v15594_v27, %v6710_v6  ;;  %v17761_v6 = vld [vmem:[#allocation59_spill] sm:$0xff]  ;;  %v6539_v10 = vsel %vm6384_vm14, %v17766_v9, %v17765_v2  ;;  %v17772_v2 = vld [vmem:[#allocation89_spill] sm:$0xff] }
 0x855   : > { %v6437_v38 = vsel %vm6384_vm14, %v17761_v6, %v17760_v53  ;;  %v6436_v17 = vsel %vm6384_vm14, %v17743_v45, %v17761_v6  ;;  %v6538_v45 = vsel %vm6384_vm14, %v17747_v44, %v17766_v9  ;;  %v17773_v6 = vld [vmem:[#allocation81_spill] sm:$0xff]  ;;  %vm7679_vm14 = vcmask 523264  }
 0x856   : > { %v15859_v35 = vpop.permute.xlu1 %7611  ;;  %v15861_v36 = vpop.permute.xlu0 %7778  ;;  %v6443_v43 = vadd.f32 %v6437_v38, %v6392_v49  ;;  %v6391_v49 = vadd.f32 %v6385_v62, %v6326_v60  ;;  %v17776_v26 = vld [vmem:[#allocation145_spill] sm:$0xff] }
 0x858   : > { %8688 = vrot.lane.b32.xlu1 %v8682_v54, %s11706_s28  ;;  %v6825_v54 = vadd.f32 %v15554_v63, %v6761_v51  ;;  %v6494_v0 = vadd.f32 %v6488_v4, %v6443_v43  ;;  %v17771_v4 = vld [vmem:[#allocation151_spill] sm:$0xff]  ;;  %v6442_v60 = vadd.f32 %v6436_v17, %v6391_v49  ;;  %v17778_v49 = vld [vmem:[#allocation188_spill] sm:$0xff] }
 0x859   : > { %v6757_v44 = vsel %vm6602_vm2, %v17778_v49, %v17777_v24  ;;  %v6654_v17 = vsel %vm6602_vm2, %v17753_v33, %v17771_v4  ;;  %v17783_v24 = vld [vmem:[#allocation177_spill] sm:$0xff] }
 0x85a   : > { %v15874_v48 = vpop.permute.xlu1 %7673  ;;  %v15876_v14 = vpop.permute.xlu0 %7827  ;;  %v6876_v19 = vadd.f32 %v15576_v39, %v6825_v54  ;;  %v17767_v54 = vld [vmem:[#allocation116_spill] sm:$0xff]  ;;  %v6545_v38 = vadd.f32 %v6539_v10, %v6494_v0  ;;  %v6493_v62 = vadd.f32 %v6487_v58, %v6442_v60  ;;  %v17780_v58 = vld [vmem:[#allocation35_spill] sm:$0xff] }
 0x85c   : > { %8690 = vrot.lane.b32.xlu1 %v8683_v15, %s11706_s28  ;;  %v6610_v8 = vadd.f32 %v6604_v30, %v6545_v38  ;;  %v6603_v30 = vsel %vm6602_vm2, %v17750_v16, %v17769_v12  ;;  %v17775_v38 = vld [vmem:[#allocation174_spill] sm:$0xff]  ;;  %v6544_v9 = vadd.f32 %v6538_v45, %v6493_v62  ;;  %v6821_v16 = vsel %vm6819_vm12, %v15649_v28, %v17780_v58  ;;  %v17781_v45 = vld [vmem:[#allocation39_spill] sm:$0xff]  ;;  %s17847_s28 = sld [smem:[#allocation205_spill]] (!%p10763_p8) }
 0x85d   : > { %v6872_v33 = vsel %vm6819_vm12, %v15668_v29, %v17781_v45  ;;  %v6756_v62 = vsel %vm6602_vm2, %v15594_v27, %v17778_v49 }
 0x85e   : > { %v15891_v31 = vpop.permute.xlu1 %7727  ;;  %v15893_v42 = vpop.permute.xlu0 %7831  ;;  %v6609_v12 = vadd.f32 %v6603_v30, %v6544_v9  ;;  %v17782_v30 = vld [vmem:[#allocation52_spill] sm:$0xff] }
 0x860   : > { %3123 = vperm.xlu1 %11419, %v2299_v3   ;;  %v6927_v3 = vadd.f32 %v17767_v54, %v6876_v19  ;;  %v17770_v19 = vld [vmem:[#allocation173_spill] sm:$0xff] }
 0x861   : > { %v6655_v43 = vsel %vm6602_vm2, %v17771_v4, %v17770_v19  ;;  %v17779_v19 = vld [vmem:[#allocation68_spill] sm:$0xff]  ;;  %v6660_v4 = vadd.f32 %v6654_v17, %v6609_v12  ;;  %v17784_v17 = vld [vmem:[#allocation41_spill] sm:$0xff]  ;;  %v17785_v12 = vld [vmem:[#allocation71_spill] sm:$0xff] }
 0x862   : > { %v15902_v15 = vpop.permute.xlu1 %7776  ;;  %v15904_v51 = vpop.permute.xlu0 %7893  ;;  %v6978_v5 = vadd.f32 %v17772_v2, %v6927_v3  ;;  %v6661_v10 = vadd.f32 %v6655_v43, %v6610_v8  ;;  %v6706_v8 = vsel %vm6602_vm2, %v17776_v26, %v17775_v38  ;;  %v6974_v27 = vsel %vm6819_vm12, %v15719_v1, %v17784_v17  ;;  %v17789_v17 = vld [vmem:[#allocation69_spill] sm:$0xff] }
 0x863   : > { %17762 = vst [vmem:[#allocation114_spill] sm:$0xff] %v15904_v51 }
 0x864   : > { %v7034_v0 = vadd.f32 %v17773_v6, %v6978_v5  ;;  %v6712_v5 = vadd.f32 %v6706_v8, %v6661_v10  ;;  %v6705_v10 = vsel %vm6602_vm2, %v15574_v59, %v17776_v26  ;;  %v6923_v8 = vsel %vm6819_vm12, %v15694_v23, %v17782_v30  ;;  %v17787_v30 = vld [vmem:[#allocation64_spill] sm:$0xff] }
 0x865   : > { %v6711_v9 = vadd.f32 %v6705_v10, %v6660_v4  ;;  %v6820_v26 = vsel %vm6819_vm12, %v15554_v63, %v15649_v28  ;;  %v6922_v63 = vsel %vm6819_vm12, %v17767_v54, %v15694_v23  ;;  %v17788_v54 = vld [vmem:[#allocation108_spill] sm:$0xff]  ;;  %vm7897_vm2 = vcmask 515072  }
 0x866   : > { %v15916_v53 = vpop.permute.xlu1 %7780  ;;  %v15918_v11 = vpop.permute.xlu0 %7943  ;;  %v7085_v43 = vadd.f32 %v17779_v19, %v7034_v0  ;;  %v6763_v60 = vadd.f32 %v6757_v44, %v6712_v5 }
 0x867   : > { %v6762_v49 = vadd.f32 %v6756_v62, %v6711_v9  ;;  %v17786_v62 = vld [vmem:[#allocation40_spill] sm:$0xff] }
 0x868   : > { %v6827_v0 = vadd.f32 %v6821_v16, %v6763_v60  ;;  %v7136_v44 = vadd.f32 %v17783_v24, %v7085_v43  ;;  %v6871_v43 = vsel %vm6819_vm12, %v15576_v39, %v15668_v29  ;;  %v7030_v39 = vsel %vm7028_vm1, %v17787_v30, %v17786_v62 }
 0x869   : > { %v6826_v10 = vadd.f32 %v6820_v26, %v6762_v49  ;;  %v6973_v29 = vsel %vm6819_vm12, %v17772_v2, %v15719_v1  ;;  %v7029_v1 = vsel %vm7028_vm1, %v17773_v6, %v17787_v30  ;;  %v17792_v6 = vld [vmem:[#allocation63_spill] sm:$0xff]  ;;  %v17793_v30 = vld [vmem:[#allocation84_spill] sm:$0xff]  ;;  %vm8106_vm12 = vcmask 506880  }
 0x86a   : > { %v15933_v51 = vpop.permute.xlu1 %7829  ;;  %v15935_v40 = vpop.permute.xlu0 %7947  ;;  %v6878_v5 = vadd.f32 %v6872_v33, %v6827_v0  ;;  %v7187_v60 = vadd.f32 %v17785_v12, %v7136_v44 }
 0x86b   : > { %v6877_v0 = vadd.f32 %v6871_v43, %v6826_v10  ;;  %v17790_v10 = vld [vmem:[#allocation50_spill] sm:$0xff] }
 0x86c   : > { %v6929_v16 = vadd.f32 %v6923_v8, %v6878_v5  ;;  %v7249_v28 = vadd.f32 %v15741_v46, %v7187_v60 }
 0x86d   : > { %v6928_v8 = vadd.f32 %v6922_v63, %v6877_v0 }
 0x86e   : > { %v15944_v3 = vpop.permute.xlu1 %7891  ;;  %v15946_v56 = vpop.permute.xlu0 %7996  ;;  %v6980_v45 = vadd.f32 %v6974_v27, %v6929_v16  ;;  %v7300_v26 = vadd.f32 %v15670_v34, %v7249_v28  ;;  %v7081_v27 = vsel %vm7028_vm1, %v17789_v17, %v17788_v54 }
 0x86f   : > { %17774 = vst [vmem:[#allocation191_spill] sm:$0xff] %v15946_v56  ;;  %v6979_v23 = vadd.f32 %v6973_v29, %v6928_v8  ;;  %v7080_v29 = vsel %vm7028_vm1, %v17779_v19, %v17789_v17  ;;  %v17794_v17 = vld [vmem:[#allocation34_spill] sm:$0xff] }
 0x870   : > { %v7036_v44 = vadd.f32 %v7030_v39, %v6980_v45  ;;  %v7351_v49 = vadd.f32 %v15779_v37, %v7300_v26  ;;  %v17791_v45 = vld [vmem:[#allocation78_spill] sm:$0xff]  ;;  %v7183_v26 = vsel %vm7028_vm1, %v17793_v30, %v17792_v6 }
 0x871   : > { %v7035_v2 = vadd.f32 %v7029_v1, %v6979_v23  ;;  %v7132_v63 = vsel %vm7028_vm1, %v17791_v45, %v17790_v10  ;;  %v7245_v1 = vsel %vm7243_vm15, %v15651_v57, %v17794_v17 }
 0x872   : > { %v15964_v56 = vpop.permute.xlu1 %7895  ;;  %v15966_v38 = vpop.permute.xlu0 %8045  ;;  %v7087_v16 = vadd.f32 %v7081_v27, %v7036_v44  ;;  %v7402_v28 = vadd.f32 %v15721_v50, %v7351_v49  ;;  %v7131_v49 = vsel %vm7028_vm1, %v17783_v24, %v17791_v45  ;;  %v17795_v24 = vld [vmem:[#allocation47_spill] sm:$0xff] }
 0x873   : > { %v7086_v44 = vadd.f32 %v7080_v29, %v7035_v2  ;;  %v7296_v45 = vsel %vm7243_vm15, %v15760_v47, %v17795_v24 }
 0x874   : > { %v7138_v0 = vadd.f32 %v7132_v63, %v7087_v16  ;;  %v7467_v8 = vadd.f32 %v15811_v55, %v7402_v28 }
 0x875   : > { %v7137_v19 = vadd.f32 %v7131_v49, %v7086_v44 }
 0x876   : > { %v15981_v58 = vpop.permute.xlu1 %7945  ;;  %v15983_v59 = vpop.permute.xlu0 %8049  ;;  %v7189_v23 = vadd.f32 %v7183_v26, %v7138_v0  ;;  %v7518_v16 = vadd.f32 %v15762_v21, %v7467_v8  ;;  %v7182_v0 = vsel %vm7028_vm1, %v17785_v12, %v17793_v30  ;;  %v17796_v12 = vld [vmem:[#allocation49_spill] sm:$0xff]  ;;  %vm8322_vm1 = vcmask 498688  }
 0x877   : > { %v7188_v29 = vadd.f32 %v7182_v0, %v7137_v19  ;;  %v7347_v30 = vsel %vm7243_vm15, %v15696_v20, %v17796_v12 }
 0x878   : > { %v7569_v2 = vadd.f32 %v15844_v7, %v7518_v16  ;;  %v7251_v10 = vadd.f32 %v7245_v1, %v7189_v23  ;;  %v7244_v23 = vsel %vm7243_vm15, %v15741_v46, %v15651_v57 }
 0x879   : > { %v7250_v16 = vadd.f32 %v7244_v23, %v7188_v29 }
 0x87a   : > { %v15995_v33 = vpop.permute.xlu1 %7994  ;;  %v15997_v4 = vpop.permute.xlu0 %8102  ;;  %v7620_v8 = vadd.f32 %v15798_v25, %v7569_v2  ;;  %v7302_v44 = vadd.f32 %v7296_v45, %v7251_v10  ;;  %v7295_v2 = vsel %vm7243_vm15, %v15670_v34, %v15760_v47  ;;  %v17797_v10 = vld [vmem:[#allocation51_spill] sm:$0xff]  ;;  %v17798_v47 = vld [vmem:[#allocation73_spill] sm:$0xff] }
 0x87b   : > { %v7398_v57 = vsel %vm7243_vm15, %v15796_v22, %v17797_v10  ;;  %v7301_v0 = vadd.f32 %v7295_v2, %v7250_v16  ;;  %v7463_v23 = vsel %vm7461_vm13, %v15743_v52, %v17798_v47  ;;  %v17799_v16 = vld [vmem:[#allocation86_spill] sm:$0xff] }
 0x87c   : > { %v7685_v49 = vadd.f32 %v15874_v48, %v7620_v8  ;;  %v7353_v19 = vadd.f32 %v7347_v30, %v7302_v44  ;;  %v7346_v44 = vsel %vm7243_vm15, %v15779_v37, %v15696_v20  ;;  %v7514_v12 = vsel %vm7461_vm13, %v15827_v13, %v17799_v16 }
 0x87d   : > { %v7352_v34 = vadd.f32 %v7346_v44, %v7301_v0  ;;  %v7462_v20 = vsel %vm7461_vm13, %v15811_v55, %v15743_v52  ;;  %v7564_v52 = vsel %vm7461_vm13, %v15844_v7, %v15781_v18  ;;  %v17801_v55 = vld [vmem:[#allocation82_spill] sm:$0xff]  ;;  %v7680_v7 = vsel %vm7679_vm14, %v15874_v48, %v15813_v41 }
 0x87e   : > { %v16009_v9 = vpop.permute.xlu1 %7998  ;;  %v16011_v5 = vpop.permute.xlu0 %8152  ;;  %v7736_v46 = vadd.f32 %v15829_v61, %v7685_v49  ;;  %v7404_v24 = vadd.f32 %v7398_v57, %v7353_v19  ;;  %v7397_v49 = vsel %vm7243_vm15, %v15721_v50, %v15796_v22  ;;  %v7513_v50 = vsel %vm7461_vm13, %v15762_v21, %v15827_v13 }
 0x87f   : > { %v7403_v10 = vadd.f32 %v7397_v49, %v7352_v34  ;;  %v7616_v44 = vsel %vm7461_vm13, %v15859_v35, %v17801_v55  ;;  %v7615_v21 = vsel %vm7461_vm13, %v15798_v25, %v15859_v35  ;;  %v7731_v25 = vsel %vm7679_vm14, %v15829_v61, %v15891_v31 }
 0x880   : > { %v7787_v29 = vadd.f32 %v15902_v15, %v7736_v46  ;;  %v7469_v19 = vadd.f32 %v7463_v23, %v7404_v24  ;;  %v7732_v35 = vsel %vm7679_vm14, %v15891_v31, %v15846_v32  ;;  %v7782_v48 = vsel %vm7679_vm14, %v15902_v15, %v15861_v36 }
 0x881   : > { %v7468_v22 = vadd.f32 %v7462_v20, %v7403_v10  ;;  %v7833_v31 = vsel %vm7679_vm14, %v15876_v14, %v15933_v51  ;;  %vm8540_vm15 = vcmask 490496  }
 0x882   : > { %v16018_v43 = vpop.permute.xlu1 %8047  ;;  %v16020_v60 = vpop.permute.xlu0 %8156  ;;  %v7838_v30 = vadd.f32 %v15876_v14, %v7787_v29  ;;  %v7520_v57 = vadd.f32 %v7514_v12, %v7469_v19  ;;  %v17800_v29 = vld [vmem:[#allocation76_spill] sm:$0xff]  ;;  %v17802_v19 = vld [vmem:[#allocation107_spill] sm:$0xff]  ;;  %v7949_v14 = vsel %vm7897_vm2, %v15918_v11, %v15981_v58 }
 0x883   : > { %v7565_v24 = vsel %vm7461_vm13, %v15781_v18, %v17800_v29  ;;  %v7519_v47 = vadd.f32 %v7513_v50, %v7468_v22  ;;  %v7681_v20 = vsel %vm7679_vm14, %v15813_v41, %v17802_v19  ;;  %v7783_v41 = vsel %vm7679_vm14, %v15861_v36, %v15916_v53 }
 0x884   : > { %v7903_v37 = vadd.f32 %v15944_v3, %v7838_v30  ;;  %v7571_v23 = vadd.f32 %v7565_v24, %v7520_v57  ;;  %v7834_v24 = vsel %vm7679_vm14, %v15933_v51, %v15893_v42  ;;  %v7950_v42 = vsel %vm7897_vm2, %v15981_v58, %v15935_v40 }
 0x885   : > { %v7570_v49 = vadd.f32 %v7564_v52, %v7519_v47  ;;  %v8051_v40 = vsel %vm7897_vm2, %v15966_v38, %v16018_v43  ;;  %v8052_v58 = vsel %vm7897_vm2, %v16018_v43, %v15983_v59 }
 0x886   : > { %v16029_v62 = vpop.permute.xlu1 %8100  ;;  %v16031_v39 = vpop.permute.xlu0 %8205  ;;  %v7954_v34 = vadd.f32 %v15918_v11, %v7903_v37  ;;  %v7622_v16 = vadd.f32 %v7616_v44, %v7571_v23  ;;  %v17803_v44 = vld [vmem:[#allocation114_spill] sm:$0xff] }
 0x887   : > { %v7621_v30 = vadd.f32 %v7615_v21, %v7570_v49  ;;  %v7898_v36 = vsel %vm7897_vm2, %v15944_v3, %v17803_v44  ;;  %v7899_v53 = vsel %vm7897_vm2, %v17803_v44, %v15964_v56 }
 0x888   : > { %v8005_v13 = vadd.f32 %v15995_v33, %v7954_v34  ;;  %v7687_v57 = vadd.f32 %v7681_v20, %v7622_v16  ;;  %v17804_v16 = vld [vmem:[#allocation191_spill] sm:$0xff] }
 0x889   : > { %v7686_v10 = vadd.f32 %v7680_v7, %v7621_v30  ;;  %v8000_v56 = vsel %vm7897_vm2, %v15995_v33, %v17804_v16  ;;  %v8001_v7 = vsel %vm7897_vm2, %v17804_v16, %v16009_v9  ;;  %v8107_v9 = vsel %vm8106_vm12, %v16029_v62, %v15997_v4 }
 0x88a   : > { %v16040_v54 = vpop.permute.xlu1 %8104  ;;  %v16042_v27 = vpop.permute.xlu0 %8254  ;;  %v8056_v37 = vadd.f32 %v15966_v38, %v8005_v13  ;;  %v7738_v29 = vadd.f32 %v7732_v35, %v7687_v57 }
 0x88b   : > { %v7737_v22 = vadd.f32 %v7731_v25, %v7686_v10  ;;  %v8108_v35 = vsel %vm8106_vm12, %v15997_v4, %v16040_v54 }
 0x88c   : > { %v8112_v61 = vadd.f32 %v16029_v62, %v8056_v37  ;;  %v7789_v52 = vadd.f32 %v7783_v41, %v7738_v29 }
 0x88d   : > { %v7788_v15 = vadd.f32 %v7782_v48, %v7737_v22 }
 0x88e   : > { %v16052_v63 = vpop.permute.xlu1 %8154  ;;  %v16054_v28 = vpop.permute.xlu0 %8258  ;;  %v8163_v34 = vadd.f32 %v16011_v5, %v8112_v61  ;;  %v7840_v23 = vadd.f32 %v7834_v24, %v7789_v52 }
 0x88f   : > { %v7839_v47 = vadd.f32 %v7833_v31, %v7788_v15  ;;  %v8158_v59 = vsel %vm8106_vm12, %v16011_v5, %v16052_v63  ;;  %v8159_v43 = vsel %vm8106_vm12, %v16052_v63, %v16020_v60 }
 0x890   : > { %v7905_v3 = vadd.f32 %v7899_v53, %v7840_v23 }
 0x891   : > { %v7904_v21 = vadd.f32 %v7898_v36, %v7839_v47 }
 0x892   : > { %v16063_v6 = vpop.permute.xlu1 %8203  ;;  %v16065_v26 = vpop.permute.xlu0 %8318  ;;  %v7956_v11 = vadd.f32 %v7950_v42, %v7905_v3 }
 0x893   : > { %v8214_v51 = vadd.f32 %v16063_v6, %v8163_v34  ;;  %v7955_v30 = vadd.f32 %v7949_v14, %v7904_v21  ;;  %v8209_v4 = vsel %vm8106_vm12, %v16063_v6, %v16031_v39 }
 0x894   : > { %v8007_v25 = vadd.f32 %v8001_v7, %v7956_v11 }
 0x895   : > { %v8265_v19 = vadd.f32 %v16042_v27, %v8214_v51  ;;  %v8006_v20 = vadd.f32 %v8000_v56, %v7955_v30 }
 0x896   : > { %v16074_v17 = vpop.permute.xlu1 %8207  ;;  %v16076_v1 = vpop.permute.xlu0 %8368  ;;  %v8058_v10 = vadd.f32 %v8052_v58, %v8007_v25 }
 0x897   : > { %v8057_v38 = vadd.f32 %v8051_v40, %v8006_v20  ;;  %v8210_v54 = vsel %vm8106_vm12, %v16031_v39, %v16074_v17 }
 0x898   : > { %v8114_v41 = vadd.f32 %v8108_v35, %v8058_v10 }
 0x899   : > { %v8113_v48 = vadd.f32 %v8107_v9, %v8057_v38 }
 0x89a   : > { %v16086_v45 = vpop.permute.xlu1 %8256  ;;  %v16088_v8 = vpop.permute.xlu0 %8372  ;;  %v8165_v29 = vadd.f32 %v8159_v43, %v8114_v41 }
 0x89b   : > { %v8164_v22 = vadd.f32 %v8158_v59, %v8113_v48  ;;  %v8260_v5 = vsel %vm8106_vm12, %v16042_v27, %v16086_v45  ;;  %v8261_v60 = vsel %vm8106_vm12, %v16086_v45, %v16054_v28  ;;  %v16249_v48 = vld [vmem:[#allocation3 + $0x18] sm:$0xff] }
 0x89c   : > { %v8216_v31 = vadd.f32 %v8210_v54, %v8165_v29  ;;  %v10995_v41 = vpack.c.bf16 %v16249_v48, %v16249_v48  ;;  %v3406_v54 = vpop.f32.mrf.mxu1 }
 0x89d   : > { %v8215_v6 = vadd.f32 %v8209_v4, %v8164_v22 }
 0x89e   : > { %v16103_v2 = vpop.permute.xlu1 %8316  ;;  %v16109_v46 = vpop.permute.xlu0 %8421  ;;  %v8267_v27 = vadd.f32 %v8261_v60, %v8216_v31 }
 0x89f   : > { %v8328_v37 = vadd.f32 %v16103_v2, %v8265_v19  ;;  %v8323_v39 = vsel %vm8322_vm1, %v16103_v2, %v16065_v26  ;;  %v8266_v52 = vadd.f32 %v8260_v5, %v8215_v6  ;;  %v17807_v5 = vld [vmem:[#allocation37_spill] sm:$0xff]  ;;  %v3408_v31 = vpop.f32.mrf.mxu1 }
 0x8a1   : > { %v8379_v61 = vadd.f32 %v16076_v1, %v8328_v37  ;;  %v8329_v36 = vadd.f32 %v8323_v39, %v8266_v52 }
 0x8a2   : > { %v16114_v0 = vpop.permute.xlu1 %8320  ;;  %v16130_v12 = vpop.permute.xlu0 %8470 }
 0x8a3   : > { %v8324_v17 = vsel %vm8322_vm1, %v16065_v26, %v16114_v0 }
 0x8a4   : > { %v8330_v53 = vadd.f32 %v8324_v17, %v8267_v27  ;;  %v17809_v27 = vld [vmem:[#allocation18_spill] sm:$0xff] }
 0x8a6   : > { %v16132_v18 = vpop.permute.xlu1 %8370  ;;  %v16156_v32 = vpop.permute.xlu0 %8474 }
 0x8a7   : > { %v8374_v28 = vsel %vm8322_vm1, %v16076_v1, %v16132_v18  ;;  %v8375_v45 = vsel %vm8322_vm1, %v16132_v18, %v16088_v8 }
 0x8a8   : > { %v8380_v47 = vadd.f32 %v8374_v28, %v8329_v36  ;;  %v8381_v23 = vadd.f32 %v8375_v45, %v8330_v53  ;;  %v17810_v45 = vld [vmem:[#allocation19_spill] sm:$0xff]  ;;  %v17811_v53 = vld [vmem:[#allocation16_spill] sm:$0xff] }
 0x8aa   : > { %v16147_v50 = vpop.permute.xlu1 %8419  ;;  %v8537_v13 = vpop.permute.xlu0 %8536 }
 0x8ab   : > { %v8430_v63 = vadd.f32 %v16147_v50, %v8379_v61  ;;  %v8425_v2 = vsel %vm8322_vm1, %v16147_v50, %v16109_v46  ;;  %v17806_v61 = vld [vmem:[#allocation15_spill] sm:$0xff] }
 0x8ac   : > { %v8431_v14 = vadd.f32 %v8425_v2, %v8380_v47  ;;  %v8998_v22 = vmul.f32 %v17806_v61, %v16249_v48  ;;  %v17813_v47 = vld [vmem:[#allocation22_spill] sm:$0xff] }
 0x8ad   : > { %v8481_v44 = vadd.f32 %v16130_v12, %v8430_v63  ;;  %v17808_v63 = vld [vmem:[#allocation44_spill] sm:$0xff] }
 0x8ae   : > { %v8424_v55 = vpop.permute.xlu1 %8423  ;;  %v8587_v57 = vpop.permute.xlu0 %8586  ;;  %v10991_v39 = vpack.c.bf16 %v8998_v22, %v8998_v22  ;;  %v16334_v22 = vld [vmem:[#allocation3] sm:$0xff] }
 0x8af   : > { %v8426_v26 = vsel %vm8322_vm1, %v16109_v46, %v8424_v55 }
 0x8b0   : > { %v8432_v42 = vadd.f32 %v8426_v26, %v8381_v23  ;;  %v17812_v26 = vld [vmem:[#allocation21_spill] sm:$0xff] }
 0x8b2   : > { %v8473_v49 = vpop.permute.xlu1 %8472  ;;  %v8591_v24 = vpop.permute.xlu0 %8590 }
 0x8b3   : > { %v8476_v8 = vsel %vm8322_vm1, %v16130_v12, %v8473_v49  ;;  %v8477_v18 = vsel %vm8322_vm1, %v8473_v49, %v16156_v32 }
 0x8b4   : > { %v8482_v46 = vadd.f32 %v8476_v8, %v8431_v14  ;;  %v8483_v55 = vadd.f32 %v8477_v18, %v8432_v42  ;;  %v16289_v18 = vld [vmem:[#allocation3 + $0x20] sm:$0xff] }
 0x8b5   : > { %v17814_v42 = vld [vmem:[#allocation25_spill] sm:$0xff] }
 0x8b6   : > { %v8535_v33 = vpop.permute.xlu1 %8534  ;;  %v8640_v1 = vpop.permute.xlu0 %8639 }
 0x8b7   : > { %v8546_v0 = vadd.f32 %v8535_v33, %v8481_v44  ;;  %v8541_v21 = vsel %vm8540_vm15, %v8535_v33, %v8537_v13 }
 0x8b8   : > { %v8547_v12 = vadd.f32 %v8541_v21, %v8482_v46  ;;  %v17816_v46 = vld [vmem:[#allocation24_spill] sm:$0xff] }
 0x8b9   : > { %v8597_v3 = vadd.f32 %v8587_v57, %v8546_v0 }
 0x8ba   : > { %v8539_v62 = vpop.permute.xlu1 %8538 }
 0x8bb   : > { %v8542_v50 = vsel %vm8540_vm15, %v8537_v13, %v8539_v62  ;;  %v16255_v62 = vld [vmem:[#allocation3 + $0x38] sm:$0xff] }
 0x8bc   : > { %v8548_v11 = vadd.f32 %v8542_v50, %v8483_v55  ;;  %v10997_v4 = vpack.c.bf16 %v16255_v62, %v16255_v62  ;;  %v9001_v17 = vmul.f32 %v17806_v61, %v16255_v62  ;;  %v8953_v8 = vmul.f32 %v17811_v53, %v16255_v62  ;;  %v17815_v50 = vld [vmem:[#allocation17_spill] sm:$0xff] }
 0x8bd   : > { %v8885_v55 = vmul.f32 %v17816_v46, %v16289_v18 }
 0x8be   : > { %v8589_v15 = vpop.permute.xlu1 %8588  ;;  %v10993_v36 = vpack.c.bf16 %v9001_v17, %v9001_v17  ;;  %v10989_v21 = vpack.c.bf16 %v8953_v8, %v8953_v8 }
 0x8bf   : > { %v8592_v56 = vsel %vm8540_vm15, %v8587_v57, %v8589_v15  ;;  %v8593_v7 = vsel %vm8540_vm15, %v8589_v15, %v8591_v24 }
 0x8c0   : > { %v8598_v19 = vadd.f32 %v8592_v56, %v8547_v12  ;;  %v8599_v20 = vadd.f32 %v8593_v7, %v8548_v11  ;;  %v17817_v56 = vld [vmem:[#allocation28_spill] sm:$0xff] }
 0x8c1   : > { %v17818_v12 = vld [vmem:[#allocation20_spill] sm:$0xff] }
 0x8c2   : > { %v8638_v34 = vpop.permute.xlu1 %8637 }
 0x8c3   : > { %v8706_v16 = vpop.permute.xlu0 %8705  ;;  %v8648_v30 = vadd.f32 %v8638_v34, %v8597_v3  ;;  %v8643_v32 = vsel %vm8540_vm15, %v8638_v34, %v8640_v1  ;;  %v8950_v34 = vmul.f32 %v17811_v53, %v16249_v48 }
 0x8c4   : > { %v8649_v25 = vadd.f32 %v8643_v32, %v8598_v19 }
 0x8c6   : > { %v8642_v51 = vpop.permute.xlu1 %8641 }
 0x8c7   : > { %v8644_v49 = vsel %vm8540_vm15, %v8640_v1, %v8642_v51  ;;  %v8693_v9 = vpop.permute.xlu0 %8692  ;;  %v10987_v1 = vpack.c.bf16 %v8950_v34, %v8950_v34 }
 0x8c8   : > { %v8650_v33 = vadd.f32 %v8644_v49, %v8599_v20 }
 0x8ca   : > { %v8689_v40 = vpop.permute.xlu1 %8688 }
 0x8cb   : > { %v8699_v58 = vadd.f32 %v8689_v40, %v8648_v30 }
 0x8cd   : > { %v8708_v13 = vadd.f32 %v8706_v16, %v8699_v58 }
 0x8ce   : > { %v8691_v35 = vpop.permute.xlu1 %8690 }
 0x8cf   : > { %v8694_v37 = vsel %vm8540_vm15, %v8689_v40, %v8691_v35  ;;  %v8695_v38 = vsel %vm8540_vm15, %v8691_v35, %v8693_v9  ;;  %8714 = vrot.lane.b32.xlu0 %v8708_v13, %s17805_s26  ;;  %v17820_v40 = vld [vmem:[#allocation27_spill] sm:$0xff] }
 0x8d0   : > { %v8700_v10 = vadd.f32 %v8694_v37, %v8649_v25  ;;  %v8701_v57 = vadd.f32 %v8695_v38, %v8650_v33  ;;  %v8837_v32 = vmul.f32 %v17820_v40, %v16289_v18 }
 0x8d2   : > { %v8709_v59 = vadd.f32 %v8706_v16, %v8700_v10  ;;  %v8710_v43 = vadd.f32 %v8706_v16, %v8701_v57 }
 0x8d4   : > { %8716 = vrot.lane.b32.xlu1 %v8709_v59, %s17805_s26  ;;  %8718 = vrot.lane.b32.xlu0 %v8710_v43, %s17805_s26  ;;  %v17822_v59 = vld [vmem:[#allocation23_spill] sm:$0xff]  ;;  %s11714_s26 = smov (!%p10763_p8), 111  }
 0x8d8   : > { %9062 = vrot.lane.b32.xlu0 %v10995_v41, %s11575_s9 }
 0x8db   : > { %v3124_v29 = vpop.permute.xlu1 %3123 }
 0x8dc   : > { %v3364_v60 = vadd.f32 %v17807_v5, %v3124_v29  ;;  %v3366_v6 = vadd.f32 %v17808_v63, %v3124_v29  ;;  %9066 = vrot.lane.b32.xlu0 %v10997_v4, %s11575_s9 }
 0x8de   : > { %v16265_v24 = vadd.f32 %v3406_v54, %v3364_v60  ;;  %v16267_v15 = vadd.f32 %v3408_v31, %v3366_v6 }
 0x8e0   : > { %9020 = vrot.lane.b32.xlu0 %v10991_v39, %s11572_s22  ;;  %v10996_v52 = vpack.c.bf16 %v16267_v15, %v16265_v24  ;;  %v8999_v28 = vmul.f32 %v17809_v27, %v16265_v24  ;;  %v9000_v44 = vmul.f32 %v16267_v15, %v17810_v45  ;;  %v8951_v0 = vmul.f32 %v17812_v26, %v16265_v24 }
 0x8e1   : > { %v8952_v23 = vmul.f32 %v16267_v15, %v17813_v47  ;;  %v8886_v51 = vmul.f32 %v16265_v24, %v17814_v42  ;;  %v8887_v3 = vmul.f32 %v17815_v50, %v16267_v15  ;;  %v8838_v7 = vmul.f32 %v16265_v24, %v17817_v56 }
 0x8e2   : > { %9064 = vrot.lane.b32.xlu1 %v10996_v52, %s11575_s9  ;;  %v10992_v2 = vpack.c.bf16 %v9000_v44, %v8999_v28  ;;  %v8839_v11 = vmul.f32 %v17818_v12, %v16267_v15  ;;  %v10974_v19 = vpack.c.bf16 %v16265_v24, %v16289_v18  ;;  %v10975_v20 = vpack.c.bf16 %v16267_v15, %v16267_v15 }
 0x8e3   : > { %v10988_v14 = vpack.c.bf16 %v8952_v23, %v8951_v0  ;;  %v10982_v16 = vpack.c.bf16 %v8886_v51, %v8885_v55  ;;  %v10983_v30 = vpack.c.bf16 %v8887_v3, %v8887_v3  ;;  %v10978_v49 = vpack.c.bf16 %v8838_v7, %v8837_v32 }
 0x8e4   : > { %9024 = vrot.lane.b32.xlu0 %v10993_v36, %s11572_s22  ;;  %v10979_v58 = vpack.c.bf16 %v8839_v11, %v8839_v11  ;;  %v8749_v43 = vmul.f32 %v17822_v59, %v16267_v15 }
 0x8e6   : > { %9022 = vrot.lane.b32.xlu1 %v10992_v2, %s11572_s22  ;;  %v10971_v29 = vpack.c.bf16 %v8749_v43, %v8749_v43 }
 0x8e8   : > { %8972 = vrot.lane.b32.xlu0 %v10987_v1, %s11569_s0 }
 0x8ea   : > { %8974 = vrot.lane.b32.xlu1 %v10988_v14, %s11569_s0 }
 0x8ec   : > { %8976 = vrot.lane.b32.xlu0 %v10989_v21, %s11569_s0  ;;  %v17825_v21 = vld [vmem:[#allocation30_spill] sm:$0xff] }
 0x8ee   : > { %8908 = vrot.lane.b32.xlu1 %v10982_v16, %s17819_s20  ;;  %v17826_v16 = vld [vmem:[#allocation29_spill] sm:$0xff] }
 0x8ef   : > { %v8747_v7 = vmul.f32 %v17826_v16, %v16289_v18 }
 0x8f0   : > { %8910 = vrot.lane.b32.xlu0 %v10983_v30, %s17819_s20 }
 0x8f2   : > { %8860 = vrot.lane.b32.xlu1 %v10978_v49, %s11568_s27 }
 0x8f4   : > { %8862 = vrot.lane.b32.xlu0 %v10979_v58, %s11568_s27 }
 0x8f6   : > { %8812 = vrot.lane.b32.xlu1 %v10974_v19, %s17821_s19 }
 0x8f8   : > { %8814 = vrot.lane.b32.xlu0 %v10975_v20, %s17821_s19 }
 0x941   : > { %v8715_v13 = vpop.permute.xlu0 %8714 }
 0x946   : > { %v8717_v25 = vpop.permute.xlu1 %8716  ;;  %v8719_v33 = vpop.permute.xlu0 %8718 }
 0x947   : > { %v8720_v9 = vsel %vm8489_vm0, %v8715_v13, %v8717_v25  ;;  %v8721_v35 = vsel %vm8489_vm0, %v8717_v25, %v8719_v33  ;;  %v8882_v13 = vmul.f32 %v17816_v46, %v16334_v22 }
 0x948   : > { %8724 = vst [vmem:[#allocation6] sm:$0xf] %v8720_v9  ;;  %8725 = vst [vmem:[#allocation6 + $0x18] sm:$0xf] %v8721_v35 }
 0x94a   : > { %v16318_v37 = vpop.permute.xlu0 %9062 }
 0x94e   : > { %v9067_v38 = vpop.permute.xlu0 %9066 }
 0x94f   : > { %v16320_v10 = vld [vmem:[#allocation6] sm:$0xff]  ;;  %v16322_v57 = vld [vmem:[#allocation6 + $0x18] sm:$0xff]  ;;  %v9071_v61 = vrot.slane %v9067_v38, 4 }
 0x950   : > { %v10994_v41 = vpack.c.bf16 %v16322_v57, %v16320_v10  ;;  %v10973_v4 = vpack.c.bf16 %v16322_v57, %v16322_v57  ;;  %v10972_v5 = vpack.c.bf16 %v16320_v10, %v16334_v22  ;;  %v8996_v60 = vmul.f32 %v17809_v27, %v16320_v10 }
 0x951   : > { %v8997_v63 = vmul.f32 %v16322_v57, %v17810_v45  ;;  %v8884_v6 = vmul.f32 %v17815_v50, %v16322_v57  ;;  %v8948_v28 = vmul.f32 %v17812_v26, %v16320_v10  ;;  %v8949_v27 = vmul.f32 %v16322_v57, %v17813_v47  ;;  %v17824_v47 = vld [vmem:[#allocation26_spill] sm:$0xff] }
 0x952   : > { %v16330_v54 = vpop.permute.xlu0 %9020  ;;  %9060 = vrot.lane.b32.xlu1 %v10994_v41, %s11575_s9  ;;  %8810 = vrot.lane.b32.xlu0 %v10973_v4, %s17821_s19  ;;  %s17823_s9 = smov 17   ;;  %v8836_v53 = vmul.f32 %v17818_v12, %v16322_v57  ;;  %v9088_v1 = vmul.f32 %v17824_v47, %v16249_v48  ;;  %v8748_v50 = vmul.f32 %v16265_v24, %v17825_v21 }
 0x953   : > { %v10990_v44 = vpack.c.bf16 %v8997_v63, %v8996_v60  ;;  %v10981_v45 = vpack.c.bf16 %v8884_v6, %v8884_v6  ;;  %v10986_v8 = vpack.c.bf16 %v8949_v27, %v8948_v28  ;;  %v8883_v32 = vmul.f32 %v16320_v10, %v17814_v42  ;;  %v17827_v27 = vld [vmem:[#allocation31_spill] sm:$0xff] }
 0x954   : > { %v9065_v31 = vpop.permute.xlu1 %9064  ;;  %v10977_v14 = vpack.c.bf16 %v8836_v53, %v8836_v53  ;;  %v10970_v48 = vpack.c.bf16 %v8748_v50, %v8747_v7  ;;  %v10999_v11 = vpack.c.bf16 %v9088_v1, %v9088_v1  ;;  %v8746_v49 = vmul.f32 %v17822_v59, %v16322_v57  ;;  %v8736_v1 = vld [vmem:[%s11911_s6] sm:$0xff] }
 0x955   : > { %v9070_v39 = vrot.slane %v9065_v31, 4  ;;  %v10980_v42 = vpack.c.bf16 %v8883_v32, %v8882_v13  ;;  %v8835_v35 = vmul.f32 %v16320_v10, %v17817_v56  ;;  %v9091_v38 = vmul.f32 %v17824_v47, %v16255_v62 }
 0x956   : > { %v9025_v17 = vpop.permute.xlu0 %9024  ;;  %8808 = vrot.lane.b32.xlu1 %v10972_v5, %s17821_s19  ;;  %8772 = vrot.lane.b32.xlu0 %v10971_v29, %s17823_s9  ;;  %v10969_v9 = vpack.c.bf16 %v8746_v49, %v8746_v49  ;;  %v8834_v4 = vmul.f32 %v17820_v40, %v16334_v22  ;;  %v8745_v62 = vmul.f32 %v16320_v10, %v17825_v21  ;;  %v9027_v13 = vrot.slane %v16330_v54, 4 }
 0x957   : > { %v9074_v52 = vsel %vm1602_vm4, %v9070_v39, %v9071_v61  ;;  %v9029_v2 = vrot.slane %v9025_v17, 4  ;;  %v11001_v5 = vpack.c.bf16 %v9091_v38, %v9091_v38  ;;  %v8744_v40 = vmul.f32 %v17826_v16, %v16334_v22  ;;  %v8737_v17 = vld [vmem:[%s11911_s6 + $0x8] sm:$0xff] }
 0x958   : > { %v16352_v36 = vsel %vm1942_vm5, %v9065_v31, %v9074_v52  ;;  %v9023_v34 = vpop.permute.xlu1 %9022  ;;  %v10976_v29 = vpack.c.bf16 %v8835_v35, %v8834_v4 }
 0x959   : > { %v9028_v0 = vrot.slane %v9023_v34, 4  ;;  %v10968_v28 = vpack.c.bf16 %v8745_v62, %v8744_v40 }
 0x95a   : > { %v16356_v23 = vpop.permute.xlu0 %8972  ;;  %9018 = vrot.lane.b32.xlu1 %v10990_v44, %s11572_s22  ;;  %8906 = vrot.lane.b32.xlu0 %v10981_v45, %s17819_s20  ;;  %v9086_v44 = vmul.f32 %v17827_v27, %v16320_v10  ;;  %v17828_v45 = vld [vmem:[#allocation32_spill] sm:$0xff]  ;;  %s11708_s22 = smov (!%p10763_p8), 113  }
 0x95b   : > { %v9032_v26 = vsel %vm1602_vm4, %v9028_v0, %v9029_v2  ;;  %v9087_v53 = vmul.f32 %v16322_v57, %v17828_v45  ;;  %v9089_v0 = vmul.f32 %v17827_v27, %v16265_v24  ;;  %v8979_v35 = vrot.slane %v16356_v23, 4 }
 0x95c   : > { %v16364_v51 = vsel %vm1667_vm8, %v9023_v34, %v9032_v26  ;;  %v8975_v3 = vpop.permute.xlu1 %8974  ;;  %v9090_v26 = vmul.f32 %v16267_v15, %v17828_v45 }
 0x95d   : > { %v8980_v12 = vrot.slane %v8975_v3, 4  ;;  %v10998_v2 = vpack.c.bf16 %v9087_v53, %v9086_v44 }
 0x95e   : > { %v8977_v55 = vpop.permute.xlu0 %8976  ;;  %8970 = vrot.lane.b32.xlu1 %v10986_v8, %s11569_s0  ;;  %8858 = vrot.lane.b32.xlu0 %v10977_v14, %s11568_s27  ;;  %v11000_v47 = vpack.c.bf16 %v9090_v26, %v9089_v0  ;;  %v11435_v8 = vld [vmem:[%s11904_s5 + $0x4] ss:$8 sps:$4 sm:$0xff]  }
 0x95f   : > { %v8981_v30 = vrot.slane %v8977_v55, 4  ;;  %v9337_v14 = vld [vmem:[%s11922_s1] sm:$0xff]  ;;  %10756 = vmatprep.mubr.msk.bf16.mxu0 %vm1647_vm11, %v11435_v8 }
 0x960   : > { %v8909_v58 = vpop.permute.xlu1 %8908 }
 0x961   : > { %v8984_v19 = vsel %vm1602_vm4, %v8980_v12, %v8981_v30  ;;  %v8914_v33 = vrot.slane %v8909_v58, 4 }
 0x962   : > { %v8911_v20 = vpop.permute.xlu0 %8910  ;;  %8770 = vrot.lane.b32.xlu1 %v10970_v48, %s17823_s9  ;;  %9110 = vrot.lane.b32.xlu0 %v10999_v11, %s11573_s3  ;;  %v16380_v18 = vsel %vm1725_vm7, %v8975_v3, %v8984_v19  ;;  %v9069_v3 = vrot.slane %v16318_v37, 4 }
 0x963   : > { %v8915_v25 = vrot.slane %v8911_v20, 4 }
 0x964   : > { %v8861_v59 = vpop.permute.xlu1 %8860 }
 0x965   : > { %v8918_v43 = vsel %vm1602_vm4, %v8914_v33, %v8915_v25  ;;  %v8866_v56 = vrot.slane %v8861_v59, 4 }
 0x966   : > { %v8863_v41 = vpop.permute.xlu0 %8862  ;;  %8904 = vrot.lane.b32.xlu1 %v10980_v42, %s17819_s20  ;;  %8768 = vrot.lane.b32.xlu0 %v10969_v9, %s17823_s9  ;;  %v16392_v46 = vsel %vm1765_vm6, %v8909_v58, %v8918_v43  ;;  %s17848_s20 = smov (!%p10763_p8), %s17847_s28 }
 0x967   : > { %v8867_v61 = vrot.slane %v8863_v41, 4 }
 0x968   : > { %v8813_v60 = vpop.permute.xlu1 %8812 }
 0x969   : > { %v8870_v63 = vsel %vm1602_vm4, %v8866_v56, %v8867_v61  ;;  %v8818_v52 = vrot.slane %v8813_v60, 4 }
 0x96a   : > { %v8815_v6 = vpop.permute.xlu0 %8814  ;;  %8856 = vrot.lane.b32.xlu1 %v10976_v29, %s11568_s27  ;;  %9114 = vrot.lane.b32.xlu0 %v11001_v5, %s11573_s3  ;;  %v16402_v31 = vsel %vm1707_vm3, %v8861_v59, %v8870_v63 }
 0x96b   : > { %v8819_v39 = vrot.slane %v8815_v6, 4 }
 0x96d   : > { %v8822_v34 = vsel %vm1602_vm4, %v8818_v52, %v8819_v39  ;;  %v11514_v39 = vpack.c.bf16 %v16265_v24, %v16320_v10 }
 0x96e   : > { %8766 = vrot.lane.b32.xlu1 %v10968_v28, %s17823_s9  ;;  %9153 = vperm.xlu0 %11414, %v8737_v17   ;;  %v16414_v22 = vsel %vm1647_vm11, %v8813_v60, %v8822_v34 }
 0x972   : > { %9108 = vrot.lane.b32.xlu1 %v10998_v2, %s11573_s3 }
 0x976   : > { %9112 = vrot.lane.b32.xlu1 %v11000_v47, %s11573_s3  ;;  %s11709_s3 = smov (!%p10763_p8), 127  }
 0x97a   : > { %9148 = vperm.xlu1 %11419, %v8736_v1  }
 0x97e   : > { %9341 = vperm.xlu1 %11419, %v9337_v14  }
 0x9c4   : > { %v9061_v21 = vpop.permute.xlu1 %9060  ;;  %v8811_v50 = vpop.permute.xlu0 %8810 }
 0x9c5   : > { %v9068_v55 = vrot.slane %v9061_v21, 4  ;;  %v8817_v48 = vrot.slane %v8811_v50, 4 }
 0x9c7   : > { %v9072_v16 = vsel %vm1602_vm4, %v9068_v55, %v9069_v3 }
 0x9c8   : > { %v9073_v7 = vsel %vm1942_vm5, %v9061_v21, %v9072_v16  ;;  %v8809_v30 = vpop.permute.xlu1 %8808  ;;  %v8773_v12 = vpop.permute.xlu0 %8772 }
 0x9c9   : > { %v8816_v11 = vrot.slane %v8809_v30, 4  ;;  %v10752_v32 = vcombine.low %v9073_v7, %v16352_v36  ;;  %v10753_v49 = vcombine.high %v9073_v7, %v16352_v36  ;;  %v8777_v61 = vrot.slane %v8773_v12, 4 }
 0x9cb   : > { %v8820_v58 = vsel %vm1602_vm4, %v8816_v11, %v8817_v48  ;;  %9258 = vmatprep.subr.bf16.mxu0 %v10753_v49 }
 0x9cc   : > { %v16433_v19 = vsel %vm1647_vm11, %v8809_v30, %v8820_v58  ;;  %v9019_v37 = vpop.permute.xlu1 %9018  ;;  %v8907_v20 = vpop.permute.xlu0 %8906  ;;  %9259 = vmatpush1.bf16.msra.mxu0 %v10752_v32 }
 0x9cd   : > { %v9026_v25 = vrot.slane %v9019_v37, 4  ;;  %v8913_v6 = vrot.slane %v8907_v20, 4  ;;  %v10740_v7 = vcombine.low %v16433_v19, %v16414_v22  ;;  %v11433_v20 = vld [vmem:[%s11904_s5] ss:$8 sps:$4 sm:$0xff]  }
 0x9cf   : > { %v9030_v33 = vsel %vm1602_vm4, %v9026_v25, %v9027_v13 }
 0x9d0   : > { %v9031_v42 = vsel %vm1667_vm8, %v9019_v37, %v9030_v33  ;;  %v8971_v9 = vpop.permute.xlu1 %8970  ;;  %v8859_v43 = vpop.permute.xlu0 %8858 }
 0x9d1   : > { %v8978_v36 = vrot.slane %v8971_v9, 4  ;;  %v10750_v38 = vcombine.low %v9031_v42, %v16364_v51  ;;  %v10751_v59 = vcombine.high %v9031_v42, %v16364_v51  ;;  %v11513_v51 = vpack.c.bf16 %v16267_v15, %v16322_v57 }
 0x9d2   : > { %v8865_v28 = vrot.slane %v8859_v43, 4 }
 0x9d3   : > { %v8982_v41 = vsel %vm1602_vm4, %v8978_v36, %v8979_v35  ;;  %9260 = vmatprep.subr.bf16.mxu0 %v10751_v59 }
 0x9d4   : > { %v8983_v4 = vsel %vm1725_vm7, %v8971_v9, %v8982_v41  ;;  %v8771_v54 = vpop.permute.xlu1 %8770  ;;  %9261 = vmatpush1.bf16.msra.mxu0 %v10750_v38  ;;  %v9111_v60 = vpop.permute.xlu0 %9110 }
 0x9d5   : > { %v8776_v56 = vrot.slane %v8771_v54, 4  ;;  %v10748_v29 = vcombine.low %v8983_v4, %v16380_v18  ;;  %v10749_v5 = vcombine.high %v8983_v4, %v16380_v18  ;;  %v9117_v3 = vrot.slane %v9111_v60, 4 }
 0x9d7   : > { %v8780_v23 = vsel %vm1602_vm4, %v8776_v56, %v8777_v61  ;;  %9262 = vmatprep.subr.bf16.mxu0 %v10749_v5 }
 0x9d8   : > { %v8781_v62 = vsel %vm1604_vm10, %v8771_v54, %v8780_v23  ;;  %v8905_v63 = vpop.permute.xlu1 %8904  ;;  %9263 = vmatpush1.bf16.msra.mxu0 %v10748_v29  ;;  %v8769_v53 = vpop.permute.xlu0 %8768 }
 0x9d9   : > { %v8912_v40 = vrot.slane %v8905_v63, 4  ;;  %9264 = vmatprep.subr.bf16.mxu0 %v11513_v51  ;;  %v8775_v26 = vrot.slane %v8769_v53, 4 }
 0x9db   : > { %v8916_v17 = vsel %vm1602_vm4, %v8912_v40, %v8913_v6 }
 0x9dc   : > { %v8917_v18 = vsel %vm1765_vm6, %v8905_v63, %v8916_v17  ;;  %v8857_v52 = vpop.permute.xlu1 %8856  ;;  %9265 = vmatpush1.bf16.msra.mxu0 %v11514_v39  ;;  %v9115_v16 = vpop.permute.xlu0 %9114 }
 0x9dd   : > { %v8864_v27 = vrot.slane %v8857_v52, 4  ;;  %v10744_v44 = vcombine.low %v8917_v18, %v16392_v46  ;;  %v10745_v45 = vcombine.high %v8917_v18, %v16392_v46  ;;  %v10741_v46 = vcombine.high %v16433_v19, %v16414_v22 }
 0x9de   : > { %v9119_v11 = vrot.slane %v9115_v16, 4 }
 0x9df   : > { %v8868_v34 = vsel %vm1602_vm4, %v8864_v27, %v8865_v28  ;;  %9266 = vmatprep.subr.bf16.mxu0 %v10745_v45 }
 0x9e0   : > { %v8869_v2 = vsel %vm1707_vm3, %v8857_v52, %v8868_v34  ;;  %v8767_v0 = vpop.permute.xlu1 %8766  ;;  %9267 = vmatpush1.bf16.msra.mxu0 %v10744_v44 }
 0x9e1   : > { %v8774_v47 = vrot.slane %v8767_v0, 4  ;;  %v10742_v1 = vcombine.low %v8869_v2, %v16402_v31  ;;  %v10743_v8 = vcombine.high %v8869_v2, %v16402_v31 }
 0x9e3   : > { %v8778_v14 = vsel %vm1602_vm4, %v8774_v47, %v8775_v26  ;;  %9268 = vmatprep.subr.bf16.mxu0 %v10743_v8 }
 0x9e4   : > { %v8779_v21 = vsel %vm1604_vm10, %v8767_v0, %v8778_v14  ;;  %v9109_v50 = vpop.permute.xlu1 %9108  ;;  %9269 = vmatpush1.bf16.msra.mxu0 %v10742_v1  ;;  %v11436_v14 = vld [vmem:[%s11917_s29] sm:$0xff]  }
 0x9e5   : > { %v9116_v55 = vrot.slane %v9109_v50, 4  ;;  %9270 = vmatprep.subr.bf16.mxu0 %v10741_v46  ;;  %v10739_v31 = vcombine.high %v8779_v21, %v8781_v62  ;;  %v10738_v49 = vcombine.low %v8779_v21, %v8781_v62 }
 0x9e7   : > { %v9120_v30 = vsel %vm1602_vm4, %v9116_v55, %v9117_v3 }
 0x9e8   : > { %v9121_v12 = vsel %vm1563_vm9, %v9109_v50, %v9120_v30  ;;  %v9113_v48 = vpop.permute.xlu1 %9112  ;;  %9271 = vmatpush1.bf16.msra.mxu0 %v10740_v7 }
 0x9e9   : > { %9126 = vst [vmem:[#allocation7 + $0x88] sm:$0xff] %v9121_v12  ;;  %v9118_v32 = vrot.slane %v9113_v48, 4  ;;  %9272 = vmatprep.subr.bf16.mxu0 %v10739_v31  ;;  %v9154_v36 = vpop.permute.xlu0 %9153 }
 0x9eb   : > { %v9122_v58 = vsel %vm1602_vm4, %v9118_v32, %v9119_v11  ;;  %v9402_v11 = vld [vmem:[%s11932_s18] sm:$0xff]  ;;  %v9403_v32 = vld [vmem:[%s11932_s18 + $0x8] sm:$0xff] }
 0x9ec   : > { %v9123_v37 = vsel %vm1563_vm9, %v9113_v48, %v9122_v58  ;;  %9273 = vmatpush1.bf16.msra.mxu0 %v10738_v49  ;;  %v9401_v48 = vld [vmem:[%s11927_s8 + $0x8] sm:$0xff] }
 0x9ed   : > { %9127 = vst [vmem:[#allocation7 + $0x70] sm:$0xff] %v9123_v37  ;;  %v10754_v22 = vcombine.low %v9121_v12, %v9123_v37  ;;  %v10755_v19 = vcombine.high %v9121_v12, %v9123_v37  ;;  %v9338_v12 = vld [vmem:[%s11922_s1 + $0x8] sm:$0xff] }
 0x9ef   : > { %9288 = vmatprep.subr.bf16.mxu0 %v10755_v19 }
 0x9f0   : > { %9289 = vmatpush2.bf16.msra.mxu0 %v10754_v22 }
 0x9f3   : > { %9291 = vmatmul.mubr.bf16.vlgmr.msra.gmra.mxu0 %v11433_v20 }
 0x9f5   : > { %v9149_v13 = vpop.permute.xlu1 %9148 }
 0x9f9   : > { %v9342_v46 = vpop.permute.xlu1 %9341 }
 0xab3   : > { %v9292_v25 = vpop.f32.mrf.mxu0 }
 0xab4   : > { %v9293_v33 = vadd.f32 %v9292_v25, %v9149_v13 }
 0xab5   : > { %v9294_v42 = vpop.f32.mrf.mxu0 }
 0xab6   : > { %v10757_v9 = vclamps-f32 %v9293_v33, 30.0  ;;  %v9295_v35 = vadd.f32 %v9294_v42, %v9149_v13 }
 0xab7   : > { %v9296_v38 = vpop.f32.mrf.mxu0 }
 0xab8   : > { %v9309_v59 = vsub.f32 0.0, %v10757_v9  ;;  %v10758_v43 = vclamps-f32 %v9295_v35, 30.0  ;;  %v9297_v41 = vadd.f32 %v9296_v38, %v9154_v36 }
 0xab9   : > { %v9298_v4 = vpop.f32.mrf.mxu0 }
 0xaba   : > { %v9313_v54 = vmul.f32 1.442695, %v9309_v59  ;;  %v9310_v61 = vsub.f32 0.0, %v10758_v43  ;;  %v10759_v56 = vclamps-f32 %v9297_v41, 30.0  ;;  %v9299_v29 = vadd.f32 %v9298_v4, %v9154_v36 }
 0xabc   : > { %v9315_v5 = vmul.f32 1.442695, %v9310_v61  ;;  %v9311_v23 = vsub.f32 0.0, %v10759_v56  ;;  %v10760_v51 = vclamps-f32 %v9299_v29, 30.0  ;;  %11469 = vpow2.f32 %v9313_v54 }
 0xabe   : > { %11471 = vpow2.f32 %v9315_v5  ;;  %v9317_v62 = vmul.f32 1.442695, %v9311_v23  ;;  %v9312_v60 = vsub.f32 0.0, %v10760_v51 }
 0xac0   : > { %11473 = vpow2.f32 %v9317_v62  ;;  %v9319_v63 = vmul.f32 1.442695, %v9312_v60 }
 0xac2   : > { %11475 = vpow2.f32 %v9319_v63 }
 0xac9   : > { %v11470_v6 = vpop.eup %11469 }
 0xaca   : > { %v9321_v18 = vadd.f32 1.0, %v11470_v6 }
 0xacb   : > { %v11472_v40 = vpop.eup %11471 }
 0xacc   : > { %v9322_v39 = vadd.f32 1.0, %v11472_v40 }
 0xacd   : > { %v11474_v17 = vpop.eup %11473 }
 0xace   : > { %v9323_v52 = vadd.f32 1.0, %v11474_v17  ;;  %11477 = vrcp.f32 %v9322_v39 }
 0xacf   : > { %v11476_v28 = vpop.eup %11475 }
 0xad0   : > { %11479 = vrcp.f32 %v9323_v52  ;;  %v9324_v27 = vadd.f32 1.0, %v11476_v28 }
 0xad1   : > { %11481 = vrcp.f32 %v9321_v18 }
 0xad2   : > { %11483 = vrcp.f32 %v9324_v27 }
 0xadb   : > { %v11478_v44 = vpop.eup %11477 }
 0xadc   : > { %v9330_v0 = vmul.f32 %v11478_v44, %v16322_v57 }
 0xadd   : > { %v11480_v45 = vpop.eup %11479 }
 0xade   : > { %v11482_v53 = vpop.eup %11481  ;;  %v9331_v2 = vmul.f32 %v11480_v45, %v16265_v24 }
 0xadf   : > { %v11484_v34 = vpop.eup %11483  ;;  %v9329_v47 = vmul.f32 %v11482_v53, %v16320_v10 }
 0xae0   : > { %v9332_v26 = vmul.f32 %v11484_v34, %v16267_v15 }
 0xae1   : > { %v9335_v8 = vpack.c.bf16 %v9331_v2, %v9329_v47 }
 0xae2   : > { %v9336_v1 = vpack.c.bf16 %v9332_v26, %v9330_v0 }
 0xae4   : > { %9371 = vmatprep.subr.bf16.mxu1 %v9336_v1 }
 0xae5   : > { %9372 = vmatpush1.bf16.msra.mxu1 %v9335_v8 }
 0xae8   : > { %10762 = vmatmul.mubr.msk.bf16.vlgmr.msra.gmra.mxu1 %vm1647_vm11, %v11436_v14 }
 0xba8   : > { %v9391_v21 = vpop.f32.mrf.mxu1 }
 0xba9   : > { %v9392_v50 = vadd.f32 %v9391_v21, %v9342_v46 }
 0xbaa   : > { %v9393_v3 = vpop.f32.mrf.mxu1 }
 0xbab   : > { %v9394_v24 = vadd.f32 %v9393_v3, %v9342_v46  ;;  %v9405_v57 = vsel %vm1602_vm4, %v9392_v50, 0.0  ;;  %v9461_v10 = vrot.slane %v9392_v50, 4 }
 0xbac   : > { %v9395_v18 = vpop.f32.mrf.mxu1 }
 0xbad   : > { %v9406_v15 = vsel %vm1602_vm4, %v9394_v24, 0.0  ;;  %v9462_v55 = vrot.slane %v9394_v24, 4  ;;  %v9465_v30 = vsel %vm1602_vm4, %v9461_v10, 0.0 }
 0xbae   : > { %v9407_v16 = vadd.f32 %v9406_v15, %v9405_v57  ;;  %v9397_v53 = vpop.f32.mrf.mxu1 }
 0xbaf   : > { %v9466_v7 = vsel %vm1602_vm4, %v9462_v55, 0.0 }
 0xbb0   : > { %9408 = vadd.xlane.f32.xlu0 %v9407_v16  ;;  %v9467_v31 = vadd.f32 %v9466_v7, %v9465_v30 }
 0xbb4   : > { %9468 = vadd.xlane.f32.xlu0 %v9467_v31 }
 0xbca   : > { %9346 = vperm.xlu0 %11414, %v9338_v12  }
 0xbce   : > { %9553 = vperm.xlu0 %11414, %v9401_v48  }
 0xbd2   : > { %9450 = vperm.xlu0 %11414, %v9402_v11  }
 0xbd6   : > { %9560 = vperm.xlu0 %11414, %v9403_v32  }
 0xc39   : > { %v9409_v49 = vpop.xlane.xlu0 %9408 }
 0xc3a   : > { %v9410_v58 = vrot.slane %v9409_v49, 4 }
 0xc3c   : > { %v9411_v37 = vadd.f32 %v9410_v58, %v9409_v49 }
 0xc3d   : > { %v9469_v41 = vpop.xlane.xlu0 %9468 }
 0xc3e   : > { %v9412_v22 = vrot.slane %v9411_v37, 2  ;;  %v9470_v4 = vrot.slane %v9469_v41, 4 }
 0xc40   : > { %v9413_v19 = vadd.f32 %v9412_v22, %v9411_v37  ;;  %v9471_v54 = vadd.f32 %v9470_v4, %v9469_v41 }
 0xc42   : > { %v9414_v20 = vrot.slane %v9413_v19, 1  ;;  %v9472_v61 = vrot.slane %v9471_v54, 2 }
 0xc44   : > { %v9415_v13 = vadd.f32 %v9414_v20, %v9413_v19  ;;  %v9473_v23 = vadd.f32 %v9472_v61, %v9471_v54 }
 0xc45   : > { %v9347_v27 = vpop.permute.xlu0 %9346 }
 0xc46   : > { %11037 = vpush %v9415_v13  ;;  %v9474_v60 = vrot.slane %v9473_v23, 1  ;;  %v16504_v34 = vadd.f32 %v9395_v18, %v9347_v27  ;;  %v16506_v2 = vadd.f32 %v9397_v53, %v9347_v27 }
 0xc48   : > { %v9475_v40 = vadd.f32 %v9474_v60, %v9473_v23  ;;  %v9515_v14 = vsel %vm1602_vm4, %v16504_v34, 0.0  ;;  %v9516_v46 = vsel %vm1602_vm4, %v16506_v2, 0.0  ;;  %v9571_v20 = vrot.slane %v16504_v34, 4 }
 0xc49   : > { %v9517_v21 = vadd.f32 %v9516_v46, %v9515_v14  ;;  %v9572_v13 = vrot.slane %v16506_v2, 4 }
 0xc77   : > { %s11038_s5 = spop %11037 }
 0xc78   : > { %v9417_v25 = vstv %s11038_s5  ;;  %s17849_s5 = sld [smem:[#allocation206_spill]] (!%p10763_p8) }
 0xc79   : > { %v9418_v33 = vmul.f32 0.0009765625, %v9417_v25 }
 0xc7b   : > { %v16484_v42 = vsub.f32 %v9392_v50, %v9418_v33  ;;  %v16486_v9 = vsub.f32 %v9394_v24, %v9418_v33 }
 0xc7d   : > { %v9421_v35 = vmul.f32 %v16484_v42, %v16484_v42  ;;  %v9422_v36 = vmul.f32 %v16486_v9, %v16486_v9 }
 0xc7f   : > { %v9423_v38 = vsel %vm1602_vm4, %v9421_v35, 0.0  ;;  %v9424_v59 = vsel %vm1602_vm4, %v9422_v36, 0.0  ;;  %v9575_v36 = vsel %vm1602_vm4, %v9571_v20, 0.0 }
 0xc80   : > { %v9425_v43 = vadd.f32 %v9424_v59, %v9423_v38  ;;  %v9576_v38 = vsel %vm1602_vm4, %v9572_v13, 0.0 }
 0xc81   : > { %v9577_v59 = vadd.f32 %v9576_v38, %v9575_v36 }
 0xc82   : > { %9426 = vadd.xlane.f32.xlu1 %v9425_v43 }
 0xd0b   : > { %v9427_v56 = vpop.xlane.xlu1 %9426 }
 0xd0c   : > { %v9428_v29 = vrot.slane %v9427_v56, 4 }
 0xd0e   : > { %v9429_v5 = vadd.f32 %v9428_v29, %v9427_v56 }
 0xd10   : > { %v9430_v51 = vrot.slane %v9429_v5, 2 }
 0xd12   : > { %v9431_v62 = vadd.f32 %v9430_v51, %v9429_v5 }
 0xd14   : > { %v9432_v63 = vrot.slane %v9431_v62, 1 }
 0xd16   : > { %v9433_v6 = vadd.f32 %v9432_v63, %v9431_v62 }
 0xd18   : > { %11039 = vpush %v9433_v6 }
 0xd19   : > { %11041 = vpush %v9475_v40 }
 0xd49   : > { %s16494_s6 = spop %11039 }
 0xd4a   : > { %s11042_s29 = spop %11041 }
 0xd4b   : > { %v9477_v39 = vstv %s11042_s29 }
 0xd4c   : > { %v9478_v17 = vmul.f32 0.0009765625, %v9477_v39 }
 0xd4e   : > { %v16496_v52 = vsub.f32 %v9392_v50, %v9478_v17  ;;  %v16498_v28 = vsub.f32 %v9394_v24, %v9478_v17 }
 0xd50   : > { %v9481_v44 = vmul.f32 %v16496_v52, %v16496_v52  ;;  %v9482_v45 = vmul.f32 %v16498_v28, %v16498_v28 }
 0xd52   : > { %v9485_v0 = vrot.slane %v9481_v44, 4  ;;  %v9486_v26 = vrot.slane %v9482_v45, 4 }
 0xd54   : > { %v9489_v47 = vsel %vm1602_vm4, %v9485_v0, 0.0  ;;  %v9490_v1 = vsel %vm1602_vm4, %v9486_v26, 0.0  ;;  %v16534_v26 = vpop.permute.xlu0 %9553 }
 0xd55   : > { %v9491_v8 = vadd.f32 %v9490_v1, %v9489_v47 }
 0xd57   : > { %9492 = vadd.xlane.f32.xlu1 %v9491_v8 }
 0xd5b   : > { %9518 = vadd.xlane.f32.xlu1 %v9517_v21 }
 0xde0   : > { %v9493_v50 = vpop.xlane.xlu1 %9492 }
 0xde1   : > { %v9494_v3 = vrot.slane %v9493_v50, 4 }
 0xde3   : > { %v9495_v24 = vadd.f32 %v9494_v3, %v9493_v50 }
 0xde4   : > { %v9519_v57 = vpop.xlane.xlu1 %9518 }
 0xde5   : > { %v9496_v15 = vrot.slane %v9495_v24, 2  ;;  %v9520_v10 = vrot.slane %v9519_v57, 4 }
 0xde7   : > { %v9521_v55 = vadd.f32 %v9520_v10, %v9519_v57  ;;  %v9497_v16 = vadd.f32 %v9496_v15, %v9495_v24 }
 0xde9   : > { %v9522_v7 = vrot.slane %v9521_v55, 2  ;;  %v9498_v30 = vrot.slane %v9497_v16, 1 }
 0xdeb   : > { %v9499_v31 = vadd.f32 %v9498_v30, %v9497_v16  ;;  %v9523_v12 = vadd.f32 %v9522_v7, %v9521_v55  ;;  %v11500_v55 = vld [vmem:[#allocation2 + $0x18] sm:$0xff]  ;;  %v11501_v7 = vld [vmem:[#allocation2 + $0x8] sm:$0xff] }
 0xded   : > { %11043 = vpush %v9499_v31  ;;  %v9524_v48 = vrot.slane %v9523_v12, 1  ;;  %v9400_v31 = vld [vmem:[%s11927_s8] sm:$0xff] }
 0xdef   : > { %v9525_v11 = vadd.f32 %v9524_v48, %v9523_v12  ;;  %v9435_v12 = vstv %s16494_s6 }
 0xdf1   : > { %11045 = vpush %v9525_v11  ;;  %v9436_v11 = vmul.f32 0.0009765625, %v9435_v12 }
 0xe1e   : > { %s16514_s1 = spop %11043 }
 0xe1f   : > { %v9501_v48 = vstv %s16514_s1 }
 0xe22   : > { %s11046_s18 = spop %11045 }
 0xe23   : > { %v9527_v32 = vstv %s11046_s18 }
 0xe24   : > { %v9528_v49 = vmul.f32 0.0009765625, %v9527_v32  ;;  %v9502_v32 = vmul.f32 0.0009765625, %v9501_v48 }
 0xe26   : > { %v9529_v58 = vsub.f32 %v16504_v34, %v9528_v49  ;;  %v9530_v37 = vsub.f32 %v16506_v2, %v9528_v49  ;;  %v9437_v49 = vadd.f32 1e-05, %v9436_v11 }
 0xe28   : > { %v9531_v22 = vmul.f32 %v9529_v58, %v9529_v58  ;;  %v9532_v19 = vmul.f32 %v9530_v37, %v9530_v37 }
 0xe2a   : > { %v9533_v25 = vsel %vm1602_vm4, %v9531_v22, 0.0  ;;  %v9534_v33 = vsel %vm1602_vm4, %v9532_v19, 0.0 }
 0xe2b   : > { %v9535_v35 = vadd.f32 %v9534_v33, %v9533_v25 }
 0xe2d   : > { %9536 = vadd.xlane.f32.xlu1 %v9535_v35 }
 0xe31   : > { %9578 = vadd.xlane.f32.xlu1 %v9577_v59 }
 0xeb6   : > { %v9537_v43 = vpop.xlane.xlu1 %9536 }
 0xeb7   : > { %v9538_v41 = vrot.slane %v9537_v43, 4 }
 0xeb9   : > { %v9539_v4 = vadd.f32 %v9538_v41, %v9537_v43 }
 0xeba   : > { %v9579_v54 = vpop.xlane.xlu1 %9578 }
 0xebb   : > { %v9540_v61 = vrot.slane %v9539_v4, 2  ;;  %v9580_v56 = vrot.slane %v9579_v54, 4 }
 0xebd   : > { %v9581_v29 = vadd.f32 %v9580_v56, %v9579_v54  ;;  %v9541_v5 = vadd.f32 %v9540_v61, %v9539_v4 }
 0xebf   : > { %v9582_v23 = vrot.slane %v9581_v29, 2  ;;  %v9542_v51 = vrot.slane %v9541_v5, 1 }
 0xec1   : > { %v9543_v62 = vadd.f32 %v9542_v51, %v9541_v5  ;;  %v9583_v60 = vadd.f32 %v9582_v23, %v9581_v29  ;;  %v11502_v51 = vld [vmem:[#allocation2 + $0x10] sm:$0xff] }
 0xec3   : > { %11047 = vpush %v9543_v62  ;;  %v9584_v63 = vrot.slane %v9583_v60, 1 }
 0xec5   : > { %v9585_v6 = vadd.f32 %v9584_v63, %v9583_v60 }
 0xec7   : > { %11049 = vpush %v9585_v6 }
 0xef4   : > { %s11048_s27 = spop %11047 }
 0xef5   : > { %v9545_v40 = vstv %s11048_s27 }
 0xef6   : > { %v9546_v39 = vmul.f32 0.0009765625, %v9545_v40 }
 0xef8   : > { %v9547_v17 = vadd.f32 1e-05, %v9546_v39  ;;  %s11050_s0 = spop %11049 }
 0xef9   : > { %v9587_v18 = vstv %s11050_s0 }
 0xefa   : > { %11485 = vrsqrt.f32 %v9547_v17  ;;  %v9588_v27 = vmul.f32 0.0009765625, %v9587_v18 }
 0xefb   : > { %11487 = vrsqrt.f32 %v9437_v49 }
 0xefc   : > { %v16525_v44 = vsub.f32 %v16504_v34, %v9588_v27  ;;  %v16528_v45 = vsub.f32 %v16506_v2, %v9588_v27  ;;  %v9451_v34 = vpop.permute.xlu0 %9450 }
 0xefe   : > { %v9591_v53 = vmul.f32 %v16525_v44, %v16525_v44  ;;  %v9592_v0 = vmul.f32 %v16528_v45, %v16528_v45 }
 0xf00   : > { %v9595_v47 = vrot.slane %v9591_v53, 4  ;;  %v9596_v1 = vrot.slane %v9592_v0, 4  ;;  %v16540_v57 = vpop.permute.xlu0 %9560 }
 0xf02   : > { %v9599_v8 = vsel %vm1602_vm4, %v9595_v47, 0.0  ;;  %v9600_v14 = vsel %vm1602_vm4, %v9596_v1, 0.0 }
 0xf03   : > { %v9601_v46 = vadd.f32 %v9600_v14, %v9599_v8 }
 0xf05   : > { %9602 = vadd.xlane.f32.xlu1 %v9601_v46 }
 0xf07   : > { %v11486_v2 = vpop.eup %11485 }
 0xf08   : > { %v9549_v21 = vmul.f32 %v11486_v2, %v9529_v58  ;;  %v9550_v50 = vmul.f32 %v11486_v2, %v9530_v37  ;;  %v9503_v58 = vadd.f32 1e-05, %v9502_v32  ;;  %v11488_v37 = vpop.eup %11487 }
 0xf09   : > { %v9439_v25 = vmul.f32 %v11488_v37, %v16484_v42  ;;  %v9440_v33 = vmul.f32 %v11488_v37, %v16486_v9  ;;  %v11503_v42 = vld [vmem:[#allocation2] sm:$0xff] }
 0xf0a   : > { %v9556_v3 = vmul.f32 %v16534_v26, %v9549_v21  ;;  %v9557_v24 = vmul.f32 %v16534_v26, %v9550_v50  ;;  %11489 = vrsqrt.f32 %v9503_v58 }
 0xf0c   : > { %v9563_v15 = vadd.f32 %v16540_v57, %v9556_v3  ;;  %v9564_v10 = vadd.f32 %v16540_v57, %v9557_v24 }
 0xf0e   : > { %v9565_v16 = vadd.f32 %v11500_v55, %v9563_v15  ;;  %v9566_v30 = vadd.f32 %v11501_v7, %v9564_v10 }
 0xf10   : > { %9567 = vst [vmem:[#allocation2 + $0x18] sm:$0xf] %v9565_v16  ;;  %9568 = vst [vmem:[#allocation2 + $0x8] sm:$0xf] %v9566_v30 }
 0xf16   : > { %9443 = vperm.xlu1 %11419, %v9400_v31  }
 0xf17   : > { %v11490_v22 = vpop.eup %11489 }
 0xf18   : > { %v9505_v35 = vmul.f32 %v11490_v22, %v16496_v52  ;;  %v9506_v36 = vmul.f32 %v11490_v22, %v16498_v28 }
 0xf8e   : > { %v9603_v19 = vpop.xlane.xlu1 %9602 }
 0xf8f   : > { %v9604_v20 = vrot.slane %v9603_v19, 4 }
 0xf91   : > { %v9605_v13 = vadd.f32 %v9604_v20, %v9603_v19 }
 0xf92   : > { %v9444_v38 = vpop.permute.xlu1 %9443 }
 0xf93   : > { %v9606_v59 = vrot.slane %v9605_v13, 2  ;;  %v9446_v43 = vmul.f32 %v9444_v38, %v9439_v25  ;;  %v9447_v41 = vmul.f32 %v9444_v38, %v9440_v33  ;;  %v9507_v4 = vmul.f32 %v9505_v35, %v9444_v38 }
 0xf94   : > { %v9508_v54 = vmul.f32 %v9506_v36, %v9444_v38 }
 0xf95   : > { %v9453_v61 = vadd.f32 %v9451_v34, %v9446_v43  ;;  %v9454_v56 = vadd.f32 %v9451_v34, %v9447_v41  ;;  %v9509_v29 = vadd.f32 %v9507_v4, %v9451_v34  ;;  %v9607_v5 = vadd.f32 %v9606_v59, %v9605_v13 }
 0xf96   : > { %v9510_v23 = vadd.f32 %v9508_v54, %v9451_v34 }
 0xf97   : > { %v9455_v62 = vadd.f32 %v11502_v51, %v9453_v61  ;;  %v9456_v60 = vadd.f32 %v11503_v42, %v9454_v56  ;;  %v9511_v9 = vadd.f32 %v11502_v51, %v9509_v29  ;;  %v9608_v63 = vrot.slane %v9607_v5, 1 }
 0xf98   : > { %v9512_v52 = vadd.f32 %v11503_v42, %v9510_v23 }
 0xf99   : > { %9457 = vst [vmem:[#allocation2 + $0x10] sm:$0xf] %v9455_v62  ;;  %9458 = vst [vmem:[#allocation2] sm:$0xf] %v9456_v60  ;;  %v9609_v28 = vadd.f32 %v9608_v63, %v9607_v5 }
 0xf9a   : > { %9513 = vst [vmem:[#allocation2 + $0x10] sm:$0xf0] %v9511_v9  ;;  %9514 = vst [vmem:[#allocation2] sm:$0xf0] %v9512_v52 }
 0xf9b   : > { %11051 = vpush %v9609_v28 }
 0xfcc   : > { %s11052_s8 = spop %11051 }
 0xfcd   : > { %v9611_v6 = vstv %s11052_s8 }
 0xfce   : > { %v9612_v40 = vmul.f32 0.0009765625, %v9611_v6 }
 0xfd0   : > { %v9613_v39 = vadd.f32 1e-05, %v9612_v40 }
 0xfd2   : > { %11491 = vrsqrt.f32 %v9613_v39 }
 0xfdf   : > { %v11492_v17 = vpop.eup %11491 }
 0xfe0   : > { %v9615_v18 = vmul.f32 %v11492_v17, %v16525_v44  ;;  %v9616_v27 = vmul.f32 %v11492_v17, %v16528_v45 }
 0xfe2   : > { %v9617_v53 = vmul.f32 %v9615_v18, %v16534_v26  ;;  %v9618_v0 = vmul.f32 %v9616_v27, %v16534_v26 }
 0xfe4   : > { %v9619_v47 = vadd.f32 %v9617_v53, %v16540_v57  ;;  %v9620_v1 = vadd.f32 %v9618_v0, %v16540_v57  ;;  %9628 = sbr.rel (%p10763_p8) target bundleno = 4466 (0x1172), region = 96 }
 0xfe6   : > { %v9621_v8 = vadd.f32 %v11500_v55, %v9619_v47  ;;  %v9622_v14 = vadd.f32 %v11501_v7, %v9620_v1 }
 0xfe8   : > { %9623 = vst [vmem:[#allocation2 + $0x18] sm:$0xf0] %v9621_v8  ;;  %9624 = vst [vmem:[#allocation2 + $0x8] sm:$0xf0] %v9622_v14 }
 0xfe9   : > { %v16558_v46 = vld [vmem:[#allocation3 + $0x38] sm:$0xff]  ;;  %v17829_v2 = vld [vmem:[#allocation15_spill] sm:$0xff]  ;;  %v16574_v24 = vld [vmem:[#allocation2] sm:$0xff] }
 0xfea   : > { %v16560_v44 = vld [vmem:[#allocation3 + $0x18] sm:$0xff]  ;;  %v11031_v26 = vpack.c.bf16 %v16558_v46, %v16558_v46  ;;  %v16572_v3 = vld [vmem:[#allocation2 + $0x10] sm:$0xff]  ;;  %v17830_v55 = vld [vmem:[#allocation18_spill] sm:$0xff]  ;;  %v9904_v31 = vmul.f32 %v17829_v2, %v16558_v46 }
 0xfeb   : > { %v11029_v34 = vpack.c.bf16 %v16560_v44, %v16560_v44  ;;  %v9901_v21 = vmul.f32 %v17829_v2, %v16560_v44  ;;  %v11028_v15 = vpack.c.bf16 %v16574_v24, %v16572_v3  ;;  %v9899_v16 = vmul.f32 %v17830_v55, %v16572_v3  ;;  %v17831_v7 = vld [vmem:[#allocation19_spill] sm:$0xff]  ;;  %v17832_v49 = vld [vmem:[#allocation16_spill] sm:$0xff]  ;;  %v17833_v22 = vld [vmem:[#allocation21_spill] sm:$0xff] }
 0xfec   : > { %9969 = vrot.lane.b32.xlu1 %v11031_v26, %s11707_s24  ;;  %v9900_v30 = vmul.f32 %v16574_v24, %v17831_v7  ;;  %v11027_v32 = vpack.c.bf16 %v9904_v31, %v9904_v31  ;;  %v9853_v58 = vmul.f32 %v17832_v49, %v16560_v44  ;;  %v9851_v19 = vmul.f32 %v17833_v22, %v16572_v3  ;;  %v17834_v20 = vld [vmem:[#allocation22_spill] sm:$0xff]  ;;  %v9779_v59 = vld [vmem:[#allocation3] sm:$0xff]  ;;  %v17836_v54 = vld [vmem:[#allocation24_spill] sm:$0xff] }
 0xfed   : > { %9965 = vrot.lane.b32.xlu0 %v11029_v34, %s11707_s24  ;;  %v11025_v10 = vpack.c.bf16 %v9901_v21, %v9901_v21  ;;  %v9852_v13 = vmul.f32 %v16574_v24, %v17834_v20  ;;  %v9856_v25 = vmul.f32 %v17832_v49, %v16558_v46  ;;  %v17835_v41 = vld [vmem:[#allocation17_spill] sm:$0xff]  ;;  %v9785_v61 = vmul.f32 %v17836_v54, %v9779_v59  ;;  %v17838_v28 = vld [vmem:[#allocation20_spill] sm:$0xff]  ;;  %v17839_v40 = vld [vmem:[#allocation27_spill] sm:$0xff] }
 0xfee   : > { %v11024_v12 = vpack.c.bf16 %v9900_v30, %v9899_v16  ;;  %v11021_v35 = vpack.c.bf16 %v9853_v58, %v9853_v58  ;;  %v9787_v4 = vmul.f32 %v17835_v41, %v16574_v24  ;;  %v17837_v5 = vld [vmem:[#allocation25_spill] sm:$0xff]  ;;  %v9739_v6 = vmul.f32 %v17838_v28, %v16574_v24  ;;  %v17840_v27 = vld [vmem:[#allocation28_spill] sm:$0xff]  ;;  %v17843_v30 = vld [vmem:[#allocation30_spill] sm:$0xff] }
 0xfef   : > { %v16562_v45 = vld [vmem:[#allocation2 + $0x18] sm:$0xff]  ;;  %v16570_v50 = vld [vmem:[#allocation2 + $0x8] sm:$0xff]  ;;  %v11020_v36 = vpack.c.bf16 %v9852_v13, %v9851_v19  ;;  %v11023_v43 = vpack.c.bf16 %v9856_v25, %v9856_v25  ;;  %v9786_v23 = vmul.f32 %v16572_v3, %v17837_v5  ;;  %v9782_v62 = vld [vmem:[#allocation3 + $0x20] sm:$0xff]  ;;  %v9737_v39 = vmul.f32 %v17839_v40, %v9779_v59 }
 0xff0   : > { %v11030_v57 = vpack.c.bf16 %v16570_v50, %v16562_v45  ;;  %9923 = vrot.lane.b32.xlu1 %v11025_v10, %s11708_s22  ;;  %v9902_v48 = vmul.f32 %v17830_v55, %v16562_v45  ;;  %v9903_v11 = vmul.f32 %v16570_v50, %v17831_v7  ;;  %v9854_v33 = vmul.f32 %v17833_v22, %v16562_v45  ;;  %v17841_v10 = vld [vmem:[#allocation23_spill] sm:$0xff]  ;;  %v17842_v16 = vld [vmem:[#allocation29_spill] sm:$0xff]  ;;  %v17846_v25 = vld [vmem:[#allocation32_spill] sm:$0xff] }
 0xff1   : > { %9963 = vrot.lane.b32.xlu0 %v11028_v15, %s11707_s24  ;;  %v9855_v38 = vmul.f32 %v16570_v50, %v17834_v20  ;;  %v11515_v56 = vpack.c.bf16 %v16570_v50, %v16574_v24  ;;  %v11516_v51 = vpack.c.bf16 %v16562_v45, %v16572_v3  ;;  %v11015_v42 = vpack.c.bf16 %v9787_v4, %v9787_v4  ;;  %v17845_v20 = vld [vmem:[#allocation31_spill] sm:$0xff] }
 0xff2   : > { %v11026_v37 = vpack.c.bf16 %v9903_v11, %v9902_v48  ;;  %v9790_v60 = vmul.f32 %v17835_v41, %v16570_v50  ;;  %v11014_v9 = vpack.c.bf16 %v9786_v23, %v9785_v61  ;;  %v9788_v63 = vmul.f32 %v17836_v54, %v9782_v62  ;;  %v9639_v54 = vld [vmem:[%s17849_s5] sm:$0xff]  ;;  %v9640_v61 = vld [vmem:[%s17849_s5 + $0x8] sm:$0xf] }
 0xff3   : > { %v11022_v29 = vpack.c.bf16 %v9855_v38, %v9854_v33  ;;  %v9789_v52 = vmul.f32 %v16562_v45, %v17837_v5  ;;  %v9738_v53 = vmul.f32 %v16572_v3, %v17840_v27  ;;  %v9742_v0 = vmul.f32 %v17838_v28, %v16570_v50 }
 0xff4   : > { %9967 = vrot.lane.b32.xlu1 %v11030_v57, %s11707_s24  ;;  %v11017_v17 = vpack.c.bf16 %v9790_v60, %v9790_v60  ;;  %v9740_v47 = vmul.f32 %v17839_v40, %v9782_v62  ;;  %v11011_v1 = vpack.c.bf16 %v9739_v6, %v9739_v6  ;;  %v9741_v14 = vmul.f32 %v16562_v45, %v17840_v27 }
 0xff5   : > { %9921 = vrot.lane.b32.xlu0 %v11024_v12, %s11708_s22  ;;  %v11016_v18 = vpack.c.bf16 %v9789_v52, %v9788_v63  ;;  %v11010_v8 = vpack.c.bf16 %v9738_v53, %v9737_v39  ;;  %v11013_v26 = vpack.c.bf16 %v9742_v0, %v9742_v0  ;;  %v11007_v2 = vpack.c.bf16 %v16574_v24, %v16574_v24 }
 0xff6   : > { %v11012_v34 = vpack.c.bf16 %v9741_v14, %v9740_v47  ;;  %v11006_v21 = vpack.c.bf16 %v16572_v3, %v9779_v59  ;;  %v11009_v57 = vpack.c.bf16 %v16570_v50, %v16570_v50  ;;  %v11008_v15 = vpack.c.bf16 %v16562_v45, %v9782_v62 }
 0xff7   : > { %v9649_v55 = vmul.f32 %v17841_v10, %v16574_v24  ;;  %v9647_v7 = vmul.f32 %v17842_v16, %v9779_v59  ;;  %v9648_v31 = vmul.f32 %v16572_v3, %v17843_v30  ;;  %v9652_v12 = vmul.f32 %v17841_v10, %v16570_v50 }
 0xff8   : > { %9927 = vrot.lane.b32.xlu1 %v11027_v32, %s11708_s22  ;;  %v9650_v48 = vmul.f32 %v17842_v16, %v9782_v62  ;;  %v9651_v49 = vmul.f32 %v16562_v45, %v17843_v30  ;;  %v9989_v13 = vmul.f32 %v17845_v20, %v16572_v3  ;;  %v9990_v33 = vmul.f32 %v16574_v24, %v17846_v25 }
 0xff9   : > { %9925 = vrot.lane.b32.xlu0 %v11026_v37, %s11708_s22  ;;  %v11003_v11 = vpack.c.bf16 %v9649_v55, %v9649_v55  ;;  %v11002_v32 = vpack.c.bf16 %v9648_v31, %v9647_v7  ;;  %v11005_v58 = vpack.c.bf16 %v9652_v12, %v9652_v12  ;;  %v17844_v37 = vld [vmem:[#allocation26_spill] sm:$0xff]  ;;  %v9993_v59 = vmul.f32 %v16570_v50, %v17846_v25 }
 0xffa   : > { %v9991_v22 = vmul.f32 %v17844_v37, %v16560_v44  ;;  %v11004_v19 = vpack.c.bf16 %v9651_v49, %v9650_v48  ;;  %v11032_v38 = vpack.c.bf16 %v9990_v33, %v9989_v13  ;;  %v9992_v44 = vmul.f32 %v17845_v20, %v16562_v45 }
 0xffc   : > { %9875 = vrot.lane.b32.xlu1 %v11021_v35, %s11709_s3  ;;  %v11033_v35 = vpack.c.bf16 %v9991_v22, %v9991_v22  ;;  %v11034_v4 = vpack.c.bf16 %v9993_v59, %v9992_v44 }
 0xffd   : > { %9873 = vrot.lane.b32.xlu0 %v11020_v36, %s11709_s3  ;;  %v9994_v36 = vmul.f32 %v17844_v37, %v16558_v46  ;;  %v11715_v46 = vmov 0  }
 0xffe   : > { %11504 = vset.pattern.permute.xlu0 %v11715_v46  ;;  %11505 = vset.pattern.permute.xlu1 %v11715_v46 }
 0xfff   : > { %v11035_v41 = vpack.c.bf16 %v9994_v36, %v9994_v36 }
0x1000   : > { %9879 = vrot.lane.b32.xlu1 %v11023_v43, %s11709_s3  ;;  %v11508_v43 = vld [vmem:[%s17847_s28 + $0x4] ss:$8 sps:$4 sm:$0x3f]  }
0x1001   : > { %9877 = vrot.lane.b32.xlu0 %v11022_v29, %s11709_s3  ;;  %10818 = vmatprep.mubr.msk.bf16.mxu0 %vm1647_vm11, %v11508_v43 }
0x1004   : > { %9809 = vrot.lane.b32.xlu1 %v11015_v42, %s11710_s4 }
0x1005   : > { %9807 = vrot.lane.b32.xlu0 %v11014_v9, %s11710_s4 }
0x1008   : > { %9813 = vrot.lane.b32.xlu1 %v11017_v17, %s11710_s4 }
0x1009   : > { %9811 = vrot.lane.b32.xlu0 %v11016_v18, %s11710_s4 }
0x100c   : > { %9761 = vrot.lane.b32.xlu1 %v11011_v1, %s11711_s25 }
0x100d   : > { %9759 = vrot.lane.b32.xlu0 %v11010_v8, %s11711_s25 }
0x1010   : > { %9765 = vrot.lane.b32.xlu1 %v11013_v26, %s11711_s25 }
0x1011   : > { %9763 = vrot.lane.b32.xlu0 %v11012_v34, %s11711_s25 }
0x1014   : > { %9713 = vrot.lane.b32.xlu1 %v11007_v2, %s11712_s10 }
0x1015   : > { %9711 = vrot.lane.b32.xlu0 %v11006_v21, %s11712_s10 }
0x1018   : > { %9717 = vrot.lane.b32.xlu1 %v11009_v57, %s11712_s10 }
0x1019   : > { %9715 = vrot.lane.b32.xlu0 %v11008_v15, %s11712_s10 }
0x101c   : > { %9671 = vrot.lane.b32.xlu1 %v11003_v11, %s11713_s16 }
0x101d   : > { %9669 = vrot.lane.b32.xlu0 %v11002_v32, %s11713_s16 }
0x1020   : > { %9675 = vrot.lane.b32.xlu1 %v11005_v58, %s11713_s16 }
0x1021   : > { %9673 = vrot.lane.b32.xlu0 %v11004_v19, %s11713_s16 }
0x1024   : > { %10013 = vrot.lane.b32.xlu1 %v11033_v35, %s11714_s26 }
0x1025   : > { %10011 = vrot.lane.b32.xlu0 %v11032_v38, %s11714_s26 }
0x1028   : > { %10017 = vrot.lane.b32.xlu1 %v11035_v41, %s11714_s26 }
0x1029   : > { %10015 = vrot.lane.b32.xlu0 %v11034_v4, %s11714_s26 }
0x102c   : > { %10056 = vperm.xlu1 %11505, %v9640_v61  }
0x102d   : > { %10051 = vperm.xlu0 %11504, %v9639_v54  }
0x105e   : > { %v9970_v29 = vpop.permute.xlu1 %9969 }
0x105f   : > { %v9966_v5 = vpop.permute.xlu0 %9965  ;;  %v9974_v6 = vrot.slane %v9970_v29, 4 }
0x1060   : > { %v9972_v42 = vrot.slane %v9966_v5, 4 }
0x1062   : > { %v9924_v23 = vpop.permute.xlu1 %9923 }
0x1063   : > { %v9964_v62 = vpop.permute.xlu0 %9963  ;;  %v9930_v40 = vrot.slane %v9924_v23, 4 }
0x1064   : > { %v9971_v60 = vrot.slane %v9964_v62, 4 }
0x1066   : > { %v9975_v9 = vsel %vm1602_vm4, %v9971_v60, %v9972_v42  ;;  %v9968_v63 = vpop.permute.xlu1 %9967 }
0x1067   : > { %v9976_v52 = vsel %vm1942_vm5, %v9964_v62, %v9975_v9  ;;  %v9922_v28 = vpop.permute.xlu0 %9921  ;;  %v9973_v39 = vrot.slane %v9968_v63, 4 }
0x1068   : > { %v9929_v17 = vrot.slane %v9922_v28, 4 }
0x1069   : > { %v9977_v18 = vsel %vm1602_vm4, %v9973_v39, %v9974_v6 }
0x106a   : > { %v9933_v27 = vsel %vm1602_vm4, %v9929_v17, %v9930_v40  ;;  %v9978_v53 = vsel %vm1942_vm5, %v9968_v63, %v9977_v18  ;;  %v9928_v47 = vpop.permute.xlu1 %9927 }
0x106b   : > { %v9934_v0 = vsel %vm1667_vm8, %v9922_v28, %v9933_v27  ;;  %v9926_v1 = vpop.permute.xlu0 %9925  ;;  %v9932_v8 = vrot.slane %v9928_v47, 4  ;;  %v10815_v26 = vcombine.high %v9976_v52, %v9978_v53  ;;  %v10814_v34 = vcombine.low %v9976_v52, %v9978_v53 }
0x106c   : > { %v9931_v14 = vrot.slane %v9926_v1, 4 }
0x106d   : > { %10161 = vmatprep.subr.bf16.mxu0 %v10815_v26 }
0x106e   : > { %v9935_v2 = vsel %vm1602_vm4, %v9931_v14, %v9932_v8  ;;  %v9876_v57 = vpop.permute.xlu1 %9875  ;;  %10162 = vmatpush1.bf16.msra.mxu0 %v10814_v34 }
0x106f   : > { %v9936_v21 = vsel %vm1667_vm8, %v9926_v1, %v9935_v2  ;;  %v9874_v15 = vpop.permute.xlu0 %9873  ;;  %v9882_v10 = vrot.slane %v9876_v57, 4 }
0x1070   : > { %v9881_v55 = vrot.slane %v9874_v15, 4  ;;  %v10813_v16 = vcombine.high %v9934_v0, %v9936_v21  ;;  %v10812_v7 = vcombine.low %v9934_v0, %v9936_v21 }
0x1072   : > { %v9885_v30 = vsel %vm1602_vm4, %v9881_v55, %v9882_v10  ;;  %10163 = vmatprep.subr.bf16.mxu0 %v10813_v16  ;;  %v9880_v12 = vpop.permute.xlu1 %9879 }
0x1073   : > { %v9886_v31 = vsel %vm1725_vm7, %v9874_v15, %v9885_v30  ;;  %v9878_v48 = vpop.permute.xlu0 %9877  ;;  %10164 = vmatpush1.bf16.msra.mxu0 %v10812_v7  ;;  %v9884_v11 = vrot.slane %v9880_v12, 4 }
0x1074   : > { %v9883_v32 = vrot.slane %v9878_v48, 4 }
0x1076   : > { %v9887_v49 = vsel %vm1602_vm4, %v9883_v32, %v9884_v11  ;;  %v9810_v37 = vpop.permute.xlu1 %9809 }
0x1077   : > { %v9888_v58 = vsel %vm1725_vm7, %v9878_v48, %v9887_v49  ;;  %v9808_v22 = vpop.permute.xlu0 %9807  ;;  %v9816_v19 = vrot.slane %v9810_v37, 4 }
0x1078   : > { %v9815_v20 = vrot.slane %v9808_v22, 4  ;;  %v10811_v13 = vcombine.high %v9886_v31, %v9888_v58  ;;  %v10810_v25 = vcombine.low %v9886_v31, %v9888_v58 }
0x107a   : > { %v9819_v33 = vsel %vm1602_vm4, %v9815_v20, %v9816_v19  ;;  %10165 = vmatprep.subr.bf16.mxu0 %v10811_v13  ;;  %v9814_v36 = vpop.permute.xlu1 %9813 }
0x107b   : > { %v9820_v35 = vsel %vm1765_vm6, %v9808_v22, %v9819_v33  ;;  %v9812_v38 = vpop.permute.xlu0 %9811  ;;  %10166 = vmatpush1.bf16.msra.mxu0 %v10810_v25  ;;  %v9818_v44 = vrot.slane %v9814_v36, 4  ;;  %v11506_v36 = vld [vmem:[%s17848_s20] ss:$8 sps:$4 sm:$0x3f]  }
0x107c   : > { %v9817_v59 = vrot.slane %v9812_v38, 4  ;;  %10167 = vmatprep.subr.bf16.mxu0 %v11515_v56 }
0x107e   : > { %v9821_v43 = vsel %vm1602_vm4, %v9817_v59, %v9818_v44  ;;  %v9762_v4 = vpop.permute.xlu1 %9761  ;;  %v10205_v44 = vld [vmem:[%s11851_s21 + $0x8] sm:$0xff]  ;;  %v17850_v59 = vld [vmem:[#allocation109_spill] sm:$0xff] }
0x107f   : > { %v9822_v41 = vsel %vm1765_vm6, %v9812_v38, %v9821_v43  ;;  %v9760_v46 = vpop.permute.xlu0 %9759  ;;  %10168 = vmatpush1.bf16.msra.mxu0 %v11516_v51  ;;  %v9768_v54 = vrot.slane %v9762_v4, 4  ;;  %v10204_v38 = vld [vmem:[%s11851_s21] sm:$0xff] }
0x1080   : > { %v9767_v61 = vrot.slane %v9760_v46, 4  ;;  %v10807_v29 = vcombine.high %v9820_v35, %v9822_v41  ;;  %v10806_v5 = vcombine.low %v9820_v35, %v9822_v41  ;;  %v10209_v43 = vrot.slane %v10204_v38, %v17850_v59  ;;  %v17851_v41 = vld [vmem:[#allocation112_spill] sm:$0xff] }
0x1081   : > { %v10217_v4 = vrot.slane %v10204_v38, %v17851_v41 }
0x1082   : > { %v9771_v23 = vsel %vm1602_vm4, %v9767_v61, %v9768_v54  ;;  %10169 = vmatprep.subr.bf16.mxu0 %v10807_v29  ;;  %v9766_v24 = vpop.permute.xlu1 %9765  ;;  %v10213_v54 = vrot.slane %v10205_v44, %v17850_v59  ;;  %v10221_v61 = vrot.slane %v10205_v44, %v17851_v41 }
0x1083   : > { %v9772_v50 = vsel %vm1707_vm3, %v9760_v46, %v9771_v23  ;;  %v9764_v56 = vpop.permute.xlu0 %9763  ;;  %10170 = vmatpush1.bf16.msra.mxu0 %v10806_v5  ;;  %v9770_v62 = vrot.slane %v9766_v24, 4  ;;  %v10230_v5 = vsel %vm1602_vm4, %v10209_v43, %v10217_v4 }
0x1084   : > { %v9769_v42 = vrot.slane %v9764_v56, 4  ;;  %v10231_v24 = vsel %vm1602_vm4, %v10213_v54, %v10221_v61 }
0x1086   : > { %v9773_v60 = vsel %vm1602_vm4, %v9769_v42, %v9770_v62  ;;  %v9714_v45 = vpop.permute.xlu1 %9713 }
0x1087   : > { %v9774_v9 = vsel %vm1707_vm3, %v9764_v56, %v9773_v60  ;;  %v9712_v3 = vpop.permute.xlu0 %9711  ;;  %v9720_v51 = vrot.slane %v9714_v45, 4  ;;  %v17852_v60 = vld [vmem:[#allocation115_spill] sm:$0xff] }
0x1088   : > { %v9719_v63 = vrot.slane %v9712_v3, 4  ;;  %v10805_v52 = vcombine.high %v9772_v50, %v9774_v9  ;;  %v10804_v28 = vcombine.low %v9772_v50, %v9774_v9  ;;  %v10225_v9 = vrot.slane %v10204_v38, %v17852_v60 }
0x108a   : > { %v9723_v6 = vsel %vm1602_vm4, %v9719_v63, %v9720_v51  ;;  %10171 = vmatprep.subr.bf16.mxu0 %v10805_v52  ;;  %v9718_v39 = vpop.permute.xlu1 %9717  ;;  %v10229_v63 = vrot.slane %v10205_v44, %v17852_v60 }
0x108b   : > { %v9724_v40 = vsel %vm1647_vm11, %v9712_v3, %v9723_v6  ;;  %v9716_v17 = vpop.permute.xlu0 %9715  ;;  %10172 = vmatpush1.bf16.msra.mxu0 %v10804_v28  ;;  %v9722_v18 = vrot.slane %v9718_v39, 4 }
0x108c   : > { %v9721_v27 = vrot.slane %v9716_v17, 4 }
0x108e   : > { %v9725_v53 = vsel %vm1602_vm4, %v9721_v27, %v9722_v18  ;;  %v9672_v47 = vpop.permute.xlu1 %9671 }
0x108f   : > { %v9726_v0 = vsel %vm1647_vm11, %v9716_v17, %v9725_v53  ;;  %v9670_v1 = vpop.permute.xlu0 %9669  ;;  %v9678_v8 = vrot.slane %v9672_v47, 4 }
0x1090   : > { %v9677_v14 = vrot.slane %v9670_v1, 4  ;;  %v10803_v26 = vcombine.high %v9724_v40, %v9726_v0  ;;  %v10802_v34 = vcombine.low %v9724_v40, %v9726_v0 }
0x1092   : > { %v9681_v2 = vsel %vm1602_vm4, %v9677_v14, %v9678_v8  ;;  %10173 = vmatprep.subr.bf16.mxu0 %v10803_v26  ;;  %v9676_v57 = vpop.permute.xlu1 %9675 }
0x1093   : > { %v9682_v21 = vsel %vm1604_vm10, %v9670_v1, %v9681_v2  ;;  %v9674_v15 = vpop.permute.xlu0 %9673  ;;  %10174 = vmatpush1.bf16.msra.mxu0 %v10802_v34  ;;  %v9680_v10 = vrot.slane %v9676_v57, 4 }
0x1094   : > { %v9679_v55 = vrot.slane %v9674_v15, 4 }
0x1096   : > { %v9683_v16 = vsel %vm1602_vm4, %v9679_v55, %v9680_v10  ;;  %v10014_v30 = vpop.permute.xlu1 %10013 }
0x1097   : > { %v9684_v7 = vsel %vm1604_vm10, %v9674_v15, %v9683_v16  ;;  %v10012_v31 = vpop.permute.xlu0 %10011  ;;  %v10020_v12 = vrot.slane %v10014_v30, 4 }
0x1098   : > { %v10019_v48 = vrot.slane %v10012_v31, 4  ;;  %v10801_v11 = vcombine.high %v9682_v21, %v9684_v7  ;;  %v10800_v32 = vcombine.low %v9682_v21, %v9684_v7 }
0x109a   : > { %v10023_v49 = vsel %vm1602_vm4, %v10019_v48, %v10020_v12  ;;  %10175 = vmatprep.subr.bf16.mxu0 %v10801_v11  ;;  %v10018_v37 = vpop.permute.xlu1 %10017 }
0x109b   : > { %v10024_v58 = vsel %vm1563_vm9, %v10012_v31, %v10023_v49  ;;  %v10016_v22 = vpop.permute.xlu0 %10015  ;;  %10176 = vmatpush1.bf16.msra.mxu0 %v10800_v32  ;;  %v10022_v19 = vrot.slane %v10018_v37, 4 }
0x109c   : > { %10029 = vst [vmem:[#allocation7 + $0x88] sm:$0xff] %v10024_v58  ;;  %v10021_v20 = vrot.slane %v10016_v22, 4 }
0x109e   : > { %v10025_v13 = vsel %vm1602_vm4, %v10021_v20, %v10022_v19 }
0x109f   : > { %v10026_v25 = vsel %vm1563_vm9, %v10016_v22, %v10025_v13 }
0x10a0   : > { %10030 = vst [vmem:[#allocation7 + $0x70] sm:$0xff] %v10026_v25  ;;  %v10817_v33 = vcombine.high %v10024_v58, %v10026_v25  ;;  %v10816_v35 = vcombine.low %v10024_v58, %v10026_v25 }
0x10a2   : > { %10191 = vmatprep.subr.bf16.mxu0 %v10817_v33 }
0x10a3   : > { %10192 = vmatpush2.bf16.msra.mxu0 %v10816_v35 }
0x10a6   : > { %10194 = vmatmul.mubr.bf16.vlgmr.msra.gmra.mxu0 %v11506_v36 }
0x10a7   : > { %v10057_v56 = vpop.permute.xlu1 %10056 }
0x10a8   : > { %v10052_v46 = vpop.permute.xlu0 %10051 }
0x1166   : > { %v10195_v29 = vpop.f32.mrf.mxu0 }
0x1167   : > { %v10196_v23 = vadd.f32 %v10195_v29, %v10052_v46 }
0x1168   : > { %v10197_v50 = vpop.f32.mrf.mxu0 }
0x1169   : > { %v10232_v62 = vadd.f32 %v10230_v5, %v10196_v23  ;;  %v10198_v42 = vadd.f32 %v10197_v50, %v10052_v46 }
0x116a   : > { %v10199_v45 = vpop.f32.mrf.mxu0 }
0x116b   : > { %10236 = vst [vmem:[%s11939_s7] sm:$0xff] %v10232_v62  ;;  %v10233_v3 = vadd.f32 %v10231_v24, %v10198_v42  ;;  %v10200_v51 = vadd.f32 %v10199_v45, %v10057_v56 }
0x116c   : > { %v10201_v52 = vpop.f32.mrf.mxu0 }
0x116d   : > { %10237 = vst [vmem:[%s11939_s7 + $0x8] sm:$0xff] %v10233_v3  ;;  %v10234_v28 = vadd.f32 %v10225_v9, %v10200_v51  ;;  %v10202_v6 = vadd.f32 %v10201_v52, %v10057_v56 }
0x116f   : > { %10238 = vst [vmem:[%s11939_s7 + $0x10] sm:$0xf] %v10234_v28  ;;  %v10235_v40 = vadd.f32 %v10229_v63, %v10202_v6 }
0x1171   : > { %10239 = vst [vmem:[%s11939_s7 + $0x18] sm:$0xf] %v10235_v40 }
0x1172 PF: > { %s17853_s21 = sld [smem:[#allocation10_spill]] }
0x1173   : > { %s17854_s24 = sld [smem:[#allocation8_spill]] }
0x1174   : > { %s17855_s25 = sld [smem:[#allocation9_spill]] }
0x1175   : > { %s17856_s26 = sld [smem:[#allocation11_spill]] }
0x1176   : > { %s17857_s27 = sld [smem:[#allocation12_spill]] }
0x1178   : > { %s27_s28 = sadd.s32 1, %s17853_s21  }
0x1179   : > { %p24_p9 = scmp.ge.s32.totalorder %s27_s28, 6  }
0x117b   :  { %26 = sbr.rel (!%p24_p9) target bundleno = 13 (0xd), region = 162 }

</bundles_post_ra>
